<compile_context>
chip_gen: v7x
topology: tpu7x:2x2x1
jax: 0.10.0
libtpu: 0.0.40
codegen_flags: <defaults>
</compile_context>

<pallas_src>
import functools

import jax
import jax.numpy as jnp
from jax.experimental import pallas as pl
from jax.experimental.pallas import tpu as pltpu

PH = 12            # padded spatial extent (10 + 2)
P = PH * PH        # 144 flattened padded positions
FEATURES = 64      # DnCNN hidden channel count
RING_NEG = -1e30   # pre-ReLU bias on padding-ring rows -> ReLU forces them to 0


# ---------------------------------------------------------------------------
# Fused conv/BN/ReLU stack: one kernel, layer loop inside, grid over batch.
# ---------------------------------------------------------------------------
def _conv_stack_kernel(x_ref, w_ref, b_ref, o_ref):
    # x_ref: (B_tile, 144, 64)  zero-padded flattened NHWC input tile
    # w_ref: (L*9, 64, 64)      per-layer 3x3 taps (BN scale pre-folded);
    #                           tap k of layer l lives at row l*9 + k
    # b_ref: (L, 144, 64)       per-layer bias: BN shift on interior rows,
    #                           -1e30 on the padding ring (ReLU -> 0)
    # o_ref: (B_tile, 144, 64)  carried activation / output tile
    bt, p, c = o_ref.shape
    nrows = bt * p
    num_layers = b_ref.shape[0]

    o_ref[...] = x_ref[...]                      # seed the carried activation

    def layer_body(l, carry):
        a = o_ref[...].reshape(nrows, c)         # (B_tile*144, 64)
        # 3x3 conv as 9 accumulated matmuls on row-shifted views.  Interior
        # output rows never read wrapped rows (|d| <= 13, interior flat
        # offsets in [13, 130] of each 144-row element); ring rows may, but
        # they are forced to zero by the -1e30 bias + ReLU below.
        acc = None
        for k in range(9):
            ky, kx = k // 3, k % 3
            d = (ky - 1) * PH + (kx - 1)         # source row offset of tap k
            a_k = a if d == 0 else pltpu.roll(a, (-d) % nrows, 0)
            t = jnp.dot(a_k, w_ref[l * 9 + k],
                        preferred_element_type=jnp.float32)
            acc = t if acc is None else acc + t
        y = acc.reshape(bt, p, c) + b_ref[l][None]
        o_ref[...] = jnp.maximum(y, 0.0)         # ReLU (also zeroes the ring)
        return carry

    jax.lax.fori_loop(0, num_layers, layer_body, 0)


def conv_stack(x_pad, w_stack, bias_stack, b_tile):
    n_pad, p, c = x_pad.shape
    l9 = w_stack.shape[0]
    num_layers = bias_stack.shape[0]
    assert n_pad % b_tile == 0
    return pl.pallas_call(
        _conv_stack_kernel,
        out_shape=jax.ShapeDtypeStruct((n_pad, p, c), jnp.float32),
        grid=(n_pad // b_tile,),
        in_specs=[
            pl.BlockSpec((b_tile, p, c), lambda b: (b, 0, 0)),    # input tile
            pl.BlockSpec((l9, c, c), lambda b: (0, 0, 0)),        # weight stack (resident)
            pl.BlockSpec((num_layers, p, c), lambda b: (0, 0, 0)),# bias stack (resident)
        ],
        out_specs=pl.BlockSpec((b_tile, p, c), lambda b: (b, 0, 0)),
        compiler_params=pltpu.CompilerParams(
            dimension_semantics=("parallel",),
            vmem_limit_bytes=32 * 1024 * 1024),
    )(x_pad, w_stack, bias_stack)


# ---------------------------------------------------------------------------
# Fused Linear head: stream bf16 w1 over K, fuse the tiny w2 matmul into the
# last K step.  M is tiled so VMEM stays bounded for large batches.
# ---------------------------------------------------------------------------
def _head_kernel(x_ref, w1_ref, b1_ref, w2_ref, b2_ref, o_ref, acc_ref):
    k = pl.program_id(1)

    @pl.when(k == 0)
    def _():
        acc_ref[...] = jnp.zeros_like(acc_ref)

    # bf16 x bf16 MXU matmul with f32 accumulation (w1 streamed in bf16).
    acc_ref[...] += jnp.dot(x_ref[...].astype(jnp.bfloat16), w1_ref[...],
                            preferred_element_type=jnp.float32)

    @pl.when(k == pl.num_programs(1) - 1)
    def _():
        h = acc_ref[...] + b1_ref[...]                       # Linear 1 bias
        o_ref[...] = jnp.dot(h, w2_ref[...],
                             preferred_element_type=jnp.float32) + b2_ref[...]


def head(xf, w1, b1, w2, b2, tk=1280, tm_max=256):
    n, kdim = xf.shape
    m1 = w1.shape[1]
    m2 = w2.shape[1]

    # Stream the 41 MB first-layer weight as bf16 (HBM-BW bound kernel).
    w1 = w1.astype(jnp.bfloat16)

    # K tile: largest multiple of 128 (<= 2048) dividing kdim; last resort full K.
    if tk % 128 != 0 or kdim % tk != 0:
        cands = [d for d in range(128, min(kdim, 2048) + 1, 128) if kdim % d == 0]
        tk = max(cands) if cands else kdim

    # M tile: whole batch when small, else fixed 256-row tiles (bounds VMEM).
    if n <= tm_max:
        tm, n_pad = n, n
    else:
        tm = tm_max
        n_pad = pl.cdiv(n, tm) * tm
        xf = jnp.pad(xf, ((0, n_pad - n), (0, 0)))

    out = pl.pallas_call(
        _head_kernel,
        out_shape=jax.ShapeDtypeStruct((n_pad, m2), jnp.float32),
        grid=(n_pad // tm, kdim // tk),
        in_specs=[
            pl.BlockSpec((tm, tk), lambda m, k: (m, k)),
            pl.BlockSpec((tk, m1), lambda m, k: (k, 0)),
            pl.BlockSpec((1, m1), lambda m, k: (0, 0)),
            pl.BlockSpec((m1, m2), lambda m, k: (0, 0)),
            pl.BlockSpec((1, m2), lambda m, k: (0, 0)),
        ],
        out_specs=pl.BlockSpec((tm, m2), lambda m, k: (m, 0)),
        scratch_shapes=[pltpu.VMEM((tm, m1), jnp.float32)],
        compiler_params=pltpu.CompilerParams(
            dimension_semantics=("parallel", "arbitrary"),
            vmem_limit_bytes=32 * 1024 * 1024),
    )(xf, w1, b1, w2, b2)
    return out[:n]


# ---------------------------------------------------------------------------
# Parameters (deterministic synthetic values matching the module's shapes).
# ---------------------------------------------------------------------------
def init_params(key, channels, num_of_layers):
    eps = 1e-5
    keys = jax.random.split(key, 2 * num_of_layers + 4)
    ki = 0
    convs = []
    # First conv (no BN) — weight (3,3,Cin,64) stored as (9, Cin, 64).
    w0 = 0.1 * jax.random.normal(keys[ki], (9, channels, FEATURES), jnp.float32)
    ki += 1
    convs.append((w0,
                  jnp.ones((1, FEATURES), jnp.float32),
                  jnp.zeros((1, FEATURES), jnp.float32)))
    # Middle conv+BN layers (eval-mode BN fused into scale/shift).
    for _ in range(num_of_layers - 2):
        w = 0.05 * jax.random.normal(keys[ki], (9, FEATURES, FEATURES), jnp.float32)
        ki += 1
        k1, k2, k3, k4 = jax.random.split(keys[ki], 4)
        ki += 1
        gamma = 1.0 + 0.1 * jax.random.normal(k1, (FEATURES,), jnp.float32)
        beta = 0.1 * jax.random.normal(k2, (FEATURES,), jnp.float32)
        mean = 0.1 * jax.random.normal(k3, (FEATURES,), jnp.float32)
        var = 1.0 + 0.1 * jax.random.uniform(k4, (FEATURES,), jnp.float32)
        scale = gamma / jnp.sqrt(var + eps)
        shift = beta - mean * scale
        convs.append((w, scale.reshape(1, FEATURES), shift.reshape(1, FEATURES)))
    d1_in, d1_out, d2_out = FEATURES * 10 * 10, 16 * 10 * 10, 10 * 10
    w1 = jax.random.normal(keys[ki], (d1_in, d1_out), jnp.float32) / jnp.sqrt(d1_in)
    ki += 1
    b1 = 0.01 * jax.random.normal(keys[ki], (1, d1_out), jnp.float32)
    ki += 1
    w2 = jax.random.normal(keys[ki], (d1_out, d2_out), jnp.float32) / jnp.sqrt(d1_out)
    ki += 1
    b2 = 0.01 * jax.random.normal(keys[ki], (1, d2_out), jnp.float32)
    return {"convs": convs, "w1": w1, "b1": b1, "w2": w2, "b2": b2}


# ---------------------------------------------------------------------------
# Forward pass (matches DnCNNmod.forward semantics, eval-mode BN).
# ---------------------------------------------------------------------------
def dncnn_forward(x_nchw, params):
    n, c, hh, ww = x_nchw.shape
    assert hh == 10 and ww == 10, "Linear head requires 10x10 spatial input"
    assert c <= FEATURES

    # Interior mask of the flattened 12x12 padded grid (True on the 10x10 core).
    pos = jnp.arange(P)
    hq, wq = pos // PH, pos % PH
    interior = (hq >= 1) & (hq <= PH - 2) & (wq >= 1) & (wq <= PH - 2)
    interior_col = interior.reshape(P, 1)

    # Fold BN scale into the conv weights; build per-layer (144, 64) biases
    # carrying the BN shift on interior rows and -1e30 on the padding ring.
    ws, biases = [], []
    for (w, sc, sh) in params["convs"]:
        cin = w.shape[1]
        wf = w * sc.reshape(1, 1, FEATURES)                      # scale on cout
        if cin < FEATURES:
            wf = jnp.pad(wf, ((0, 0), (0, FEATURES - cin), (0, 0)))
        ws.append(wf)
        biases.append(jnp.where(interior_col, sh.reshape(1, FEATURES), RING_NEG))
    w_stack = jnp.concatenate(ws, axis=0)        # (L*9, 64, 64)
    bias_stack = jnp.stack(biases)               # (L, 144, 64)

    # NCHW -> padded flattened NHWC with channels zero-padded to 64.
    x = jnp.transpose(x_nchw, (0, 2, 3, 1))                       # (N,10,10,C)
    x = jnp.pad(x, ((0, 0), (1, 1), (1, 1), (0, FEATURES - c)))   # (N,12,12,64)
    x = x.reshape(n, P, FEATURES)                                 # (N,144,64)

    # Batch tiling: keep >= 2 batch tiles when possible (v7x megacore) while
    # amortizing grid-step overhead for larger batches.
    if n >= 64:
        b_tile = 16
    elif n >= 16:
        b_tile = 8
    else:
        b_tile = max(1, n // 2)
    n_pad = pl.cdiv(n, b_tile) * b_tile
    if n_pad != n:
        x = jnp.pad(x, ((0, n_pad - n), (0, 0), (0, 0)))

    y = conv_stack(x, w_stack, bias_stack, b_tile)
    y = y[:n].reshape(n, PH, PH, FEATURES)[:, 1:PH - 1, 1:PH - 1, :]  # (N,10,10,64)
    # nn.Flatten(start_dim=1) on NCHW flattens in (C, H, W) order.
    y = jnp.transpose(y, (0, 3, 1, 2)).reshape(n, FEATURES * 100)

    out = head(y, params["w1"], params["b1"], params["w2"], params["b2"])
    return out.reshape(n, 1, 10, 10)       # nn.Unflatten(1, (-1, 10, 10))


# Pure-JAX reference (same math, XLA ops) used only for a correctness check.
def dncnn_reference(x_nchw, params):
    n, c, hh, ww = x_nchw.shape
    hi = jax.lax.Precision.HIGHEST
    x = jnp.transpose(x_nchw, (0, 2, 3, 1))
    for (w, scale, shift) in params["convs"]:
        cin = w.shape[1]
        k = w.reshape(3, 3, cin, FEATURES)
        x = jax.lax.conv_general_dilated(
            x, k, window_strides=(1, 1), padding="SAME",
            dimension_numbers=("NHWC", "HWIO", "NHWC"), precision=hi)
        x = x * scale.reshape(1, 1, 1, FEATURES) + shift.reshape(1, 1, 1, FEATURES)
        x = jnp.maximum(x, 0.0)
    xf = jnp.transpose(x, (0, 3, 1, 2)).reshape(n, FEATURES * hh * ww)
    h = jnp.dot(xf, params["w1"], precision=hi) + params["b1"]
    o = jnp.dot(h, params["w2"], precision=hi) + params["b2"]
    return o.reshape(n, 1, hh, ww)


if __name__ == "__main__":
    channels = 3
    num_of_layers = 5   # small instance of DnCNNmod(channels, num_of_layers)
    key = jax.random.PRNGKey(0)
    pkey, xkey = jax.random.split(key)
    params = init_params(pkey, channels, num_of_layers)
    x = jax.random.normal(xkey, (2, channels, 10, 10), jnp.float32)

    fwd = jax.jit(functools.partial(dncnn_forward, params=params))
    out = jax.block_until_ready(fwd(x))

    assert out.shape == (2, 1, 10, 10), out.shape
    assert bool(jnp.all(jnp.isfinite(out)))

    ref = jax.block_until_ready(
        jax.jit(functools.partial(dncnn_reference, params=params))(x))
    err = float(jnp.max(jnp.abs(out - ref)))
    tol = 2e-2 * max(1.0, float(jnp.max(jnp.abs(ref))))
    assert err <= tol, (err, tol)

    print("KERNEL_OK")
</pallas_src>

<mosaic_0001>
module attributes {stable_mosaic.version = 11 : i64} {
  func.func @_conv_stack_kernel(%arg0: i32, %arg1: memref<1x144x64xf32, #tpu.memory_space<vmem>>, %arg2: memref<36x64x64xf32, #tpu.memory_space<vmem>>, %arg3: memref<4x144x64xf32, #tpu.memory_space<vmem>>, %arg4: memref<1x144x64xf32, #tpu.memory_space<vmem>>) attributes {dimension_semantics = [#tpu.dimension_semantics<parallel>], iteration_bounds = array<i64: 2>, scalar_prefetch = 0 : i64, scratch_operands = 0 : i64, tpu.core_type = #tpu.core_type<tc>, window_params = [{transform_indices = @transform_0, window_bounds = array<i64: 1, 144, 64>}, {pipeline_mode = #tpu.pipeline_mode<synchronous>, transform_indices = @transform_1, window_bounds = array<i64: 36, 64, 64>}, {pipeline_mode = #tpu.pipeline_mode<synchronous>, transform_indices = @transform_2, window_bounds = array<i64: 4, 144, 64>}, {transform_indices = @transform_3, window_bounds = array<i64: 1, 144, 64>}]} {
    %c0 = arith.constant 0 : index
    %c0_0 = arith.constant 0 : index
    %c0_1 = arith.constant 0 : index
    %0 = vector.load %arg1[%c0, %c0_0, %c0_1] : memref<1x144x64xf32, #tpu.memory_space<vmem>>, vector<1x144x64xf32>
    %c0_2 = arith.constant 0 : index
    %c0_3 = arith.constant 0 : index
    %c0_4 = arith.constant 0 : index
    %1 = vector.load %arg4[%c0_2, %c0_3, %c0_4] : memref<1x144x64xf32, #tpu.memory_space<vmem>>, vector<1x144x64xf32>
    tpu.vector_store %arg4[%c0_2, %c0_3, %c0_4], %0 {strides = array<i32>} : memref<1x144x64xf32, #tpu.memory_space<vmem>>, vector<1x144x64xf32>,
    %c0_i32 = arith.constant 0 : i32
    %c4_i32 = arith.constant 4 : i32
    %2 = arith.addi %c0_i32, %c4_i32 : i32
    %c1_i32 = arith.constant 1 : i32
    scf.for %arg5 = %c0_i32 to %2 step %c1_i32  : i32 {
      %c0_6 = arith.constant 0 : index
      %c0_7 = arith.constant 0 : index
      %c0_8 = arith.constant 0 : index
      %3 = vector.load %arg4[%c0_6, %c0_7, %c0_8] : memref<1x144x64xf32, #tpu.memory_space<vmem>>, vector<1x144x64xf32>
      %4 = vector.shape_cast %3 : vector<1x144x64xf32> to vector<144x64xf32>
      %c13_i32 = arith.constant 13 : i32
      %5 = tpu.dynamic_rotate %4 by %c13_i32 dim 0 : vector<144x64xf32>, i32 -> vector<144x64xf32>
      %c9_i32 = arith.constant 9 : i32
      %6 = arith.muli %arg5, %c9_i32 : i32
      %c0_i32_9 = arith.constant 0 : i32
      %7 = arith.addi %6, %c0_i32_9 : i32
      %8 = arith.index_cast %7 : i32 to index
      %c0_10 = arith.constant 0 : index
      %c0_11 = arith.constant 0 : index
      %9 = vector.load %arg2[%8, %c0_10, %c0_11] : memref<36x64x64xf32, #tpu.memory_space<vmem>>, vector<1x64x64xf32>
      %10 = vector.shape_cast %9 : vector<1x64x64xf32> to vector<64x64xf32>
      %cst = arith.constant dense<0.000000e+00> : vector<144x64xf32>
      %11 = tpu.matmul %5, %10, %cst {dimension_numbers = #tpu.dot_dimension_numbers<[1], [0], [0], [1], [0, 0, 1, 1], [], []>} : vector<144x64xf32>, vector<64x64xf32>, vector<144x64xf32> -> vector<144x64xf32>
      %c12_i32 = arith.constant 12 : i32
      %12 = tpu.dynamic_rotate %4 by %c12_i32 dim 0 : vector<144x64xf32>, i32 -> vector<144x64xf32>
      %c9_i32_12 = arith.constant 9 : i32
      %13 = arith.muli %arg5, %c9_i32_12 : i32
      %c1_i32_13 = arith.constant 1 : i32
      %14 = arith.addi %13, %c1_i32_13 : i32
      %15 = arith.index_cast %14 : i32 to index
      %c0_14 = arith.constant 0 : index
      %c0_15 = arith.constant 0 : index
      %16 = vector.load %arg2[%15, %c0_14, %c0_15] : memref<36x64x64xf32, #tpu.memory_space<vmem>>, vector<1x64x64xf32>
      %17 = vector.shape_cast %16 : vector<1x64x64xf32> to vector<64x64xf32>
      %cst_16 = arith.constant dense<0.000000e+00> : vector<144x64xf32>
      %18 = tpu.matmul %12, %17, %cst_16 {dimension_numbers = #tpu.dot_dimension_numbers<[1], [0], [0], [1], [0, 0, 1, 1], [], []>} : vector<144x64xf32>, vector<64x64xf32>, vector<144x64xf32> -> vector<144x64xf32>
      %19 = arith.addf %11, %18 : vector<144x64xf32>
      %c11_i32 = arith.constant 11 : i32
      %20 = tpu.dynamic_rotate %4 by %c11_i32 dim 0 : vector<144x64xf32>, i32 -> vector<144x64xf32>
      %c9_i32_17 = arith.constant 9 : i32
      %21 = arith.muli %arg5, %c9_i32_17 : i32
      %c2_i32 = arith.constant 2 : i32
      %22 = arith.addi %21, %c2_i32 : i32
      %23 = arith.index_cast %22 : i32 to index
      %c0_18 = arith.constant 0 : index
      %c0_19 = arith.constant 0 : index
      %24 = vector.load %arg2[%23, %c0_18, %c0_19] : memref<36x64x64xf32, #tpu.memory_space<vmem>>, vector<1x64x64xf32>
      %25 = vector.shape_cast %24 : vector<1x64x64xf32> to vector<64x64xf32>
      %cst_20 = arith.constant dense<0.000000e+00> : vector<144x64xf32>
      %26 = tpu.matmul %20, %25, %cst_20 {dimension_numbers = #tpu.dot_dimension_numbers<[1], [0], [0], [1], [0, 0, 1, 1], [], []>} : vector<144x64xf32>, vector<64x64xf32>, vector<144x64xf32> -> vector<144x64xf32>
      %27 = arith.addf %19, %26 : vector<144x64xf32>
      %c1_i32_21 = arith.constant 1 : i32
      %28 = tpu.dynamic_rotate %4 by %c1_i32_21 dim 0 : vector<144x64xf32>, i32 -> vector<144x64xf32>
      %c9_i32_22 = arith.constant 9 : i32
      %29 = arith.muli %arg5, %c9_i32_22 : i32
      %c3_i32 = arith.constant 3 : i32
      %30 = arith.addi %29, %c3_i32 : i32
      %31 = arith.index_cast %30 : i32 to index
      %c0_23 = arith.constant 0 : index
      %c0_24 = arith.constant 0 : index
      %32 = vector.load %arg2[%31, %c0_23, %c0_24] : memref<36x64x64xf32, #tpu.memory_space<vmem>>, vector<1x64x64xf32>
      %33 = vector.shape_cast %32 : vector<1x64x64xf32> to vector<64x64xf32>
      %cst_25 = arith.constant dense<0.000000e+00> : vector<144x64xf32>
      %34 = tpu.matmul %28, %33, %cst_25 {dimension_numbers = #tpu.dot_dimension_numbers<[1], [0], [0], [1], [0, 0, 1, 1], [], []>} : vector<144x64xf32>, vector<64x64xf32>, vector<144x64xf32> -> vector<144x64xf32>
      %35 = arith.addf %27, %34 : vector<144x64xf32>
      %c9_i32_26 = arith.constant 9 : i32
      %36 = arith.muli %arg5, %c9_i32_26 : i32
      %c4_i32_27 = arith.constant 4 : i32
      %37 = arith.addi %36, %c4_i32_27 : i32
      %38 = arith.index_cast %37 : i32 to index
      %c0_28 = arith.constant 0 : index
      %c0_29 = arith.constant 0 : index
      %39 = vector.load %arg2[%38, %c0_28, %c0_29] : memref<36x64x64xf32, #tpu.memory_space<vmem>>, vector<1x64x64xf32>
      %40 = vector.shape_cast %39 : vector<1x64x64xf32> to vector<64x64xf32>
      %cst_30 = arith.constant dense<0.000000e+00> : vector<144x64xf32>
      %41 = tpu.matmul %4, %40, %cst_30 {dimension_numbers = #tpu.dot_dimension_numbers<[1], [0], [0], [1], [0, 0, 1, 1], [], []>} : vector<144x64xf32>, vector<64x64xf32>, vector<144x64xf32> -> vector<144x64xf32>
      %42 = arith.addf %35, %41 : vector<144x64xf32>
      %c143_i32 = arith.constant 143 : i32
      %43 = tpu.dynamic_rotate %4 by %c143_i32 dim 0 : vector<144x64xf32>, i32 -> vector<144x64xf32>
      %c9_i32_31 = arith.constant 9 : i32
      %44 = arith.muli %arg5, %c9_i32_31 : i32
      %c5_i32 = arith.constant 5 : i32
      %45 = arith.addi %44, %c5_i32 : i32
      %46 = arith.index_cast %45 : i32 to index
      %c0_32 = arith.constant 0 : index
      %c0_33 = arith.constant 0 : index
      %47 = vector.load %arg2[%46, %c0_32, %c0_33] : memref<36x64x64xf32, #tpu.memory_space<vmem>>, vector<1x64x64xf32>
      %48 = vector.shape_cast %47 : vector<1x64x64xf32> to vector<64x64xf32>
      %cst_34 = arith.constant dense<0.000000e+00> : vector<144x64xf32>
      %49 = tpu.matmul %43, %48, %cst_34 {dimension_numbers = #tpu.dot_dimension_numbers<[1], [0], [0], [1], [0, 0, 1, 1], [], []>} : vector<144x64xf32>, vector<64x64xf32>, vector<144x64xf32> -> vector<144x64xf32>
      %50 = arith.addf %42, %49 : vector<144x64xf32>
      %c133_i32 = arith.constant 133 : i32
      %51 = tpu.dynamic_rotate %4 by %c133_i32 dim 0 : vector<144x64xf32>, i32 -> vector<144x64xf32>
      %c9_i32_35 = arith.constant 9 : i32
      %52 = arith.muli %arg5, %c9_i32_35 : i32
      %c6_i32 = arith.constant 6 : i32
      %53 = arith.addi %52, %c6_i32 : i32
      %54 = arith.index_cast %53 : i32 to index
      %c0_36 = arith.constant 0 : index
      %c0_37 = arith.constant 0 : index
      %55 = vector.load %arg2[%54, %c0_36, %c0_37] : memref<36x64x64xf32, #tpu.memory_space<vmem>>, vector<1x64x64xf32>
      %56 = vector.shape_cast %55 : vector<1x64x64xf32> to vector<64x64xf32>
      %cst_38 = arith.constant dense<0.000000e+00> : vector<144x64xf32>
      %57 = tpu.matmul %51, %56, %cst_38 {dimension_numbers = #tpu.dot_dimension_numbers<[1], [0], [0], [1], [0, 0, 1, 1], [], []>} : vector<144x64xf32>, vector<64x64xf32>, vector<144x64xf32> -> vector<144x64xf32>
      %58 = arith.addf %50, %57 : vector<144x64xf32>
      %c132_i32 = arith.constant 132 : i32
      %59 = tpu.dynamic_rotate %4 by %c132_i32 dim 0 : vector<144x64xf32>, i32 -> vector<144x64xf32>
      %c9_i32_39 = arith.constant 9 : i32
      %60 = arith.muli %arg5, %c9_i32_39 : i32
      %c7_i32 = arith.constant 7 : i32
      %61 = arith.addi %60, %c7_i32 : i32
      %62 = arith.index_cast %61 : i32 to index
      %c0_40 = arith.constant 0 : index
      %c0_41 = arith.constant 0 : index
      %63 = vector.load %arg2[%62, %c0_40, %c0_41] : memref<36x64x64xf32, #tpu.memory_space<vmem>>, vector<1x64x64xf32>
      %64 = vector.shape_cast %63 : vector<1x64x64xf32> to vector<64x64xf32>
      %cst_42 = arith.constant dense<0.000000e+00> : vector<144x64xf32>
      %65 = tpu.matmul %59, %64, %cst_42 {dimension_numbers = #tpu.dot_dimension_numbers<[1], [0], [0], [1], [0, 0, 1, 1], [], []>} : vector<144x64xf32>, vector<64x64xf32>, vector<144x64xf32> -> vector<144x64xf32>
      %66 = arith.addf %58, %65 : vector<144x64xf32>
      %c131_i32 = arith.constant 131 : i32
      %67 = tpu.dynamic_rotate %4 by %c131_i32 dim 0 : vector<144x64xf32>, i32 -> vector<144x64xf32>
      %c9_i32_43 = arith.constant 9 : i32
      %68 = arith.muli %arg5, %c9_i32_43 : i32
      %c8_i32 = arith.constant 8 : i32
      %69 = arith.addi %68, %c8_i32 : i32
      %70 = arith.index_cast %69 : i32 to index
      %c0_44 = arith.constant 0 : index
      %c0_45 = arith.constant 0 : index
      %71 = vector.load %arg2[%70, %c0_44, %c0_45] : memref<36x64x64xf32, #tpu.memory_space<vmem>>, vector<1x64x64xf32>
      %72 = vector.shape_cast %71 : vector<1x64x64xf32> to vector<64x64xf32>
      %cst_46 = arith.constant dense<0.000000e+00> : vector<144x64xf32>
      %73 = tpu.matmul %67, %72, %cst_46 {dimension_numbers = #tpu.dot_dimension_numbers<[1], [0], [0], [1], [0, 0, 1, 1], [], []>} : vector<144x64xf32>, vector<64x64xf32>, vector<144x64xf32> -> vector<144x64xf32>
      %74 = arith.addf %66, %73 : vector<144x64xf32>
      %75 = vector.shape_cast %74 : vector<144x64xf32> to vector<1x144x64xf32>
      %76 = arith.index_cast %arg5 : i32 to index
      %c0_47 = arith.constant 0 : index
      %c0_48 = arith.constant 0 : index
      %77 = vector.load %arg3[%76, %c0_47, %c0_48] : memref<4x144x64xf32, #tpu.memory_space<vmem>>, vector<1x144x64xf32>
      %78 = vector.shape_cast %77 : vector<1x144x64xf32> to vector<144x64xf32>
      %79 = vector.shape_cast %78 : vector<144x64xf32> to vector<1x144x64xf32>
      %80 = arith.addf %75, %79 : vector<1x144x64xf32>
      %cst_49 = arith.constant 0.000000e+00 : f32
      %81 = vector.broadcast %cst_49 : f32 to vector<1x144x64xf32>
      %82 = arith.maximumf %80, %81 : vector<1x144x64xf32>
      %c0_50 = arith.constant 0 : index
      %c0_51 = arith.constant 0 : index
      %c0_52 = arith.constant 0 : index
      %83 = vector.load %arg4[%c0_50, %c0_51, %c0_52] : memref<1x144x64xf32, #tpu.memory_space<vmem>>, vector<1x144x64xf32>
      tpu.vector_store %arg4[%c0_50, %c0_51, %c0_52], %82 {strides = array<i32>} : memref<1x144x64xf32, #tpu.memory_space<vmem>>, vector<1x144x64xf32>,
    }
    %c4_i32_5 = arith.constant 4 : i32
    return
  }
  func.func @transform_0(%arg0: i32) -> (i32, i32, i32) {
    %c0_i32 = arith.constant 0 : i32
    %c0_i32_0 = arith.constant 0 : i32
    %c0_i32_1 = arith.constant 0 : i32
    return %arg0, %c0_i32, %c0_i32_0 : i32, i32, i32
  }
  func.func @transform_1(%arg0: i32) -> (i32, i32, i32) {
    %c0_i32 = arith.constant 0 : i32
    %c0_i32_0 = arith.constant 0 : i32
    %c0_i32_1 = arith.constant 0 : i32
    %c0_i32_2 = arith.constant 0 : i32
    return %c0_i32, %c0_i32_0, %c0_i32_1 : i32, i32, i32
  }
  func.func @transform_2(%arg0: i32) -> (i32, i32, i32) {
    %c0_i32 = arith.constant 0 : i32
    %c0_i32_0 = arith.constant 0 : i32
    %c0_i32_1 = arith.constant 0 : i32
    %c0_i32_2 = arith.constant 0 : i32
    return %c0_i32, %c0_i32_0, %c0_i32_1 : i32, i32, i32
  }
  func.func @transform_3(%arg0: i32) -> (i32, i32, i32) {
    %c0_i32 = arith.constant 0 : i32
    %c0_i32_0 = arith.constant 0 : i32
    %c0_i32_1 = arith.constant 0 : i32
    return %arg0, %c0_i32, %c0_i32_0 : i32, i32, i32
  }
}

module attributes {stable_mosaic.version = 11 : i64} {
  func.func @_head_kernel(%arg0: i32, %arg1: i32, %arg2: memref<2x1280xf32, #tpu.memory_space<vmem>>, %arg3: memref<1280x1600xbf16, #tpu.memory_space<vmem>>, %arg4: memref<1x1600xf32, #tpu.memory_space<vmem>>, %arg5: memref<1600x100xf32, #tpu.memory_space<vmem>>, %arg6: memref<1x100xf32, #tpu.memory_space<vmem>>, %arg7: memref<2x100xf32, #tpu.memory_space<vmem>>, %arg8: memref<2x1600xf32, #tpu.memory_space<vmem>>) attributes {dimension_semantics = [#tpu.dimension_semantics<parallel>, #tpu.dimension_semantics<arbitrary>], iteration_bounds = array<i64: 1, 5>, scalar_prefetch = 0 : i64, scratch_operands = 1 : i64, tpu.core_type = #tpu.core_type<tc>, window_params = [{transform_indices = @transform_0, window_bounds = array<i64: 2, 1280>}, {transform_indices = @transform_1, window_bounds = array<i64: 1280, 1600>}, {pipeline_mode = #tpu.pipeline_mode<synchronous>, transform_indices = @transform_2, window_bounds = array<i64: 1, 1600>}, {pipeline_mode = #tpu.pipeline_mode<synchronous>, transform_indices = @transform_3, window_bounds = array<i64: 1600, 100>}, {pipeline_mode = #tpu.pipeline_mode<synchronous>, transform_indices = @transform_4, window_bounds = array<i64: 1, 100>}, {transform_indices = @transform_5, window_bounds = array<i64: 2, 100>}]} {
    %c0_i32 = arith.constant 0 : i32
    %0 = arith.cmpi eq, %arg1, %c0_i32 : i32
    %1 = arith.extui %0 : i1 to i32
    %c0_i32_0 = arith.constant 0 : i32
    %2 = arith.cmpi ne, %1, %c0_i32_0 : i32
    scf.if %2 {
      %cst_9 = arith.constant 0.000000e+00 : f32
      %13 = vector.broadcast %cst_9 : f32 to vector<2x1600xf32>
      %c0_10 = arith.constant 0 : index
      %c0_11 = arith.constant 0 : index
      %14 = vector.load %arg8[%c0_10, %c0_11] : memref<2x1600xf32, #tpu.memory_space<vmem>>, vector<2x1600xf32>
      tpu.vector_store %arg8[%c0_10, %c0_11], %13 {strides = array<i32>} : memref<2x1600xf32, #tpu.memory_space<vmem>>, vector<2x1600xf32>,
    } else {
    }
    %c0 = arith.constant 0 : index
    %c0_1 = arith.constant 0 : index
    %3 = vector.load %arg8[%c0, %c0_1] : memref<2x1600xf32, #tpu.memory_space<vmem>>, vector<2x1600xf32>
    %c0_2 = arith.constant 0 : index
    %c0_3 = arith.constant 0 : index
    %4 = vector.load %arg2[%c0_2, %c0_3] : memref<2x1280xf32, #tpu.memory_space<vmem>>, vector<2x1280xf32>
    %5 = arith.truncf %4 : vector<2x1280xf32> to vector<2x1280xbf16>
    %c0_4 = arith.constant 0 : index
    %c0_5 = arith.constant 0 : index
    %6 = vector.load %arg3[%c0_4, %c0_5] : memref<1280x1600xbf16, #tpu.memory_space<vmem>>, vector<1280x1600xbf16>
    %cst = arith.constant dense<0.000000e+00> : vector<2x1600xf32>
    %7 = tpu.matmul %5, %6, %cst {dimension_numbers = #tpu.dot_dimension_numbers<[1], [0], [0], [1], [0, 0, 1, 1], [], []>} : vector<2x1280xbf16>, vector<1280x1600xbf16>, vector<2x1600xf32> -> vector<2x1600xf32>
    %8 = arith.addf %3, %7 : vector<2x1600xf32>
    %c0_6 = arith.constant 0 : index
    %c0_7 = arith.constant 0 : index
    %9 = vector.load %arg8[%c0_6, %c0_7] : memref<2x1600xf32, #tpu.memory_space<vmem>>, vector<2x1600xf32>
    tpu.vector_store %arg8[%c0_6, %c0_7], %8 {strides = array<i32>} : memref<2x1600xf32, #tpu.memory_space<vmem>>, vector<2x1600xf32>,
    %c4_i32 = arith.constant 4 : i32
    %10 = arith.cmpi eq, %arg1, %c4_i32 : i32
    %11 = arith.extui %10 : i1 to i32
    %c0_i32_8 = arith.constant 0 : i32
    %12 = arith.cmpi ne, %11, %c0_i32_8 : i32
    scf.if %12 {
      %c0_9 = arith.constant 0 : index
      %c0_10 = arith.constant 0 : index
      %13 = vector.load %arg8[%c0_9, %c0_10] : memref<2x1600xf32, #tpu.memory_space<vmem>>, vector<2x1600xf32>
      %c0_11 = arith.constant 0 : index
      %c0_12 = arith.constant 0 : index
      %14 = vector.load %arg4[%c0_11, %c0_12] : memref<1x1600xf32, #tpu.memory_space<vmem>>, vector<1x1600xf32>
      %15 = vector.broadcast %14 : vector<1x1600xf32> to vector<2x1600xf32>
      %16 = arith.addf %13, %15 : vector<2x1600xf32>
      %c0_13 = arith.constant 0 : index
      %c0_14 = arith.constant 0 : index
      %17 = vector.load %arg5[%c0_13, %c0_14] : memref<1600x100xf32, #tpu.memory_space<vmem>>, vector<1600x100xf32>
      %cst_15 = arith.constant dense<0.000000e+00> : vector<2x100xf32>
      %18 = tpu.matmul %16, %17, %cst_15 {dimension_numbers = #tpu.dot_dimension_numbers<[1], [0], [0], [1], [0, 0, 1, 1], [], []>} : vector<2x1600xf32>, vector<1600x100xf32>, vector<2x100xf32> -> vector<2x100xf32>
      %c0_16 = arith.constant 0 : index
      %c0_17 = arith.constant 0 : index
      %19 = vector.load %arg6[%c0_16, %c0_17] : memref<1x100xf32, #tpu.memory_space<vmem>>, vector<1x100xf32>
      %20 = vector.broadcast %19 : vector<1x100xf32> to vector<2x100xf32>
      %21 = arith.addf %18, %20 : vector<2x100xf32>
      %c0_18 = arith.constant 0 : index
      %c0_19 = arith.constant 0 : index
      %22 = vector.load %arg7[%c0_18, %c0_19] : memref<2x100xf32, #tpu.memory_space<vmem>>, vector<2x100xf32>
      tpu.vector_store %arg7[%c0_18, %c0_19], %21 {strides = array<i32>} : memref<2x100xf32, #tpu.memory_space<vmem>>, vector<2x100xf32>,
    } else {
    }
    return
  }
  func.func @transform_0(%arg0: i32, %arg1: i32) -> (i32, i32) {
    %c0_i32 = arith.constant 0 : i32
    return %arg0, %arg1 : i32, i32
  }
  func.func @transform_1(%arg0: i32, %arg1: i32) -> (i32, i32) {
    %c0_i32 = arith.constant 0 : i32
    %c0_i32_0 = arith.constant 0 : i32
    return %arg1, %c0_i32 : i32, i32
  }
  func.func @transform_2(%arg0: i32, %arg1: i32) -> (i32, i32) {
    %c0_i32 = arith.constant 0 : i32
    %c0_i32_0 = arith.constant 0 : i32
    %c0_i32_1 = arith.constant 0 : i32
    return %c0_i32, %c0_i32_0 : i32, i32
  }
  func.func @transform_3(%arg0: i32, %arg1: i32) -> (i32, i32) {
    %c0_i32 = arith.constant 0 : i32
    %c0_i32_0 = arith.constant 0 : i32
    %c0_i32_1 = arith.constant 0 : i32
    return %c0_i32, %c0_i32_0 : i32, i32
  }
  func.func @transform_4(%arg0: i32, %arg1: i32) -> (i32, i32) {
    %c0_i32 = arith.constant 0 : i32
    %c0_i32_0 = arith.constant 0 : i32
    %c0_i32_1 = arith.constant 0 : i32
    return %c0_i32, %c0_i32_0 : i32, i32
  }
  func.func @transform_5(%arg0: i32, %arg1: i32) -> (i32, i32) {
    %c0_i32 = arith.constant 0 : i32
    %c0_i32_0 = arith.constant 0 : i32
    return %arg0, %c0_i32 : i32, i32
  }
}

</mosaic_0001>

<bundles_post_ra>
// kernel: dncnn_forward.2
= control target key start
LH: loop header
LB: loop body
LE: loop exit
PB: predicated region body
PF: predicated region fallthrough
CT: control target
= control target key end

     0   :  { %8 = vsyncpa [#allocation3], 0  ;;  %s3826_s12 = smov 0   ;;  %s4809_s0 = inlined_call_operand.vmem [shape: f32[2,144,64], index: 0, kind: input, shape index: {}]   ;;  %s4810_s1 = inlined_call_operand.hbm [shape: f32[36,64,64], index: 1, kind: input, shape index: {}]   ;;  %s4811_s2 = inlined_call_operand.vmem [shape: f32[4,144,64], index: 2, kind: input, shape index: {}]   ;;  %s4812_s3 = inlined_call_operand.vmem [shape: f32[2,144,64], index: 3, kind: output, shape index: {}]  }
   0x1 LB: > { %s3832_s13 = sadd.s32 4294967295, %s3797_s12   ;;  %p2562_p0 = scmp.ge.s32.totalorder %s3797_s12, 1  ;;  %s3797_s12 = sphi %s3826_s12, %s14_s12  }
   0x2   : > { %p113_p1 = scmp.lt.s32.totalorder %s3797_s12, 3  ;;  %s3803_s14 = smov [#allocation2]  }
   0x3   : > { %s125_s15 = sshll.u32 %s3803_s14, 4  ;;  %p4813_p3 = scmp.eq.s32.totalorder %s3832_s13, 0  ;;  %s126_s15 = int_to_ptr.vmem [resolvable:$true] %s125_s15 }
   0x4   : > { %p3836_p2 = pnand %p2562_p0, %p113_p1  ;;  %s3755_s20 = scalar_lea.hbm %s4810_s1, 36864 }
   0x5   : > { %p3756_p6 = scmp.ne.s32.totalorder %s4810_s1, %s3755_s20  ;;  %p3762_p10 = scmp.lt.u32.totalorder %s3755_s20, %s4810_s1 }
   0x6   : > { %s4818_s16 = scalar_select %p3836_p2, 1, 0 }
   0x7   : > { %p3728_p4 = pneg %p3836_p2 }
   0x9   : > { %p3845_p5 = pnand %p4813_p3, %p3728_p4 }
   0xb   : > { %p3757_p7 = pneg %p3845_p5 }
   0xd   : > { %p3758_p8 = pnand %p3757_p7, %p3756_p6 }
   0xf   : > { %p3759_p9 = pneg %p3758_p8 }
  0x11   : > { %p3764_p11 = pnand %p3762_p10, %p3759_p9 }
  0x13   : > { %3767 = shalt.err (!%p3764_p11)
}
  0x14   : > { %s3768_s25 = scalar_lea.vmem %s126_s15, 36864  ;;  %p3776_p1 = scmp.lt.s32.totalorder %s126_s15, %s126_s15 }
  0x15   : > { %p3769_p12 = scmp.ne.s32.totalorder %s126_s15, %s3768_s25  ;;  %p3777_p4 = scmp.lt.s32.totalorder %s3768_s25, %s3768_s25 }
  0x17   : > { %p3771_p13 = pnand %p3769_p12, %p3757_p7  ;;  %p3778_p3 = por %p3777_p4, %p3776_p1 }
  0x19   : > { %p3772_p0 = pneg %p3771_p13 }
  0x1b   : > { %p3779_p2 = pnand %p3778_p3, %p3772_p0 }
  0x1d   : > { %3782 = shalt.err (!%p3779_p2)
}
  0x1e   : > { %s3804_s26 = smov 128   ;;  %s3805_s27 = smov 8  }
  0x1f   : > { %3731 = dma.hbm_to_vmem [thread:$0]  (!%p3845_p5), %s4810_s1, 36864, %s126_s15, [#allocation3], %s3804_s26, %s3804_s26, %s3805_s27  }
  0x20   : > { %p4820_p6 = scmp.ne.s32.totalorder %s4818_s16, 0 }
  0x21   : > { %p4821_p8 = scmp.eq.s32.totalorder (!%p4820_p6), %s3832_s13, 0 }
  0x22   : > { %152 = sbr.rel (%p4820_p6) target bundleno = 460 (0x1cc), region = 32 }
  0x29   : > { %3792 = dma.done.wait (%p4821_p8), [#allocation3], 36864   ;;  %p4822_p7 = pmov %p4821_p8 }
  0x2a   : > { %p176_p2 = scmp.lt.s32.totalorder %s3832_s13, 1  ;;  %vm204_vm0 = vcmask 523264   ;;  %s3937_s10 = smov 0  }
  0x2b   : > { %3794 = vsyncadd (%p4822_p7), [#allocation3], 4294930432 }
  0x2c   : > { %s4828_s13 = smov (!%p176_p2, %s3832_s13), 1 }
  0x2d   : > { %s3723_s30 = smul.u32 144, %s4828_s13 }
  0x2f   : > { %s3876_s6 = scalar_lea.vmem %s4809_s0, %s3723_s30  ;;  %s3881_s9 = scalar_lea.vmem %s4812_s3, %s3723_s30 }
  0x30   : > { %v186_v0 = vld [vmem:[%s3876_s6] sm:$0xff]  ;;  %v187_v1 = vld [vmem:[%s3876_s6 + $0x8] sm:$0xff]  ;;  %v188_v2 = vld [vmem:[%s3876_s6 + $0x10] sm:$0xff] }
  0x31   : > { %205 = vst.msk [vmem:[%s3881_s9] sm:$0xff] %vm204_vm0, %v186_v0  ;;  %206 = vst.msk [vmem:[%s3881_s9 + $0x8] sm:$0xff] %vm204_vm0, %v187_v1  ;;  %v189_v3 = vld [vmem:[%s3876_s6 + $0x18] sm:$0xff]  ;;  %v190_v4 = vld [vmem:[%s3876_s6 + $0x20] sm:$0xff] }
  0x32   : > { %207 = vst.msk [vmem:[%s3881_s9 + $0x10] sm:$0xff] %vm204_vm0, %v188_v2  ;;  %v191_v5 = vld [vmem:[%s3876_s6 + $0x28] sm:$0xff]  ;;  %208 = vst.msk [vmem:[%s3881_s9 + $0x18] sm:$0xff] %vm204_vm0, %v189_v3  ;;  %v192_v6 = vld [vmem:[%s3876_s6 + $0x30] sm:$0xff] }
  0x33   : > { %209 = vst.msk [vmem:[%s3881_s9 + $0x20] sm:$0xff] %vm204_vm0, %v190_v4  ;;  %210 = vst.msk [vmem:[%s3881_s9 + $0x28] sm:$0xff] %vm204_vm0, %v191_v5  ;;  %v193_v7 = vld [vmem:[%s3876_s6 + $0x38] sm:$0xff]  ;;  %v194_v8 = vld [vmem:[%s3876_s6 + $0x40] sm:$0xff] }
  0x34   : > { %211 = vst.msk [vmem:[%s3881_s9 + $0x30] sm:$0xff] %vm204_vm0, %v192_v6  ;;  %212 = vst.msk [vmem:[%s3881_s9 + $0x38] sm:$0xff] %vm204_vm0, %v193_v7  ;;  %v195_v9 = vld [vmem:[%s3876_s6 + $0x48] sm:$0xff]  ;;  %v196_v10 = vld [vmem:[%s3876_s6 + $0x50] sm:$0xff] }
  0x35   : > { %213 = vst.msk [vmem:[%s3881_s9 + $0x40] sm:$0xff] %vm204_vm0, %v194_v8  ;;  %v197_v11 = vld [vmem:[%s3876_s6 + $0x58] sm:$0xff]  ;;  %214 = vst.msk [vmem:[%s3881_s9 + $0x48] sm:$0xff] %vm204_vm0, %v195_v9  ;;  %v198_v12 = vld [vmem:[%s3876_s6 + $0x60] sm:$0xff] }
  0x36   : > { %215 = vst.msk [vmem:[%s3881_s9 + $0x50] sm:$0xff] %vm204_vm0, %v196_v10  ;;  %216 = vst.msk [vmem:[%s3881_s9 + $0x58] sm:$0xff] %vm204_vm0, %v197_v11  ;;  %v199_v13 = vld [vmem:[%s3876_s6 + $0x68] sm:$0xff]  ;;  %v200_v14 = vld [vmem:[%s3876_s6 + $0x70] sm:$0xff] }
  0x37   : > { %217 = vst.msk [vmem:[%s3881_s9 + $0x60] sm:$0xff] %vm204_vm0, %v198_v12  ;;  %218 = vst.msk [vmem:[%s3881_s9 + $0x68] sm:$0xff] %vm204_vm0, %v199_v13  ;;  %v201_v15 = vld [vmem:[%s3876_s6 + $0x78] sm:$0xff]  ;;  %v202_v16 = vld [vmem:[%s3876_s6 + $0x80] sm:$0xff] }
  0x38   : > { %219 = vst.msk [vmem:[%s3881_s9 + $0x70] sm:$0xff] %vm204_vm0, %v200_v14  ;;  %v203_v17 = vld [vmem:[%s3876_s6 + $0x88] sm:$0xff]  ;;  %220 = vst.msk [vmem:[%s3881_s9 + $0x78] sm:$0xff] %vm204_vm0, %v201_v15 }
  0x39   : > { %221 = vst.msk [vmem:[%s3881_s9 + $0x80] sm:$0xff] %vm204_vm0, %v202_v16  ;;  %222 = vst.msk [vmem:[%s3881_s9 + $0x88] sm:$0xff] %vm204_vm0, %v203_v17 }
  0x3a LB: >> { %v265_v20 = vlaneseq  ;;  %v3949_v21 = vld [vmem:[%s3881_s9] sm:$0xff]  ;;  %s2569_s11 = smul.u32 576, %s3801_s10  ;;  %v4001_v52 = vld [vmem:[%s3881_s9 + $0x8] sm:$0xff]  ;;  %v4008_v57 = vld [vmem:[%s3881_s9 + $0x10] sm:$0xff]  ;;  %s3801_s10 = sphi %s3937_s10, %s228_s10  }
  0x3b   : >> { %3228 = vmatprep.mubr.msk.f32.mxu0 %vm204_vm0, %v3949_v21  ;;  %v297_v55 = vrot.slane %v3949_v21, 4  ;;  %v298_v59 = vrot.slane %v4001_v52, 4  ;;  %v4013_v60 = vld [vmem:[%s3881_s9 + $0x18] sm:$0xff]  ;;  %v299_v0 = vrot.slane %v4008_v57, 4  ;;  %v4027_v4 = vld [vmem:[%s3881_s9 + $0x20] sm:$0xff]  ;;  %v4034_v7 = vld [vmem:[%s3881_s9 + $0x28] sm:$0xff] }
  0x3c   : >> { %v3956_v24 = vshrl.u32 %v265_v20, 7  ;;  %s3959_s13 = scalar_lea.vmem [#allocation2], %s2569_s11  ;;  %v300_v3 = vrot.slane %v4013_v60, 4  ;;  %v301_v12 = vrot.slane %v4027_v4, 4  ;;  %v302_v16 = vrot.slane %v4034_v7, 4  ;;  %v4057_v17 = vld [vmem:[%s3881_s9 + $0x30] sm:$0xff] }
  0x3d   : >> { %v2571_v25 = vld [vmem:[%s3959_s13 + $0x40] sm:$0xff]  ;;  %v2572_v26 = vld [vmem:[%s3959_s13 + $0x48] sm:$0xff]  ;;  %v2573_v31 = vld [vmem:[%s3959_s13 + $0x50] sm:$0xff]  ;;  %s2378_s14 = smul.u32 144, %s3801_s10  ;;  %s228_s10 = sadd.s32 1, %s3801_s10  }
  0x3e   : >> { %vm315_vm1 = vcmp.lt.s32.totalorder %v3956_v24, 4  ;;  %v2670_v27 = vld [vmem:[%s3959_s13 + $0x100] sm:$0xff]  ;;  %v3427_v29 = vpack.c.bf16 %v2572_v26, %v2571_v25  ;;  %v2671_v30 = vld [vmem:[%s3959_s13 + $0x108] sm:$0xff]  ;;  %v2574_v32 = vld [vmem:[%s3959_s13 + $0x58] sm:$0xff]  ;;  %vm1569_vm2 = vcmp.lt.s32.totalorder %v3956_v24, 7  ;;  %vm267_vm3 = vcmp.lt.s32.totalorder %v3956_v24, 5 }
  0x3f   : >> { %v3975_v33 = vpack.c.bf16 %v2671_v30, %v2670_v27  ;;  %v3431_v34 = vpack.c.bf16 %v2574_v32, %v2573_v31  ;;  %v2672_v35 = vld [vmem:[%s3959_s13 + $0x110] sm:$0xff]  ;;  %v2673_v36 = vld [vmem:[%s3959_s13 + $0x118] sm:$0xff]  ;;  %v2575_v37 = vld [vmem:[%s3959_s13 + $0x60] sm:$0xff]  ;;  %v4031_v5 = vsel %vm315_vm1, %v297_v55, %v298_v59  ;;  %v4044_v11 = vsel %vm315_vm1, %v298_v59, %v299_v0  ;;  %s4747_s17 = scalar_lea.vmem %s4811_s2, %s2378_s14  ;;  %p225_p3 = scmp.ge.s32.totalorder %s228_s10, 4  }
  0x40   : >> { %v3943_v18 = vld [vmem:[%s3881_s9 + $0x80] sm:$0xff]  ;;  %v3946_v19 = vld [vmem:[%s3881_s9 + $0x88] sm:$0xff]  ;;  %3428 = vmatprep.subr.bf16.mxu1 %v3427_v29  ;;  %v3980_v38 = vpack.c.bf16 %v2673_v36, %v2672_v35  ;;  %v2577_v44 = vld [vmem:[%s3959_s13 + $0x70] sm:$0xff]  ;;  %4823 = vst [vmem:[#allocation5_spill] sm:$0xff] %v4031_v5  ;;  %v4053_v15 = vsel %vm315_vm1, %v299_v0, %v300_v3  ;;  %v303_v30 = vrot.slane %v4057_v17, 4  ;;  %vm781_vm4 = vcmp.lt.s32.totalorder %v3956_v24, 3 }
  0x41   : >> { %v313_v22 = vrot.slane %v3943_v18, 4  ;;  %v314_v23 = vrot.slane %v3946_v19, 4  ;;  %v2576_v39 = vld [vmem:[%s3959_s13 + $0x68] sm:$0xff]  ;;  %v2674_v40 = vld [vmem:[%s3959_s13 + $0x120] sm:$0xff]  ;;  %3492 = vmatprep.subr.bf16.mxu0 %v3975_v33  ;;  %3430 = vmatpush3.bf16.msra.mxu1 %v3427_v29  ;;  %v2578_v45 = vld [vmem:[%s3959_s13 + $0x78] sm:$0xff]  ;;  %v4074_v29 = vsel %vm315_vm1, %v300_v3, %v301_v12  ;;  %vm1056_vm5 = vcmp.lt.s32.totalorder %v3956_v24, 1 }
  0x42   : >> { %v2675_v41 = vld [vmem:[%s3959_s13 + $0x128] sm:$0xff]  ;;  %3494 = vmatpush3.bf16.msra.mxu0 %v3975_v33  ;;  %3432 = vmatprep.subr.bf16.mxu1 %v3431_v34  ;;  %v3435_v42 = vpack.c.bf16 %v2576_v39, %v2575_v37  ;;  %v2676_v46 = vld [vmem:[%s3959_s13 + $0x130] sm:$0xff]  ;;  %v2677_v47 = vld [vmem:[%s3959_s13 + $0x138] sm:$0xff]  ;;  %v3439_v48 = vpack.c.bf16 %v2578_v45, %v2577_v44  ;;  %v4816_v39 = vrot.slane %v3949_v21, 1 }
  0x43   : >> { %v3968_v28 = vsel %vm315_vm1, %v313_v22, %v314_v23  ;;  %3496 = vmatprep.subr.bf16.mxu0 %v3980_v38  ;;  %v3988_v43 = vpack.c.bf16 %v2675_v41, %v2674_v40  ;;  %v3996_v49 = vpack.c.bf16 %v2677_v47, %v2676_v46  ;;  %v289_v50 = vld [vmem:[%s3959_s13] sm:$0xff]  ;;  %v290_v51 = vld [vmem:[%s3959_s13 + $0x8] sm:$0xff]  ;;  %v2699_v61 = vld [vmem:[%s3959_s13 + $0x150] sm:$0xff]  ;;  %v4019_v63 = vsel %vm315_vm1, %v314_v23, %v297_v55 }
  0x44   : >> { %3056 = vmatprep.mubr.msk.f32.mxu1 %vm204_vm0, %v3968_v28  ;;  %v2697_v53 = vld [vmem:[%s3959_s13 + $0x140] sm:$0xff]  ;;  %v2698_v54 = vld [vmem:[%s3959_s13 + $0x148] sm:$0xff]  ;;  %v3443_v56 = vpack.c.bf16 %v290_v51, %v289_v50  ;;  %v2700_v62 = vld [vmem:[%s3959_s13 + $0x158] sm:$0xff]  ;;  %v1552_v40 = vrot.slane %v4001_v52, 1  ;;  %v4105_v46 = vsel %vm315_vm1, %v302_v16, %v303_v30 }
  0x45   : >> { %3434 = vmatpush3.bf16.msra.mxu1 %v3431_v34  ;;  %v3507_v58 = vpack.c.bf16 %v2698_v54, %v2697_v53  ;;  %v291_v1 = vld [vmem:[%s3959_s13 + $0x10] sm:$0xff]  ;;  %v292_v2 = vld [vmem:[%s3959_s13 + $0x18] sm:$0xff]  ;;  %v3511_v6 = vpack.c.bf16 %v2700_v62, %v2699_v61  ;;  %v2701_v8 = vld [vmem:[%s3959_s13 + $0x160] sm:$0xff]  ;;  %v4083_v34 = vsel %vm315_vm1, %v301_v12, %v302_v16  ;;  %v1553_v53 = vrot.slane %v4008_v57, 1 }
  0x46   : >> { %3498 = vmatpush3.bf16.msra.mxu0 %v3980_v38  ;;  %3436 = vmatprep.subr.bf16.mxu1 %v3435_v42  ;;  %v2702_v9 = vld [vmem:[%s3959_s13 + $0x168] sm:$0xff]  ;;  %v3447_v10 = vpack.c.bf16 %v292_v2, %v291_v1  ;;  %v293_v13 = vld [vmem:[%s3959_s13 + $0x20] sm:$0xff]  ;;  %v4062_v23 = vld [vmem:[%s3881_s9 + $0x38] sm:$0xff] }
  0x47   : >> { %3500 = vmatprep.subr.bf16.mxu0 %v3988_v43  ;;  %v294_v14 = vld [vmem:[%s3959_s13 + $0x28] sm:$0xff]  ;;  %v3515_v20 = vpack.c.bf16 %v2702_v9, %v2701_v8  ;;  %v2703_v25 = vld [vmem:[%s3959_s13 + $0x170] sm:$0xff]  ;;  %v2704_v26 = vld [vmem:[%s3959_s13 + $0x178] sm:$0xff]  ;;  %v304_v35 = vrot.slane %v4062_v23, 4  ;;  %v1555_v9 = vrot.slane %v4027_v4, 1 }
  0x48   : >> { %v3451_v27 = vpack.c.bf16 %v294_v14, %v293_v13  ;;  %v295_v31 = vld [vmem:[%s3959_s13 + $0x30] sm:$0xff]  ;;  %v296_v32 = vld [vmem:[%s3959_s13 + $0x38] sm:$0xff]  ;;  %v4087_v36 = vld [vmem:[%s3881_s9 + $0x40] sm:$0xff]  ;;  %v3519_v37 = vpack.c.bf16 %v2704_v26, %v2703_v25  ;;  %v1556_v14 = vrot.slane %v4034_v7, 1 }
  0x49   : >> { %3438 = vmatpush3.bf16.msra.mxu1 %v3435_v42  ;;  %v4092_v41 = vld [vmem:[%s3881_s9 + $0x48] sm:$0xff]  ;;  %v2724_v42 = vld [vmem:[%s3959_s13 + $0x180] sm:$0xff]  ;;  %v3455_v45 = vpack.c.bf16 %v296_v32, %v295_v31  ;;  %v305_v47 = vrot.slane %v4087_v36, 4  ;;  %v4114_v51 = vsel %vm315_vm1, %v303_v30, %v304_v35  ;;  %v4119_v55 = vld [vmem:[%s3881_s9 + $0x50] sm:$0xff] }
  0x4a   : >> { %3502 = vmatpush3.bf16.msra.mxu0 %v3988_v43  ;;  %3440 = vmatprep.subr.bf16.mxu1 %v3439_v48  ;;  %v2725_v44 = vld [vmem:[%s3959_s13 + $0x188] sm:$0xff]  ;;  %v306_v54 = vrot.slane %v4092_v41, 4  ;;  %v4127_v61 = vld [vmem:[%s3881_s9 + $0x58] sm:$0xff]  ;;  %v2726_v62 = vld [vmem:[%s3959_s13 + $0x190] sm:$0xff]  ;;  %v307_v3 = vrot.slane %v4119_v55, 4 }
  0x4b   : >> { %3504 = vmatprep.subr.bf16.mxu0 %v3996_v49  ;;  %v2617_v50 = vld [vmem:[%s3959_s13 + $0x88] sm:$0xff]  ;;  %v3523_v59 = vpack.c.bf16 %v2725_v44, %v2724_v42  ;;  %v2727_v0 = vld [vmem:[%s3959_s13 + $0x198] sm:$0xff]  ;;  %v4141_v2 = vsel %vm315_vm1, %v304_v35, %v305_v47  ;;  %v4154_v12 = vld [vmem:[%s3881_s9 + $0x60] sm:$0xff]  ;;  %v1557_v35 = vrot.slane %v4057_v17, 1  ;;  %v1582_v42 = vsel %vm1569_vm2, %v1555_v9, %v1556_v14 }
  0x4c   : >> { %v4149_v8 = vsel %vm315_vm1, %v305_v47, %v306_v54  ;;  %v4160_v16 = vld [vmem:[%s3881_s9 + $0x68] sm:$0xff]  ;;  %v2728_v25 = vld [vmem:[%s3959_s13 + $0x1a0] sm:$0xff]  ;;  %v309_v30 = vrot.slane %v4154_v12, 4  ;;  %v1558_v44 = vrot.slane %v4062_v23, 1 }
  0x4d   : >> { %3442 = vmatpush3.bf16.msra.mxu1 %v3439_v48  ;;  %v2616_v48 = vld [vmem:[%s3959_s13 + $0x80] sm:$0xff]  ;;  %v2729_v26 = vld [vmem:[%s3959_s13 + $0x1a8] sm:$0xff] }
  0x4e   : >> { %3506 = vmatpush3.bf16.msra.mxu0 %v3996_v49  ;;  %3444 = vmatprep.subr.bf16.mxu1 %v3443_v56  ;;  %v4133_v1 = vpack.c.bf16 %v2617_v50, %v2616_v48  ;;  %v3531_v47 = vpack.c.bf16 %v2729_v26, %v2728_v25  ;;  %v2730_v48 = vld [vmem:[%s3959_s13 + $0x1b0] sm:$0xff]  ;;  %v2731_v50 = vld [vmem:[%s3959_s13 + $0x1b8] sm:$0xff]  ;;  %v1561_v26 = vrot.slane %v4119_v55, 1 }
  0x4f   : >> { %3508 = vmatprep.subr.bf16.mxu0 %v3507_v58 }
  0x50   : >> { %3057 = vmatmul.mubr.msk.f32.vlgmr.msra.gmra.mrb[0].mxu1 %vm204_vm0, %v4019_v63 }
  0x51   : >> { %3229 = vmatmul.mubr.msk.f32.vlgmr.msra.gmra.mrb[0].mxu0 %vm204_vm0, %v4001_v52  ;;  %3446 = vmatpush3.bf16.msra.mxu1 %v3443_v56  ;;  %v1586_v56 = vsel %vm1569_vm2, %v4816_v39, %v1552_v40  ;;  %v253_v39 = vrot.slane %v4057_v17, 3 }
  0x52   : >> { %3510 = vmatpush3.bf16.msra.mxu0 %v3507_v58  ;;  %3059 = vmatprep.mubr.msk.f32.mxu1 %vm204_vm0, %v4031_v5  ;;  %v1554_v58 = vrot.slane %v4013_v60, 1 }
  0x53   : >> { %3231 = vmatprep.mubr.msk.f32.mxu0 %vm204_vm0, %v4008_v57  ;;  %3512 = vmatprep.subr.bf16.mxu0 %v3511_v6 }
  0x54   : >> { %3060 = vmatmul.mubr.msk.f32.gmra.mrb[2].mxu1 %vm204_vm0, %v4044_v11  ;;  %3448 = vmatprep.subr.bf16.mxu1 %v3447_v10  ;;  %v1584_v13 = vsel %vm1569_vm2, %v1553_v53, %v1554_v58  ;;  %v1583_v31 = vsel %vm1569_vm2, %v1554_v58, %v1555_v9  ;;  %v2751_v9 = vld [vmem:[%s3959_s13 + $0x1c0] sm:$0xff] }
  0x55   : >> { %3232 = vmatmul.mubr.msk.f32.gmra.mrb[2].mxu0 %vm204_vm0, %v4013_v60  ;;  %3062 = vmatprep.mubr.msk.f32.mxu1 %vm204_vm0, %v4053_v15 }
  0x56   : >> { %3514 = vmatpush3.bf16.msra.mxu0 %v3511_v6  ;;  %3234 = vmatprep.mubr.msk.f32.mxu0 %vm204_vm0, %v4027_v4  ;;  %v1585_v6 = vsel %vm1569_vm2, %v1552_v40, %v1553_v53  ;;  %v4185_v40 = vld [vmem:[%s3881_s9 + $0x70] sm:$0xff] }
  0x57   : >> { %3516 = vmatprep.subr.bf16.mxu0 %v3515_v20  ;;  %3450 = vmatpush3.bf16.msra.mxu1 %v3447_v10  ;;  %v308_v10 = vrot.slane %v4127_v61, 4 }
  0x58   : >> { %3063 = vmatmul.mubr.msk.f32.gmra.mrb[4].mxu1 %vm204_vm0, %v4074_v29  ;;  %3452 = vmatprep.subr.bf16.mxu1 %v3451_v27 }
  0x59   : >> { %3235 = vmatmul.mubr.msk.f32.gmra.mrb[4].mxu0 %vm204_vm0, %v4034_v7  ;;  %3065 = vmatprep.mubr.msk.f32.mxu1 %vm204_vm0, %v4083_v34  ;;  %v4180_v32 = vsel %vm315_vm1, %v307_v3, %v308_v10  ;;  %v4202_v53 = vsel %vm315_vm1, %v308_v10, %v309_v30  ;;  %v2752_v10 = vld [vmem:[%s3959_s13 + $0x1c8] sm:$0xff] }
  0x5a   : >> { %3518 = vmatpush3.bf16.msra.mxu0 %v3515_v20  ;;  %3237 = vmatprep.mubr.msk.f32.mxu0 %vm204_vm0, %v4057_v17  ;;  %v3527_v20 = vpack.c.bf16 %v2727_v0, %v2726_v62  ;;  %v1580_v0 = vsel %vm1569_vm2, %v1557_v35, %v1558_v44 }
  0x5b   : >> { %3520 = vmatprep.subr.bf16.mxu0 %v3519_v37  ;;  %3454 = vmatpush3.bf16.msra.mxu1 %v3451_v27  ;;  %v4172_v27 = vsel %vm315_vm1, %v306_v54, %v307_v3  ;;  %v311_v54 = vrot.slane %v4185_v40, 4  ;;  %v1560_v3 = vrot.slane %v4092_v41, 1 }
  0x5c   : >> { %3066 = vmatmul.mubr.msk.f32.gmra.mrb[6].mxu1 %vm204_vm0, %v4105_v46  ;;  %3456 = vmatprep.subr.bf16.mxu1 %v3455_v45 }
  0x5d   : >> { %3238 = vmatmul.mubr.msk.f32.gmra.mrb[6].mxu0 %vm204_vm0, %v4062_v23  ;;  %3068 = vmatprep.mubr.msk.f32.mxu1 %vm204_vm0, %v4114_v51 }
  0x5e   : >> { %3522 = vmatpush3.bf16.msra.mxu0 %v3519_v37  ;;  %3271 = vmatprep.mubr.msk.f32.mxu0 %vm204_vm0, %v1586_v56  ;;  %v310_v37 = vrot.slane %v4160_v16, 4  ;;  %v1581_v56 = vsel %vm1569_vm2, %v1556_v14, %v1557_v35  ;;  %v4815_v14 = vrot.slane %v3943_v18, 3  ;;  %v1562_v35 = vrot.slane %v4127_v61, 1 }
  0x5f   : >> { %3524 = vmatprep.subr.bf16.mxu0 %v3523_v59  ;;  %3458 = vmatpush3.bf16.msra.mxu1 %v3455_v45  ;;  %v4191_v45 = vld [vmem:[%s3881_s9 + $0x78] sm:$0xff] }
  0x60   : >> { %3069 = vmatmul.mubr.msk.f32.gmra.mrb[8].mxu1 %vm204_vm0, %v4141_v2  ;;  %3460 = vmatprep.subr.bf16.mxu1 %v4133_v1  ;;  %v4210_v58 = vsel %vm315_vm1, %v309_v30, %v310_v37  ;;  %v312_v62 = vrot.slane %v4191_v45, 4  ;;  %v264_v30 = vrot.slane %v3946_v19, 3 }
  0x61   : >> { %3272 = vmatmul.mubr.msk.f32.vlgmr.msra.gmra.mrb[0].mxu0 %vm204_vm0, %v1585_v6  ;;  %3071 = vmatprep.mubr.msk.f32.mxu1 %vm204_vm0, %v4149_v8  ;;  %v3535_v6 = vpack.c.bf16 %v2731_v50, %v2730_v48  ;;  %v1563_v50 = vrot.slane %v4154_v12, 1 }
  0x62   : >> { %3274 = vmatprep.mubr.msk.f32.mxu0 %vm204_vm0, %v1584_v13  ;;  %3526 = vmatpush3.bf16.msra.mxu0 %v3523_v59  ;;  %v1559_v59 = vrot.slane %v4087_v36, 1  ;;  %v4226_v13 = vsel %vm315_vm1, %v310_v37, %v311_v54  ;;  %v4234_v25 = vsel %vm315_vm1, %v311_v54, %v312_v62  ;;  %v4242_v37 = vpack.c.bf16 %v2752_v10, %v2751_v9 }
  0x63   : >> { %3528 = vmatprep.subr.bf16.mxu0 %v3527_v20  ;;  %v4263_v48 = vsel %vm267_vm3, %v4815_v14, %v264_v30  ;;  %v248_v54 = vrot.slane %v4001_v52, 3  ;;  %v1565_v9 = vrot.slane %v4185_v40, 1  ;;  %v250_v10 = vrot.slane %v4013_v60, 3 }
  0x64   : >> { %3072 = vmatmul.mubr.msk.f32.gmra.mrb[10].mxu1 %vm204_vm0, %v4172_v27 }
  0x65   : >> { %3275 = vmatmul.mubr.msk.f32.gmra.mrb[2].mxu0 %vm204_vm0, %v1583_v31  ;;  %3074 = vmatprep.mubr.msk.f32.mxu1 %vm204_vm0, %v4180_v32  ;;  %v1578_v31 = vsel %vm1569_vm2, %v1559_v59, %v1560_v3 }
  0x66   : >> { %3277 = vmatprep.mubr.msk.f32.mxu0 %vm204_vm0, %v1582_v42  ;;  %3530 = vmatpush3.bf16.msra.mxu0 %v3527_v20  ;;  %v1579_v20 = vsel %vm1569_vm2, %v1558_v44, %v1559_v59  ;;  %v4253_v42 = vsel %vm315_vm1, %v312_v62, %v313_v22  ;;  %v247_v44 = vrot.slane %v3949_v21, 3  ;;  %v1576_v22 = vsel %vm1569_vm2, %v1561_v26, %v1562_v35  ;;  %v2618_v59 = vld [vmem:[%s3959_s13 + $0x90] sm:$0xff]  ;;  %v2619_v62 = vld [vmem:[%s3959_s13 + $0x98] sm:$0xff] }
  0x67   : >> { %3532 = vmatprep.subr.bf16.mxu0 %v3531_v47 }
  0x68   : >> { %3075 = vmatmul.mubr.msk.f32.gmra.mrb[12].mxu1 %vm204_vm0, %v4202_v53 }
  0x69   : >> { %3278 = vmatmul.mubr.msk.f32.gmra.mrb[4].mxu0 %vm204_vm0, %v1581_v56  ;;  %3077 = vmatprep.mubr.msk.f32.mxu1 %vm204_vm0, %v4210_v58  ;;  %v1564_v56 = vrot.slane %v4160_v16, 1 }
  0x6a   : >> { %3280 = vmatprep.mubr.msk.f32.mxu0 %vm204_vm0, %v1580_v0  ;;  %3534 = vmatpush3.bf16.msra.mxu0 %v3531_v47  ;;  %v1577_v47 = vsel %vm1569_vm2, %v1560_v3, %v1561_v26  ;;  %v4280_v0 = vsel %vm267_vm3, %v264_v30, %v247_v44  ;;  %v249_v3 = vrot.slane %v4008_v57, 3  ;;  %v1566_v30 = vrot.slane %v4191_v45, 1 }
  0x6b   : >> { %3536 = vmatprep.subr.bf16.mxu0 %v3535_v6  ;;  %v1574_v26 = vsel %vm1569_vm2, %v1563_v50, %v1564_v56 }
  0x6c   : >> { %3078 = vmatmul.mubr.msk.f32.gmra.mrb[14].mxu1 %vm204_vm0, %v4226_v13 }
  0x6d   : >> { %3281 = vmatmul.mubr.msk.f32.gmra.mrb[6].mxu0 %vm204_vm0, %v1579_v20  ;;  %3080 = vmatprep.mubr.msk.f32.mxu1 %vm204_vm0, %v4234_v25  ;;  %v4290_v20 = vsel %vm267_vm3, %v247_v44, %v248_v54  ;;  %v251_v44 = vrot.slane %v4027_v4, 3 }
  0x6e   : >> { %3283 = vmatprep.mubr.msk.f32.mxu0 %vm204_vm0, %v1578_v31  ;;  %3538 = vmatpush3.bf16.msra.mxu0 %v3535_v6  ;;  %v1575_v6 = vsel %vm1569_vm2, %v1562_v35, %v1563_v50  ;;  %v3463_v31 = vpack.c.bf16 %v2619_v62, %v2618_v59  ;;  %v283_v35 = vsel %vm267_vm3, %v248_v54, %v249_v3  ;;  %v1567_v62 = vrot.slane %v3943_v18, 1 }
  0x6f   : >> { %3540 = vmatprep.subr.bf16.mxu0 %v4242_v37  ;;  %v1573_v50 = vsel %vm1569_vm2, %v1564_v56, %v1565_v9  ;;  %v282_v59 = vsel %vm267_vm3, %v249_v3, %v250_v10  ;;  %v1572_v54 = vsel %vm1569_vm2, %v1565_v9, %v1566_v30  ;;  %v2623_v56 = vld [vmem:[%s3959_s13 + $0xb8] sm:$0xff]  ;;  %v281_v3 = vsel %vm267_vm3, %v250_v10, %v251_v44  ;;  %v2643_v10 = vld [vmem:[%s3959_s13 + $0xc0] sm:$0xff] }
  0x70   : >> { %3081 = vmatmul.mubr.msk.f32.gmra.mrb[16].mxu1 %vm204_vm0, %v4253_v42  ;;  %v1571_v9 = vsel %vm1569_vm2, %v1566_v30, %v1567_v62 }
  0x71   : >> { %3284 = vmatmul.mubr.msk.f32.gmra.mrb[8].mxu0 %vm204_vm0, %v1577_v47  ;;  %3099 = vmatprep.mubr.msk.f32.mxu1 %vm204_vm0, %v4263_v48  ;;  %v2620_v47 = vld [vmem:[%s3959_s13 + $0xa0] sm:$0xff] }
  0x72   : >> { %3286 = vmatprep.mubr.msk.f32.mxu0 %vm204_vm0, %v1576_v22  ;;  %v2621_v22 = vld [vmem:[%s3959_s13 + $0xa8] sm:$0xff] }
  0x73   : >> { %v3467_v14 = vpack.c.bf16 %v2621_v22, %v2620_v47  ;;  %v254_v22 = vrot.slane %v4062_v23, 3 }
  0x74   : >> { %3100 = vmatmul.mubr.msk.f32.vlgmr.msra.gmra.mrb[0].mxu1 %vm204_vm0, %v4280_v0 }
  0x75   : >> { %3287 = vmatmul.mubr.msk.f32.gmra.mrb[10].mxu0 %vm204_vm0, %v1575_v6  ;;  %3462 = vmatpush3.bf16.msra.mxu1 %v4133_v1  ;;  %v252_v1 = vrot.slane %v4034_v7, 3  ;;  %v1568_v6 = vrot.slane %v3946_v19, 1 }
  0x76   : >> { %3102 = vmatprep.mubr.msk.f32.mxu1 %vm204_vm0, %v4290_v20  ;;  %3289 = vmatprep.mubr.msk.f32.mxu0 %vm204_vm0, %v1574_v26  ;;  %v2622_v26 = vld [vmem:[%s3959_s13 + $0xb0] sm:$0xff] }
  0x77   : >> { %3464 = vmatprep.subr.bf16.mxu1 %v3463_v31  ;;  %v280_v47 = vsel %vm267_vm3, %v251_v44, %v252_v1  ;;  %v3471_v5 = vpack.c.bf16 %v2623_v56, %v2622_v26  ;;  %v279_v30 = vsel %vm267_vm3, %v252_v1, %v253_v39  ;;  %v4824_v44 = vrot.slane %v3949_v21, 1  ;;  %v2753_v1 = vld [vmem:[%s3959_s13 + $0x1d0] sm:$0xff] }
  0x78   : >> { %3103 = vmatmul.mubr.msk.f32.gmra.mrb[2].mxu1 %vm204_vm0, %v283_v35  ;;  %v278_v26 = vsel %vm267_vm3, %v253_v39, %v254_v22  ;;  %v256_v56 = vrot.slane %v4092_v41, 3  ;;  %v257_v39 = vrot.slane %v4119_v55, 3 }
  0x79   : >> { %3290 = vmatmul.mubr.msk.f32.gmra.mrb[12].mxu0 %vm204_vm0, %v1573_v50  ;;  %3105 = vmatprep.mubr.msk.f32.mxu1 %vm204_vm0, %v282_v59  ;;  %v1570_v50 = vsel %vm1569_vm2, %v1567_v62, %v1568_v6  ;;  %v1587_v62 = vsel %vm1569_vm2, %v1568_v6, %v4824_v44  ;;  %v2755_v44 = vld [vmem:[%s3959_s13 + $0x1e0] sm:$0xff] }
  0x7a   : >> { %3292 = vmatprep.mubr.msk.f32.mxu0 %vm204_vm0, %v1572_v54  ;;  %3466 = vmatpush3.bf16.msra.mxu1 %v3463_v31  ;;  %v2644_v54 = vld [vmem:[%s3959_s13 + $0xc8] sm:$0xff]  ;;  %v255_v31 = vrot.slane %v4087_v36, 3 }
  0x7b   : >> { %3468 = vmatprep.subr.bf16.mxu1 %v3467_v14 }
  0x7c   : >> { %3106 = vmatmul.mubr.msk.f32.gmra.mrb[4].mxu1 %vm204_vm0, %v281_v3  ;;  %v277_v6 = vsel %vm267_vm3, %v254_v22, %v255_v31  ;;  %v259_v22 = vrot.slane %v4154_v12, 3 }
  0x7d   : >> { %3293 = vmatmul.mubr.msk.f32.gmra.mrb[14].mxu0 %vm204_vm0, %v1571_v9  ;;  %3108 = vmatprep.mubr.msk.f32.mxu1 %vm204_vm0, %v280_v47  ;;  %v4348_v9 = vpack.c.bf16 %v2644_v54, %v2643_v10  ;;  %v258_v10 = vrot.slane %v4127_v61, 3 }
  0x7e   : >> { %3295 = vmatprep.mubr.msk.f32.mxu0 %vm204_vm0, %v1570_v50  ;;  %3470 = vmatpush3.bf16.msra.mxu1 %v3467_v14  ;;  %v2754_v50 = vld [vmem:[%s3959_s13 + $0x1d8] sm:$0xff]  ;;  %v276_v14 = vsel %vm267_vm3, %v255_v31, %v256_v56  ;;  %v260_v31 = vrot.slane %v4160_v16, 3 }
  0x7f   : >> { %3472 = vmatprep.subr.bf16.mxu1 %v3471_v5  ;;  %v3543_v54 = vpack.c.bf16 %v2754_v50, %v2753_v1  ;;  %v2758_v50 = vld [vmem:[%s3959_s13 + $0x1f8] sm:$0xff] }
  0x80   : >> { %3109 = vmatmul.mubr.msk.f32.gmra.mrb[6].mxu1 %vm204_vm0, %v279_v30 }
  0x81   : >> { %3296 = vmatmul.mubr.msk.f32.gmra.mrb[16].mxu0 %vm204_vm0, %v1587_v62  ;;  %3111 = vmatprep.mubr.msk.f32.mxu1 %vm204_vm0, %v278_v26  ;;  %v2756_v62 = vld [vmem:[%s3959_s13 + $0x1e8] sm:$0xff] }
  0x82   : >> { %3314 = vmatprep.mubr.msk.f32.mxu0 %vm204_vm0, %v283_v35  ;;  %3474 = vmatpush3.bf16.msra.mxu1 %v3471_v5  ;;  %v275_v35 = vsel %vm267_vm3, %v256_v56, %v257_v39  ;;  %v274_v5 = vsel %vm267_vm3, %v257_v39, %v258_v10  ;;  %v3547_v1 = vpack.c.bf16 %v2756_v62, %v2755_v44  ;;  %v262_v39 = vrot.slane %v4191_v45, 3  ;;  %v2779_v62 = vld [vmem:[%s3959_s13 + $0x208] sm:$0xff] }
  0x83   : >> { %3476 = vmatprep.subr.bf16.mxu1 %v4348_v9  ;;  %v272_v56 = vsel %vm267_vm3, %v259_v22, %v260_v31 }
  0x84   : >> { %3112 = vmatmul.mubr.msk.f32.gmra.mrb[8].mxu1 %vm204_vm0, %v277_v6 }
  0x85   : >> { %3315 = vmatmul.mubr.msk.f32.vlgmr.msra.gmra.mrb[0].mxu0 %vm204_vm0, %v282_v59  ;;  %3114 = vmatprep.mubr.msk.f32.mxu1 %vm204_vm0, %v276_v14  ;;  %v2757_v59 = vld [vmem:[%s3959_s13 + $0x1f0] sm:$0xff] }
  0x86   : >> { %3317 = vmatprep.mubr.msk.f32.mxu0 %vm204_vm0, %v281_v3  ;;  %3542 = vmatpush3.bf16.msra.mxu0 %v4242_v37  ;;  %v273_v37 = vsel %vm267_vm3, %v258_v10, %v259_v22  ;;  %v261_v3 = vrot.slane %v4185_v40, 3  ;;  %v3551_v44 = vpack.c.bf16 %v2758_v50, %v2757_v59  ;;  %v780_v22 = vrot.slane %v3946_v19, 5  ;;  %v2645_v50 = vld [vmem:[%s3959_s13 + $0xd0] sm:$0xff] }
  0x87   : >> { %3544 = vmatprep.subr.bf16.mxu0 %v3543_v54  ;;  %v763_v59 = vrot.slane %v3949_v21, 5 }
  0x88   : >> { %3115 = vmatmul.mubr.msk.f32.gmra.mrb[10].mxu1 %vm204_vm0, %v275_v35  ;;  %v271_v10 = vsel %vm267_vm3, %v260_v31, %v261_v3 }
  0x89   : >> { %3318 = vmatmul.mubr.msk.f32.gmra.mrb[2].mxu0 %vm204_vm0, %v280_v47  ;;  %3117 = vmatprep.mubr.msk.f32.mxu1 %vm204_vm0, %v274_v5  ;;  %v2778_v47 = vld [vmem:[%s3959_s13 + $0x200] sm:$0xff] }
  0x8a   : >> { %3320 = vmatprep.mubr.msk.f32.mxu0 %vm204_vm0, %v279_v30  ;;  %3546 = vmatpush3.bf16.msra.mxu0 %v3543_v54  ;;  %v270_v30 = vsel %vm267_vm3, %v261_v3, %v262_v39  ;;  %v779_v54 = vrot.slane %v3943_v18, 5  ;;  %v2646_v3 = vld [vmem:[%s3959_s13 + $0xd8] sm:$0xff] }
  0x8b   : >> { %3548 = vmatprep.subr.bf16.mxu0 %v3547_v1 }
  0x8c   : >> { %3118 = vmatmul.mubr.msk.f32.gmra.mrb[12].mxu1 %vm204_vm0, %v273_v37 }
  0x8d   : >> { %3321 = vmatmul.mubr.msk.f32.gmra.mrb[4].mxu0 %vm204_vm0, %v278_v26  ;;  %3120 = vmatprep.mubr.msk.f32.mxu1 %vm204_vm0, %v272_v56  ;;  %v4401_v26 = vpack.c.bf16 %v2779_v62, %v2778_v47  ;;  %v3479_v62 = vpack.c.bf16 %v2646_v3, %v2645_v50  ;;  %v768_v50 = vrot.slane %v4034_v7, 5  ;;  %v769_v3 = vrot.slane %v4057_v17, 5 }
  0x8e   : >> { %3323 = vmatprep.mubr.msk.f32.mxu0 %vm204_vm0, %v277_v6  ;;  %3550 = vmatpush3.bf16.msra.mxu0 %v3547_v1  ;;  %v4825_v6 = vrot.slane %v3943_v18, 3  ;;  %v4416_v1 = vsel %vm781_vm4, %v779_v54, %v780_v22 }
  0x8f   : >> { %3552 = vmatprep.subr.bf16.mxu0 %v3551_v44 }
  0x90   : >> { %3121 = vmatmul.mubr.msk.f32.gmra.mrb[14].mxu1 %vm204_vm0, %v271_v10  ;;  %v269_v31 = vsel %vm267_vm3, %v262_v39, %v4825_v6  ;;  %v765_v39 = vrot.slane %v4008_v57, 5  ;;  %v2648_v6 = vld [vmem:[%s3959_s13 + $0xe8] sm:$0xff] }
  0x91   : >> { %3324 = vmatmul.mubr.msk.f32.gmra.mrb[6].mxu0 %vm204_vm0, %v276_v14  ;;  %3123 = vmatprep.mubr.msk.f32.mxu1 %vm204_vm0, %v270_v30  ;;  %v764_v14 = vrot.slane %v4001_v52, 5 }
  0x92   : >> { %3326 = vmatprep.mubr.msk.f32.mxu0 %vm204_vm0, %v275_v35  ;;  %3554 = vmatpush3.bf16.msra.mxu0 %v3551_v44  ;;  %v4428_v35 = vsel %vm781_vm4, %v780_v22, %v763_v59  ;;  %v766_v44 = vrot.slane %v4013_v60, 5  ;;  %v767_v22 = vrot.slane %v4027_v4, 5 }
  0x93   : >> { %3556 = vmatprep.subr.bf16.mxu0 %v4401_v26  ;;  %v4435_v47 = vsel %vm781_vm4, %v763_v59, %v764_v14 }
  0x94   : >> { %3124 = vmatmul.mubr.msk.f32.gmra.mrb[16].mxu1 %vm204_vm0, %v269_v31  ;;  %v4453_v59 = vsel %vm781_vm4, %v765_v39, %v766_v44 }
  0x95   : >> { %3327 = vmatmul.mubr.msk.f32.gmra.mrb[8].mxu0 %vm204_vm0, %v274_v5  ;;  %3142 = vmatprep.mubr.msk.f32.mxu1 %vm204_vm0, %v4416_v1  ;;  %v2647_v5 = vld [vmem:[%s3959_s13 + $0xe0] sm:$0xff] }
  0x96   : >> { %3329 = vmatprep.mubr.msk.f32.mxu0 %vm204_vm0, %v273_v37  ;;  %v4445_v37 = vsel %vm781_vm4, %v764_v14, %v765_v39  ;;  %v2650_v14 = vld [vmem:[%s3959_s13 + $0xf8] sm:$0xff]  ;;  %v4471_v39 = vsel %vm781_vm4, %v767_v22, %v768_v50 }
  0x98   : >> { %3143 = vmatmul.mubr.msk.f32.vlgmr.msra.gmra.mrb[0].mxu1 %vm204_vm0, %v4428_v35 }
  0x99   : >> { %3330 = vmatmul.mubr.msk.f32.gmra.mrb[10].mxu0 %vm204_vm0, %v272_v56  ;;  %3478 = vmatpush3.bf16.msra.mxu1 %v4348_v9  ;;  %v3483_v56 = vpack.c.bf16 %v2648_v6, %v2647_v5  ;;  %v2649_v9 = vld [vmem:[%s3959_s13 + $0xf0] sm:$0xff]  ;;  %v772_v6 = vrot.slane %v4092_v41, 5 }
  0x9a   : >> { %3145 = vmatprep.mubr.msk.f32.mxu1 %vm204_vm0, %v4435_v47  ;;  %3332 = vmatprep.mubr.msk.f32.mxu0 %vm204_vm0, %v271_v10  ;;  %v4465_v10 = vsel %vm781_vm4, %v766_v44, %v767_v22  ;;  %v3487_v5 = vpack.c.bf16 %v2650_v14, %v2649_v9  ;;  %v771_v44 = vrot.slane %v4087_v36, 5  ;;  %v2781_v22 = vld [vmem:[%s3959_s13 + $0x218] sm:$0xff]  ;;  %v774_v9 = vrot.slane %v4127_v61, 5  ;;  %v2782_v14 = vld [vmem:[%s3959_s13 + $0x220] sm:$0xff] }
  0x9b   : >> { %3480 = vmatprep.subr.bf16.mxu1 %v3479_v62 }
  0x9c   : >> { %3146 = vmatmul.mubr.msk.f32.gmra.mrb[2].mxu1 %vm204_vm0, %v4445_v37 }
  0x9d   : >> { %3333 = vmatmul.mubr.msk.f32.gmra.mrb[12].mxu0 %vm204_vm0, %v270_v30  ;;  %3148 = vmatprep.mubr.msk.f32.mxu1 %vm204_vm0, %v4453_v59  ;;  %v770_v30 = vrot.slane %v4062_v23, 5 }
  0x9e   : >> { %3335 = vmatprep.mubr.msk.f32.mxu0 %vm204_vm0, %v269_v31  ;;  %3482 = vmatpush3.bf16.msra.mxu1 %v3479_v62  ;;  %v4482_v31 = vsel %vm781_vm4, %v768_v50, %v769_v3  ;;  %v773_v50 = vrot.slane %v4119_v55, 5 }
  0x9f   : >> { %3484 = vmatprep.subr.bf16.mxu1 %v3483_v56  ;;  %v4489_v62 = vsel %vm781_vm4, %v769_v3, %v770_v30  ;;  %v2783_v3 = vld [vmem:[%s3959_s13 + $0x228] sm:$0xff] }
  0xa0   : >> { %3149 = vmatmul.mubr.msk.f32.gmra.mrb[4].mxu1 %vm204_vm0, %v4465_v10 }
  0xa1   : >> { %3336 = vmatmul.mubr.msk.f32.gmra.mrb[14].mxu0 %vm204_vm0, %v4263_v48  ;;  %3151 = vmatprep.mubr.msk.f32.mxu1 %vm204_vm0, %v4471_v39  ;;  %v2780_v48 = vld [vmem:[%s3959_s13 + $0x210] sm:$0xff] }
  0xa2   : >> { %3338 = vmatprep.mubr.msk.f32.mxu0 %vm204_vm0, %v4280_v0  ;;  %3486 = vmatpush3.bf16.msra.mxu1 %v3483_v56  ;;  %v4502_v0 = vsel %vm781_vm4, %v770_v30, %v771_v44  ;;  %v4509_v56 = vsel %vm781_vm4, %v771_v44, %v772_v6  ;;  %v775_v30 = vrot.slane %v4154_v12, 5  ;;  %v3563_v44 = vpack.c.bf16 %v2783_v3, %v2782_v14 }
  0xa3   : >> { %3488 = vmatprep.subr.bf16.mxu1 %v3487_v5  ;;  %v1055_v14 = vrot.slane %v3946_v19, 7  ;;  %v3754_v19 = vld [vmem:[%s3881_s9 + $0x88] sm:$0xff] }
  0xa4   : >> { %3152 = vmatmul.mubr.msk.f32.gmra.mrb[6].mxu1 %vm204_vm0, %v4482_v31 }
  0xa5   : >> { %3339 = vmatmul.mubr.msk.f32.gmra.mrb[16].mxu0 %vm204_vm0, %v4290_v20  ;;  %3154 = vmatprep.mubr.msk.f32.mxu1 %vm204_vm0, %v4489_v62  ;;  %v3559_v20 = vpack.c.bf16 %v2781_v22, %v2780_v48  ;;  %v2785_v48 = vld [vmem:[%s3959_s13 + $0x238] sm:$0xff] }
  0xa6   : >> { %3357 = vmatprep.mubr.msk.f32.mxu0 %vm204_vm0, %v4044_v11  ;;  %3490 = vmatpush3.bf16.msra.mxu1 %v3487_v5  ;;  %v4523_v11 = vsel %vm781_vm4, %v772_v6, %v773_v50  ;;  %v4531_v5 = vsel %vm781_vm4, %v773_v50, %v774_v9  ;;  %v2784_v6 = vld [vmem:[%s3959_s13 + $0x230] sm:$0xff]  ;;  %v778_v50 = vrot.slane %v4191_v45, 5 }
  0xa7   : >> { %3571 = vmatprep.subr.bf16.mxu1 %v3975_v33 }
  0xa8   : >> { %3155 = vmatmul.mubr.msk.f32.gmra.mrb[8].mxu1 %vm204_vm0, %v4502_v0 }
  0xa9   : >> { %3358 = vmatmul.mubr.msk.f32.vlgmr.msra.gmra.mrb[0].mxu0 %vm204_vm0, %v4053_v15  ;;  %3157 = vmatprep.mubr.msk.f32.mxu1 %vm204_vm0, %v4509_v56  ;;  %v776_v15 = vrot.slane %v4160_v16, 5 }
  0xaa   : >> { %3360 = vmatprep.mubr.msk.f32.mxu0 %vm204_vm0, %v4074_v29  ;;  %3558 = vmatpush3.bf16.msra.mxu0 %v4401_v26  ;;  %v4544_v29 = vsel %vm781_vm4, %v774_v9, %v775_v30  ;;  %v777_v26 = vrot.slane %v4185_v40, 5 }
  0xab   : >> { %3560 = vmatprep.subr.bf16.mxu0 %v3559_v20  ;;  %v4551_v22 = vsel %vm781_vm4, %v775_v30, %v776_v15 }
  0xac   : >> { %3158 = vmatmul.mubr.msk.f32.gmra.mrb[10].mxu1 %vm204_vm0, %v4523_v11  ;;  %v4568_v9 = vsel %vm781_vm4, %v777_v26, %v778_v50 }
  0xad   : >> { %3361 = vmatmul.mubr.msk.f32.gmra.mrb[2].mxu0 %vm204_vm0, %v4083_v34  ;;  %3160 = vmatprep.mubr.msk.f32.mxu1 %vm204_vm0, %v4531_v5  ;;  %v3567_v34 = vpack.c.bf16 %v2785_v48, %v2784_v6 }
  0xae   : >> { %3363 = vmatprep.mubr.msk.f32.mxu0 %vm204_vm0, %v4105_v46  ;;  %3562 = vmatpush3.bf16.msra.mxu0 %v3559_v20  ;;  %v4562_v46 = vsel %vm781_vm4, %v776_v15, %v777_v26  ;;  %v1038_v20 = vrot.slane %v3949_v21, 7  ;;  %v4583_v21 = vsel %vm781_vm4, %v778_v50, %v779_v54  ;;  %v1050_v54 = vrot.slane %v4154_v12, 7 }
  0xaf   : >> { %3564 = vmatprep.subr.bf16.mxu0 %v3563_v44  ;;  %v1053_v15 = vrot.slane %v4191_v45, 7 }
  0xb0   : >> { %3161 = vmatmul.mubr.msk.f32.gmra.mrb[12].mxu1 %vm204_vm0, %v4544_v29 }
  0xb1   : >> { %3364 = vmatmul.mubr.msk.f32.gmra.mrb[4].mxu0 %vm204_vm0, %v4114_v51  ;;  %3163 = vmatprep.mubr.msk.f32.mxu1 %vm204_vm0, %v4551_v22  ;;  %v1039_v51 = vrot.slane %v4001_v52, 7  ;;  %v1041_v52 = vrot.slane %v4013_v60, 7  ;;  %v1043_v60 = vrot.slane %v4034_v7, 7  ;;  %v1045_v7 = vrot.slane %v4062_v23, 7 }
  0xb2   : >> { %3366 = vmatprep.mubr.msk.f32.mxu0 %vm204_vm0, %v4141_v2  ;;  %3566 = vmatpush3.bf16.msra.mxu0 %v3563_v44  ;;  %v1074_v2 = vsel %vm1056_vm5, %v1055_v14, %v1038_v20  ;;  %v3753_v44 = vld [vmem:[%s3881_s9 + $0x80] sm:$0xff] }
  0xb3   : >> { %3568 = vmatprep.subr.bf16.mxu0 %v3567_v34  ;;  %v1073_v18 = vsel %vm1056_vm5, %v1038_v20, %v1039_v51  ;;  %v1054_v6 = vrot.slane %v3753_v44, 7 }
  0xb4   : >> { %3164 = vmatmul.mubr.msk.f32.gmra.mrb[14].mxu1 %vm204_vm0, %v4562_v46 }
  0xb5   : >> { %3367 = vmatmul.mubr.msk.f32.gmra.mrb[6].mxu0 %vm204_vm0, %v4149_v8  ;;  %3166 = vmatprep.mubr.msk.f32.mxu1 %vm204_vm0, %v4568_v9  ;;  %v1040_v8 = vrot.slane %v4008_v57, 7 }
  0xb6   : >> { %3369 = vmatprep.mubr.msk.f32.mxu0 %vm204_vm0, %v4172_v27  ;;  %3570 = vmatpush3.bf16.msra.mxu0 %v3567_v34  ;;  %v1042_v27 = vrot.slane %v4027_v4, 7  ;;  %v2382_v34 = vld [vmem:[%s4747_s17 + $0x10] sm:$0xff] }
  0xb7   : >> { %v1072_v57 = vsel %vm1056_vm5, %v1039_v51, %v1040_v8  ;;  %v2385_v51 = vld [vmem:[%s4747_s17 + $0x28] sm:$0xff] }
  0xb8   : >> { %3167 = vmatmul.mubr.msk.f32.gmra.mrb[16].mxu1 %vm204_vm0, %v4583_v21  ;;  %v1070_v4 = vsel %vm1056_vm5, %v1041_v52, %v1042_v27 }
  0xb9   : >> { %3370 = vmatmul.mubr.msk.f32.gmra.mrb[8].mxu0 %vm204_vm0, %v4180_v32  ;;  %3185 = vmatprep.mubr.msk.f32.mxu1 %vm204_vm0, %v1074_v2  ;;  %v1071_v32 = vsel %vm1056_vm5, %v1040_v8, %v1041_v52  ;;  %v2384_v52 = vld [vmem:[%s4747_s17 + $0x20] sm:$0xff] }
  0xba   : >> { %3372 = vmatprep.mubr.msk.f32.mxu0 %vm204_vm0, %v4202_v53  ;;  %v1044_v53 = vrot.slane %v4057_v17, 7 }
  0xbc   : >> { %3186 = vmatmul.mubr.msk.f32.vlgmr.msra.gmra.mrb[0].mxu1 %vm204_vm0, %v1073_v18  ;;  %v1068_v17 = vsel %vm1056_vm5, %v1043_v60, %v1044_v53  ;;  %v1067_v23 = vsel %vm1056_vm5, %v1044_v53, %v1045_v7  ;;  %v2387_v53 = vld [vmem:[%s4747_s17 + $0x38] sm:$0xff] }
  0xbd   : >> { %3373 = vmatmul.mubr.msk.f32.gmra.mrb[10].mxu0 %vm204_vm0, %v4210_v58  ;;  %3575 = vmatpush3.bf16.msra.mxu1 %v3975_v33  ;;  %v1069_v33 = vsel %vm1056_vm5, %v1042_v27, %v1043_v60  ;;  %v1046_v58 = vrot.slane %v4087_v36, 7 }
  0xbe   : >> { %3188 = vmatprep.mubr.msk.f32.mxu1 %vm204_vm0, %v1072_v57  ;;  %3375 = vmatprep.mubr.msk.f32.mxu0 %vm204_vm0, %v4226_v13  ;;  %v1047_v13 = vrot.slane %v4092_v41, 7 }
  0xbf   : >> { %3572 = vmatprep.subr.bf16.mxu1 %v3980_v38 }
  0xc0   : >> { %3189 = vmatmul.mubr.msk.f32.gmra.mrb[2].mxu1 %vm204_vm0, %v1071_v32 }
  0xc1   : >> { %3376 = vmatmul.mubr.msk.f32.gmra.mrb[12].mxu0 %vm204_vm0, %v4234_v25  ;;  %3191 = vmatprep.mubr.msk.f32.mxu1 %vm204_vm0, %v1070_v4  ;;  %v1048_v25 = vrot.slane %v4119_v55, 7 }
  0xc2   : >> { %3378 = vmatprep.mubr.msk.f32.mxu0 %vm204_vm0, %v4253_v42  ;;  %3576 = vmatpush3.bf16.msra.mxu1 %v3980_v38  ;;  %v1066_v38 = vsel %vm1056_vm5, %v1045_v7, %v1046_v58  ;;  %v1065_v42 = vsel %vm1056_vm5, %v1046_v58, %v1047_v13  ;;  %v2386_v58 = vld [vmem:[%s4747_s17 + $0x30] sm:$0xff] }
  0xc3   : >> { %3573 = vmatprep.subr.bf16.mxu1 %v3988_v43 }
  0xc4   : >> { %3192 = vmatmul.mubr.msk.f32.gmra.mrb[4].mxu1 %vm204_vm0, %v1069_v33 }
  0xc5   : >> { %3379 = vmatmul.mubr.msk.f32.gmra.mrb[14].mxu0 %vm204_vm0, %v3968_v28  ;;  %3194 = vmatprep.mubr.msk.f32.mxu1 %vm204_vm0, %v1068_v17  ;;  %v4826_v28 = vld [vmem:[#allocation5_spill] sm:$0xff] }
  0xc6   : >> { %3381 = vmatprep.mubr.msk.f32.mxu0 %vm204_vm0, %v4019_v63  ;;  %3577 = vmatpush3.bf16.msra.mxu1 %v3988_v43  ;;  %v1049_v63 = vrot.slane %v4127_v61, 7  ;;  %v1064_v43 = vsel %vm1056_vm5, %v1047_v13, %v1048_v25 }
  0xc7   : >> { %3574 = vmatprep.subr.bf16.mxu1 %v3996_v49 }
  0xc8   : >> { %3195 = vmatmul.mubr.msk.f32.gmra.mrb[6].mxu1 %vm204_vm0, %v1067_v23  ;;  %v1063_v3 = vsel %vm1056_vm5, %v1048_v25, %v1049_v63  ;;  %v1062_v30 = vsel %vm1056_vm5, %v1049_v63, %v1050_v54 }
  0xc9   : >> { %3382 = vmatmul.mubr.msk.f32.gmra.mrb[16].mxu0 %vm204_vm0, %v4826_v28  ;;  %3197 = vmatprep.mubr.msk.f32.mxu1 %vm204_vm0, %v1066_v38 }
  0xca   : >> { %3400 = vmatprep.mubr.msk.f32.mxu0 %vm204_vm0, %v4445_v37  ;;  %3578 = vmatpush3.bf16.msra.mxu1 %v3996_v49  ;;  %v1051_v37 = vrot.slane %v4160_v16, 7  ;;  %v1052_v49 = vrot.slane %v4185_v40, 7 }
  0xcc   : >> { %3198 = vmatmul.mubr.msk.f32.gmra.mrb[8].mxu1 %vm204_vm0, %v1065_v42 }
  0xcd   : >> { %3401 = vmatmul.mubr.msk.f32.vlgmr.msra.gmra.mrb[0].mxu0 %vm204_vm0, %v4453_v59  ;;  %3200 = vmatprep.mubr.msk.f32.mxu1 %vm204_vm0, %v1064_v43  ;;  %v1061_v59 = vsel %vm1056_vm5, %v1050_v54, %v1051_v37 }
  0xce   : >> { %3403 = vmatprep.mubr.msk.f32.mxu0 %vm204_vm0, %v4465_v10  ;;  %v1060_v10 = vsel %vm1056_vm5, %v1051_v37, %v1052_v49 }
  0xd0   : >> { %3201 = vmatmul.mubr.msk.f32.gmra.mrb[10].mxu1 %vm204_vm0, %v1063_v3  ;;  %v2389_v3 = vld [vmem:[%s4747_s17 + $0x48] sm:$0xff] }
  0xd1   : >> { %3404 = vmatmul.mubr.msk.f32.gmra.mrb[2].mxu0 %vm204_vm0, %v4471_v39  ;;  %3203 = vmatprep.mubr.msk.f32.mxu1 %vm204_vm0, %v1062_v30  ;;  %v1059_v39 = vsel %vm1056_vm5, %v1052_v49, %v1053_v15 }
  0xd2   : >> { %3406 = vmatprep.mubr.msk.f32.mxu0 %vm204_vm0, %v4482_v31  ;;  %v1058_v31 = vsel %vm1056_vm5, %v1053_v15, %v1054_v6 }
  0xd4   : >> { %3204 = vmatmul.mubr.msk.f32.gmra.mrb[12].mxu1 %vm204_vm0, %v1061_v59  ;;  %v2388_v59 = vld [vmem:[%s4747_s17 + $0x40] sm:$0xff] }
  0xd5   : >> { %3407 = vmatmul.mubr.msk.f32.gmra.mrb[4].mxu0 %vm204_vm0, %v4489_v62  ;;  %3206 = vmatprep.mubr.msk.f32.mxu1 %vm204_vm0, %v1060_v10  ;;  %v1057_v62 = vsel %vm1056_vm5, %v1054_v6, %v1055_v14 }
  0xd6   : >> { %3409 = vmatprep.mubr.msk.f32.mxu0 %vm204_vm0, %v4502_v0  ;;  %v2380_v0 = vld [vmem:[%s4747_s17] sm:$0xff] }
  0xd8   : >> { %3207 = vmatmul.mubr.msk.f32.gmra.mrb[14].mxu1 %vm204_vm0, %v1059_v39 }
  0xd9   : >> { %3410 = vmatmul.mubr.msk.f32.gmra.mrb[6].mxu0 %vm204_vm0, %v4509_v56  ;;  %3209 = vmatprep.mubr.msk.f32.mxu1 %vm204_vm0, %v1058_v31  ;;  %v2391_v31 = vld [vmem:[%s4747_s17 + $0x58] sm:$0xff] }
  0xda   : >> { %3412 = vmatprep.mubr.msk.f32.mxu0 %vm204_vm0, %v4523_v11 }
  0xdc   : >> { %3210 = vmatmul.mubr.msk.f32.gmra.mrb[16].mxu1 %vm204_vm0, %v1057_v62 }
  0xdd   : >> { %3413 = vmatmul.mubr.msk.f32.gmra.mrb[8].mxu0 %vm204_vm0, %v4531_v5  ;;  %3240 = vmatprep.mubr.msk.f32.mxu1 %vm204_vm0, %v4087_v36 }
  0xde   : >> { %3415 = vmatprep.mubr.msk.f32.mxu0 %vm204_vm0, %v4544_v29  ;;  %v2383_v29 = vld [vmem:[%s4747_s17 + $0x18] sm:$0xff] }
  0xe0   : >> { %3241 = vmatmul.mubr.msk.f32.vlgmr.msra.gmra.mrb[8].mxu1 %vm204_vm0, %v4092_v41 }
  0xe1   : >> { %3416 = vmatmul.mubr.msk.f32.gmra.mrb[10].mxu0 %vm204_vm0, %v4551_v22  ;;  %3243 = vmatprep.mubr.msk.f32.mxu1 %vm204_vm0, %v4119_v55 }
  0xe2   : >> { %3418 = vmatprep.mubr.msk.f32.mxu0 %vm204_vm0, %v4562_v46 }
  0xe4   : >> { %3244 = vmatmul.mubr.msk.f32.gmra.mrb[10].mxu1 %vm204_vm0, %v4127_v61 }
  0xe5   : >> { %3419 = vmatmul.mubr.msk.f32.gmra.mrb[12].mxu0 %vm204_vm0, %v4568_v9  ;;  %3246 = vmatprep.mubr.msk.f32.mxu1 %vm204_vm0, %v4154_v12 }
  0xe6   : >> { %3421 = vmatprep.mubr.msk.f32.mxu0 %vm204_vm0, %v4583_v21 }
  0xe8   : >> { %3247 = vmatmul.mubr.msk.f32.gmra.mrb[12].mxu1 %vm204_vm0, %v4160_v16 }
  0xe9   : >> { %3422 = vmatmul.mubr.msk.f32.gmra.mrb[14].mxu0 %vm204_vm0, %v4416_v1  ;;  %3249 = vmatprep.mubr.msk.f32.mxu1 %vm204_vm0, %v4185_v40  ;;  %v2381_v1 = vld [vmem:[%s4747_s17 + $0x8] sm:$0xff] }
  0xea   : >> { %3424 = vmatprep.mubr.msk.f32.mxu0 %vm204_vm0, %v4428_v35 }
  0xec   : >> { %3250 = vmatmul.mubr.msk.f32.gmra.mrb[14].mxu1 %vm204_vm0, %v4191_v45 }
  0xed   : >> { %3425 = vmatmul.mubr.msk.f32.gmra.mrb[16].mxu0 %vm204_vm0, %v4435_v47  ;;  %3252 = vmatprep.mubr.msk.f32.mxu1 %vm204_vm0, %v3753_v44 }
  0xf0   : >> { %3253 = vmatmul.mubr.msk.f32.gmra.mrb[16].mxu1 %vm204_vm0, %v3754_v19 }
 0x18f   : >> { %v3187_v24 = vpop.f32.mrb[0].mxu1 }
 0x190   : >> { %v1206_v36 = vpop.f32.mrb[1].mxu1 }
 0x193   : >> { %v3190_v41 = vpop.f32.mrb[2].mxu1 }
 0x194   : >> { %v1216_v55 = vpop.f32.mrb[3].mxu1 }
 0x197   : >> { %v3193_v61 = vpop.f32.mrb[4].mxu1 }
 0x198   : >> { %v1226_v12 = vpop.f32.mrb[5].mxu1 }
 0x19b   : >> { %v3196_v16 = vpop.f32.mrb[6].mxu1 }
 0x19c   : >> { %v1236_v40 = vpop.f32.mrb[7].mxu1 }
 0x1a0   : >> { %v3402_v45 = vpop.f32.mrb[0].mxu0 }
 0x1a1   : >> { %v3579_v35 = vadd.f32 %v3402_v45, %v3187_v24  ;;  %v2271_v47 = vpop.f32.mrb[1].mxu0 }
 0x1a2   : >> { %v3580_v56 = vadd.f32 %v2271_v47, %v1206_v36 }
 0x1a3   : >> { %v2399_v11 = vadd.f32 %v3579_v35, %v2381_v1  ;;  %v2393_v1 = vld [vmem:[%s4747_s17 + $0x68] sm:$0xff] }
 0x1a4   : >> { %v2398_v5 = vadd.f32 %v3580_v56, %v2380_v0  ;;  %v3405_v48 = vpop.f32.mrb[2].mxu0 }
 0x1a5   : >> { %v2417_v26 = vmax.f32 %v2399_v11, 0.0  ;;  %v3581_v22 = vadd.f32 %v3405_v48, %v3190_v41  ;;  %v2281_v50 = vpop.f32.mrb[3].mxu0  ;;  %v2390_v41 = vld [vmem:[%s4747_s17 + $0x50] sm:$0xff]  ;;  %v2392_v11 = vld [vmem:[%s4747_s17 + $0x60] sm:$0xff] }
 0x1a6   : >> { %v2416_v46 = vmax.f32 %v2398_v5, 0.0  ;;  %v3582_v9 = vadd.f32 %v2281_v50, %v1216_v55 }
 0x1a7   : >> { %2435 = vst.msk [vmem:[%s3881_s9 + $0x8] sm:$0xff] %vm204_vm0, %v2417_v26  ;;  %v2401_v20 = vadd.f32 %v3581_v22, %v2383_v29 }
 0x1a8   : >> { %2434 = vst.msk [vmem:[%s3881_s9] sm:$0xff] %vm204_vm0, %v2416_v46  ;;  %v2400_v14 = vadd.f32 %v3582_v9, %v2382_v34  ;;  %v3408_v21 = vpop.f32.mrb[4].mxu0  ;;  %v2395_v34 = vld [vmem:[%s4747_s17 + $0x78] sm:$0xff] }
 0x1a9   : >> { %v2419_v2 = vmax.f32 %v2401_v20, 0.0  ;;  %v3583_v8 = vadd.f32 %v3408_v21, %v3193_v61  ;;  %v2291_v18 = vpop.f32.mrb[5].mxu0  ;;  %v2394_v21 = vld [vmem:[%s4747_s17 + $0x70] sm:$0xff] }
 0x1aa   : >> { %v2418_v27 = vmax.f32 %v2400_v14, 0.0  ;;  %v3584_v57 = vadd.f32 %v2291_v18, %v1226_v12 }
 0x1ab   : >> { %2437 = vst.msk [vmem:[%s3881_s9 + $0x18] sm:$0xff] %vm204_vm0, %v2419_v2  ;;  %v2403_v32 = vadd.f32 %v3583_v8, %v2385_v51 }
 0x1ac   : >> { %2436 = vst.msk [vmem:[%s3881_s9 + $0x10] sm:$0xff] %vm204_vm0, %v2418_v27  ;;  %v2402_v60 = vadd.f32 %v3584_v57, %v2384_v52  ;;  %v3411_v4 = vpop.f32.mrb[6].mxu0  ;;  %v2397_v57 = vld [vmem:[%s4747_s17 + $0x88] sm:$0xff] }
 0x1ad   : >> { %v2421_v33 = vmax.f32 %v2403_v32, 0.0  ;;  %v3585_v7 = vadd.f32 %v3411_v4, %v3196_v16  ;;  %v2301_v17 = vpop.f32.mrb[7].mxu0 }
 0x1ae   : >> { %v2420_v23 = vmax.f32 %v2402_v60, 0.0  ;;  %v3586_v13 = vadd.f32 %v2301_v17, %v1236_v40 }
 0x1af   : >> { %2439 = vst.msk [vmem:[%s3881_s9 + $0x28] sm:$0xff] %vm204_vm0, %v2421_v33  ;;  %v2405_v38 = vadd.f32 %v3585_v7, %v2387_v53  ;;  %v2396_v53 = vld [vmem:[%s4747_s17 + $0x80] sm:$0xff] }
 0x1b0   : >> { %2438 = vst.msk [vmem:[%s3881_s9 + $0x20] sm:$0xff] %vm204_vm0, %v2420_v23  ;;  %v2404_v25 = vadd.f32 %v3586_v13, %v2386_v58  ;;  %v3414_v28 = vpop.f32.mrb[8].mxu0 }
 0x1b1   : >> { %v2423_v42 = vmax.f32 %v2405_v38, 0.0  ;;  %v2311_v63 = vpop.f32.mrb[9].mxu0 }
 0x1b2   : >> { %v2422_v43 = vmax.f32 %v2404_v25, 0.0 }
 0x1b3   : >> { %2441 = vst.msk [vmem:[%s3881_s9 + $0x38] sm:$0xff] %vm204_vm0, %v2423_v42  ;;  %v3242_v54 = vpop.f32.mrb[8].mxu1 }
 0x1b4   : >> { %2440 = vst.msk [vmem:[%s3881_s9 + $0x30] sm:$0xff] %vm204_vm0, %v2422_v43  ;;  %v3587_v37 = vadd.f32 %v3414_v28, %v3242_v54  ;;  %v3417_v30 = vpop.f32.mrb[10].mxu0  ;;  %v1484_v49 = vpop.f32.mrb[9].mxu1 }
 0x1b5   : >> { %v3588_v15 = vadd.f32 %v2311_v63, %v1484_v49  ;;  %v2321_v10 = vpop.f32.mrb[11].mxu0 }
 0x1b6   : >> { %v2407_v44 = vadd.f32 %v3587_v37, %v2389_v3 }
 0x1b7   : >> { %v2406_v6 = vadd.f32 %v3588_v15, %v2388_v59  ;;  %v3245_v39 = vpop.f32.mrb[10].mxu1 }
 0x1b8   : >> { %v2425_v62 = vmax.f32 %v2407_v44, 0.0  ;;  %v3589_v19 = vadd.f32 %v3417_v30, %v3245_v39  ;;  %v3420_v24 = vpop.f32.mrb[12].mxu0  ;;  %v1494_v36 = vpop.f32.mrb[11].mxu1 }
 0x1b9   : >> { %v2424_v55 = vmax.f32 %v2406_v6, 0.0  ;;  %v3590_v61 = vadd.f32 %v2321_v10, %v1494_v36  ;;  %v2331_v12 = vpop.f32.mrb[13].mxu0 }
 0x1ba   : >> { %2443 = vst.msk [vmem:[%s3881_s9 + $0x48] sm:$0xff] %vm204_vm0, %v2425_v62  ;;  %v2409_v16 = vadd.f32 %v3589_v19, %v2391_v31 }
 0x1bb   : >> { %2442 = vst.msk [vmem:[%s3881_s9 + $0x40] sm:$0xff] %vm204_vm0, %v2424_v55  ;;  %v2408_v40 = vadd.f32 %v3590_v61, %v2390_v41  ;;  %v3248_v45 = vpop.f32.mrb[12].mxu1 }
 0x1bc   : >> { %v2427_v35 = vmax.f32 %v2409_v16, 0.0  ;;  %v3591_v47 = vadd.f32 %v3420_v24, %v3248_v45  ;;  %v3423_v0 = vpop.f32.mrb[14].mxu0  ;;  %v1504_v56 = vpop.f32.mrb[13].mxu1 }
 0x1bd   : >> { %v2426_v5 = vmax.f32 %v2408_v40, 0.0  ;;  %v3592_v48 = vadd.f32 %v2331_v12, %v1504_v56  ;;  %v2341_v29 = vpop.f32.mrb[15].mxu0 }
 0x1be   : >> { %2445 = vst.msk [vmem:[%s3881_s9 + $0x58] sm:$0xff] %vm204_vm0, %v2427_v35  ;;  %v2411_v26 = vadd.f32 %v3591_v47, %v2393_v1 }
 0x1bf   : >> { %2444 = vst.msk [vmem:[%s3881_s9 + $0x50] sm:$0xff] %vm204_vm0, %v2426_v5  ;;  %v2410_v22 = vadd.f32 %v3592_v48, %v2392_v11  ;;  %v3251_v50 = vpop.f32.mrb[14].mxu1 }
 0x1c0   : >> { %v2429_v46 = vmax.f32 %v2411_v26, 0.0  ;;  %v3593_v9 = vadd.f32 %v3423_v0, %v3251_v50  ;;  %v3426_v20 = vpop.f32.mrb[16].mxu0  ;;  %v1514_v14 = vpop.f32.mrb[15].mxu1 }
 0x1c1   : >> { %v2428_v51 = vmax.f32 %v2410_v22, 0.0  ;;  %v3594_v2 = vadd.f32 %v2341_v29, %v1514_v14  ;;  %v2351_v8 = vpop.f32.mrb[17].mxu0 }
 0x1c2   : >> { %2447 = vst.msk [vmem:[%s3881_s9 + $0x68] sm:$0xff] %vm204_vm0, %v2429_v46  ;;  %v2413_v18 = vadd.f32 %v3593_v9, %v2395_v34 }
 0x1c3   : >> { %2446 = vst.msk [vmem:[%s3881_s9 + $0x60] sm:$0xff] %vm204_vm0, %v2428_v51  ;;  %v2412_v52 = vadd.f32 %v3594_v2, %v2394_v21  ;;  %v3254_v27 = vpop.f32.mrb[16].mxu1 }
 0x1c4   : >> { %v2431_v32 = vmax.f32 %v2413_v18, 0.0  ;;  %v3595_v60 = vadd.f32 %v3426_v20, %v3254_v27  ;;  %v1524_v4 = vpop.f32.mrb[17].mxu1 }
 0x1c5   : >> { %v2430_v33 = vmax.f32 %v2412_v52, 0.0  ;;  %v3596_v7 = vadd.f32 %v2351_v8, %v1524_v4  ;;  %227 = sbr.rel (!%p225_p3) target bundleno = 58 (0x3a), region = 84 }
 0x1c6   : >> { %2449 = vst.msk [vmem:[%s3881_s9 + $0x78] sm:$0xff] %vm204_vm0, %v2431_v32  ;;  %v2415_v17 = vadd.f32 %v3595_v60, %v2397_v57 }
 0x1c7   : >> { %2448 = vst.msk [vmem:[%s3881_s9 + $0x70] sm:$0xff] %vm204_vm0, %v2430_v33  ;;  %v2414_v58 = vadd.f32 %v3596_v7, %v2396_v53 }
 0x1c8   : >> { %v2433_v23 = vmax.f32 %v2415_v17, 0.0 }
 0x1c9   : >> { %v2432_v13 = vmax.f32 %v2414_v58, 0.0 }
 0x1ca   : >> { %2451 = vst.msk [vmem:[%s3881_s9 + $0x88] sm:$0xff] %vm204_vm0, %v2433_v23 }
 0x1cb   : >> { %2450 = vst.msk [vmem:[%s3881_s9 + $0x80] sm:$0xff] %vm204_vm0, %v2432_v13 }
 0x1cc PF: > { %s14_s12 = sadd.s32 1, %s3797_s12  }
 0x1cd   : > { %p11_p5 = scmp.ge.s32.totalorder %s14_s12, 4  }
 0x1cf   :  { %13 = sbr.rel (!%p11_p5) target bundleno = 1 (0x1), region = 95 }
 0x1d6   :  { %2473 = vsyncpa [#allocation3], 1 }
 0x1d7   :  { %2475 = vsyncpa [#allocation3 + $0x1], 1 }

// kernel: dncnn_forward.3
= control target key start
LH: loop header
LB: loop body
LE: loop exit
PB: predicated region body
PF: predicated region fallthrough
CT: control target
= control target key end

     0   :  { %s12568_s18 = smov 0   ;;  %s12570_s19 = smov 0   ;;  %s14470_s0 = inlined_call_operand.vmem [shape: f32[2,6400], index: 0, kind: input, shape index: {}]   ;;  %s14471_s1 = inlined_call_operand.vmem [shape: bf16[6400,1600], index: 1, kind: input, shape index: {}]   ;;  %s14472_s2 = inlined_call_operand.vmem [shape: f32[1,1600], index: 2, kind: input, shape index: {}]   ;;  %s14473_s3 = inlined_call_operand.vmem [shape: f32[1600,100], index: 3, kind: input, shape index: {}]   ;;  %s14474_s4 = inlined_call_operand.vmem [shape: f32[1,100], index: 4, kind: input, shape index: {}]   ;;  %s14475_s5 = inlined_call_operand.vmem [shape: f32[2,100], index: 5, kind: output, shape index: {}]  }
   0x1   :  { %s12572_s20 = smov 0  }
   0x2 LB: > { %s24_s21 = sadd.s32 1, %s12527_s19  ;;  %p9258_p0 = scmp.ge.s32.totalorder %s12531_s20, 1  ;;  %s12531_s20 = sphi %s12572_s20, %s15_s20   ;;  %s12527_s19 = sphi %s12570_s19, %s14477_s19   ;;  %s12523_s18 = sphi %s12568_s18, %s14476_s18  }
   0x3   : > { %p25_p1 = scmp.ge.s32.totalorder %s24_s21, 5  ;;  %p218_p2 = scmp.lt.s32.totalorder %s12531_s20, 6 }
   0x5   : > { %s14479_s21 = smov (%p25_p1, %s24_s21), 0  ;;  %p219_p3 = pnand %p9258_p0, %p218_p2 }
   0x6   : > { %s255_s22 = smul.u32 (!%p219_p3), 10, %s12523_s18  ;;  %p9261_p6 = scmp.ne.s32.totalorder (!%p219_p3), %s12523_s18, 0 }
   0x7   : > { %222 = sbr.rel (%p219_p3) target bundleno = 1609 (0x649), region = 40 }
   0x8   : > { %s265_s23 = smul.u32 (!%p219_p3), 160, %s12523_s18  ;;  %p258_p4 = scmp.lt.s32.totalorder (!%p219_p3), %s255_s22, 49 }
   0xa   : > { %p266_p5 = scmp.lt.s32.totalorder (!%p219_p3), %s265_s23, 799 }
   0xe   : > { %s14481_s22 = smov (!%p258_p4, %s255_s22), 49  ;;  %s14483_s23 = smov (!%p266_p5, %s265_s23), 799 }
   0xf   : > { %s9259_s24 = sshll.u32 %s14481_s22, 1  ;;  %s10957_s28 = smul.u32 52, %s14483_s23  ;;  %vm284_vm0 = vcmask (!%p9261_p6), 517120   ;;  %v12533_v0 = vmov (!%p9261_p6), 0.0  }
  0x10   : > { %s12593_s27 = scalar_lea.vmem %s14470_s0, %s9259_s24  ;;  %280 = sbr.rel (%p9261_p6) target bundleno = 23 (0x17), region = 44  ;;  %281 = vst [vmem:[#allocation2] sm:$0xff] (!%p9261_p6), %v12533_v0  ;;  %282 = vst [vmem:[#allocation2 + $0x8] sm:$0xff] (!%p9261_p6), %v12533_v0 }
  0x11   : > { %s12598_s6 = scalar_lea.vmem %s14471_s1, %s10957_s28  ;;  %283 = vst [vmem:[#allocation2 + $0x10] sm:$0xff] (!%p9261_p6), %v12533_v0  ;;  %285 = vst.msk [vmem:[#allocation2 + $0x18] sm:$0x3] (!%p9261_p6), %vm284_vm0, %v12533_v0 }
  0x17 PF: > { %v10987_v1 = vld [vmem:[%s12598_s6 + $0x4] ss:$52 sps:$4 sm:$0xff]   ;;  %v10989_v2 = vld [vmem:[%s12598_s6 + $0xc] ss:$52 sps:$4 sm:$0xff]   ;;  %v10992_v4 = vld [vmem:[%s12598_s6 + $0x8] ss:$52 sps:$4 sm:$0xff]   ;;  %v300_v39 = vlaneseq }
  0x18   : > { %6758 = vmatprep.subr.bf16.mxu0 %v10987_v1  ;;  %v10991_v3 = vld [vmem:[%s12598_s6] ss:$52 sps:$4 sm:$0xff]   ;;  %6963 = vmatprep.subr.bf16.mxu1 %v10989_v2  ;;  %v10997_v7 = vld [vmem:[%s12598_s6 + $0x68] ss:$52 sps:$4 sm:$0xff]   ;;  %v10998_v8 = vld [vmem:[%s12598_s6 + $0x70] ss:$52 sps:$4 sm:$0xff]  }
  0x19   : > { %v10993_v5 = vld [vmem:[%s12598_s6 + $0x6c] ss:$52 sps:$4 sm:$0xff]   ;;  %6759 = vmatpush1.bf16.msra.mxu0 %v10991_v3  ;;  %6964 = vmatpush1.bf16.msra.mxu1 %v10992_v4  ;;  %v10995_v6 = vld [vmem:[%s12598_s6 + $0x74] ss:$52 sps:$4 sm:$0xff]   ;;  %v11001_v10 = vld [vmem:[%s12598_s6 + $0xdc] ss:$52 sps:$4 sm:$0xff]  }
  0x1a   : > { %6760 = vmatprep.subr.bf16.mxu0 %v10993_v5  ;;  %6965 = vmatprep.subr.bf16.mxu1 %v10995_v6  ;;  %v10999_v9 = vld [vmem:[%s12598_s6 + $0xd4] ss:$52 sps:$4 sm:$0xff]   ;;  %v11003_v11 = vld [vmem:[%s12598_s6 + $0xd0] ss:$52 sps:$4 sm:$0xff]   ;;  %v11004_v12 = vld [vmem:[%s12598_s6 + $0xd8] ss:$52 sps:$4 sm:$0xff]  }
  0x1b   : > { %v11005_v13 = vld [vmem:[%s12598_s6 + $0x13c] ss:$52 sps:$4 sm:$0xff]   ;;  %v11007_v14 = vld [vmem:[%s12598_s6 + $0x144] ss:$52 sps:$4 sm:$0xff]   ;;  %v11010_v16 = vld [vmem:[%s12598_s6 + $0x140] ss:$52 sps:$4 sm:$0xff]  }
  0x1c   : > { %v11009_v15 = vld [vmem:[%s12598_s6 + $0x138] ss:$52 sps:$4 sm:$0xff]   ;;  %v11015_v19 = vld [vmem:[%s12598_s6 + $0x1a0] ss:$52 sps:$4 sm:$0xff]   ;;  %v11016_v20 = vld [vmem:[%s12598_s6 + $0x1a8] ss:$52 sps:$4 sm:$0xff]  }
  0x1d   : > { %6761 = vmatpush1.bf16.msra.mxu0 %v10997_v7  ;;  %6966 = vmatpush1.bf16.msra.mxu1 %v10998_v8  ;;  %v11011_v17 = vld [vmem:[%s12598_s6 + $0x1a4] ss:$52 sps:$4 sm:$0xff]   ;;  %v11013_v18 = vld [vmem:[%s12598_s6 + $0x1ac] ss:$52 sps:$4 sm:$0xff]   ;;  %v11019_v22 = vld [vmem:[%s12598_s6 + $0x214] ss:$52 sps:$4 sm:$0xff]  }
  0x1e   : > { %6762 = vmatprep.subr.bf16.mxu0 %v10999_v9  ;;  %6967 = vmatprep.subr.bf16.mxu1 %v11001_v10  ;;  %v11017_v21 = vld [vmem:[%s12598_s6 + $0x20c] ss:$52 sps:$4 sm:$0xff]   ;;  %v11021_v23 = vld [vmem:[%s12598_s6 + $0x208] ss:$52 sps:$4 sm:$0xff]   ;;  %v11022_v24 = vld [vmem:[%s12598_s6 + $0x210] ss:$52 sps:$4 sm:$0xff]  }
  0x1f   : > { %v11023_v25 = vld [vmem:[%s12598_s6 + $0x274] ss:$52 sps:$4 sm:$0xff]   ;;  %v11025_v26 = vld [vmem:[%s12598_s6 + $0x27c] ss:$52 sps:$4 sm:$0xff]   ;;  %v11028_v28 = vld [vmem:[%s12598_s6 + $0x278] ss:$52 sps:$4 sm:$0xff]  }
  0x20   : > { %v11027_v27 = vld [vmem:[%s12598_s6 + $0x270] ss:$52 sps:$4 sm:$0xff]   ;;  %v11033_v31 = vld [vmem:[%s12598_s6 + $0x2d8] ss:$52 sps:$4 sm:$0xff]   ;;  %v11034_v32 = vld [vmem:[%s12598_s6 + $0x2e0] ss:$52 sps:$4 sm:$0xff]  }
  0x21   : > { %6763 = vmatpush1.bf16.msra.mxu0 %v11003_v11  ;;  %6968 = vmatpush1.bf16.msra.mxu1 %v11004_v12  ;;  %v11029_v29 = vld [vmem:[%s12598_s6 + $0x2dc] ss:$52 sps:$4 sm:$0xff]   ;;  %v11031_v30 = vld [vmem:[%s12598_s6 + $0x2e4] ss:$52 sps:$4 sm:$0xff]   ;;  %v11037_v34 = vld [vmem:[%s12598_s6 + $0x34c] ss:$52 sps:$4 sm:$0xff]  }
  0x22   : > { %6764 = vmatprep.subr.bf16.mxu0 %v11005_v13  ;;  %6969 = vmatprep.subr.bf16.mxu1 %v11007_v14  ;;  %v11035_v33 = vld [vmem:[%s12598_s6 + $0x344] ss:$52 sps:$4 sm:$0xff]   ;;  %v11039_v35 = vld [vmem:[%s12598_s6 + $0x340] ss:$52 sps:$4 sm:$0xff]   ;;  %v11040_v36 = vld [vmem:[%s12598_s6 + $0x348] ss:$52 sps:$4 sm:$0xff]  }
  0x23   : > { %v12534_v37 = vmov 1983009808   ;;  %v11041_v40 = vld [vmem:[%s12598_s6 + $0x3ac] ss:$52 sps:$4 sm:$0xff]   ;;  %v11043_v41 = vld [vmem:[%s12598_s6 + $0x3b4] ss:$52 sps:$4 sm:$0xff]  }
  0x24   : > { %v298_v38 = vunpack.c.l.s4 %v12534_v37  ;;  %v11045_v42 = vld [vmem:[%s12598_s6 + $0x3a8] ss:$52 sps:$4 sm:$0xff]   ;;  %v12640_v44 = vshrl.u32 %v300_v39, 7  ;;  %v11046_v45 = vld [vmem:[%s12598_s6 + $0x3b0] ss:$52 sps:$4 sm:$0xff]   ;;  %vm8270_vm1 = vcmask 517120  }
  0x25   : > { %6765 = vmatpush1.bf16.msra.mxu0 %v11009_v15  ;;  %6970 = vmatpush1.bf16.msra.mxu1 %v11010_v16  ;;  %v11047_v46 = vld [vmem:[%s12598_s6 + $0x414] ss:$52 sps:$4 sm:$0xff]   ;;  %v11049_v47 = vld [vmem:[%s12598_s6 + $0x41c] ss:$52 sps:$4 sm:$0xff]   ;;  %v11052_v49 = vld [vmem:[%s12598_s6 + $0x418] ss:$52 sps:$4 sm:$0xff]  }
  0x26   : > { %6766 = vmatprep.subr.bf16.mxu0 %v11011_v17  ;;  %6971 = vmatprep.subr.bf16.mxu1 %v11013_v18  ;;  %v299_v43 = vunpack.c.0.s8 %v298_v38  ;;  %v11051_v48 = vld [vmem:[%s12598_s6 + $0x410] ss:$52 sps:$4 sm:$0xff]   ;;  %v11057_v54 = vld [vmem:[%s12598_s6 + $0x478] ss:$52 sps:$4 sm:$0xff]   ;;  %v11058_v56 = vld [vmem:[%s12598_s6 + $0x480] ss:$52 sps:$4 sm:$0xff]  }
  0x27   : > { %v11053_v51 = vld [vmem:[%s12598_s6 + $0x47c] ss:$52 sps:$4 sm:$0xff]   ;;  %v11055_v52 = vld [vmem:[%s12598_s6 + $0x484] ss:$52 sps:$4 sm:$0xff]   ;;  %v11061_v58 = vld [vmem:[%s12598_s6 + $0x4ec] ss:$52 sps:$4 sm:$0xff]  }
  0x28   : > { %v12648_v50 = vsub.s32 %v299_v43, %v12640_v44  ;;  %v290_v53 = vld [vmem:[%s12593_s27] sm:$0xff]  ;;  %v11064_v62 = vld [vmem:[%s12598_s6 + $0x4e8] ss:$52 sps:$4 sm:$0xff]   ;;  %v11076_v7 = vld [vmem:[%s12598_s6 + $0x5b8] ss:$52 sps:$4 sm:$0xff]   ;;  %p10303_p7 = scmp.ne.s32.totalorder %s12523_s18, 4 }
  0x29   : > { %6767 = vmatpush1.bf16.msra.mxu0 %v11015_v19  ;;  %6972 = vmatpush1.bf16.msra.mxu1 %v11016_v20  ;;  %v11059_v57 = vld [vmem:[%s12598_s6 + $0x4e4] ss:$52 sps:$4 sm:$0xff]   ;;  %v11063_v60 = vld [vmem:[%s12598_s6 + $0x4e0] ss:$52 sps:$4 sm:$0xff]   ;;  %v11069_v1 = vld [vmem:[%s12598_s6 + $0x548] ss:$52 sps:$4 sm:$0xff]   ;;  %v296_v5 = vcombine.high %v290_v53, %v290_v53 }
  0x2a   : > { %6768 = vmatprep.subr.bf16.mxu0 %v11017_v21  ;;  %6973 = vmatprep.subr.bf16.mxu1 %v11019_v22  ;;  %v303_v55 = vrot.slane %v290_v53, %v12648_v50  ;;  %v11065_v63 = vld [vmem:[%s12598_s6 + $0x54c] ss:$52 sps:$4 sm:$0xff]   ;;  %v11067_v0 = vld [vmem:[%s12598_s6 + $0x554] ss:$52 sps:$4 sm:$0xff]   ;;  %v11070_v2 = vld [vmem:[%s12598_s6 + $0x550] ss:$52 sps:$4 sm:$0xff]  }
  0x2b   : > { %v11071_v3 = vld [vmem:[%s12598_s6 + $0x5b4] ss:$52 sps:$4 sm:$0xff]   ;;  %v11073_v4 = vld [vmem:[%s12598_s6 + $0x5bc] ss:$52 sps:$4 sm:$0xff]   ;;  %v11079_v9 = vld [vmem:[%s12598_s6 + $0x624] ss:$52 sps:$4 sm:$0xff]   ;;  %v12675_v10 = vrot.slane %v296_v5, %v12648_v50 }
  0x2c   : > { %v311_v59 = vcombine.high %v303_v55, %v303_v55  ;;  %v11075_v6 = vld [vmem:[%s12598_s6 + $0x5b0] ss:$52 sps:$4 sm:$0xff]   ;;  %v11081_v11 = vld [vmem:[%s12598_s6 + $0x618] ss:$52 sps:$4 sm:$0xff]   ;;  %v11082_v12 = vld [vmem:[%s12598_s6 + $0x620] ss:$52 sps:$4 sm:$0xff]   ;;  %v12684_v17 = vpack.c.bf16 %v303_v55, %v303_v55 }
  0x2d   : > { %6769 = vmatpush1.bf16.msra.mxu0 %v11021_v23  ;;  %6974 = vmatpush1.bf16.msra.mxu1 %v11022_v24  ;;  %v11077_v8 = vld [vmem:[%s12598_s6 + $0x61c] ss:$52 sps:$4 sm:$0xff]   ;;  %v11085_v13 = vld [vmem:[%s12598_s6 + $0x684] ss:$52 sps:$4 sm:$0xff]   ;;  %v11088_v14 = vld [vmem:[%s12598_s6 + $0x68c] ss:$52 sps:$4 sm:$0xff]   ;;  %v312_v15 = vcombine.high %v12675_v10, %v12675_v10 }
  0x2e   : > { %6770 = vmatprep.subr.bf16.mxu0 %v11023_v25  ;;  %6975 = vmatprep.subr.bf16.mxu1 %v11025_v26  ;;  %v12659_v61 = vpack.c.bf16 %v311_v59, %v311_v59  ;;  %v11083_v16 = vld [vmem:[%s12598_s6 + $0x680] ss:$52 sps:$4 sm:$0xff]   ;;  %v11086_v18 = vld [vmem:[%s12598_s6 + $0x688] ss:$52 sps:$4 sm:$0xff]   ;;  %v11092_v23 = vld [vmem:[%s12598_s6 + $0x6f0] ss:$52 sps:$4 sm:$0xff]  }
  0x2f   : > { %v11091_v19 = vld [vmem:[%s12598_s6 + $0x6ec] ss:$52 sps:$4 sm:$0xff]   ;;  %v11094_v20 = vld [vmem:[%s12598_s6 + $0x6f4] ss:$52 sps:$4 sm:$0xff]   ;;  %v12689_v21 = vpack.c.bf16 %v312_v15, %v312_v15  ;;  %v11100_v25 = vld [vmem:[%s12598_s6 + $0x75c] ss:$52 sps:$4 sm:$0xff]  }
  0x30   : > { %6790 = vmatprep.mubr.bf16.mxu0 %v12659_v61  ;;  %6995 = vmatprep.mubr.bf16.mxu1 %v12659_v61  ;;  %v11089_v22 = vld [vmem:[%s12598_s6 + $0x6e8] ss:$52 sps:$4 sm:$0xff]   ;;  %v11095_v26 = vld [vmem:[%s12598_s6 + $0x750] ss:$52 sps:$4 sm:$0xff]   ;;  %v11122_v43 = vld [vmem:[%s12598_s6 + $0x8f8] ss:$52 sps:$4 sm:$0xff]  }
  0x31   : > { %6771 = vmatpush1.bf16.msra.mxu0 %v11027_v27  ;;  %6976 = vmatpush1.bf16.msra.mxu1 %v11028_v28  ;;  %v11097_v24 = vld [vmem:[%s12598_s6 + $0x754] ss:$52 sps:$4 sm:$0xff]   ;;  %v11098_v27 = vld [vmem:[%s12598_s6 + $0x758] ss:$52 sps:$4 sm:$0xff]   ;;  %v11103_v28 = vld [vmem:[%s12598_s6 + $0x7bc] ss:$52 sps:$4 sm:$0xff]  }
  0x32   : > { %6772 = vmatprep.subr.bf16.mxu0 %v11029_v29  ;;  %6977 = vmatprep.subr.bf16.mxu1 %v11031_v30  ;;  %v11106_v29 = vld [vmem:[%s12598_s6 + $0x7c4] ss:$52 sps:$4 sm:$0xff]   ;;  %v11118_v37 = vld [vmem:[%s12598_s6 + $0x894] ss:$52 sps:$4 sm:$0xff]   ;;  %v11148_v59 = vld [vmem:[%s12598_s6 + $0xa9c] ss:$52 sps:$4 sm:$0xff]  }
  0x33   : > { %v11101_v30 = vld [vmem:[%s12598_s6 + $0x7b8] ss:$52 sps:$4 sm:$0xff]   ;;  %v11113_v38 = vld [vmem:[%s12598_s6 + $0x888] ss:$52 sps:$4 sm:$0xff]   ;;  %v11116_v39 = vld [vmem:[%s12598_s6 + $0x890] ss:$52 sps:$4 sm:$0xff]  }
  0x34   : > { %v11134_v53 = vld [vmem:[%s12598_s6 + $0x9c8] ss:$52 sps:$4 sm:$0xff]   ;;  %v11155_v5 = vld [vmem:[%s12598_s6 + $0xb60] ss:$52 sps:$4 sm:$0xff]   ;;  %v11170_v15 = vld [vmem:[%s12598_s6 + $0xc38] ss:$52 sps:$4 sm:$0xff]  }
  0x35   : > { %6773 = vmatpush1.bf16.msra.mxu0 %v11033_v31  ;;  %6978 = vmatpush1.bf16.msra.mxu1 %v11034_v32  ;;  %v11104_v31 = vld [vmem:[%s12598_s6 + $0x7c0] ss:$52 sps:$4 sm:$0xff]   ;;  %v11109_v32 = vld [vmem:[%s12598_s6 + $0x824] ss:$52 sps:$4 sm:$0xff]   ;;  %vm12536_vm2 = vmmov (!%p10303_p7), 0   ;;  %vm8683_vm3 = vcmask (!%p10303_p7), 523264  }
  0x36   : > { %6774 = vmatprep.subr.bf16.mxu0 %v11035_v33  ;;  %6979 = vmatprep.subr.bf16.mxu1 %v11037_v34  ;;  %v11112_v33 = vld [vmem:[%s12598_s6 + $0x82c] ss:$52 sps:$4 sm:$0xff]   ;;  %v11142_v55 = vld [vmem:[%s12598_s6 + $0xa34] ss:$52 sps:$4 sm:$0xff]   ;;  %vm9176_vm4 = vcmask (!%p10303_p7), 812032  }
  0x37   : > { %v11107_v34 = vld [vmem:[%s12598_s6 + $0x820] ss:$52 sps:$4 sm:$0xff]  }
  0x39   : > { %6775 = vmatpush1.bf16.msra.mxu0 %v11039_v35  ;;  %6980 = vmatpush1.bf16.msra.mxu1 %v11040_v36  ;;  %v11110_v35 = vld [vmem:[%s12598_s6 + $0x828] ss:$52 sps:$4 sm:$0xff]   ;;  %v11115_v36 = vld [vmem:[%s12598_s6 + $0x88c] ss:$52 sps:$4 sm:$0xff]  }
  0x3a   : > { %6776 = vmatprep.subr.bf16.mxu0 %v11041_v40  ;;  %6981 = vmatprep.subr.bf16.mxu1 %v11043_v41  ;;  %v11121_v40 = vld [vmem:[%s12598_s6 + $0x8f4] ss:$52 sps:$4 sm:$0xff]   ;;  %v11124_v41 = vld [vmem:[%s12598_s6 + $0x8fc] ss:$52 sps:$4 sm:$0xff]  }
  0x3d   : > { %6777 = vmatpush1.bf16.msra.mxu0 %v11045_v42  ;;  %6982 = vmatpush1.bf16.msra.mxu1 %v11046_v45  ;;  %v11119_v42 = vld [vmem:[%s12598_s6 + $0x8f0] ss:$52 sps:$4 sm:$0xff]  }
  0x3e   : > { %6778 = vmatprep.subr.bf16.mxu0 %v11047_v46  ;;  %6983 = vmatprep.subr.bf16.mxu1 %v11049_v47  ;;  %v11127_v45 = vld [vmem:[%s12598_s6 + $0x95c] ss:$52 sps:$4 sm:$0xff]   ;;  %v11130_v46 = vld [vmem:[%s12598_s6 + $0x964] ss:$52 sps:$4 sm:$0xff]  }
  0x3f   : > { %v11125_v47 = vld [vmem:[%s12598_s6 + $0x958] ss:$52 sps:$4 sm:$0xff]  }
  0x41   : > { %6779 = vmatpush1.bf16.msra.mxu0 %v11051_v48  ;;  %6984 = vmatpush1.bf16.msra.mxu1 %v11052_v49  ;;  %v11128_v48 = vld [vmem:[%s12598_s6 + $0x960] ss:$52 sps:$4 sm:$0xff]   ;;  %v11133_v49 = vld [vmem:[%s12598_s6 + $0x9c4] ss:$52 sps:$4 sm:$0xff]  }
  0x42   : > { %6780 = vmatprep.subr.bf16.mxu0 %v11053_v51  ;;  %6985 = vmatprep.subr.bf16.mxu1 %v11055_v52  ;;  %v11136_v51 = vld [vmem:[%s12598_s6 + $0x9cc] ss:$52 sps:$4 sm:$0xff]  }
  0x43   : > { %v11131_v52 = vld [vmem:[%s12598_s6 + $0x9c0] ss:$52 sps:$4 sm:$0xff]  }
  0x45   : > { %6781 = vmatpush1.bf16.msra.mxu0 %v11057_v54  ;;  %6986 = vmatpush1.bf16.msra.mxu1 %v11058_v56  ;;  %v11139_v54 = vld [vmem:[%s12598_s6 + $0xa2c] ss:$52 sps:$4 sm:$0xff]   ;;  %v11137_v56 = vld [vmem:[%s12598_s6 + $0xa28] ss:$52 sps:$4 sm:$0xff]  }
  0x46   : > { %6782 = vmatprep.subr.bf16.mxu0 %v11059_v57  ;;  %6987 = vmatprep.subr.bf16.mxu1 %v11061_v58  ;;  %v11140_v57 = vld [vmem:[%s12598_s6 + $0xa30] ss:$52 sps:$4 sm:$0xff]   ;;  %v11145_v58 = vld [vmem:[%s12598_s6 + $0xa94] ss:$52 sps:$4 sm:$0xff]  }
  0x49   : > { %6783 = vmatpush1.bf16.msra.mxu0 %v11063_v60  ;;  %6988 = vmatpush1.bf16.msra.mxu1 %v11064_v62  ;;  %v11143_v60 = vld [vmem:[%s12598_s6 + $0xa90] ss:$52 sps:$4 sm:$0xff]   ;;  %v11146_v62 = vld [vmem:[%s12598_s6 + $0xa98] ss:$52 sps:$4 sm:$0xff]  }
  0x4a   : > { %6784 = vmatprep.subr.bf16.mxu0 %v11065_v63  ;;  %6989 = vmatprep.subr.bf16.mxu1 %v11067_v0  ;;  %v11151_v63 = vld [vmem:[%s12598_s6 + $0xafc] ss:$52 sps:$4 sm:$0xff]   ;;  %v11154_v0 = vld [vmem:[%s12598_s6 + $0xb04] ss:$52 sps:$4 sm:$0xff]  }
  0x4d   : > { %6785 = vmatpush1.bf16.msra.mxu0 %v11069_v1  ;;  %6990 = vmatpush1.bf16.msra.mxu1 %v11070_v2  ;;  %v11149_v1 = vld [vmem:[%s12598_s6 + $0xaf8] ss:$52 sps:$4 sm:$0xff]   ;;  %v11152_v2 = vld [vmem:[%s12598_s6 + $0xb00] ss:$52 sps:$4 sm:$0xff]  }
  0x4e   : > { %6786 = vmatprep.subr.bf16.mxu0 %v11071_v3  ;;  %6991 = vmatprep.subr.bf16.mxu1 %v11073_v4  ;;  %v11157_v3 = vld [vmem:[%s12598_s6 + $0xb64] ss:$52 sps:$4 sm:$0xff]   ;;  %v11160_v4 = vld [vmem:[%s12598_s6 + $0xb6c] ss:$52 sps:$4 sm:$0xff]  }
  0x51   : > { %6787 = vmatpush1.bf16.msra.mxu0 %v11075_v6  ;;  %6992 = vmatpush1.bf16.msra.mxu1 %v11076_v7  ;;  %v11158_v6 = vld [vmem:[%s12598_s6 + $0xb68] ss:$52 sps:$4 sm:$0xff]   ;;  %v11163_v7 = vld [vmem:[%s12598_s6 + $0xbcc] ss:$52 sps:$4 sm:$0xff]  }
  0x52   : > { %6788 = vmatprep.subr.bf16.mxu0 %v11077_v8  ;;  %6993 = vmatprep.subr.bf16.mxu1 %v11079_v9  ;;  %v11166_v8 = vld [vmem:[%s12598_s6 + $0xbd4] ss:$52 sps:$4 sm:$0xff]  }
  0x53   : > { %v11161_v9 = vld [vmem:[%s12598_s6 + $0xbc8] ss:$52 sps:$4 sm:$0xff]  }
  0x55   : > { %6789 = vmatpush1.bf16.msra.mxu0 %v11081_v11  ;;  %6994 = vmatpush1.bf16.msra.mxu1 %v11082_v12  ;;  %v11164_v11 = vld [vmem:[%s12598_s6 + $0xbd0] ss:$52 sps:$4 sm:$0xff]   ;;  %v11169_v12 = vld [vmem:[%s12598_s6 + $0xc34] ss:$52 sps:$4 sm:$0xff]  }
  0x56   : > { %6799 = vmatprep.subr.bf16.mxu0 %v11085_v13  ;;  %7004 = vmatprep.subr.bf16.mxu1 %v11088_v14  ;;  %v11172_v13 = vld [vmem:[%s12598_s6 + $0xc3c] ss:$52 sps:$4 sm:$0xff]  }
  0x57   : > { %v11167_v14 = vld [vmem:[%s12598_s6 + $0xc30] ss:$52 sps:$4 sm:$0xff]  }
  0x58   : > { %6791 = vmatmul.mubr.bf16.vlgmr.msra.gmra.mrb[0].mxu0 %v12684_v17  ;;  %6996 = vmatmul.mubr.bf16.vlgmr.msra.gmra.mrb[0].mxu1 %v12684_v17 }
  0x59   : > { %6800 = vmatpush1.bf16.msra.mxu0 %v11083_v16  ;;  %7005 = vmatpush1.bf16.msra.mxu1 %v11086_v18  ;;  %v11175_v16 = vld [vmem:[%s12598_s6 + $0xc9c] ss:$52 sps:$4 sm:$0xff]   ;;  %v11178_v18 = vld [vmem:[%s12598_s6 + $0xca4] ss:$52 sps:$4 sm:$0xff]  }
  0x5a   : > { %6801 = vmatprep.subr.bf16.mxu0 %v11091_v19  ;;  %7006 = vmatprep.subr.bf16.mxu1 %v11094_v20  ;;  %v11173_v19 = vld [vmem:[%s12598_s6 + $0xc98] ss:$52 sps:$4 sm:$0xff]   ;;  %v11176_v20 = vld [vmem:[%s12598_s6 + $0xca0] ss:$52 sps:$4 sm:$0xff]  }
  0x5b   : > { %6831 = vmatprep.mubr.bf16.mxu0 %v12689_v21  ;;  %7036 = vmatprep.mubr.bf16.mxu1 %v12689_v21 }
  0x5d   : > { %6802 = vmatpush1.bf16.msra.mxu0 %v11089_v22  ;;  %7007 = vmatpush1.bf16.msra.mxu1 %v11092_v23  ;;  %v11182_v22 = vld [vmem:[%s12598_s6 + $0xd04] ss:$52 sps:$4 sm:$0xff]   ;;  %v11185_v23 = vld [vmem:[%s12598_s6 + $0xd0c] ss:$52 sps:$4 sm:$0xff]  }
  0x5e   : > { %6803 = vmatprep.subr.bf16.mxu0 %v11097_v24  ;;  %7008 = vmatprep.subr.bf16.mxu1 %v11100_v25  ;;  %v11180_v24 = vld [vmem:[%s12598_s6 + $0xd00] ss:$52 sps:$4 sm:$0xff]   ;;  %v12758_v25 = vpack.c.bf16 %v12675_v10, %v12675_v10 }
  0x61   : > { %6804 = vmatpush1.bf16.msra.mxu0 %v11095_v26  ;;  %7009 = vmatpush1.bf16.msra.mxu1 %v11098_v27  ;;  %v11183_v26 = vld [vmem:[%s12598_s6 + $0xd08] ss:$52 sps:$4 sm:$0xff]  }
  0x62   : > { %6805 = vmatprep.subr.bf16.mxu0 %v11103_v28  ;;  %7010 = vmatprep.subr.bf16.mxu1 %v11106_v29  ;;  %v12762_v27 = vld [vmem:[%s12593_s27 + $0x8] sm:$0xff] }
  0x63   : > { %v11188_v28 = vld [vmem:[%s12598_s6 + $0xd6c] ss:$52 sps:$4 sm:$0xff]   ;;  %v11191_v29 = vld [vmem:[%s12598_s6 + $0xd74] ss:$52 sps:$4 sm:$0xff]  }
  0x65   : > { %6806 = vmatpush1.bf16.msra.mxu0 %v11101_v30  ;;  %7011 = vmatpush1.bf16.msra.mxu1 %v11104_v31  ;;  %v12768_v30 = vrot.slane %v12762_v27, %v12648_v50  ;;  %v11186_v31 = vld [vmem:[%s12598_s6 + $0xd68] ss:$52 sps:$4 sm:$0xff]  }
  0x66   : > { %6807 = vmatprep.subr.bf16.mxu0 %v11109_v32  ;;  %7012 = vmatprep.subr.bf16.mxu1 %v11112_v33  ;;  %v11189_v32 = vld [vmem:[%s12598_s6 + $0xd70] ss:$52 sps:$4 sm:$0xff]   ;;  %v11194_v33 = vld [vmem:[%s12598_s6 + $0xdd4] ss:$52 sps:$4 sm:$0xff]  }
  0x67   : > { %v328_v10 = vcombine.high %v12768_v30, %v12768_v30 }
  0x69   : > { %6808 = vmatpush1.bf16.msra.mxu0 %v11107_v34  ;;  %7013 = vmatpush1.bf16.msra.mxu1 %v11110_v35  ;;  %v11197_v34 = vld [vmem:[%s12598_s6 + $0xddc] ss:$52 sps:$4 sm:$0xff]   ;;  %v12778_v35 = vpack.c.bf16 %v328_v10, %v328_v10  ;;  %v11267_v10 = vld [vmem:[%s12598_s6 + $0x12b8] ss:$52 sps:$4 sm:$0xff]  }
  0x6a   : > { %6809 = vmatprep.subr.bf16.mxu0 %v11115_v36  ;;  %7014 = vmatprep.subr.bf16.mxu1 %v11118_v37  ;;  %v11192_v36 = vld [vmem:[%s12598_s6 + $0xdd0] ss:$52 sps:$4 sm:$0xff]   ;;  %v11195_v37 = vld [vmem:[%s12598_s6 + $0xdd8] ss:$52 sps:$4 sm:$0xff]  }
  0x6d   : > { %6810 = vmatpush1.bf16.msra.mxu0 %v11113_v38  ;;  %7015 = vmatpush1.bf16.msra.mxu1 %v11116_v39  ;;  %v11200_v38 = vld [vmem:[%s12598_s6 + $0xe3c] ss:$52 sps:$4 sm:$0xff]   ;;  %v11203_v39 = vld [vmem:[%s12598_s6 + $0xe44] ss:$52 sps:$4 sm:$0xff]  }
  0x6e   : > { %6811 = vmatprep.subr.bf16.mxu0 %v11121_v40  ;;  %7016 = vmatprep.subr.bf16.mxu1 %v11124_v41  ;;  %v11198_v40 = vld [vmem:[%s12598_s6 + $0xe38] ss:$52 sps:$4 sm:$0xff]   ;;  %v11201_v41 = vld [vmem:[%s12598_s6 + $0xe40] ss:$52 sps:$4 sm:$0xff]  }
  0x71   : > { %6812 = vmatpush1.bf16.msra.mxu0 %v11119_v42  ;;  %7017 = vmatpush1.bf16.msra.mxu1 %v11122_v43  ;;  %v11206_v42 = vld [vmem:[%s12598_s6 + $0xea4] ss:$52 sps:$4 sm:$0xff]   ;;  %v11209_v43 = vld [vmem:[%s12598_s6 + $0xeac] ss:$52 sps:$4 sm:$0xff]  }
  0x72   : > { %6813 = vmatprep.subr.bf16.mxu0 %v11127_v45  ;;  %7018 = vmatprep.subr.bf16.mxu1 %v11130_v46  ;;  %v11204_v45 = vld [vmem:[%s12598_s6 + $0xea0] ss:$52 sps:$4 sm:$0xff]   ;;  %v11207_v46 = vld [vmem:[%s12598_s6 + $0xea8] ss:$52 sps:$4 sm:$0xff]  }
  0x75   : > { %6814 = vmatpush1.bf16.msra.mxu0 %v11125_v47  ;;  %7019 = vmatpush1.bf16.msra.mxu1 %v11128_v48  ;;  %v11212_v47 = vld [vmem:[%s12598_s6 + $0xf0c] ss:$52 sps:$4 sm:$0xff]   ;;  %v11215_v48 = vld [vmem:[%s12598_s6 + $0xf14] ss:$52 sps:$4 sm:$0xff]  }
  0x76   : > { %6815 = vmatprep.subr.bf16.mxu0 %v11133_v49  ;;  %7020 = vmatprep.subr.bf16.mxu1 %v11136_v51  ;;  %v11210_v49 = vld [vmem:[%s12598_s6 + $0xf08] ss:$52 sps:$4 sm:$0xff]   ;;  %v11213_v51 = vld [vmem:[%s12598_s6 + $0xf10] ss:$52 sps:$4 sm:$0xff]  }
  0x79   : > { %6816 = vmatpush1.bf16.msra.mxu0 %v11131_v52  ;;  %7021 = vmatpush1.bf16.msra.mxu1 %v11134_v53  ;;  %v11218_v52 = vld [vmem:[%s12598_s6 + $0xf74] ss:$52 sps:$4 sm:$0xff]   ;;  %v11221_v53 = vld [vmem:[%s12598_s6 + $0xf7c] ss:$52 sps:$4 sm:$0xff]  }
  0x7a   : > { %6817 = vmatprep.subr.bf16.mxu0 %v11139_v54  ;;  %7022 = vmatprep.subr.bf16.mxu1 %v11142_v55  ;;  %v11216_v54 = vld [vmem:[%s12598_s6 + $0xf70] ss:$52 sps:$4 sm:$0xff]   ;;  %v11219_v55 = vld [vmem:[%s12598_s6 + $0xf78] ss:$52 sps:$4 sm:$0xff]  }
  0x7d   : > { %6818 = vmatpush1.bf16.msra.mxu0 %v11137_v56  ;;  %7023 = vmatpush1.bf16.msra.mxu1 %v11140_v57  ;;  %v11224_v56 = vld [vmem:[%s12598_s6 + $0xfdc] ss:$52 sps:$4 sm:$0xff]   ;;  %v11227_v57 = vld [vmem:[%s12598_s6 + $0xfe4] ss:$52 sps:$4 sm:$0xff]  }
  0x7e   : > { %6819 = vmatprep.subr.bf16.mxu0 %v11145_v58  ;;  %7024 = vmatprep.subr.bf16.mxu1 %v11148_v59  ;;  %v11222_v58 = vld [vmem:[%s12598_s6 + $0xfd8] ss:$52 sps:$4 sm:$0xff]   ;;  %v11225_v59 = vld [vmem:[%s12598_s6 + $0xfe0] ss:$52 sps:$4 sm:$0xff]  }
  0x81   : > { %6820 = vmatpush1.bf16.msra.mxu0 %v11143_v60  ;;  %7025 = vmatpush1.bf16.msra.mxu1 %v11146_v62  ;;  %v11230_v60 = vld [vmem:[%s12598_s6 + $0x1044] ss:$52 sps:$4 sm:$0xff]   ;;  %v11233_v62 = vld [vmem:[%s12598_s6 + $0x104c] ss:$52 sps:$4 sm:$0xff]  }
  0x82   : > { %6821 = vmatprep.subr.bf16.mxu0 %v11151_v63  ;;  %7026 = vmatprep.subr.bf16.mxu1 %v11154_v0  ;;  %v11228_v63 = vld [vmem:[%s12598_s6 + $0x1040] ss:$52 sps:$4 sm:$0xff]   ;;  %v11231_v0 = vld [vmem:[%s12598_s6 + $0x1048] ss:$52 sps:$4 sm:$0xff]  }
  0x85   : > { %6822 = vmatpush1.bf16.msra.mxu0 %v11149_v1  ;;  %7027 = vmatpush1.bf16.msra.mxu1 %v11152_v2  ;;  %v11236_v1 = vld [vmem:[%s12598_s6 + $0x10ac] ss:$52 sps:$4 sm:$0xff]   ;;  %v11239_v2 = vld [vmem:[%s12598_s6 + $0x10b4] ss:$52 sps:$4 sm:$0xff]  }
  0x86   : > { %6823 = vmatprep.subr.bf16.mxu0 %v11157_v3  ;;  %7028 = vmatprep.subr.bf16.mxu1 %v11160_v4  ;;  %v11234_v3 = vld [vmem:[%s12598_s6 + $0x10a8] ss:$52 sps:$4 sm:$0xff]   ;;  %v11237_v4 = vld [vmem:[%s12598_s6 + $0x10b0] ss:$52 sps:$4 sm:$0xff]  }
  0x89   : > { %6824 = vmatpush1.bf16.msra.mxu0 %v11155_v5  ;;  %7029 = vmatpush1.bf16.msra.mxu1 %v11158_v6  ;;  %v11242_v5 = vld [vmem:[%s12598_s6 + $0x1114] ss:$52 sps:$4 sm:$0xff]   ;;  %v11245_v6 = vld [vmem:[%s12598_s6 + $0x111c] ss:$52 sps:$4 sm:$0xff]  }
  0x8a   : > { %6825 = vmatprep.subr.bf16.mxu0 %v11163_v7  ;;  %7030 = vmatprep.subr.bf16.mxu1 %v11166_v8  ;;  %v11240_v7 = vld [vmem:[%s12598_s6 + $0x1110] ss:$52 sps:$4 sm:$0xff]   ;;  %v11243_v8 = vld [vmem:[%s12598_s6 + $0x1118] ss:$52 sps:$4 sm:$0xff]  }
  0x8d   : > { %6826 = vmatpush1.bf16.msra.mxu0 %v11161_v9  ;;  %7031 = vmatpush1.bf16.msra.mxu1 %v11164_v11  ;;  %v11248_v9 = vld [vmem:[%s12598_s6 + $0x117c] ss:$52 sps:$4 sm:$0xff]   ;;  %v11251_v11 = vld [vmem:[%s12598_s6 + $0x1184] ss:$52 sps:$4 sm:$0xff]  }
  0x8e   : > { %6827 = vmatprep.subr.bf16.mxu0 %v11169_v12  ;;  %7032 = vmatprep.subr.bf16.mxu1 %v11172_v13  ;;  %v11246_v12 = vld [vmem:[%s12598_s6 + $0x1178] ss:$52 sps:$4 sm:$0xff]   ;;  %v11249_v13 = vld [vmem:[%s12598_s6 + $0x1180] ss:$52 sps:$4 sm:$0xff]  }
  0x91   : > { %6828 = vmatpush1.bf16.msra.mxu0 %v11167_v14  ;;  %7033 = vmatpush1.bf16.msra.mxu1 %v11170_v15  ;;  %v11254_v14 = vld [vmem:[%s12598_s6 + $0x11e4] ss:$52 sps:$4 sm:$0xff]   ;;  %v11257_v15 = vld [vmem:[%s12598_s6 + $0x11ec] ss:$52 sps:$4 sm:$0xff]  }
  0x92   : > { %6829 = vmatprep.subr.bf16.mxu0 %v11175_v16  ;;  %7034 = vmatprep.subr.bf16.mxu1 %v11178_v18  ;;  %v11252_v16 = vld [vmem:[%s12598_s6 + $0x11e0] ss:$52 sps:$4 sm:$0xff]   ;;  %v11255_v18 = vld [vmem:[%s12598_s6 + $0x11e8] ss:$52 sps:$4 sm:$0xff]  }
  0x95   : > { %6830 = vmatpush1.bf16.msra.mxu0 %v11173_v19  ;;  %7035 = vmatpush1.bf16.msra.mxu1 %v11176_v20  ;;  %v11260_v19 = vld [vmem:[%s12598_s6 + $0x124c] ss:$52 sps:$4 sm:$0xff]   ;;  %v11263_v20 = vld [vmem:[%s12598_s6 + $0x1254] ss:$52 sps:$4 sm:$0xff]  }
  0x96   : > { %6840 = vmatprep.subr.bf16.mxu0 %v11182_v22  ;;  %7045 = vmatprep.subr.bf16.mxu1 %v11185_v23  ;;  %v11258_v22 = vld [vmem:[%s12598_s6 + $0x1248] ss:$52 sps:$4 sm:$0xff]   ;;  %v11261_v23 = vld [vmem:[%s12598_s6 + $0x1250] ss:$52 sps:$4 sm:$0xff]  }
  0x98   : > { %6832 = vmatmul.mubr.bf16.vlgmr.msra.gmra.mrb[0].mxu0 %v12758_v25  ;;  %7037 = vmatmul.mubr.bf16.vlgmr.msra.gmra.mrb[0].mxu1 %v12758_v25 }
  0x99   : > { %6841 = vmatpush1.bf16.msra.mxu0 %v11180_v24  ;;  %7046 = vmatpush1.bf16.msra.mxu1 %v11183_v26  ;;  %v11266_v24 = vld [vmem:[%s12598_s6 + $0x12b4] ss:$52 sps:$4 sm:$0xff]   ;;  %v11269_v26 = vld [vmem:[%s12598_s6 + $0x12bc] ss:$52 sps:$4 sm:$0xff]  }
  0x9a   : > { %6842 = vmatprep.subr.bf16.mxu0 %v11188_v28  ;;  %7047 = vmatprep.subr.bf16.mxu1 %v11191_v29  ;;  %v313_v28 = vcombine.high %v12762_v27, %v12762_v27  ;;  %v11264_v29 = vld [vmem:[%s12598_s6 + $0x12b0] ss:$52 sps:$4 sm:$0xff]   ;;  %v11270_v27 = vld [vmem:[%s12598_s6 + $0x1318] ss:$52 sps:$4 sm:$0xff]  }
  0x9b   : > { %6872 = vmatprep.mubr.bf16.mxu0 %v12778_v35  ;;  %7077 = vmatprep.mubr.bf16.mxu1 %v12778_v35 }
  0x9d   : > { %6843 = vmatpush1.bf16.msra.mxu0 %v11186_v31  ;;  %7048 = vmatpush1.bf16.msra.mxu1 %v11189_v32  ;;  %v11272_v31 = vld [vmem:[%s12598_s6 + $0x131c] ss:$52 sps:$4 sm:$0xff]   ;;  %v11275_v32 = vld [vmem:[%s12598_s6 + $0x1324] ss:$52 sps:$4 sm:$0xff]  }
  0x9e   : > { %6844 = vmatprep.subr.bf16.mxu0 %v11194_v33  ;;  %7049 = vmatprep.subr.bf16.mxu1 %v11197_v34  ;;  %v12837_v33 = vrot.slane %v313_v28, %v12648_v50  ;;  %v11273_v34 = vld [vmem:[%s12598_s6 + $0x1320] ss:$52 sps:$4 sm:$0xff]   ;;  %v11342_v28 = vld [vmem:[%s12598_s6 + $0x17f8] ss:$52 sps:$4 sm:$0xff]  }
  0xa1   : > { %6845 = vmatpush1.bf16.msra.mxu0 %v11192_v36  ;;  %7050 = vmatpush1.bf16.msra.mxu1 %v11195_v37  ;;  %v11278_v36 = vld [vmem:[%s12598_s6 + $0x1384] ss:$52 sps:$4 sm:$0xff]   ;;  %v11281_v37 = vld [vmem:[%s12598_s6 + $0x138c] ss:$52 sps:$4 sm:$0xff]  }
  0xa2   : > { %6846 = vmatprep.subr.bf16.mxu0 %v11200_v38  ;;  %7051 = vmatprep.subr.bf16.mxu1 %v11203_v39  ;;  %v329_v38 = vcombine.high %v12837_v33, %v12837_v33  ;;  %v12847_v39 = vpack.c.bf16 %v12768_v30, %v12768_v30  ;;  %v11282_v30 = vld [vmem:[%s12598_s6 + $0x13e8] ss:$52 sps:$4 sm:$0xff]  }
  0xa5   : > { %6847 = vmatpush1.bf16.msra.mxu0 %v11198_v40  ;;  %7052 = vmatpush1.bf16.msra.mxu1 %v11201_v41  ;;  %v11276_v40 = vld [vmem:[%s12598_s6 + $0x1380] ss:$52 sps:$4 sm:$0xff]   ;;  %v11279_v41 = vld [vmem:[%s12598_s6 + $0x1388] ss:$52 sps:$4 sm:$0xff]  }
  0xa6   : > { %6848 = vmatprep.subr.bf16.mxu0 %v11206_v42  ;;  %7053 = vmatprep.subr.bf16.mxu1 %v11209_v43  ;;  %v11284_v42 = vld [vmem:[%s12598_s6 + $0x13ec] ss:$52 sps:$4 sm:$0xff]   ;;  %v11287_v43 = vld [vmem:[%s12598_s6 + $0x13f4] ss:$52 sps:$4 sm:$0xff]  }
  0xa9   : > { %6849 = vmatpush1.bf16.msra.mxu0 %v11204_v45  ;;  %7054 = vmatpush1.bf16.msra.mxu1 %v11207_v46  ;;  %v12853_v45 = vpack.c.bf16 %v329_v38, %v329_v38  ;;  %v11285_v46 = vld [vmem:[%s12598_s6 + $0x13f0] ss:$52 sps:$4 sm:$0xff]  }
  0xaa   : > { %6850 = vmatprep.subr.bf16.mxu0 %v11212_v47  ;;  %7055 = vmatprep.subr.bf16.mxu1 %v11215_v48  ;;  %v11290_v47 = vld [vmem:[%s12598_s6 + $0x1454] ss:$52 sps:$4 sm:$0xff]   ;;  %v11293_v48 = vld [vmem:[%s12598_s6 + $0x145c] ss:$52 sps:$4 sm:$0xff]  }
  0xab   : > { %v11357_v38 = vld [vmem:[%s12598_s6 + $0x18d0] ss:$52 sps:$4 sm:$0xff]  }
  0xad   : > { %6851 = vmatpush1.bf16.msra.mxu0 %v11210_v49  ;;  %7056 = vmatpush1.bf16.msra.mxu1 %v11213_v51  ;;  %v11288_v49 = vld [vmem:[%s12598_s6 + $0x1450] ss:$52 sps:$4 sm:$0xff]   ;;  %v11291_v51 = vld [vmem:[%s12598_s6 + $0x1458] ss:$52 sps:$4 sm:$0xff]  }
  0xae   : > { %6852 = vmatprep.subr.bf16.mxu0 %v11218_v52  ;;  %7057 = vmatprep.subr.bf16.mxu1 %v11221_v53  ;;  %v11296_v52 = vld [vmem:[%s12598_s6 + $0x14bc] ss:$52 sps:$4 sm:$0xff]   ;;  %v11299_v53 = vld [vmem:[%s12598_s6 + $0x14c4] ss:$52 sps:$4 sm:$0xff]  }
  0xb1   : > { %6853 = vmatpush1.bf16.msra.mxu0 %v11216_v54  ;;  %7058 = vmatpush1.bf16.msra.mxu1 %v11219_v55  ;;  %v11294_v54 = vld [vmem:[%s12598_s6 + $0x14b8] ss:$52 sps:$4 sm:$0xff]   ;;  %v11297_v55 = vld [vmem:[%s12598_s6 + $0x14c0] ss:$52 sps:$4 sm:$0xff]  }
  0xb2   : > { %6854 = vmatprep.subr.bf16.mxu0 %v11224_v56  ;;  %7059 = vmatprep.subr.bf16.mxu1 %v11227_v57  ;;  %v11302_v56 = vld [vmem:[%s12598_s6 + $0x1524] ss:$52 sps:$4 sm:$0xff]   ;;  %v11305_v57 = vld [vmem:[%s12598_s6 + $0x152c] ss:$52 sps:$4 sm:$0xff]  }
  0xb5   : > { %6855 = vmatpush1.bf16.msra.mxu0 %v11222_v58  ;;  %7060 = vmatpush1.bf16.msra.mxu1 %v11225_v59  ;;  %v11300_v58 = vld [vmem:[%s12598_s6 + $0x1520] ss:$52 sps:$4 sm:$0xff]   ;;  %v11303_v59 = vld [vmem:[%s12598_s6 + $0x1528] ss:$52 sps:$4 sm:$0xff]  }
  0xb6   : > { %6856 = vmatprep.subr.bf16.mxu0 %v11230_v60  ;;  %7061 = vmatprep.subr.bf16.mxu1 %v11233_v62  ;;  %v11308_v60 = vld [vmem:[%s12598_s6 + $0x158c] ss:$52 sps:$4 sm:$0xff]   ;;  %v11311_v62 = vld [vmem:[%s12598_s6 + $0x1594] ss:$52 sps:$4 sm:$0xff]  }
  0xb9   : > { %6857 = vmatpush1.bf16.msra.mxu0 %v11228_v63  ;;  %7062 = vmatpush1.bf16.msra.mxu1 %v11231_v0  ;;  %v11306_v63 = vld [vmem:[%s12598_s6 + $0x1588] ss:$52 sps:$4 sm:$0xff]   ;;  %v11309_v0 = vld [vmem:[%s12598_s6 + $0x1590] ss:$52 sps:$4 sm:$0xff]  }
  0xba   : > { %6858 = vmatprep.subr.bf16.mxu0 %v11236_v1  ;;  %7063 = vmatprep.subr.bf16.mxu1 %v11239_v2  ;;  %v11314_v1 = vld [vmem:[%s12598_s6 + $0x15f4] ss:$52 sps:$4 sm:$0xff]   ;;  %v11317_v2 = vld [vmem:[%s12598_s6 + $0x15fc] ss:$52 sps:$4 sm:$0xff]  }
  0xbd   : > { %6859 = vmatpush1.bf16.msra.mxu0 %v11234_v3  ;;  %7064 = vmatpush1.bf16.msra.mxu1 %v11237_v4  ;;  %v11312_v3 = vld [vmem:[%s12598_s6 + $0x15f0] ss:$52 sps:$4 sm:$0xff]   ;;  %v11315_v4 = vld [vmem:[%s12598_s6 + $0x15f8] ss:$52 sps:$4 sm:$0xff]  }
  0xbe   : > { %6860 = vmatprep.subr.bf16.mxu0 %v11242_v5  ;;  %7065 = vmatprep.subr.bf16.mxu1 %v11245_v6  ;;  %v11320_v5 = vld [vmem:[%s12598_s6 + $0x165c] ss:$52 sps:$4 sm:$0xff]   ;;  %v11323_v6 = vld [vmem:[%s12598_s6 + $0x1664] ss:$52 sps:$4 sm:$0xff]  }
  0xc1   : > { %6861 = vmatpush1.bf16.msra.mxu0 %v11240_v7  ;;  %7066 = vmatpush1.bf16.msra.mxu1 %v11243_v8  ;;  %v11318_v7 = vld [vmem:[%s12598_s6 + $0x1658] ss:$52 sps:$4 sm:$0xff]   ;;  %v11321_v8 = vld [vmem:[%s12598_s6 + $0x1660] ss:$52 sps:$4 sm:$0xff]  }
  0xc2   : > { %6862 = vmatprep.subr.bf16.mxu0 %v11248_v9  ;;  %7067 = vmatprep.subr.bf16.mxu1 %v11251_v11  ;;  %v11326_v9 = vld [vmem:[%s12598_s6 + $0x16c4] ss:$52 sps:$4 sm:$0xff]   ;;  %v11329_v11 = vld [vmem:[%s12598_s6 + $0x16cc] ss:$52 sps:$4 sm:$0xff]  }
  0xc5   : > { %6863 = vmatpush1.bf16.msra.mxu0 %v11246_v12  ;;  %7068 = vmatpush1.bf16.msra.mxu1 %v11249_v13  ;;  %v11324_v12 = vld [vmem:[%s12598_s6 + $0x16c0] ss:$52 sps:$4 sm:$0xff]   ;;  %v11327_v13 = vld [vmem:[%s12598_s6 + $0x16c8] ss:$52 sps:$4 sm:$0xff]  }
  0xc6   : > { %6864 = vmatprep.subr.bf16.mxu0 %v11254_v14  ;;  %7069 = vmatprep.subr.bf16.mxu1 %v11257_v15  ;;  %v11332_v14 = vld [vmem:[%s12598_s6 + $0x172c] ss:$52 sps:$4 sm:$0xff]   ;;  %v11335_v15 = vld [vmem:[%s12598_s6 + $0x1734] ss:$52 sps:$4 sm:$0xff]  }
  0xc9   : > { %6865 = vmatpush1.bf16.msra.mxu0 %v11252_v16  ;;  %7070 = vmatpush1.bf16.msra.mxu1 %v11255_v18  ;;  %v11330_v16 = vld [vmem:[%s12598_s6 + $0x1728] ss:$52 sps:$4 sm:$0xff]   ;;  %v11333_v18 = vld [vmem:[%s12598_s6 + $0x1730] ss:$52 sps:$4 sm:$0xff]  }
  0xca   : > { %6866 = vmatprep.subr.bf16.mxu0 %v11260_v19  ;;  %7071 = vmatprep.subr.bf16.mxu1 %v11263_v20  ;;  %v11338_v19 = vld [vmem:[%s12598_s6 + $0x1794] ss:$52 sps:$4 sm:$0xff]   ;;  %v11341_v20 = vld [vmem:[%s12598_s6 + $0x179c] ss:$52 sps:$4 sm:$0xff]  }
  0xcd   : > { %6867 = vmatpush1.bf16.msra.mxu0 %v11258_v22  ;;  %7072 = vmatpush1.bf16.msra.mxu1 %v11261_v23  ;;  %v11336_v22 = vld [vmem:[%s12598_s6 + $0x1790] ss:$52 sps:$4 sm:$0xff]   ;;  %v11339_v23 = vld [vmem:[%s12598_s6 + $0x1798] ss:$52 sps:$4 sm:$0xff]  }
  0xce   : > { %6868 = vmatprep.subr.bf16.mxu0 %v11266_v24  ;;  %7073 = vmatprep.subr.bf16.mxu1 %v11269_v26  ;;  %v11344_v24 = vld [vmem:[%s12598_s6 + $0x17fc] ss:$52 sps:$4 sm:$0xff]   ;;  %v11347_v26 = vld [vmem:[%s12598_s6 + $0x1804] ss:$52 sps:$4 sm:$0xff]  }
  0xd1   : > { %6869 = vmatpush1.bf16.msra.mxu0 %v11264_v29  ;;  %7074 = vmatpush1.bf16.msra.mxu1 %v11267_v10  ;;  %v11345_v29 = vld [vmem:[%s12598_s6 + $0x1800] ss:$52 sps:$4 sm:$0xff]   ;;  %v11350_v10 = vld [vmem:[%s12598_s6 + $0x1864] ss:$52 sps:$4 sm:$0xff]  }
  0xd2   : > { %6870 = vmatprep.subr.bf16.mxu0 %v11272_v31  ;;  %7075 = vmatprep.subr.bf16.mxu1 %v11275_v32  ;;  %v11353_v31 = vld [vmem:[%s12598_s6 + $0x186c] ss:$52 sps:$4 sm:$0xff]  }
  0xd3   : > { %v11348_v32 = vld [vmem:[%s12598_s6 + $0x1860] ss:$52 sps:$4 sm:$0xff]  }
  0xd5   : > { %6871 = vmatpush1.bf16.msra.mxu0 %v11270_v27  ;;  %7076 = vmatpush1.bf16.msra.mxu1 %v11273_v34  ;;  %v11351_v27 = vld [vmem:[%s12598_s6 + $0x1868] ss:$52 sps:$4 sm:$0xff]   ;;  %v11356_v34 = vld [vmem:[%s12598_s6 + $0x18cc] ss:$52 sps:$4 sm:$0xff]  }
  0xd6   : > { %6881 = vmatprep.subr.bf16.mxu0 %v11278_v36  ;;  %7086 = vmatprep.subr.bf16.mxu1 %v11281_v37  ;;  %v11359_v36 = vld [vmem:[%s12598_s6 + $0x18d4] ss:$52 sps:$4 sm:$0xff]  }
  0xd7   : > { %v11354_v37 = vld [vmem:[%s12598_s6 + $0x18c8] ss:$52 sps:$4 sm:$0xff]  }
  0xd8   : > { %6873 = vmatmul.mubr.bf16.vlgmr.msra.gmra.mrb[0].mxu0 %v12847_v39  ;;  %7078 = vmatmul.mubr.bf16.vlgmr.msra.gmra.mrb[0].mxu1 %v12847_v39 }
  0xd9   : > { %6882 = vmatpush1.bf16.msra.mxu0 %v11276_v40  ;;  %7087 = vmatpush1.bf16.msra.mxu1 %v11279_v41  ;;  %v11362_v40 = vld [vmem:[%s12598_s6 + $0x1934] ss:$52 sps:$4 sm:$0xff]   ;;  %v11365_v41 = vld [vmem:[%s12598_s6 + $0x193c] ss:$52 sps:$4 sm:$0xff]  }
  0xda   : > { %6883 = vmatprep.subr.bf16.mxu0 %v11284_v42  ;;  %7088 = vmatprep.subr.bf16.mxu1 %v11287_v43  ;;  %v11360_v42 = vld [vmem:[%s12598_s6 + $0x1930] ss:$52 sps:$4 sm:$0xff]   ;;  %v11363_v43 = vld [vmem:[%s12598_s6 + $0x1938] ss:$52 sps:$4 sm:$0xff]  }
  0xdb   : > { %6913 = vmatprep.mubr.bf16.mxu0 %v12853_v45  ;;  %7118 = vmatprep.mubr.bf16.mxu1 %v12853_v45 }
  0xdd   : > { %6884 = vmatpush1.bf16.msra.mxu0 %v11282_v30  ;;  %7089 = vmatpush1.bf16.msra.mxu1 %v11285_v46  ;;  %v11368_v30 = vld [vmem:[%s12598_s6 + $0x199c] ss:$52 sps:$4 sm:$0xff]   ;;  %v11371_v46 = vld [vmem:[%s12598_s6 + $0x19a4] ss:$52 sps:$4 sm:$0xff]  }
  0xde   : > { %6885 = vmatprep.subr.bf16.mxu0 %v11290_v47  ;;  %7090 = vmatprep.subr.bf16.mxu1 %v11293_v48  ;;  %v11366_v47 = vld [vmem:[%s12598_s6 + $0x1998] ss:$52 sps:$4 sm:$0xff]   ;;  %v12917_v48 = vld.sshfl [vmem:[%s12593_s27 + $0x10] sm:$0x33 pattern:$0x76325410] }
  0xe1   : > { %6886 = vmatpush1.bf16.msra.mxu0 %v11288_v49  ;;  %7091 = vmatpush1.bf16.msra.mxu1 %v11291_v51  ;;  %v11369_v49 = vld [vmem:[%s12598_s6 + $0x19a0] ss:$52 sps:$4 sm:$0xff]   ;;  %v11375_v51 = vld [vmem:[%s12598_s6 + $0x1a04] ss:$52 sps:$4 sm:$0xff]  }
  0xe2   : > { %6887 = vmatprep.subr.bf16.mxu0 %v11296_v52  ;;  %7092 = vmatprep.subr.bf16.mxu1 %v11299_v53  ;;  %v11378_v52 = vld [vmem:[%s12598_s6 + $0x1a0c] ss:$52 sps:$4 sm:$0xff]   ;;  %v337_v53 = vcombine.high %v12917_v48, %v12917_v48 }
  0xe5   : > { %6888 = vmatpush1.bf16.msra.mxu0 %v11294_v54  ;;  %7093 = vmatpush1.bf16.msra.mxu1 %v11297_v55  ;;  %v11373_v54 = vld [vmem:[%s12598_s6 + $0x1a00] ss:$52 sps:$4 sm:$0xff]   ;;  %v12927_v55 = vpack.c.bf16 %v12837_v33, %v12837_v33  ;;  %v11382_v33 = vld [vmem:[%s12598_s6 + $0x1a70] ss:$52 sps:$4 sm:$0xff]  }
  0xe6   : > { %6889 = vmatprep.subr.bf16.mxu0 %v11302_v56  ;;  %7094 = vmatprep.subr.bf16.mxu1 %v11305_v57  ;;  %v11376_v56 = vld [vmem:[%s12598_s6 + $0x1a08] ss:$52 sps:$4 sm:$0xff]   ;;  %v11381_v57 = vld [vmem:[%s12598_s6 + $0x1a6c] ss:$52 sps:$4 sm:$0xff]  }
  0xe9   : > { %6890 = vmatpush1.bf16.msra.mxu0 %v11300_v58  ;;  %7095 = vmatpush1.bf16.msra.mxu1 %v11303_v59  ;;  %v11384_v58 = vld [vmem:[%s12598_s6 + $0x1a74] ss:$52 sps:$4 sm:$0xff]   ;;  %v12932_v59 = vpack.c.bf16 %v337_v53, %v337_v53 }
  0xea   : > { %6891 = vmatprep.subr.bf16.mxu0 %v11308_v60  ;;  %7096 = vmatprep.subr.bf16.mxu1 %v11311_v62  ;;  %v11379_v60 = vld [vmem:[%s12598_s6 + $0x1a68] ss:$52 sps:$4 sm:$0xff]  }
  0xeb   : > { %v11387_v62 = vld [vmem:[%s12598_s6 + $0x1ad4] ss:$52 sps:$4 sm:$0xff]  }
  0xec   : > { %v11456_v53 = vld [vmem:[%s12598_s6 + $0x1f54] ss:$52 sps:$4 sm:$0xff]  }
  0xed   : > { %6892 = vmatpush1.bf16.msra.mxu0 %v11306_v63  ;;  %7097 = vmatpush1.bf16.msra.mxu1 %v11309_v0  ;;  %v11390_v63 = vld [vmem:[%s12598_s6 + $0x1adc] ss:$52 sps:$4 sm:$0xff]  }
  0xee   : > { %6893 = vmatprep.subr.bf16.mxu0 %v11314_v1  ;;  %7098 = vmatprep.subr.bf16.mxu1 %v11317_v2  ;;  %v11385_v0 = vld [vmem:[%s12598_s6 + $0x1ad0] ss:$52 sps:$4 sm:$0xff]   ;;  %v11388_v1 = vld [vmem:[%s12598_s6 + $0x1ad8] ss:$52 sps:$4 sm:$0xff]  }
  0xef   : > { %v11393_v2 = vld [vmem:[%s12598_s6 + $0x1b3c] ss:$52 sps:$4 sm:$0xff]  }
  0xf1   : > { %6894 = vmatpush1.bf16.msra.mxu0 %v11312_v3  ;;  %7099 = vmatpush1.bf16.msra.mxu1 %v11315_v4  ;;  %v11396_v3 = vld [vmem:[%s12598_s6 + $0x1b44] ss:$52 sps:$4 sm:$0xff]  }
  0xf2   : > { %6895 = vmatprep.subr.bf16.mxu0 %v11320_v5  ;;  %7100 = vmatprep.subr.bf16.mxu1 %v11323_v6  ;;  %v11391_v4 = vld [vmem:[%s12598_s6 + $0x1b38] ss:$52 sps:$4 sm:$0xff]   ;;  %v11394_v5 = vld [vmem:[%s12598_s6 + $0x1b40] ss:$52 sps:$4 sm:$0xff]  }
  0xf3   : > { %v11399_v6 = vld [vmem:[%s12598_s6 + $0x1ba4] ss:$52 sps:$4 sm:$0xff]  }
  0xf5   : > { %6896 = vmatpush1.bf16.msra.mxu0 %v11318_v7  ;;  %7101 = vmatpush1.bf16.msra.mxu1 %v11321_v8  ;;  %v11402_v7 = vld [vmem:[%s12598_s6 + $0x1bac] ss:$52 sps:$4 sm:$0xff]  }
  0xf6   : > { %6897 = vmatprep.subr.bf16.mxu0 %v11326_v9  ;;  %7102 = vmatprep.subr.bf16.mxu1 %v11329_v11  ;;  %v11397_v8 = vld [vmem:[%s12598_s6 + $0x1ba0] ss:$52 sps:$4 sm:$0xff]   ;;  %v11400_v9 = vld [vmem:[%s12598_s6 + $0x1ba8] ss:$52 sps:$4 sm:$0xff]  }
  0xf7   : > { %v11405_v11 = vld [vmem:[%s12598_s6 + $0x1c0c] ss:$52 sps:$4 sm:$0xff]  }
  0xf9   : > { %6898 = vmatpush1.bf16.msra.mxu0 %v11324_v12  ;;  %7103 = vmatpush1.bf16.msra.mxu1 %v11327_v13  ;;  %v11408_v12 = vld [vmem:[%s12598_s6 + $0x1c14] ss:$52 sps:$4 sm:$0xff]  }
  0xfa   : > { %6899 = vmatprep.subr.bf16.mxu0 %v11332_v14  ;;  %7104 = vmatprep.subr.bf16.mxu1 %v11335_v15  ;;  %v11403_v13 = vld [vmem:[%s12598_s6 + $0x1c08] ss:$52 sps:$4 sm:$0xff]   ;;  %v11406_v14 = vld [vmem:[%s12598_s6 + $0x1c10] ss:$52 sps:$4 sm:$0xff]  }
  0xfb   : > { %v11411_v15 = vld [vmem:[%s12598_s6 + $0x1c74] ss:$52 sps:$4 sm:$0xff]  }
  0xfd   : > { %6900 = vmatpush1.bf16.msra.mxu0 %v11330_v16  ;;  %7105 = vmatpush1.bf16.msra.mxu1 %v11333_v18  ;;  %v11414_v16 = vld [vmem:[%s12598_s6 + $0x1c7c] ss:$52 sps:$4 sm:$0xff]  }
  0xfe   : > { %6901 = vmatprep.subr.bf16.mxu0 %v11338_v19  ;;  %7106 = vmatprep.subr.bf16.mxu1 %v11341_v20  ;;  %v11409_v18 = vld [vmem:[%s12598_s6 + $0x1c70] ss:$52 sps:$4 sm:$0xff]   ;;  %v11412_v19 = vld [vmem:[%s12598_s6 + $0x1c78] ss:$52 sps:$4 sm:$0xff]  }
  0xff   : > { %v11417_v20 = vld [vmem:[%s12598_s6 + $0x1cdc] ss:$52 sps:$4 sm:$0xff]  }
 0x101   : > { %6902 = vmatpush1.bf16.msra.mxu0 %v11336_v22  ;;  %7107 = vmatpush1.bf16.msra.mxu1 %v11339_v23  ;;  %v11420_v22 = vld [vmem:[%s12598_s6 + $0x1ce4] ss:$52 sps:$4 sm:$0xff]  }
 0x102   : > { %6903 = vmatprep.subr.bf16.mxu0 %v11344_v24  ;;  %7108 = vmatprep.subr.bf16.mxu1 %v11347_v26  ;;  %v11415_v23 = vld [vmem:[%s12598_s6 + $0x1cd8] ss:$52 sps:$4 sm:$0xff]   ;;  %v11418_v24 = vld [vmem:[%s12598_s6 + $0x1ce0] ss:$52 sps:$4 sm:$0xff]  }
 0x103   : > { %v11423_v26 = vld [vmem:[%s12598_s6 + $0x1d44] ss:$52 sps:$4 sm:$0xff]  }
 0x105   : > { %6904 = vmatpush1.bf16.msra.mxu0 %v11342_v28  ;;  %7109 = vmatpush1.bf16.msra.mxu1 %v11345_v29  ;;  %v11426_v28 = vld [vmem:[%s12598_s6 + $0x1d4c] ss:$52 sps:$4 sm:$0xff]  }
 0x106   : > { %6905 = vmatprep.subr.bf16.mxu0 %v11350_v10  ;;  %7110 = vmatprep.subr.bf16.mxu1 %v11353_v31  ;;  %v11421_v29 = vld [vmem:[%s12598_s6 + $0x1d40] ss:$52 sps:$4 sm:$0xff]   ;;  %v11424_v10 = vld [vmem:[%s12598_s6 + $0x1d48] ss:$52 sps:$4 sm:$0xff]  }
 0x107   : > { %v11429_v31 = vld [vmem:[%s12598_s6 + $0x1dac] ss:$52 sps:$4 sm:$0xff]  }
 0x109   : > { %6906 = vmatpush1.bf16.msra.mxu0 %v11348_v32  ;;  %7111 = vmatpush1.bf16.msra.mxu1 %v11351_v27  ;;  %v11432_v32 = vld [vmem:[%s12598_s6 + $0x1db4] ss:$52 sps:$4 sm:$0xff]  }
 0x10a   : > { %6907 = vmatprep.subr.bf16.mxu0 %v11356_v34  ;;  %7112 = vmatprep.subr.bf16.mxu1 %v11359_v36  ;;  %v11427_v27 = vld [vmem:[%s12598_s6 + $0x1da8] ss:$52 sps:$4 sm:$0xff]   ;;  %v11430_v34 = vld [vmem:[%s12598_s6 + $0x1db0] ss:$52 sps:$4 sm:$0xff]  }
 0x10b   : > { %v11435_v36 = vld [vmem:[%s12598_s6 + $0x1e14] ss:$52 sps:$4 sm:$0xff]  }
 0x10d   : > { %6908 = vmatpush1.bf16.msra.mxu0 %v11354_v37  ;;  %7113 = vmatpush1.bf16.msra.mxu1 %v11357_v38  ;;  %v11438_v37 = vld [vmem:[%s12598_s6 + $0x1e1c] ss:$52 sps:$4 sm:$0xff]  }
 0x10e   : > { %6909 = vmatprep.subr.bf16.mxu0 %v11362_v40  ;;  %7114 = vmatprep.subr.bf16.mxu1 %v11365_v41  ;;  %v11433_v38 = vld [vmem:[%s12598_s6 + $0x1e10] ss:$52 sps:$4 sm:$0xff]   ;;  %v11436_v40 = vld [vmem:[%s12598_s6 + $0x1e18] ss:$52 sps:$4 sm:$0xff]  }
 0x10f   : > { %v11441_v41 = vld [vmem:[%s12598_s6 + $0x1e7c] ss:$52 sps:$4 sm:$0xff]  }
 0x111   : > { %6910 = vmatpush1.bf16.msra.mxu0 %v11360_v42  ;;  %7115 = vmatpush1.bf16.msra.mxu1 %v11363_v43  ;;  %v11444_v42 = vld [vmem:[%s12598_s6 + $0x1e84] ss:$52 sps:$4 sm:$0xff]  }
 0x112   : > { %6911 = vmatprep.subr.bf16.mxu0 %v11368_v30  ;;  %7116 = vmatprep.subr.bf16.mxu1 %v11371_v46  ;;  %v11439_v43 = vld [vmem:[%s12598_s6 + $0x1e78] ss:$52 sps:$4 sm:$0xff]   ;;  %v11442_v30 = vld [vmem:[%s12598_s6 + $0x1e80] ss:$52 sps:$4 sm:$0xff]  }
 0x113   : > { %v11447_v46 = vld [vmem:[%s12598_s6 + $0x1ee4] ss:$52 sps:$4 sm:$0xff]  }
 0x115   : > { %6912 = vmatpush1.bf16.msra.mxu0 %v11366_v47  ;;  %7117 = vmatpush1.bf16.msra.mxu1 %v11369_v49  ;;  %v11450_v47 = vld [vmem:[%s12598_s6 + $0x1eec] ss:$52 sps:$4 sm:$0xff]  }
 0x116   : > { %6922 = vmatprep.subr.bf16.mxu0 %v11375_v51  ;;  %7127 = vmatprep.subr.bf16.mxu1 %v11378_v52  ;;  %v11445_v49 = vld [vmem:[%s12598_s6 + $0x1ee0] ss:$52 sps:$4 sm:$0xff]   ;;  %v11448_v51 = vld [vmem:[%s12598_s6 + $0x1ee8] ss:$52 sps:$4 sm:$0xff]  }
 0x117   : > { %v11453_v52 = vld [vmem:[%s12598_s6 + $0x1f4c] ss:$52 sps:$4 sm:$0xff]  }
 0x118   : > { %6914 = vmatmul.mubr.bf16.vlgmr.msra.gmra.mrb[0].mxu0 %v12927_v55  ;;  %7119 = vmatmul.mubr.bf16.vlgmr.msra.gmra.mrb[0].mxu1 %v12927_v55 }
 0x119   : > { %6923 = vmatpush1.bf16.msra.mxu0 %v11373_v54  ;;  %7128 = vmatpush1.bf16.msra.mxu1 %v11376_v56  ;;  %v11451_v54 = vld [vmem:[%s12598_s6 + $0x1f48] ss:$52 sps:$4 sm:$0xff]   ;;  %v11454_v56 = vld [vmem:[%s12598_s6 + $0x1f50] ss:$52 sps:$4 sm:$0xff]  }
 0x11a   : > { %6924 = vmatprep.subr.bf16.mxu0 %v11381_v57  ;;  %7129 = vmatprep.subr.bf16.mxu1 %v11384_v58  ;;  %v11459_v57 = vld [vmem:[%s12598_s6 + $0x1fb4] ss:$52 sps:$4 sm:$0xff]   ;;  %v11462_v58 = vld [vmem:[%s12598_s6 + $0x1fbc] ss:$52 sps:$4 sm:$0xff]  }
 0x11b   : > { %6954 = vmatprep.mubr.bf16.mxu0 %v12932_v59  ;;  %7159 = vmatprep.mubr.bf16.mxu1 %v12932_v59 }
 0x11d   : > { %6925 = vmatpush1.bf16.msra.mxu0 %v11379_v60  ;;  %7130 = vmatpush1.bf16.msra.mxu1 %v11382_v33  ;;  %v11457_v60 = vld [vmem:[%s12598_s6 + $0x1fb0] ss:$52 sps:$4 sm:$0xff]   ;;  %v11460_v33 = vld [vmem:[%s12598_s6 + $0x1fb8] ss:$52 sps:$4 sm:$0xff]  }
 0x11e   : > { %6926 = vmatprep.subr.bf16.mxu0 %v11387_v62  ;;  %7131 = vmatprep.subr.bf16.mxu1 %v11390_v63  ;;  %v11465_v62 = vld [vmem:[%s12598_s6 + $0x201c] ss:$52 sps:$4 sm:$0xff]   ;;  %v11468_v63 = vld [vmem:[%s12598_s6 + $0x2024] ss:$52 sps:$4 sm:$0xff]  }
 0x121   : > { %6927 = vmatpush1.bf16.msra.mxu0 %v11385_v0  ;;  %7132 = vmatpush1.bf16.msra.mxu1 %v11388_v1  ;;  %v11463_v0 = vld [vmem:[%s12598_s6 + $0x2018] ss:$52 sps:$4 sm:$0xff]   ;;  %v11466_v1 = vld [vmem:[%s12598_s6 + $0x2020] ss:$52 sps:$4 sm:$0xff]  }
 0x122   : > { %6928 = vmatprep.subr.bf16.mxu0 %v11393_v2  ;;  %7133 = vmatprep.subr.bf16.mxu1 %v11396_v3  ;;  %v11471_v2 = vld [vmem:[%s12598_s6 + $0x14] ss:$52 sps:$4 sm:$0xff]   ;;  %v11474_v3 = vld [vmem:[%s12598_s6 + $0x1c] ss:$52 sps:$4 sm:$0xff]  }
 0x125   : > { %6929 = vmatpush1.bf16.msra.mxu0 %v11391_v4  ;;  %7134 = vmatpush1.bf16.msra.mxu1 %v11394_v5  ;;  %v13000_v4 = vpack.c.bf16 %v12917_v48, %v12917_v48  ;;  %v11469_v5 = vld [vmem:[%s12598_s6 + $0x10] ss:$52 sps:$4 sm:$0xff]   ;;  %v11475_v48 = vld [vmem:[%s12598_s6 + $0x78] ss:$52 sps:$4 sm:$0xff]  }
 0x126   : > { %6930 = vmatprep.subr.bf16.mxu0 %v11399_v6  ;;  %7135 = vmatprep.subr.bf16.mxu1 %v11402_v7  ;;  %v11472_v6 = vld [vmem:[%s12598_s6 + $0x18] ss:$52 sps:$4 sm:$0xff]   ;;  %v11477_v7 = vld [vmem:[%s12598_s6 + $0x7c] ss:$52 sps:$4 sm:$0xff]  }
 0x129   : > { %6931 = vmatpush1.bf16.msra.mxu0 %v11397_v8  ;;  %7136 = vmatpush1.bf16.msra.mxu1 %v11400_v9  ;;  %v11480_v8 = vld [vmem:[%s12598_s6 + $0x84] ss:$52 sps:$4 sm:$0xff]   ;;  %v11478_v9 = vld [vmem:[%s12598_s6 + $0x80] ss:$52 sps:$4 sm:$0xff]  }
 0x12a   : > { %6932 = vmatprep.subr.bf16.mxu0 %v11405_v11  ;;  %7137 = vmatprep.subr.bf16.mxu1 %v11408_v12  ;;  %v11483_v11 = vld [vmem:[%s12598_s6 + $0xe4] ss:$52 sps:$4 sm:$0xff]   ;;  %v11486_v12 = vld [vmem:[%s12598_s6 + $0xec] ss:$52 sps:$4 sm:$0xff]  }
 0x12d   : > { %6933 = vmatpush1.bf16.msra.mxu0 %v11403_v13  ;;  %7138 = vmatpush1.bf16.msra.mxu1 %v11406_v14  ;;  %v11481_v13 = vld [vmem:[%s12598_s6 + $0xe0] ss:$52 sps:$4 sm:$0xff]   ;;  %v11484_v14 = vld [vmem:[%s12598_s6 + $0xe8] ss:$52 sps:$4 sm:$0xff]  }
 0x12e   : > { %6934 = vmatprep.subr.bf16.mxu0 %v11411_v15  ;;  %7139 = vmatprep.subr.bf16.mxu1 %v11414_v16  ;;  %v11489_v15 = vld [vmem:[%s12598_s6 + $0x14c] ss:$52 sps:$4 sm:$0xff]   ;;  %v11492_v16 = vld [vmem:[%s12598_s6 + $0x154] ss:$52 sps:$4 sm:$0xff]  }
 0x131   : > { %6935 = vmatpush1.bf16.msra.mxu0 %v11409_v18  ;;  %7140 = vmatpush1.bf16.msra.mxu1 %v11412_v19  ;;  %v11487_v18 = vld [vmem:[%s12598_s6 + $0x148] ss:$52 sps:$4 sm:$0xff]   ;;  %v11490_v19 = vld [vmem:[%s12598_s6 + $0x150] ss:$52 sps:$4 sm:$0xff]  }
 0x132   : > { %6936 = vmatprep.subr.bf16.mxu0 %v11417_v20  ;;  %7141 = vmatprep.subr.bf16.mxu1 %v11420_v22  ;;  %v11495_v20 = vld [vmem:[%s12598_s6 + $0x1b4] ss:$52 sps:$4 sm:$0xff]   ;;  %v11498_v22 = vld [vmem:[%s12598_s6 + $0x1bc] ss:$52 sps:$4 sm:$0xff]  }
 0x135   : > { %6937 = vmatpush1.bf16.msra.mxu0 %v11415_v23  ;;  %7142 = vmatpush1.bf16.msra.mxu1 %v11418_v24  ;;  %v11493_v23 = vld [vmem:[%s12598_s6 + $0x1b0] ss:$52 sps:$4 sm:$0xff]   ;;  %v11496_v24 = vld [vmem:[%s12598_s6 + $0x1b8] ss:$52 sps:$4 sm:$0xff]  }
 0x136   : > { %6938 = vmatprep.subr.bf16.mxu0 %v11423_v26  ;;  %7143 = vmatprep.subr.bf16.mxu1 %v11426_v28  ;;  %v11501_v26 = vld [vmem:[%s12598_s6 + $0x21c] ss:$52 sps:$4 sm:$0xff]   ;;  %v11504_v28 = vld [vmem:[%s12598_s6 + $0x224] ss:$52 sps:$4 sm:$0xff]  }
 0x139   : > { %6939 = vmatpush1.bf16.msra.mxu0 %v11421_v29  ;;  %7144 = vmatpush1.bf16.msra.mxu1 %v11424_v10  ;;  %v11499_v29 = vld [vmem:[%s12598_s6 + $0x218] ss:$52 sps:$4 sm:$0xff]   ;;  %v11502_v10 = vld [vmem:[%s12598_s6 + $0x220] ss:$52 sps:$4 sm:$0xff]  }
 0x13a   : > { %6940 = vmatprep.subr.bf16.mxu0 %v11429_v31  ;;  %7145 = vmatprep.subr.bf16.mxu1 %v11432_v32  ;;  %v11507_v31 = vld [vmem:[%s12598_s6 + $0x284] ss:$52 sps:$4 sm:$0xff]   ;;  %v11510_v32 = vld [vmem:[%s12598_s6 + $0x28c] ss:$52 sps:$4 sm:$0xff]  }
 0x13d   : > { %6941 = vmatpush1.bf16.msra.mxu0 %v11427_v27  ;;  %7146 = vmatpush1.bf16.msra.mxu1 %v11430_v34  ;;  %v11505_v27 = vld [vmem:[%s12598_s6 + $0x280] ss:$52 sps:$4 sm:$0xff]   ;;  %v11508_v34 = vld [vmem:[%s12598_s6 + $0x288] ss:$52 sps:$4 sm:$0xff]  }
 0x13e   : > { %6942 = vmatprep.subr.bf16.mxu0 %v11435_v36  ;;  %7147 = vmatprep.subr.bf16.mxu1 %v11438_v37  ;;  %v11513_v36 = vld [vmem:[%s12598_s6 + $0x2ec] ss:$52 sps:$4 sm:$0xff]   ;;  %v11516_v37 = vld [vmem:[%s12598_s6 + $0x2f4] ss:$52 sps:$4 sm:$0xff]  }
 0x141   : > { %6943 = vmatpush1.bf16.msra.mxu0 %v11433_v38  ;;  %7148 = vmatpush1.bf16.msra.mxu1 %v11436_v40  ;;  %v11511_v38 = vld [vmem:[%s12598_s6 + $0x2e8] ss:$52 sps:$4 sm:$0xff]   ;;  %v11514_v40 = vld [vmem:[%s12598_s6 + $0x2f0] ss:$52 sps:$4 sm:$0xff]  }
 0x142   : > { %6944 = vmatprep.subr.bf16.mxu0 %v11441_v41  ;;  %7149 = vmatprep.subr.bf16.mxu1 %v11444_v42  ;;  %v11519_v41 = vld [vmem:[%s12598_s6 + $0x354] ss:$52 sps:$4 sm:$0xff]   ;;  %v11522_v42 = vld [vmem:[%s12598_s6 + $0x35c] ss:$52 sps:$4 sm:$0xff]  }
 0x145   : > { %6945 = vmatpush1.bf16.msra.mxu0 %v11439_v43  ;;  %7150 = vmatpush1.bf16.msra.mxu1 %v11442_v30  ;;  %v11517_v43 = vld [vmem:[%s12598_s6 + $0x350] ss:$52 sps:$4 sm:$0xff]   ;;  %v11520_v30 = vld [vmem:[%s12598_s6 + $0x358] ss:$52 sps:$4 sm:$0xff]  }
 0x146   : > { %6946 = vmatprep.subr.bf16.mxu0 %v11447_v46  ;;  %7151 = vmatprep.subr.bf16.mxu1 %v11450_v47  ;;  %v11525_v46 = vld [vmem:[%s12598_s6 + $0x3bc] ss:$52 sps:$4 sm:$0xff]   ;;  %v11528_v47 = vld [vmem:[%s12598_s6 + $0x3c4] ss:$52 sps:$4 sm:$0xff]  }
 0x149   : > { %6947 = vmatpush1.bf16.msra.mxu0 %v11445_v49  ;;  %7152 = vmatpush1.bf16.msra.mxu1 %v11448_v51  ;;  %v11523_v49 = vld [vmem:[%s12598_s6 + $0x3b8] ss:$52 sps:$4 sm:$0xff]   ;;  %v11526_v51 = vld [vmem:[%s12598_s6 + $0x3c0] ss:$52 sps:$4 sm:$0xff]  }
 0x14a   : > { %6948 = vmatprep.subr.bf16.mxu0 %v11453_v52  ;;  %7153 = vmatprep.subr.bf16.mxu1 %v11456_v53  ;;  %v11531_v52 = vld [vmem:[%s12598_s6 + $0x424] ss:$52 sps:$4 sm:$0xff]   ;;  %v11534_v53 = vld [vmem:[%s12598_s6 + $0x42c] ss:$52 sps:$4 sm:$0xff]  }
 0x14d   : > { %6949 = vmatpush1.bf16.msra.mxu0 %v11451_v54  ;;  %7154 = vmatpush1.bf16.msra.mxu1 %v11454_v56  ;;  %v11529_v54 = vld [vmem:[%s12598_s6 + $0x420] ss:$52 sps:$4 sm:$0xff]   ;;  %v11532_v56 = vld [vmem:[%s12598_s6 + $0x428] ss:$52 sps:$4 sm:$0xff]  }
 0x14e   : > { %6950 = vmatprep.subr.bf16.mxu0 %v11459_v57  ;;  %7155 = vmatprep.subr.bf16.mxu1 %v11462_v58  ;;  %v11537_v57 = vld [vmem:[%s12598_s6 + $0x48c] ss:$52 sps:$4 sm:$0xff]   ;;  %v11540_v58 = vld [vmem:[%s12598_s6 + $0x494] ss:$52 sps:$4 sm:$0xff]  }
 0x151   : > { %6951 = vmatpush1.bf16.msra.mxu0 %v11457_v60  ;;  %7156 = vmatpush1.bf16.msra.mxu1 %v11460_v33  ;;  %v11535_v60 = vld [vmem:[%s12598_s6 + $0x488] ss:$52 sps:$4 sm:$0xff]   ;;  %v11538_v33 = vld [vmem:[%s12598_s6 + $0x490] ss:$52 sps:$4 sm:$0xff]  }
 0x152   : > { %6952 = vmatprep.subr.bf16.mxu0 %v11465_v62  ;;  %7157 = vmatprep.subr.bf16.mxu1 %v11468_v63  ;;  %v11543_v62 = vld [vmem:[%s12598_s6 + $0x4f4] ss:$52 sps:$4 sm:$0xff]   ;;  %v11546_v63 = vld [vmem:[%s12598_s6 + $0x4fc] ss:$52 sps:$4 sm:$0xff]  }
 0x155   : > { %6953 = vmatpush1.bf16.msra.mxu0 %v11463_v0  ;;  %7158 = vmatpush1.bf16.msra.mxu1 %v11466_v1  ;;  %v11541_v0 = vld [vmem:[%s12598_s6 + $0x4f0] ss:$52 sps:$4 sm:$0xff]   ;;  %v11544_v1 = vld [vmem:[%s12598_s6 + $0x4f8] ss:$52 sps:$4 sm:$0xff]  }
 0x156   : > { %7168 = vmatprep.subr.bf16.mxu0 %v11471_v2  ;;  %7373 = vmatprep.subr.bf16.mxu1 %v11474_v3  ;;  %v11549_v2 = vld [vmem:[%s12598_s6 + $0x55c] ss:$52 sps:$4 sm:$0xff]   ;;  %v11552_v3 = vld [vmem:[%s12598_s6 + $0x564] ss:$52 sps:$4 sm:$0xff]  }
 0x158   : > { %6955 = vmatmul.mubr.bf16.vlgmr.msra.gmra.mrb[0].mxu0 %v13000_v4  ;;  %7160 = vmatmul.mubr.bf16.vlgmr.msra.gmra.mrb[0].mxu1 %v13000_v4 }
 0x159   : > { %7169 = vmatpush1.bf16.msra.mxu0 %v11469_v5  ;;  %7374 = vmatpush1.bf16.msra.mxu1 %v11472_v6  ;;  %v11547_v5 = vld [vmem:[%s12598_s6 + $0x558] ss:$52 sps:$4 sm:$0xff]   ;;  %v11550_v6 = vld [vmem:[%s12598_s6 + $0x560] ss:$52 sps:$4 sm:$0xff]  }
 0x15a   : > { %7170 = vmatprep.subr.bf16.mxu0 %v11477_v7  ;;  %7375 = vmatprep.subr.bf16.mxu1 %v11480_v8  ;;  %v11555_v7 = vld [vmem:[%s12598_s6 + $0x5c4] ss:$52 sps:$4 sm:$0xff]   ;;  %v11558_v8 = vld [vmem:[%s12598_s6 + $0x5cc] ss:$52 sps:$4 sm:$0xff]  }
 0x15b   : > { %7200 = vmatprep.mubr.bf16.mxu0 %v12659_v61  ;;  %7405 = vmatprep.mubr.bf16.mxu1 %v12659_v61 }
 0x15d   : > { %7171 = vmatpush1.bf16.msra.mxu0 %v11475_v48  ;;  %7376 = vmatpush1.bf16.msra.mxu1 %v11478_v9  ;;  %v11553_v48 = vld [vmem:[%s12598_s6 + $0x5c0] ss:$52 sps:$4 sm:$0xff]   ;;  %v11556_v9 = vld [vmem:[%s12598_s6 + $0x5c8] ss:$52 sps:$4 sm:$0xff]  }
 0x15e   : > { %7172 = vmatprep.subr.bf16.mxu0 %v11483_v11  ;;  %7377 = vmatprep.subr.bf16.mxu1 %v11486_v12  ;;  %v11561_v11 = vld [vmem:[%s12598_s6 + $0x62c] ss:$52 sps:$4 sm:$0xff]   ;;  %v11564_v12 = vld [vmem:[%s12598_s6 + $0x634] ss:$52 sps:$4 sm:$0xff]  }
 0x161   : > { %7173 = vmatpush1.bf16.msra.mxu0 %v11481_v13  ;;  %7378 = vmatpush1.bf16.msra.mxu1 %v11484_v14  ;;  %v11559_v13 = vld [vmem:[%s12598_s6 + $0x628] ss:$52 sps:$4 sm:$0xff]   ;;  %v11562_v14 = vld [vmem:[%s12598_s6 + $0x630] ss:$52 sps:$4 sm:$0xff]  }
 0x162   : > { %7174 = vmatprep.subr.bf16.mxu0 %v11489_v15  ;;  %7379 = vmatprep.subr.bf16.mxu1 %v11492_v16  ;;  %v11567_v15 = vld [vmem:[%s12598_s6 + $0x694] ss:$52 sps:$4 sm:$0xff]   ;;  %v11570_v16 = vld [vmem:[%s12598_s6 + $0x69c] ss:$52 sps:$4 sm:$0xff]  }
 0x165   : > { %7175 = vmatpush1.bf16.msra.mxu0 %v11487_v18  ;;  %7380 = vmatpush1.bf16.msra.mxu1 %v11490_v19  ;;  %v11565_v18 = vld [vmem:[%s12598_s6 + $0x690] ss:$52 sps:$4 sm:$0xff]   ;;  %v11568_v19 = vld [vmem:[%s12598_s6 + $0x698] ss:$52 sps:$4 sm:$0xff]  }
 0x166   : > { %7176 = vmatprep.subr.bf16.mxu0 %v11495_v20  ;;  %7381 = vmatprep.subr.bf16.mxu1 %v11498_v22  ;;  %v11573_v20 = vld [vmem:[%s12598_s6 + $0x6fc] ss:$52 sps:$4 sm:$0xff]   ;;  %v11576_v22 = vld [vmem:[%s12598_s6 + $0x704] ss:$52 sps:$4 sm:$0xff]  }
 0x169   : > { %7177 = vmatpush1.bf16.msra.mxu0 %v11493_v23  ;;  %7382 = vmatpush1.bf16.msra.mxu1 %v11496_v24  ;;  %v11571_v23 = vld [vmem:[%s12598_s6 + $0x6f8] ss:$52 sps:$4 sm:$0xff]   ;;  %v11574_v24 = vld [vmem:[%s12598_s6 + $0x700] ss:$52 sps:$4 sm:$0xff]  }
 0x16a   : > { %7178 = vmatprep.subr.bf16.mxu0 %v11501_v26  ;;  %7383 = vmatprep.subr.bf16.mxu1 %v11504_v28  ;;  %v11579_v26 = vld [vmem:[%s12598_s6 + $0x764] ss:$52 sps:$4 sm:$0xff]   ;;  %v11582_v28 = vld [vmem:[%s12598_s6 + $0x76c] ss:$52 sps:$4 sm:$0xff]  }
 0x16d   : > { %7179 = vmatpush1.bf16.msra.mxu0 %v11499_v29  ;;  %7384 = vmatpush1.bf16.msra.mxu1 %v11502_v10  ;;  %v11577_v29 = vld [vmem:[%s12598_s6 + $0x760] ss:$52 sps:$4 sm:$0xff]   ;;  %v11580_v10 = vld [vmem:[%s12598_s6 + $0x768] ss:$52 sps:$4 sm:$0xff]  }
 0x16e   : > { %7180 = vmatprep.subr.bf16.mxu0 %v11507_v31  ;;  %7385 = vmatprep.subr.bf16.mxu1 %v11510_v32  ;;  %v11585_v31 = vld [vmem:[%s12598_s6 + $0x7cc] ss:$52 sps:$4 sm:$0xff]   ;;  %v11588_v32 = vld [vmem:[%s12598_s6 + $0x7d4] ss:$52 sps:$4 sm:$0xff]  }
 0x171   : > { %7181 = vmatpush1.bf16.msra.mxu0 %v11505_v27  ;;  %7386 = vmatpush1.bf16.msra.mxu1 %v11508_v34  ;;  %v11583_v27 = vld [vmem:[%s12598_s6 + $0x7c8] ss:$52 sps:$4 sm:$0xff]   ;;  %v11586_v34 = vld [vmem:[%s12598_s6 + $0x7d0] ss:$52 sps:$4 sm:$0xff]  }
 0x172   : > { %7182 = vmatprep.subr.bf16.mxu0 %v11513_v36  ;;  %7387 = vmatprep.subr.bf16.mxu1 %v11516_v37  ;;  %v11591_v36 = vld [vmem:[%s12598_s6 + $0x834] ss:$52 sps:$4 sm:$0xff]   ;;  %v11594_v37 = vld [vmem:[%s12598_s6 + $0x83c] ss:$52 sps:$4 sm:$0xff]  }
 0x175   : > { %7183 = vmatpush1.bf16.msra.mxu0 %v11511_v38  ;;  %7388 = vmatpush1.bf16.msra.mxu1 %v11514_v40  ;;  %v11589_v38 = vld [vmem:[%s12598_s6 + $0x830] ss:$52 sps:$4 sm:$0xff]   ;;  %v11592_v40 = vld [vmem:[%s12598_s6 + $0x838] ss:$52 sps:$4 sm:$0xff]  }
 0x176   : > { %7184 = vmatprep.subr.bf16.mxu0 %v11519_v41  ;;  %7389 = vmatprep.subr.bf16.mxu1 %v11522_v42  ;;  %v11597_v41 = vld [vmem:[%s12598_s6 + $0x89c] ss:$52 sps:$4 sm:$0xff]   ;;  %v11600_v42 = vld [vmem:[%s12598_s6 + $0x8a4] ss:$52 sps:$4 sm:$0xff]  }
 0x179   : > { %7185 = vmatpush1.bf16.msra.mxu0 %v11517_v43  ;;  %7390 = vmatpush1.bf16.msra.mxu1 %v11520_v30  ;;  %v11595_v43 = vld [vmem:[%s12598_s6 + $0x898] ss:$52 sps:$4 sm:$0xff]   ;;  %v11598_v30 = vld [vmem:[%s12598_s6 + $0x8a0] ss:$52 sps:$4 sm:$0xff]  }
 0x17a   : > { %7186 = vmatprep.subr.bf16.mxu0 %v11525_v46  ;;  %7391 = vmatprep.subr.bf16.mxu1 %v11528_v47  ;;  %v11603_v46 = vld [vmem:[%s12598_s6 + $0x904] ss:$52 sps:$4 sm:$0xff]   ;;  %v11606_v47 = vld [vmem:[%s12598_s6 + $0x90c] ss:$52 sps:$4 sm:$0xff]  }
 0x17d   : > { %7187 = vmatpush1.bf16.msra.mxu0 %v11523_v49  ;;  %7392 = vmatpush1.bf16.msra.mxu1 %v11526_v51  ;;  %v11601_v49 = vld [vmem:[%s12598_s6 + $0x900] ss:$52 sps:$4 sm:$0xff]   ;;  %v11604_v51 = vld [vmem:[%s12598_s6 + $0x908] ss:$52 sps:$4 sm:$0xff]  }
 0x17e   : > { %7188 = vmatprep.subr.bf16.mxu0 %v11531_v52  ;;  %7393 = vmatprep.subr.bf16.mxu1 %v11534_v53  ;;  %v11609_v52 = vld [vmem:[%s12598_s6 + $0x96c] ss:$52 sps:$4 sm:$0xff]   ;;  %v11612_v53 = vld [vmem:[%s12598_s6 + $0x974] ss:$52 sps:$4 sm:$0xff]  }
 0x181   : > { %7189 = vmatpush1.bf16.msra.mxu0 %v11529_v54  ;;  %7394 = vmatpush1.bf16.msra.mxu1 %v11532_v56  ;;  %v11607_v54 = vld [vmem:[%s12598_s6 + $0x968] ss:$52 sps:$4 sm:$0xff]   ;;  %v11610_v56 = vld [vmem:[%s12598_s6 + $0x970] ss:$52 sps:$4 sm:$0xff]  }
 0x182   : > { %7190 = vmatprep.subr.bf16.mxu0 %v11537_v57  ;;  %7395 = vmatprep.subr.bf16.mxu1 %v11540_v58  ;;  %v11615_v57 = vld [vmem:[%s12598_s6 + $0x9d4] ss:$52 sps:$4 sm:$0xff]   ;;  %v11618_v58 = vld [vmem:[%s12598_s6 + $0x9dc] ss:$52 sps:$4 sm:$0xff]  }
 0x185   : > { %7191 = vmatpush1.bf16.msra.mxu0 %v11535_v60  ;;  %7396 = vmatpush1.bf16.msra.mxu1 %v11538_v33  ;;  %v11613_v60 = vld [vmem:[%s12598_s6 + $0x9d0] ss:$52 sps:$4 sm:$0xff]   ;;  %v11616_v33 = vld [vmem:[%s12598_s6 + $0x9d8] ss:$52 sps:$4 sm:$0xff]  }
 0x186   : > { %7192 = vmatprep.subr.bf16.mxu0 %v11543_v62  ;;  %7397 = vmatprep.subr.bf16.mxu1 %v11546_v63  ;;  %v11621_v62 = vld [vmem:[%s12598_s6 + $0xa3c] ss:$52 sps:$4 sm:$0xff]   ;;  %v11624_v63 = vld [vmem:[%s12598_s6 + $0xa44] ss:$52 sps:$4 sm:$0xff]  }
 0x189   : > { %7193 = vmatpush1.bf16.msra.mxu0 %v11541_v0  ;;  %7398 = vmatpush1.bf16.msra.mxu1 %v11544_v1  ;;  %v11619_v0 = vld [vmem:[%s12598_s6 + $0xa38] ss:$52 sps:$4 sm:$0xff]   ;;  %v11622_v1 = vld [vmem:[%s12598_s6 + $0xa40] ss:$52 sps:$4 sm:$0xff]  }
 0x18a   : > { %7194 = vmatprep.subr.bf16.mxu0 %v11549_v2  ;;  %7399 = vmatprep.subr.bf16.mxu1 %v11552_v3  ;;  %v11627_v2 = vld [vmem:[%s12598_s6 + $0xaa4] ss:$52 sps:$4 sm:$0xff]   ;;  %v11630_v3 = vld [vmem:[%s12598_s6 + $0xaac] ss:$52 sps:$4 sm:$0xff]  }
 0x18d   : > { %7195 = vmatpush1.bf16.msra.mxu0 %v11547_v5  ;;  %7400 = vmatpush1.bf16.msra.mxu1 %v11550_v6  ;;  %v11625_v5 = vld [vmem:[%s12598_s6 + $0xaa0] ss:$52 sps:$4 sm:$0xff]   ;;  %v11628_v6 = vld [vmem:[%s12598_s6 + $0xaa8] ss:$52 sps:$4 sm:$0xff]  }
 0x18e   : > { %7196 = vmatprep.subr.bf16.mxu0 %v11555_v7  ;;  %7401 = vmatprep.subr.bf16.mxu1 %v11558_v8  ;;  %v11633_v7 = vld [vmem:[%s12598_s6 + $0xb0c] ss:$52 sps:$4 sm:$0xff]   ;;  %v11636_v8 = vld [vmem:[%s12598_s6 + $0xb14] ss:$52 sps:$4 sm:$0xff]  }
 0x191   : > { %7197 = vmatpush1.bf16.msra.mxu0 %v11553_v48  ;;  %7402 = vmatpush1.bf16.msra.mxu1 %v11556_v9  ;;  %v11631_v48 = vld [vmem:[%s12598_s6 + $0xb08] ss:$52 sps:$4 sm:$0xff]   ;;  %v11634_v9 = vld [vmem:[%s12598_s6 + $0xb10] ss:$52 sps:$4 sm:$0xff]  }
 0x192   : > { %7198 = vmatprep.subr.bf16.mxu0 %v11561_v11  ;;  %7403 = vmatprep.subr.bf16.mxu1 %v11564_v12  ;;  %v11639_v11 = vld [vmem:[%s12598_s6 + $0xb74] ss:$52 sps:$4 sm:$0xff]   ;;  %v11642_v12 = vld [vmem:[%s12598_s6 + $0xb7c] ss:$52 sps:$4 sm:$0xff]  }
 0x195   : > { %7199 = vmatpush1.bf16.msra.mxu0 %v11559_v13  ;;  %7404 = vmatpush1.bf16.msra.mxu1 %v11562_v14  ;;  %v11637_v13 = vld [vmem:[%s12598_s6 + $0xb70] ss:$52 sps:$4 sm:$0xff]   ;;  %v11640_v14 = vld [vmem:[%s12598_s6 + $0xb78] ss:$52 sps:$4 sm:$0xff]  }
 0x196   : > { %7209 = vmatprep.subr.bf16.mxu0 %v11567_v15  ;;  %7414 = vmatprep.subr.bf16.mxu1 %v11570_v16  ;;  %v11645_v15 = vld [vmem:[%s12598_s6 + $0xbdc] ss:$52 sps:$4 sm:$0xff]   ;;  %v11648_v16 = vld [vmem:[%s12598_s6 + $0xbe4] ss:$52 sps:$4 sm:$0xff]  }
 0x198   : > { %7201 = vmatmul.mubr.bf16.vlgmr.msra.gmra.mrb[4].mxu0 %v12684_v17  ;;  %7406 = vmatmul.mubr.bf16.vlgmr.msra.gmra.mrb[4].mxu1 %v12684_v17 }
 0x199   : > { %7210 = vmatpush1.bf16.msra.mxu0 %v11565_v18  ;;  %7415 = vmatpush1.bf16.msra.mxu1 %v11568_v19  ;;  %v11643_v18 = vld [vmem:[%s12598_s6 + $0xbd8] ss:$52 sps:$4 sm:$0xff]   ;;  %v11646_v19 = vld [vmem:[%s12598_s6 + $0xbe0] ss:$52 sps:$4 sm:$0xff]  }
 0x19a   : > { %7211 = vmatprep.subr.bf16.mxu0 %v11573_v20  ;;  %7416 = vmatprep.subr.bf16.mxu1 %v11576_v22  ;;  %v11651_v20 = vld [vmem:[%s12598_s6 + $0xc44] ss:$52 sps:$4 sm:$0xff]   ;;  %v11654_v22 = vld [vmem:[%s12598_s6 + $0xc4c] ss:$52 sps:$4 sm:$0xff]  }
 0x19b   : > { %7241 = vmatprep.mubr.bf16.mxu0 %v12689_v21  ;;  %7446 = vmatprep.mubr.bf16.mxu1 %v12689_v21 }
 0x19d   : > { %7212 = vmatpush1.bf16.msra.mxu0 %v11571_v23  ;;  %7417 = vmatpush1.bf16.msra.mxu1 %v11574_v24  ;;  %v11649_v23 = vld [vmem:[%s12598_s6 + $0xc40] ss:$52 sps:$4 sm:$0xff]   ;;  %v11652_v24 = vld [vmem:[%s12598_s6 + $0xc48] ss:$52 sps:$4 sm:$0xff]  }
 0x19e   : > { %7213 = vmatprep.subr.bf16.mxu0 %v11579_v26  ;;  %7418 = vmatprep.subr.bf16.mxu1 %v11582_v28  ;;  %v11657_v26 = vld [vmem:[%s12598_s6 + $0xcac] ss:$52 sps:$4 sm:$0xff]   ;;  %v11660_v28 = vld [vmem:[%s12598_s6 + $0xcb4] ss:$52 sps:$4 sm:$0xff]  }
 0x1a1   : > { %7214 = vmatpush1.bf16.msra.mxu0 %v11577_v29  ;;  %7419 = vmatpush1.bf16.msra.mxu1 %v11580_v10  ;;  %v11655_v29 = vld [vmem:[%s12598_s6 + $0xca8] ss:$52 sps:$4 sm:$0xff]   ;;  %v11658_v10 = vld [vmem:[%s12598_s6 + $0xcb0] ss:$52 sps:$4 sm:$0xff]  }
 0x1a2   : > { %7215 = vmatprep.subr.bf16.mxu0 %v11585_v31  ;;  %7420 = vmatprep.subr.bf16.mxu1 %v11588_v32  ;;  %v11663_v31 = vld [vmem:[%s12598_s6 + $0xd14] ss:$52 sps:$4 sm:$0xff]   ;;  %v11666_v32 = vld [vmem:[%s12598_s6 + $0xd1c] ss:$52 sps:$4 sm:$0xff]  }
 0x1a5   : > { %7216 = vmatpush1.bf16.msra.mxu0 %v11583_v27  ;;  %7421 = vmatpush1.bf16.msra.mxu1 %v11586_v34  ;;  %v11661_v27 = vld [vmem:[%s12598_s6 + $0xd10] ss:$52 sps:$4 sm:$0xff]   ;;  %v11664_v34 = vld [vmem:[%s12598_s6 + $0xd18] ss:$52 sps:$4 sm:$0xff]  }
 0x1a6   : > { %7217 = vmatprep.subr.bf16.mxu0 %v11591_v36  ;;  %7422 = vmatprep.subr.bf16.mxu1 %v11594_v37  ;;  %v11669_v36 = vld [vmem:[%s12598_s6 + $0xd7c] ss:$52 sps:$4 sm:$0xff]   ;;  %v11672_v37 = vld [vmem:[%s12598_s6 + $0xd84] ss:$52 sps:$4 sm:$0xff]  }
 0x1a9   : > { %7218 = vmatpush1.bf16.msra.mxu0 %v11589_v38  ;;  %7423 = vmatpush1.bf16.msra.mxu1 %v11592_v40  ;;  %v11667_v38 = vld [vmem:[%s12598_s6 + $0xd78] ss:$52 sps:$4 sm:$0xff]   ;;  %v11670_v40 = vld [vmem:[%s12598_s6 + $0xd80] ss:$52 sps:$4 sm:$0xff]  }
 0x1aa   : > { %7219 = vmatprep.subr.bf16.mxu0 %v11597_v41  ;;  %7424 = vmatprep.subr.bf16.mxu1 %v11600_v42  ;;  %v11675_v41 = vld [vmem:[%s12598_s6 + $0xde4] ss:$52 sps:$4 sm:$0xff]   ;;  %v11678_v42 = vld [vmem:[%s12598_s6 + $0xdec] ss:$52 sps:$4 sm:$0xff]  }
 0x1ad   : > { %7220 = vmatpush1.bf16.msra.mxu0 %v11595_v43  ;;  %7425 = vmatpush1.bf16.msra.mxu1 %v11598_v30  ;;  %v11673_v43 = vld [vmem:[%s12598_s6 + $0xde0] ss:$52 sps:$4 sm:$0xff]   ;;  %v11676_v30 = vld [vmem:[%s12598_s6 + $0xde8] ss:$52 sps:$4 sm:$0xff]  }
 0x1ae   : > { %7221 = vmatprep.subr.bf16.mxu0 %v11603_v46  ;;  %7426 = vmatprep.subr.bf16.mxu1 %v11606_v47  ;;  %v11681_v46 = vld [vmem:[%s12598_s6 + $0xe4c] ss:$52 sps:$4 sm:$0xff]   ;;  %v11684_v47 = vld [vmem:[%s12598_s6 + $0xe54] ss:$52 sps:$4 sm:$0xff]  }
 0x1b1   : > { %7222 = vmatpush1.bf16.msra.mxu0 %v11601_v49  ;;  %7427 = vmatpush1.bf16.msra.mxu1 %v11604_v51  ;;  %v11679_v49 = vld [vmem:[%s12598_s6 + $0xe48] ss:$52 sps:$4 sm:$0xff]   ;;  %v11682_v51 = vld [vmem:[%s12598_s6 + $0xe50] ss:$52 sps:$4 sm:$0xff]  }
 0x1b2   : > { %7223 = vmatprep.subr.bf16.mxu0 %v11609_v52  ;;  %7428 = vmatprep.subr.bf16.mxu1 %v11612_v53  ;;  %v11687_v52 = vld [vmem:[%s12598_s6 + $0xeb4] ss:$52 sps:$4 sm:$0xff]   ;;  %v11690_v53 = vld [vmem:[%s12598_s6 + $0xebc] ss:$52 sps:$4 sm:$0xff]  }
 0x1b5   : > { %7224 = vmatpush1.bf16.msra.mxu0 %v11607_v54  ;;  %7429 = vmatpush1.bf16.msra.mxu1 %v11610_v56  ;;  %v11685_v54 = vld [vmem:[%s12598_s6 + $0xeb0] ss:$52 sps:$4 sm:$0xff]   ;;  %v11688_v56 = vld [vmem:[%s12598_s6 + $0xeb8] ss:$52 sps:$4 sm:$0xff]  }
 0x1b6   : > { %7225 = vmatprep.subr.bf16.mxu0 %v11615_v57  ;;  %7430 = vmatprep.subr.bf16.mxu1 %v11618_v58  ;;  %v11693_v57 = vld [vmem:[%s12598_s6 + $0xf1c] ss:$52 sps:$4 sm:$0xff]   ;;  %v11696_v58 = vld [vmem:[%s12598_s6 + $0xf24] ss:$52 sps:$4 sm:$0xff]  }
 0x1b9   : > { %7226 = vmatpush1.bf16.msra.mxu0 %v11613_v60  ;;  %7431 = vmatpush1.bf16.msra.mxu1 %v11616_v33  ;;  %v11691_v60 = vld [vmem:[%s12598_s6 + $0xf18] ss:$52 sps:$4 sm:$0xff]   ;;  %v11694_v33 = vld [vmem:[%s12598_s6 + $0xf20] ss:$52 sps:$4 sm:$0xff]  }
 0x1ba   : > { %7227 = vmatprep.subr.bf16.mxu0 %v11621_v62  ;;  %7432 = vmatprep.subr.bf16.mxu1 %v11624_v63  ;;  %v11699_v62 = vld [vmem:[%s12598_s6 + $0xf84] ss:$52 sps:$4 sm:$0xff]   ;;  %v11702_v63 = vld [vmem:[%s12598_s6 + $0xf8c] ss:$52 sps:$4 sm:$0xff]  }
 0x1bd   : > { %7228 = vmatpush1.bf16.msra.mxu0 %v11619_v0  ;;  %7433 = vmatpush1.bf16.msra.mxu1 %v11622_v1  ;;  %v11697_v0 = vld [vmem:[%s12598_s6 + $0xf80] ss:$52 sps:$4 sm:$0xff]   ;;  %v11700_v1 = vld [vmem:[%s12598_s6 + $0xf88] ss:$52 sps:$4 sm:$0xff]  }
 0x1be   : > { %7229 = vmatprep.subr.bf16.mxu0 %v11627_v2  ;;  %7434 = vmatprep.subr.bf16.mxu1 %v11630_v3  ;;  %v11705_v2 = vld [vmem:[%s12598_s6 + $0xfec] ss:$52 sps:$4 sm:$0xff]   ;;  %v11708_v3 = vld [vmem:[%s12598_s6 + $0xff4] ss:$52 sps:$4 sm:$0xff]  }
 0x1c1   : > { %7230 = vmatpush1.bf16.msra.mxu0 %v11625_v5  ;;  %7435 = vmatpush1.bf16.msra.mxu1 %v11628_v6  ;;  %v11703_v5 = vld [vmem:[%s12598_s6 + $0xfe8] ss:$52 sps:$4 sm:$0xff]   ;;  %v11706_v6 = vld [vmem:[%s12598_s6 + $0xff0] ss:$52 sps:$4 sm:$0xff]  }
 0x1c2   : > { %7231 = vmatprep.subr.bf16.mxu0 %v11633_v7  ;;  %7436 = vmatprep.subr.bf16.mxu1 %v11636_v8  ;;  %v11711_v7 = vld [vmem:[%s12598_s6 + $0x1054] ss:$52 sps:$4 sm:$0xff]   ;;  %v11714_v8 = vld [vmem:[%s12598_s6 + $0x105c] ss:$52 sps:$4 sm:$0xff]  }
 0x1c5   : > { %7232 = vmatpush1.bf16.msra.mxu0 %v11631_v48  ;;  %7437 = vmatpush1.bf16.msra.mxu1 %v11634_v9  ;;  %v11709_v48 = vld [vmem:[%s12598_s6 + $0x1050] ss:$52 sps:$4 sm:$0xff]   ;;  %v11712_v9 = vld [vmem:[%s12598_s6 + $0x1058] ss:$52 sps:$4 sm:$0xff]  }
 0x1c6   : > { %7233 = vmatprep.subr.bf16.mxu0 %v11639_v11  ;;  %7438 = vmatprep.subr.bf16.mxu1 %v11642_v12  ;;  %v11717_v11 = vld [vmem:[%s12598_s6 + $0x10bc] ss:$52 sps:$4 sm:$0xff]   ;;  %v11720_v12 = vld [vmem:[%s12598_s6 + $0x10c4] ss:$52 sps:$4 sm:$0xff]  }
 0x1c9   : > { %7234 = vmatpush1.bf16.msra.mxu0 %v11637_v13  ;;  %7439 = vmatpush1.bf16.msra.mxu1 %v11640_v14  ;;  %v11715_v13 = vld [vmem:[%s12598_s6 + $0x10b8] ss:$52 sps:$4 sm:$0xff]   ;;  %v11718_v14 = vld [vmem:[%s12598_s6 + $0x10c0] ss:$52 sps:$4 sm:$0xff]  }
 0x1ca   : > { %7235 = vmatprep.subr.bf16.mxu0 %v11645_v15  ;;  %7440 = vmatprep.subr.bf16.mxu1 %v11648_v16  ;;  %v11723_v15 = vld [vmem:[%s12598_s6 + $0x1124] ss:$52 sps:$4 sm:$0xff]   ;;  %v11726_v16 = vld [vmem:[%s12598_s6 + $0x112c] ss:$52 sps:$4 sm:$0xff]  }
 0x1cd   : > { %7236 = vmatpush1.bf16.msra.mxu0 %v11643_v18  ;;  %7441 = vmatpush1.bf16.msra.mxu1 %v11646_v19  ;;  %v11721_v18 = vld [vmem:[%s12598_s6 + $0x1120] ss:$52 sps:$4 sm:$0xff]   ;;  %v11724_v19 = vld [vmem:[%s12598_s6 + $0x1128] ss:$52 sps:$4 sm:$0xff]  }
 0x1ce   : > { %7237 = vmatprep.subr.bf16.mxu0 %v11651_v20  ;;  %7442 = vmatprep.subr.bf16.mxu1 %v11654_v22  ;;  %v11729_v20 = vld [vmem:[%s12598_s6 + $0x118c] ss:$52 sps:$4 sm:$0xff]   ;;  %v11732_v22 = vld [vmem:[%s12598_s6 + $0x1194] ss:$52 sps:$4 sm:$0xff]  }
 0x1d1   : > { %7238 = vmatpush1.bf16.msra.mxu0 %v11649_v23  ;;  %7443 = vmatpush1.bf16.msra.mxu1 %v11652_v24  ;;  %v11727_v23 = vld [vmem:[%s12598_s6 + $0x1188] ss:$52 sps:$4 sm:$0xff]   ;;  %v11730_v24 = vld [vmem:[%s12598_s6 + $0x1190] ss:$52 sps:$4 sm:$0xff]  }
 0x1d2   : > { %7239 = vmatprep.subr.bf16.mxu0 %v11657_v26  ;;  %7444 = vmatprep.subr.bf16.mxu1 %v11660_v28  ;;  %v11735_v26 = vld [vmem:[%s12598_s6 + $0x11f4] ss:$52 sps:$4 sm:$0xff]   ;;  %v11738_v28 = vld [vmem:[%s12598_s6 + $0x11fc] ss:$52 sps:$4 sm:$0xff]  }
 0x1d5   : > { %7240 = vmatpush1.bf16.msra.mxu0 %v11655_v29  ;;  %7445 = vmatpush1.bf16.msra.mxu1 %v11658_v10  ;;  %v11733_v29 = vld [vmem:[%s12598_s6 + $0x11f0] ss:$52 sps:$4 sm:$0xff]   ;;  %v11736_v10 = vld [vmem:[%s12598_s6 + $0x11f8] ss:$52 sps:$4 sm:$0xff]  }
 0x1d6   : > { %7250 = vmatprep.subr.bf16.mxu0 %v11663_v31  ;;  %7455 = vmatprep.subr.bf16.mxu1 %v11666_v32  ;;  %v11741_v31 = vld [vmem:[%s12598_s6 + $0x125c] ss:$52 sps:$4 sm:$0xff]   ;;  %v11744_v32 = vld [vmem:[%s12598_s6 + $0x1264] ss:$52 sps:$4 sm:$0xff]  }
 0x1d8   : > { %7242 = vmatmul.mubr.bf16.vlgmr.msra.gmra.mrb[4].mxu0 %v12758_v25  ;;  %7447 = vmatmul.mubr.bf16.vlgmr.msra.gmra.mrb[4].mxu1 %v12758_v25 }
 0x1d9   : > { %7251 = vmatpush1.bf16.msra.mxu0 %v11661_v27  ;;  %7456 = vmatpush1.bf16.msra.mxu1 %v11664_v34  ;;  %v11739_v27 = vld [vmem:[%s12598_s6 + $0x1258] ss:$52 sps:$4 sm:$0xff]   ;;  %v11742_v34 = vld [vmem:[%s12598_s6 + $0x1260] ss:$52 sps:$4 sm:$0xff]  }
 0x1da   : > { %7252 = vmatprep.subr.bf16.mxu0 %v11669_v36  ;;  %7457 = vmatprep.subr.bf16.mxu1 %v11672_v37  ;;  %v11747_v36 = vld [vmem:[%s12598_s6 + $0x12c4] ss:$52 sps:$4 sm:$0xff]   ;;  %v11750_v37 = vld [vmem:[%s12598_s6 + $0x12cc] ss:$52 sps:$4 sm:$0xff]  }
 0x1db   : > { %7282 = vmatprep.mubr.bf16.mxu0 %v12778_v35  ;;  %7487 = vmatprep.mubr.bf16.mxu1 %v12778_v35 }
 0x1dd   : > { %7253 = vmatpush1.bf16.msra.mxu0 %v11667_v38  ;;  %7458 = vmatpush1.bf16.msra.mxu1 %v11670_v40  ;;  %v11745_v38 = vld [vmem:[%s12598_s6 + $0x12c0] ss:$52 sps:$4 sm:$0xff]   ;;  %v11748_v40 = vld [vmem:[%s12598_s6 + $0x12c8] ss:$52 sps:$4 sm:$0xff]  }
 0x1de   : > { %7254 = vmatprep.subr.bf16.mxu0 %v11675_v41  ;;  %7459 = vmatprep.subr.bf16.mxu1 %v11678_v42  ;;  %v11753_v41 = vld [vmem:[%s12598_s6 + $0x132c] ss:$52 sps:$4 sm:$0xff]   ;;  %v11756_v42 = vld [vmem:[%s12598_s6 + $0x1334] ss:$52 sps:$4 sm:$0xff]  }
 0x1e1   : > { %7255 = vmatpush1.bf16.msra.mxu0 %v11673_v43  ;;  %7460 = vmatpush1.bf16.msra.mxu1 %v11676_v30  ;;  %v11751_v43 = vld [vmem:[%s12598_s6 + $0x1328] ss:$52 sps:$4 sm:$0xff]   ;;  %v11754_v30 = vld [vmem:[%s12598_s6 + $0x1330] ss:$52 sps:$4 sm:$0xff]  }
 0x1e2   : > { %7256 = vmatprep.subr.bf16.mxu0 %v11681_v46  ;;  %7461 = vmatprep.subr.bf16.mxu1 %v11684_v47  ;;  %v11759_v46 = vld [vmem:[%s12598_s6 + $0x1394] ss:$52 sps:$4 sm:$0xff]   ;;  %v11762_v47 = vld [vmem:[%s12598_s6 + $0x139c] ss:$52 sps:$4 sm:$0xff]  }
 0x1e5   : > { %7257 = vmatpush1.bf16.msra.mxu0 %v11679_v49  ;;  %7462 = vmatpush1.bf16.msra.mxu1 %v11682_v51  ;;  %v11757_v49 = vld [vmem:[%s12598_s6 + $0x1390] ss:$52 sps:$4 sm:$0xff]   ;;  %v11760_v51 = vld [vmem:[%s12598_s6 + $0x1398] ss:$52 sps:$4 sm:$0xff]  }
 0x1e6   : > { %7258 = vmatprep.subr.bf16.mxu0 %v11687_v52  ;;  %7463 = vmatprep.subr.bf16.mxu1 %v11690_v53  ;;  %v11765_v52 = vld [vmem:[%s12598_s6 + $0x13fc] ss:$52 sps:$4 sm:$0xff]   ;;  %v11768_v53 = vld [vmem:[%s12598_s6 + $0x1404] ss:$52 sps:$4 sm:$0xff]  }
 0x1e9   : > { %7259 = vmatpush1.bf16.msra.mxu0 %v11685_v54  ;;  %7464 = vmatpush1.bf16.msra.mxu1 %v11688_v56  ;;  %v11763_v54 = vld [vmem:[%s12598_s6 + $0x13f8] ss:$52 sps:$4 sm:$0xff]   ;;  %v11766_v56 = vld [vmem:[%s12598_s6 + $0x1400] ss:$52 sps:$4 sm:$0xff]  }
 0x1ea   : > { %7260 = vmatprep.subr.bf16.mxu0 %v11693_v57  ;;  %7465 = vmatprep.subr.bf16.mxu1 %v11696_v58  ;;  %v11771_v57 = vld [vmem:[%s12598_s6 + $0x1464] ss:$52 sps:$4 sm:$0xff]   ;;  %v11774_v58 = vld [vmem:[%s12598_s6 + $0x146c] ss:$52 sps:$4 sm:$0xff]  }
 0x1ed   : > { %7261 = vmatpush1.bf16.msra.mxu0 %v11691_v60  ;;  %7466 = vmatpush1.bf16.msra.mxu1 %v11694_v33  ;;  %v11769_v60 = vld [vmem:[%s12598_s6 + $0x1460] ss:$52 sps:$4 sm:$0xff]   ;;  %v11772_v33 = vld [vmem:[%s12598_s6 + $0x1468] ss:$52 sps:$4 sm:$0xff]  }
 0x1ee   : > { %7262 = vmatprep.subr.bf16.mxu0 %v11699_v62  ;;  %7467 = vmatprep.subr.bf16.mxu1 %v11702_v63  ;;  %v11777_v62 = vld [vmem:[%s12598_s6 + $0x14cc] ss:$52 sps:$4 sm:$0xff]   ;;  %v11780_v63 = vld [vmem:[%s12598_s6 + $0x14d4] ss:$52 sps:$4 sm:$0xff]  }
 0x1f1   : > { %7263 = vmatpush1.bf16.msra.mxu0 %v11697_v0  ;;  %7468 = vmatpush1.bf16.msra.mxu1 %v11700_v1  ;;  %v11775_v0 = vld [vmem:[%s12598_s6 + $0x14c8] ss:$52 sps:$4 sm:$0xff]   ;;  %v11778_v1 = vld [vmem:[%s12598_s6 + $0x14d0] ss:$52 sps:$4 sm:$0xff]  }
 0x1f2   : > { %7264 = vmatprep.subr.bf16.mxu0 %v11705_v2  ;;  %7469 = vmatprep.subr.bf16.mxu1 %v11708_v3  ;;  %v11783_v2 = vld [vmem:[%s12598_s6 + $0x1534] ss:$52 sps:$4 sm:$0xff]   ;;  %v11786_v3 = vld [vmem:[%s12598_s6 + $0x153c] ss:$52 sps:$4 sm:$0xff]  }
 0x1f5   : > { %7265 = vmatpush1.bf16.msra.mxu0 %v11703_v5  ;;  %7470 = vmatpush1.bf16.msra.mxu1 %v11706_v6  ;;  %v11781_v5 = vld [vmem:[%s12598_s6 + $0x1530] ss:$52 sps:$4 sm:$0xff]   ;;  %v11784_v6 = vld [vmem:[%s12598_s6 + $0x1538] ss:$52 sps:$4 sm:$0xff]  }
 0x1f6   : > { %7266 = vmatprep.subr.bf16.mxu0 %v11711_v7  ;;  %7471 = vmatprep.subr.bf16.mxu1 %v11714_v8  ;;  %v11789_v7 = vld [vmem:[%s12598_s6 + $0x159c] ss:$52 sps:$4 sm:$0xff]   ;;  %v11792_v8 = vld [vmem:[%s12598_s6 + $0x15a4] ss:$52 sps:$4 sm:$0xff]  }
 0x1f9   : > { %7267 = vmatpush1.bf16.msra.mxu0 %v11709_v48  ;;  %7472 = vmatpush1.bf16.msra.mxu1 %v11712_v9  ;;  %v11787_v48 = vld [vmem:[%s12598_s6 + $0x1598] ss:$52 sps:$4 sm:$0xff]   ;;  %v11790_v9 = vld [vmem:[%s12598_s6 + $0x15a0] ss:$52 sps:$4 sm:$0xff]  }
 0x1fa   : > { %7268 = vmatprep.subr.bf16.mxu0 %v11717_v11  ;;  %7473 = vmatprep.subr.bf16.mxu1 %v11720_v12  ;;  %v11795_v11 = vld [vmem:[%s12598_s6 + $0x1604] ss:$52 sps:$4 sm:$0xff]   ;;  %v11798_v12 = vld [vmem:[%s12598_s6 + $0x160c] ss:$52 sps:$4 sm:$0xff]  }
 0x1fd   : > { %7269 = vmatpush1.bf16.msra.mxu0 %v11715_v13  ;;  %7474 = vmatpush1.bf16.msra.mxu1 %v11718_v14 }
 0x1fe   : > { %7270 = vmatprep.subr.bf16.mxu0 %v11723_v15  ;;  %7475 = vmatprep.subr.bf16.mxu1 %v11726_v16 }
 0x201   : > { %7271 = vmatpush1.bf16.msra.mxu0 %v11721_v18  ;;  %7476 = vmatpush1.bf16.msra.mxu1 %v11724_v19 }
 0x202   : > { %7272 = vmatprep.subr.bf16.mxu0 %v11729_v20  ;;  %7477 = vmatprep.subr.bf16.mxu1 %v11732_v22 }
 0x205   : > { %7273 = vmatpush1.bf16.msra.mxu0 %v11727_v23  ;;  %7478 = vmatpush1.bf16.msra.mxu1 %v11730_v24  ;;  %v11793_v23 = vld [vmem:[%s12598_s6 + $0x1600] ss:$52 sps:$4 sm:$0xff]   ;;  %v11796_v24 = vld [vmem:[%s12598_s6 + $0x1608] ss:$52 sps:$4 sm:$0xff]  }
 0x206   : > { %7274 = vmatprep.subr.bf16.mxu0 %v11735_v26  ;;  %7479 = vmatprep.subr.bf16.mxu1 %v11738_v28  ;;  %v286_v26 = vld [vmem:[#allocation2] sm:$0xff] }
 0x209   : > { %7275 = vmatpush1.bf16.msra.mxu0 %v11733_v29  ;;  %7480 = vmatpush1.bf16.msra.mxu1 %v11736_v10  ;;  %v11801_v10 = vld [vmem:[%s12598_s6 + $0x166c] ss:$52 sps:$4 sm:$0xff]  }
 0x20a   : > { %7276 = vmatprep.subr.bf16.mxu0 %v11741_v31  ;;  %7481 = vmatprep.subr.bf16.mxu1 %v11744_v32  ;;  %v11804_v31 = vld [vmem:[%s12598_s6 + $0x1674] ss:$52 sps:$4 sm:$0xff]  }
 0x20d   : > { %7277 = vmatpush1.bf16.msra.mxu0 %v11739_v27  ;;  %7482 = vmatpush1.bf16.msra.mxu1 %v11742_v34 }
 0x20e   : > { %7278 = vmatprep.subr.bf16.mxu0 %v11747_v36  ;;  %7483 = vmatprep.subr.bf16.mxu1 %v11750_v37  ;;  %v11799_v36 = vld [vmem:[%s12598_s6 + $0x1668] ss:$52 sps:$4 sm:$0xff]   ;;  %v11802_v37 = vld [vmem:[%s12598_s6 + $0x1670] ss:$52 sps:$4 sm:$0xff]  }
 0x211   : > { %7279 = vmatpush1.bf16.msra.mxu0 %v11745_v38  ;;  %7484 = vmatpush1.bf16.msra.mxu1 %v11748_v40  ;;  %v11807_v38 = vld [vmem:[%s12598_s6 + $0x16d4] ss:$52 sps:$4 sm:$0xff]   ;;  %v11810_v40 = vld [vmem:[%s12598_s6 + $0x16dc] ss:$52 sps:$4 sm:$0xff]  }
 0x212   : > { %7280 = vmatprep.subr.bf16.mxu0 %v11753_v41  ;;  %7485 = vmatprep.subr.bf16.mxu1 %v11756_v42  ;;  %v11805_v42 = vld [vmem:[%s12598_s6 + $0x16d0] ss:$52 sps:$4 sm:$0xff]  }
 0x215   : > { %7281 = vmatpush1.bf16.msra.mxu0 %v11751_v43  ;;  %7486 = vmatpush1.bf16.msra.mxu1 %v11754_v30  ;;  %v11808_v43 = vld [vmem:[%s12598_s6 + $0x16d8] ss:$52 sps:$4 sm:$0xff]   ;;  %v11813_v30 = vld [vmem:[%s12598_s6 + $0x173c] ss:$52 sps:$4 sm:$0xff]  }
 0x216   : > { %7291 = vmatprep.subr.bf16.mxu0 %v11759_v46  ;;  %7496 = vmatprep.subr.bf16.mxu1 %v11762_v47  ;;  %v11816_v46 = vld [vmem:[%s12598_s6 + $0x1744] ss:$52 sps:$4 sm:$0xff]  }
 0x217   : > { %v11811_v47 = vld [vmem:[%s12598_s6 + $0x1738] ss:$52 sps:$4 sm:$0xff]  }
 0x218   : > { %7283 = vmatmul.mubr.bf16.vlgmr.msra.gmra.mrb[4].mxu0 %v12847_v39  ;;  %7488 = vmatmul.mubr.bf16.vlgmr.msra.gmra.mrb[4].mxu1 %v12847_v39 }
 0x219   : > { %7292 = vmatpush1.bf16.msra.mxu0 %v11757_v49  ;;  %7497 = vmatpush1.bf16.msra.mxu1 %v11760_v51  ;;  %v11814_v49 = vld [vmem:[%s12598_s6 + $0x1740] ss:$52 sps:$4 sm:$0xff]   ;;  %v11819_v51 = vld [vmem:[%s12598_s6 + $0x17a4] ss:$52 sps:$4 sm:$0xff]  }
 0x21a   : > { %7293 = vmatprep.subr.bf16.mxu0 %v11765_v52  ;;  %7498 = vmatprep.subr.bf16.mxu1 %v11768_v53  ;;  %v11822_v52 = vld [vmem:[%s12598_s6 + $0x17ac] ss:$52 sps:$4 sm:$0xff]  }
 0x21b   : > { %7323 = vmatprep.mubr.bf16.mxu0 %v12853_v45  ;;  %7528 = vmatprep.mubr.bf16.mxu1 %v12853_v45  ;;  %v11817_v53 = vld [vmem:[%s12598_s6 + $0x17a0] ss:$52 sps:$4 sm:$0xff]  }
 0x21d   : > { %7294 = vmatpush1.bf16.msra.mxu0 %v11763_v54  ;;  %7499 = vmatpush1.bf16.msra.mxu1 %v11766_v56  ;;  %v11820_v54 = vld [vmem:[%s12598_s6 + $0x17a8] ss:$52 sps:$4 sm:$0xff]   ;;  %v11825_v56 = vld [vmem:[%s12598_s6 + $0x180c] ss:$52 sps:$4 sm:$0xff]  }
 0x21e   : > { %7295 = vmatprep.subr.bf16.mxu0 %v11771_v57  ;;  %7500 = vmatprep.subr.bf16.mxu1 %v11774_v58  ;;  %v11828_v57 = vld [vmem:[%s12598_s6 + $0x1814] ss:$52 sps:$4 sm:$0xff]  }
 0x21f   : > { %v11823_v58 = vld [vmem:[%s12598_s6 + $0x1808] ss:$52 sps:$4 sm:$0xff]  }
 0x221   : > { %7296 = vmatpush1.bf16.msra.mxu0 %v11769_v60  ;;  %7501 = vmatpush1.bf16.msra.mxu1 %v11772_v33  ;;  %v11826_v60 = vld [vmem:[%s12598_s6 + $0x1810] ss:$52 sps:$4 sm:$0xff]   ;;  %v11831_v33 = vld [vmem:[%s12598_s6 + $0x1874] ss:$52 sps:$4 sm:$0xff]  }
 0x222   : > { %7297 = vmatprep.subr.bf16.mxu0 %v11777_v62  ;;  %7502 = vmatprep.subr.bf16.mxu1 %v11780_v63  ;;  %v11834_v62 = vld [vmem:[%s12598_s6 + $0x187c] ss:$52 sps:$4 sm:$0xff]  }
 0x223   : > { %v11829_v63 = vld [vmem:[%s12598_s6 + $0x1870] ss:$52 sps:$4 sm:$0xff]  }
 0x225   : > { %7298 = vmatpush1.bf16.msra.mxu0 %v11775_v0  ;;  %7503 = vmatpush1.bf16.msra.mxu1 %v11778_v1  ;;  %v11832_v0 = vld [vmem:[%s12598_s6 + $0x1878] ss:$52 sps:$4 sm:$0xff]   ;;  %v11837_v1 = vld [vmem:[%s12598_s6 + $0x18dc] ss:$52 sps:$4 sm:$0xff]  }
 0x226   : > { %7299 = vmatprep.subr.bf16.mxu0 %v11783_v2  ;;  %7504 = vmatprep.subr.bf16.mxu1 %v11786_v3  ;;  %v11840_v2 = vld [vmem:[%s12598_s6 + $0x18e4] ss:$52 sps:$4 sm:$0xff]  }
 0x227   : > { %v11835_v3 = vld [vmem:[%s12598_s6 + $0x18d8] ss:$52 sps:$4 sm:$0xff]  }
 0x229   : > { %7300 = vmatpush1.bf16.msra.mxu0 %v11781_v5  ;;  %7505 = vmatpush1.bf16.msra.mxu1 %v11784_v6  ;;  %v11838_v5 = vld [vmem:[%s12598_s6 + $0x18e0] ss:$52 sps:$4 sm:$0xff]   ;;  %v11843_v6 = vld [vmem:[%s12598_s6 + $0x1944] ss:$52 sps:$4 sm:$0xff]  }
 0x22a   : > { %7301 = vmatprep.subr.bf16.mxu0 %v11789_v7  ;;  %7506 = vmatprep.subr.bf16.mxu1 %v11792_v8  ;;  %v11846_v7 = vld [vmem:[%s12598_s6 + $0x194c] ss:$52 sps:$4 sm:$0xff]  }
 0x22b   : > { %v6956_v13 = vpop.f32.mrb[0].mxu0  ;;  %v7161_v14 = vpop.f32.mrb[0].mxu1  ;;  %v11841_v8 = vld [vmem:[%s12598_s6 + $0x1940] ss:$52 sps:$4 sm:$0xff]  }
 0x22c   : > { %v6958_v15 = vpop.f32.mrb[1].mxu0  ;;  %v7163_v16 = vpop.f32.mrb[1].mxu1 }
 0x22d   : > { %v8201_v18 = vcombine.low %v6956_v13, %v6958_v15  ;;  %v8202_v19 = vcombine.low %v7161_v14, %v7163_v16  ;;  %v6960_v20 = vpop.f32.mrb[2].mxu0  ;;  %v7165_v22 = vpop.f32.mrb[2].mxu1  ;;  %7302 = vmatpush1.bf16.msra.mxu0 %v11787_v48  ;;  %7507 = vmatpush1.bf16.msra.mxu1 %v11790_v9  ;;  %v11844_v48 = vld [vmem:[%s12598_s6 + $0x1948] ss:$52 sps:$4 sm:$0xff]   ;;  %v11849_v9 = vld [vmem:[%s12598_s6 + $0x19ac] ss:$52 sps:$4 sm:$0xff]  }
 0x22e   : > { %v6961_v28 = vpop.f32.mrb[3].mxu0  ;;  %v7166_v29 = vpop.f32.mrb[3].mxu1  ;;  %7303 = vmatprep.subr.bf16.mxu0 %v11795_v11  ;;  %7508 = vmatprep.subr.bf16.mxu1 %v11798_v12  ;;  %v11852_v11 = vld [vmem:[%s12598_s6 + $0x19b4] ss:$52 sps:$4 sm:$0xff]   ;;  %v11850_v13 = vld [vmem:[%s12598_s6 + $0x19b0] ss:$52 sps:$4 sm:$0xff]  }
 0x22f   : > { %v8209_v32 = vrot.slane %v8201_v18, %v12648_v50  ;;  %v8216_v27 = vrot.slane %v8202_v19, %v12648_v50  ;;  %v11847_v12 = vld [vmem:[%s12598_s6 + $0x19a8] ss:$52 sps:$4 sm:$0xff]   ;;  %v11853_v16 = vld [vmem:[%s12598_s6 + $0x1a10] ss:$52 sps:$4 sm:$0xff]   ;;  %v11856_v18 = vld [vmem:[%s12598_s6 + $0x1a18] ss:$52 sps:$4 sm:$0xff]  }
 0x230   : > { %v11855_v14 = vld [vmem:[%s12598_s6 + $0x1a14] ss:$52 sps:$4 sm:$0xff]   ;;  %v11858_v15 = vld [vmem:[%s12598_s6 + $0x1a1c] ss:$52 sps:$4 sm:$0xff]   ;;  %v11864_v20 = vld [vmem:[%s12598_s6 + $0x1a84] ss:$52 sps:$4 sm:$0xff]  }
 0x231   : > { %v8217_v34 = vcombine.low %v8209_v32, %v8216_v27  ;;  %7304 = vmatpush1.bf16.msra.mxu0 %v11793_v23  ;;  %7509 = vmatpush1.bf16.msra.mxu1 %v11796_v24  ;;  %v11861_v19 = vld [vmem:[%s12598_s6 + $0x1a7c] ss:$52 sps:$4 sm:$0xff]   ;;  %v11859_v22 = vld [vmem:[%s12598_s6 + $0x1a78] ss:$52 sps:$4 sm:$0xff]   ;;  %v11862_v23 = vld [vmem:[%s12598_s6 + $0x1a80] ss:$52 sps:$4 sm:$0xff]  }
 0x232   : > { %7305 = vmatprep.subr.bf16.mxu0 %v11801_v10  ;;  %7510 = vmatprep.subr.bf16.mxu1 %v11804_v31  ;;  %v11867_v24 = vld [vmem:[%s12598_s6 + $0x1ae4] ss:$52 sps:$4 sm:$0xff]   ;;  %v11865_v28 = vld [vmem:[%s12598_s6 + $0x1ae0] ss:$52 sps:$4 sm:$0xff]   ;;  %v11868_v29 = vld [vmem:[%s12598_s6 + $0x1ae8] ss:$52 sps:$4 sm:$0xff]  }
 0x233   : > { %v8263_v41 = vadd.f32 %v8217_v34, %v286_v26  ;;  %v11870_v26 = vld [vmem:[%s12598_s6 + $0x1aec] ss:$52 sps:$4 sm:$0xff]   ;;  %v11876_v31 = vld [vmem:[%s12598_s6 + $0x1b54] ss:$52 sps:$4 sm:$0xff]   ;;  %v11874_v27 = vld [vmem:[%s12598_s6 + $0x1b50] ss:$52 sps:$4 sm:$0xff]  }
 0x234   : > { %v11873_v10 = vld [vmem:[%s12598_s6 + $0x1b4c] ss:$52 sps:$4 sm:$0xff]   ;;  %v11871_v32 = vld [vmem:[%s12598_s6 + $0x1b48] ss:$52 sps:$4 sm:$0xff]  }
 0x235   : > { %8267 = vst [vmem:[#allocation2] sm:$0xff] %v8263_v41  ;;  %7306 = vmatpush1.bf16.msra.mxu0 %v11799_v36  ;;  %7511 = vmatpush1.bf16.msra.mxu1 %v11802_v37  ;;  %v11879_v34 = vld [vmem:[%s12598_s6 + $0x1bb4] ss:$52 sps:$4 sm:$0xff]   ;;  %v11882_v36 = vld [vmem:[%s12598_s6 + $0x1bbc] ss:$52 sps:$4 sm:$0xff]  }
 0x236   : > { %7307 = vmatprep.subr.bf16.mxu0 %v11807_v38  ;;  %7512 = vmatprep.subr.bf16.mxu1 %v11810_v40  ;;  %v11877_v37 = vld [vmem:[%s12598_s6 + $0x1bb0] ss:$52 sps:$4 sm:$0xff]   ;;  %v11880_v38 = vld [vmem:[%s12598_s6 + $0x1bb8] ss:$52 sps:$4 sm:$0xff]  }
 0x237   : > { %v11885_v40 = vld [vmem:[%s12598_s6 + $0x1c1c] ss:$52 sps:$4 sm:$0xff]   ;;  %v11888_v41 = vld [vmem:[%s12598_s6 + $0x1c24] ss:$52 sps:$4 sm:$0xff]  }
 0x239   : > { %7308 = vmatpush1.bf16.msra.mxu0 %v11805_v42  ;;  %7513 = vmatpush1.bf16.msra.mxu1 %v11808_v43  ;;  %v11883_v42 = vld [vmem:[%s12598_s6 + $0x1c18] ss:$52 sps:$4 sm:$0xff]   ;;  %v11886_v43 = vld [vmem:[%s12598_s6 + $0x1c20] ss:$52 sps:$4 sm:$0xff]  }
 0x23a   : > { %7309 = vmatprep.subr.bf16.mxu0 %v11813_v30  ;;  %7514 = vmatprep.subr.bf16.mxu1 %v11816_v46  ;;  %v11891_v30 = vld [vmem:[%s12598_s6 + $0x1c84] ss:$52 sps:$4 sm:$0xff]   ;;  %v11894_v46 = vld [vmem:[%s12598_s6 + $0x1c8c] ss:$52 sps:$4 sm:$0xff]  }
 0x23d   : > { %7310 = vmatpush1.bf16.msra.mxu0 %v11811_v47  ;;  %7515 = vmatpush1.bf16.msra.mxu1 %v11814_v49  ;;  %v11889_v47 = vld [vmem:[%s12598_s6 + $0x1c80] ss:$52 sps:$4 sm:$0xff]   ;;  %v11892_v49 = vld [vmem:[%s12598_s6 + $0x1c88] ss:$52 sps:$4 sm:$0xff]  }
 0x23e   : > { %7311 = vmatprep.subr.bf16.mxu0 %v11819_v51  ;;  %7516 = vmatprep.subr.bf16.mxu1 %v11822_v52  ;;  %v11897_v51 = vld [vmem:[%s12598_s6 + $0x1cec] ss:$52 sps:$4 sm:$0xff]   ;;  %v11900_v52 = vld [vmem:[%s12598_s6 + $0x1cf4] ss:$52 sps:$4 sm:$0xff]  }
 0x241   : > { %7312 = vmatpush1.bf16.msra.mxu0 %v11817_v53  ;;  %7517 = vmatpush1.bf16.msra.mxu1 %v11820_v54  ;;  %v11895_v53 = vld [vmem:[%s12598_s6 + $0x1ce8] ss:$52 sps:$4 sm:$0xff]   ;;  %v11898_v54 = vld [vmem:[%s12598_s6 + $0x1cf0] ss:$52 sps:$4 sm:$0xff]  }
 0x242   : > { %7313 = vmatprep.subr.bf16.mxu0 %v11825_v56  ;;  %7518 = vmatprep.subr.bf16.mxu1 %v11828_v57  ;;  %v11903_v56 = vld [vmem:[%s12598_s6 + $0x1d54] ss:$52 sps:$4 sm:$0xff]   ;;  %v11906_v57 = vld [vmem:[%s12598_s6 + $0x1d5c] ss:$52 sps:$4 sm:$0xff]  }
 0x245   : > { %7314 = vmatpush1.bf16.msra.mxu0 %v11823_v58  ;;  %7519 = vmatpush1.bf16.msra.mxu1 %v11826_v60  ;;  %v11901_v58 = vld [vmem:[%s12598_s6 + $0x1d50] ss:$52 sps:$4 sm:$0xff]   ;;  %v11904_v60 = vld [vmem:[%s12598_s6 + $0x1d58] ss:$52 sps:$4 sm:$0xff]  }
 0x246   : > { %7315 = vmatprep.subr.bf16.mxu0 %v11831_v33  ;;  %7520 = vmatprep.subr.bf16.mxu1 %v11834_v62  ;;  %v11909_v33 = vld [vmem:[%s12598_s6 + $0x1dbc] ss:$52 sps:$4 sm:$0xff]   ;;  %v11912_v62 = vld [vmem:[%s12598_s6 + $0x1dc4] ss:$52 sps:$4 sm:$0xff]  }
 0x249   : > { %7316 = vmatpush1.bf16.msra.mxu0 %v11829_v63  ;;  %7521 = vmatpush1.bf16.msra.mxu1 %v11832_v0  ;;  %v11907_v63 = vld [vmem:[%s12598_s6 + $0x1db8] ss:$52 sps:$4 sm:$0xff]   ;;  %v11910_v0 = vld [vmem:[%s12598_s6 + $0x1dc0] ss:$52 sps:$4 sm:$0xff]  }
 0x24a   : > { %7317 = vmatprep.subr.bf16.mxu0 %v11837_v1  ;;  %7522 = vmatprep.subr.bf16.mxu1 %v11840_v2  ;;  %v11915_v1 = vld [vmem:[%s12598_s6 + $0x1e24] ss:$52 sps:$4 sm:$0xff]   ;;  %v11918_v2 = vld [vmem:[%s12598_s6 + $0x1e2c] ss:$52 sps:$4 sm:$0xff]  }
 0x24d   : > { %7318 = vmatpush1.bf16.msra.mxu0 %v11835_v3  ;;  %7523 = vmatpush1.bf16.msra.mxu1 %v11838_v5  ;;  %v11913_v3 = vld [vmem:[%s12598_s6 + $0x1e20] ss:$52 sps:$4 sm:$0xff]   ;;  %v11916_v5 = vld [vmem:[%s12598_s6 + $0x1e28] ss:$52 sps:$4 sm:$0xff]  }
 0x24e   : > { %7319 = vmatprep.subr.bf16.mxu0 %v11843_v6  ;;  %7524 = vmatprep.subr.bf16.mxu1 %v11846_v7  ;;  %v11921_v6 = vld [vmem:[%s12598_s6 + $0x1e8c] ss:$52 sps:$4 sm:$0xff]   ;;  %v11924_v7 = vld [vmem:[%s12598_s6 + $0x1e94] ss:$52 sps:$4 sm:$0xff]  }
 0x251   : > { %7320 = vmatpush1.bf16.msra.mxu0 %v11841_v8  ;;  %7525 = vmatpush1.bf16.msra.mxu1 %v11844_v48  ;;  %v11919_v8 = vld [vmem:[%s12598_s6 + $0x1e88] ss:$52 sps:$4 sm:$0xff]   ;;  %v11922_v48 = vld [vmem:[%s12598_s6 + $0x1e90] ss:$52 sps:$4 sm:$0xff]  }
 0x252   : > { %7321 = vmatprep.subr.bf16.mxu0 %v11849_v9  ;;  %7526 = vmatprep.subr.bf16.mxu1 %v11852_v11  ;;  %v11927_v9 = vld [vmem:[%s12598_s6 + $0x1ef4] ss:$52 sps:$4 sm:$0xff]   ;;  %v11930_v11 = vld [vmem:[%s12598_s6 + $0x1efc] ss:$52 sps:$4 sm:$0xff]  }
 0x255   : > { %7322 = vmatpush1.bf16.msra.mxu0 %v11847_v12  ;;  %7527 = vmatpush1.bf16.msra.mxu1 %v11850_v13  ;;  %v11925_v12 = vld [vmem:[%s12598_s6 + $0x1ef0] ss:$52 sps:$4 sm:$0xff]   ;;  %v11928_v13 = vld [vmem:[%s12598_s6 + $0x1ef8] ss:$52 sps:$4 sm:$0xff]  }
 0x256   : > { %7332 = vmatprep.subr.bf16.mxu0 %v11855_v14  ;;  %7537 = vmatprep.subr.bf16.mxu1 %v11858_v15  ;;  %v11933_v14 = vld [vmem:[%s12598_s6 + $0x1f5c] ss:$52 sps:$4 sm:$0xff]   ;;  %v11936_v15 = vld [vmem:[%s12598_s6 + $0x1f64] ss:$52 sps:$4 sm:$0xff]  }
 0x258   : > { %7324 = vmatmul.mubr.bf16.vlgmr.msra.gmra.mrb[4].mxu0 %v12927_v55  ;;  %7529 = vmatmul.mubr.bf16.vlgmr.msra.gmra.mrb[4].mxu1 %v12927_v55 }
 0x259   : > { %7333 = vmatpush1.bf16.msra.mxu0 %v11853_v16  ;;  %7538 = vmatpush1.bf16.msra.mxu1 %v11856_v18  ;;  %v11931_v16 = vld [vmem:[%s12598_s6 + $0x1f58] ss:$52 sps:$4 sm:$0xff]   ;;  %v11934_v18 = vld [vmem:[%s12598_s6 + $0x1f60] ss:$52 sps:$4 sm:$0xff]  }
 0x25a   : > { %7334 = vmatprep.subr.bf16.mxu0 %v11861_v19  ;;  %7539 = vmatprep.subr.bf16.mxu1 %v11864_v20  ;;  %v11939_v19 = vld [vmem:[%s12598_s6 + $0x1fc4] ss:$52 sps:$4 sm:$0xff]   ;;  %v11942_v20 = vld [vmem:[%s12598_s6 + $0x1fcc] ss:$52 sps:$4 sm:$0xff]  }
 0x25b   : > { %7364 = vmatprep.mubr.bf16.mxu0 %v12932_v59  ;;  %7569 = vmatprep.mubr.bf16.mxu1 %v12932_v59 }
 0x25d   : > { %7335 = vmatpush1.bf16.msra.mxu0 %v11859_v22  ;;  %7540 = vmatpush1.bf16.msra.mxu1 %v11862_v23  ;;  %v11937_v22 = vld [vmem:[%s12598_s6 + $0x1fc0] ss:$52 sps:$4 sm:$0xff]   ;;  %v11940_v23 = vld [vmem:[%s12598_s6 + $0x1fc8] ss:$52 sps:$4 sm:$0xff]  }
 0x25e   : > { %7336 = vmatprep.subr.bf16.mxu0 %v11867_v24  ;;  %7541 = vmatprep.subr.bf16.mxu1 %v11870_v26  ;;  %v11945_v24 = vld [vmem:[%s12598_s6 + $0x202c] ss:$52 sps:$4 sm:$0xff]   ;;  %v11948_v26 = vld [vmem:[%s12598_s6 + $0x2034] ss:$52 sps:$4 sm:$0xff]  }
 0x261   : > { %7337 = vmatpush1.bf16.msra.mxu0 %v11865_v28  ;;  %7542 = vmatpush1.bf16.msra.mxu1 %v11868_v29  ;;  %v11943_v28 = vld [vmem:[%s12598_s6 + $0x2028] ss:$52 sps:$4 sm:$0xff]   ;;  %v11946_v29 = vld [vmem:[%s12598_s6 + $0x2030] ss:$52 sps:$4 sm:$0xff]  }
 0x262   : > { %7338 = vmatprep.subr.bf16.mxu0 %v11873_v10  ;;  %7543 = vmatprep.subr.bf16.mxu1 %v11876_v31  ;;  %v11951_v10 = vld [vmem:[%s12598_s6 + $0x24] ss:$52 sps:$4 sm:$0xff]   ;;  %v11954_v31 = vld [vmem:[%s12598_s6 + $0x2c] ss:$52 sps:$4 sm:$0xff]  }
 0x265   : > { %7339 = vmatpush1.bf16.msra.mxu0 %v11871_v32  ;;  %7544 = vmatpush1.bf16.msra.mxu1 %v11874_v27  ;;  %v11949_v32 = vld [vmem:[%s12598_s6 + $0x20] ss:$52 sps:$4 sm:$0xff]   ;;  %v11952_v27 = vld [vmem:[%s12598_s6 + $0x28] ss:$52 sps:$4 sm:$0xff]  }
 0x266   : > { %7340 = vmatprep.subr.bf16.mxu0 %v11879_v34  ;;  %7545 = vmatprep.subr.bf16.mxu1 %v11882_v36  ;;  %v11957_v34 = vld [vmem:[%s12598_s6 + $0x8c] ss:$52 sps:$4 sm:$0xff]   ;;  %v11960_v36 = vld [vmem:[%s12598_s6 + $0x94] ss:$52 sps:$4 sm:$0xff]  }
 0x269   : > { %7341 = vmatpush1.bf16.msra.mxu0 %v11877_v37  ;;  %7546 = vmatpush1.bf16.msra.mxu1 %v11880_v38  ;;  %v11955_v37 = vld [vmem:[%s12598_s6 + $0x88] ss:$52 sps:$4 sm:$0xff]   ;;  %v11958_v38 = vld [vmem:[%s12598_s6 + $0x90] ss:$52 sps:$4 sm:$0xff]  }
 0x26a   : > { %7342 = vmatprep.subr.bf16.mxu0 %v11885_v40  ;;  %7547 = vmatprep.subr.bf16.mxu1 %v11888_v41  ;;  %v11963_v40 = vld [vmem:[%s12598_s6 + $0xf4] ss:$52 sps:$4 sm:$0xff]   ;;  %v11966_v41 = vld [vmem:[%s12598_s6 + $0xfc] ss:$52 sps:$4 sm:$0xff]  }
 0x26d   : > { %7343 = vmatpush1.bf16.msra.mxu0 %v11883_v42  ;;  %7548 = vmatpush1.bf16.msra.mxu1 %v11886_v43  ;;  %v11961_v42 = vld [vmem:[%s12598_s6 + $0xf0] ss:$52 sps:$4 sm:$0xff]   ;;  %v11964_v43 = vld [vmem:[%s12598_s6 + $0xf8] ss:$52 sps:$4 sm:$0xff]  }
 0x26e   : > { %7344 = vmatprep.subr.bf16.mxu0 %v11891_v30  ;;  %7549 = vmatprep.subr.bf16.mxu1 %v11894_v46  ;;  %v11969_v30 = vld [vmem:[%s12598_s6 + $0x15c] ss:$52 sps:$4 sm:$0xff]   ;;  %v11972_v46 = vld [vmem:[%s12598_s6 + $0x164] ss:$52 sps:$4 sm:$0xff]  }
 0x271   : > { %7345 = vmatpush1.bf16.msra.mxu0 %v11889_v47  ;;  %7550 = vmatpush1.bf16.msra.mxu1 %v11892_v49  ;;  %v11967_v47 = vld [vmem:[%s12598_s6 + $0x158] ss:$52 sps:$4 sm:$0xff]   ;;  %v11970_v49 = vld [vmem:[%s12598_s6 + $0x160] ss:$52 sps:$4 sm:$0xff]  }
 0x272   : > { %7346 = vmatprep.subr.bf16.mxu0 %v11897_v51  ;;  %7551 = vmatprep.subr.bf16.mxu1 %v11900_v52  ;;  %v11975_v51 = vld [vmem:[%s12598_s6 + $0x1c4] ss:$52 sps:$4 sm:$0xff]   ;;  %v11978_v52 = vld [vmem:[%s12598_s6 + $0x1cc] ss:$52 sps:$4 sm:$0xff]  }
 0x275   : > { %7347 = vmatpush1.bf16.msra.mxu0 %v11895_v53  ;;  %7552 = vmatpush1.bf16.msra.mxu1 %v11898_v54  ;;  %v11973_v53 = vld [vmem:[%s12598_s6 + $0x1c0] ss:$52 sps:$4 sm:$0xff]   ;;  %v11976_v54 = vld [vmem:[%s12598_s6 + $0x1c8] ss:$52 sps:$4 sm:$0xff]  }
 0x276   : > { %7348 = vmatprep.subr.bf16.mxu0 %v11903_v56  ;;  %7553 = vmatprep.subr.bf16.mxu1 %v11906_v57  ;;  %v11981_v56 = vld [vmem:[%s12598_s6 + $0x22c] ss:$52 sps:$4 sm:$0xff]   ;;  %v11984_v57 = vld [vmem:[%s12598_s6 + $0x234] ss:$52 sps:$4 sm:$0xff]  }
 0x279   : > { %7349 = vmatpush1.bf16.msra.mxu0 %v11901_v58  ;;  %7554 = vmatpush1.bf16.msra.mxu1 %v11904_v60  ;;  %v11979_v58 = vld [vmem:[%s12598_s6 + $0x228] ss:$52 sps:$4 sm:$0xff]   ;;  %v11982_v60 = vld [vmem:[%s12598_s6 + $0x230] ss:$52 sps:$4 sm:$0xff]  }
 0x27a   : > { %7350 = vmatprep.subr.bf16.mxu0 %v11909_v33  ;;  %7555 = vmatprep.subr.bf16.mxu1 %v11912_v62  ;;  %v11987_v33 = vld [vmem:[%s12598_s6 + $0x294] ss:$52 sps:$4 sm:$0xff]   ;;  %v11990_v62 = vld [vmem:[%s12598_s6 + $0x29c] ss:$52 sps:$4 sm:$0xff]  }
 0x27d   : > { %7351 = vmatpush1.bf16.msra.mxu0 %v11907_v63  ;;  %7556 = vmatpush1.bf16.msra.mxu1 %v11910_v0  ;;  %v11985_v63 = vld [vmem:[%s12598_s6 + $0x290] ss:$52 sps:$4 sm:$0xff]   ;;  %v11988_v0 = vld [vmem:[%s12598_s6 + $0x298] ss:$52 sps:$4 sm:$0xff]  }
 0x27e   : > { %7352 = vmatprep.subr.bf16.mxu0 %v11915_v1  ;;  %7557 = vmatprep.subr.bf16.mxu1 %v11918_v2  ;;  %v11993_v1 = vld [vmem:[%s12598_s6 + $0x2fc] ss:$52 sps:$4 sm:$0xff]   ;;  %v11996_v2 = vld [vmem:[%s12598_s6 + $0x304] ss:$52 sps:$4 sm:$0xff]  }
 0x281   : > { %7353 = vmatpush1.bf16.msra.mxu0 %v11913_v3  ;;  %7558 = vmatpush1.bf16.msra.mxu1 %v11916_v5  ;;  %v11991_v3 = vld [vmem:[%s12598_s6 + $0x2f8] ss:$52 sps:$4 sm:$0xff]   ;;  %v11994_v5 = vld [vmem:[%s12598_s6 + $0x300] ss:$52 sps:$4 sm:$0xff]  }
 0x282   : > { %7354 = vmatprep.subr.bf16.mxu0 %v11921_v6  ;;  %7559 = vmatprep.subr.bf16.mxu1 %v11924_v7  ;;  %v11999_v6 = vld [vmem:[%s12598_s6 + $0x364] ss:$52 sps:$4 sm:$0xff]   ;;  %v12002_v7 = vld [vmem:[%s12598_s6 + $0x36c] ss:$52 sps:$4 sm:$0xff]  }
 0x285   : > { %7355 = vmatpush1.bf16.msra.mxu0 %v11919_v8  ;;  %7560 = vmatpush1.bf16.msra.mxu1 %v11922_v48  ;;  %v11997_v8 = vld [vmem:[%s12598_s6 + $0x360] ss:$52 sps:$4 sm:$0xff]   ;;  %v12000_v48 = vld [vmem:[%s12598_s6 + $0x368] ss:$52 sps:$4 sm:$0xff]  }
 0x286   : > { %7356 = vmatprep.subr.bf16.mxu0 %v11927_v9  ;;  %7561 = vmatprep.subr.bf16.mxu1 %v11930_v11  ;;  %v12005_v9 = vld [vmem:[%s12598_s6 + $0x3cc] ss:$52 sps:$4 sm:$0xff]   ;;  %v12008_v11 = vld [vmem:[%s12598_s6 + $0x3d4] ss:$52 sps:$4 sm:$0xff]  }
 0x289   : > { %7357 = vmatpush1.bf16.msra.mxu0 %v11925_v12  ;;  %7562 = vmatpush1.bf16.msra.mxu1 %v11928_v13  ;;  %v12003_v12 = vld [vmem:[%s12598_s6 + $0x3c8] ss:$52 sps:$4 sm:$0xff]   ;;  %v12006_v13 = vld [vmem:[%s12598_s6 + $0x3d0] ss:$52 sps:$4 sm:$0xff]  }
 0x28a   : > { %7358 = vmatprep.subr.bf16.mxu0 %v11933_v14  ;;  %7563 = vmatprep.subr.bf16.mxu1 %v11936_v15  ;;  %v12011_v14 = vld [vmem:[%s12598_s6 + $0x434] ss:$52 sps:$4 sm:$0xff]   ;;  %v12014_v15 = vld [vmem:[%s12598_s6 + $0x43c] ss:$52 sps:$4 sm:$0xff]  }
 0x28d   : > { %7359 = vmatpush1.bf16.msra.mxu0 %v11931_v16  ;;  %7564 = vmatpush1.bf16.msra.mxu1 %v11934_v18  ;;  %v12009_v16 = vld [vmem:[%s12598_s6 + $0x430] ss:$52 sps:$4 sm:$0xff]   ;;  %v12012_v18 = vld [vmem:[%s12598_s6 + $0x438] ss:$52 sps:$4 sm:$0xff]  }
 0x28e   : > { %7360 = vmatprep.subr.bf16.mxu0 %v11939_v19  ;;  %7565 = vmatprep.subr.bf16.mxu1 %v11942_v20  ;;  %v12017_v19 = vld [vmem:[%s12598_s6 + $0x49c] ss:$52 sps:$4 sm:$0xff]   ;;  %v12020_v20 = vld [vmem:[%s12598_s6 + $0x4a4] ss:$52 sps:$4 sm:$0xff]  }
 0x291   : > { %7361 = vmatpush1.bf16.msra.mxu0 %v11937_v22  ;;  %7566 = vmatpush1.bf16.msra.mxu1 %v11940_v23  ;;  %v12015_v22 = vld [vmem:[%s12598_s6 + $0x498] ss:$52 sps:$4 sm:$0xff]   ;;  %v12018_v23 = vld [vmem:[%s12598_s6 + $0x4a0] ss:$52 sps:$4 sm:$0xff]  }
 0x292   : > { %7362 = vmatprep.subr.bf16.mxu0 %v11945_v24  ;;  %7567 = vmatprep.subr.bf16.mxu1 %v11948_v26  ;;  %v12023_v24 = vld [vmem:[%s12598_s6 + $0x504] ss:$52 sps:$4 sm:$0xff]   ;;  %v12026_v26 = vld [vmem:[%s12598_s6 + $0x50c] ss:$52 sps:$4 sm:$0xff]  }
 0x295   : > { %7363 = vmatpush1.bf16.msra.mxu0 %v11943_v28  ;;  %7568 = vmatpush1.bf16.msra.mxu1 %v11946_v29  ;;  %v12021_v28 = vld [vmem:[%s12598_s6 + $0x500] ss:$52 sps:$4 sm:$0xff]   ;;  %v12024_v29 = vld [vmem:[%s12598_s6 + $0x508] ss:$52 sps:$4 sm:$0xff]  }
 0x296   : > { %7578 = vmatprep.subr.bf16.mxu0 %v11951_v10  ;;  %7783 = vmatprep.subr.bf16.mxu1 %v11954_v31  ;;  %v12029_v10 = vld [vmem:[%s12598_s6 + $0x56c] ss:$52 sps:$4 sm:$0xff]   ;;  %v12032_v31 = vld [vmem:[%s12598_s6 + $0x574] ss:$52 sps:$4 sm:$0xff]  }
 0x298   : > { %7365 = vmatmul.mubr.bf16.vlgmr.msra.gmra.mrb[4].mxu0 %v13000_v4  ;;  %7570 = vmatmul.mubr.bf16.vlgmr.msra.gmra.mrb[4].mxu1 %v13000_v4 }
 0x299   : > { %7579 = vmatpush1.bf16.msra.mxu0 %v11949_v32  ;;  %7784 = vmatpush1.bf16.msra.mxu1 %v11952_v27  ;;  %v12027_v32 = vld [vmem:[%s12598_s6 + $0x568] ss:$52 sps:$4 sm:$0xff]   ;;  %v12030_v27 = vld [vmem:[%s12598_s6 + $0x570] ss:$52 sps:$4 sm:$0xff]  }
 0x29a   : > { %7580 = vmatprep.subr.bf16.mxu0 %v11957_v34  ;;  %7785 = vmatprep.subr.bf16.mxu1 %v11960_v36  ;;  %v12035_v34 = vld [vmem:[%s12598_s6 + $0x5d4] ss:$52 sps:$4 sm:$0xff]   ;;  %v12038_v36 = vld [vmem:[%s12598_s6 + $0x5dc] ss:$52 sps:$4 sm:$0xff]  }
 0x29b   : > { %7610 = vmatprep.mubr.bf16.mxu0 %v12659_v61  ;;  %7815 = vmatprep.mubr.bf16.mxu1 %v12659_v61 }
 0x29d   : > { %7581 = vmatpush1.bf16.msra.mxu0 %v11955_v37  ;;  %7786 = vmatpush1.bf16.msra.mxu1 %v11958_v38  ;;  %v12033_v37 = vld [vmem:[%s12598_s6 + $0x5d0] ss:$52 sps:$4 sm:$0xff]   ;;  %v12036_v38 = vld [vmem:[%s12598_s6 + $0x5d8] ss:$52 sps:$4 sm:$0xff]  }
 0x29e   : > { %7582 = vmatprep.subr.bf16.mxu0 %v11963_v40  ;;  %7787 = vmatprep.subr.bf16.mxu1 %v11966_v41  ;;  %v12041_v40 = vld [vmem:[%s12598_s6 + $0x63c] ss:$52 sps:$4 sm:$0xff]   ;;  %v12044_v41 = vld [vmem:[%s12598_s6 + $0x644] ss:$52 sps:$4 sm:$0xff]  }
 0x2a1   : > { %7583 = vmatpush1.bf16.msra.mxu0 %v11961_v42  ;;  %7788 = vmatpush1.bf16.msra.mxu1 %v11964_v43  ;;  %v12039_v42 = vld [vmem:[%s12598_s6 + $0x638] ss:$52 sps:$4 sm:$0xff]   ;;  %v12042_v43 = vld [vmem:[%s12598_s6 + $0x640] ss:$52 sps:$4 sm:$0xff]  }
 0x2a2   : > { %7584 = vmatprep.subr.bf16.mxu0 %v11969_v30  ;;  %7789 = vmatprep.subr.bf16.mxu1 %v11972_v46  ;;  %v12047_v30 = vld [vmem:[%s12598_s6 + $0x6a4] ss:$52 sps:$4 sm:$0xff]   ;;  %v12050_v46 = vld [vmem:[%s12598_s6 + $0x6ac] ss:$52 sps:$4 sm:$0xff]  }
 0x2a5   : > { %7585 = vmatpush1.bf16.msra.mxu0 %v11967_v47  ;;  %7790 = vmatpush1.bf16.msra.mxu1 %v11970_v49  ;;  %v12045_v47 = vld [vmem:[%s12598_s6 + $0x6a0] ss:$52 sps:$4 sm:$0xff]   ;;  %v12048_v49 = vld [vmem:[%s12598_s6 + $0x6a8] ss:$52 sps:$4 sm:$0xff]  }
 0x2a6   : > { %7586 = vmatprep.subr.bf16.mxu0 %v11975_v51  ;;  %7791 = vmatprep.subr.bf16.mxu1 %v11978_v52  ;;  %v12053_v51 = vld [vmem:[%s12598_s6 + $0x70c] ss:$52 sps:$4 sm:$0xff]   ;;  %v12056_v52 = vld [vmem:[%s12598_s6 + $0x714] ss:$52 sps:$4 sm:$0xff]  }
 0x2a9   : > { %7587 = vmatpush1.bf16.msra.mxu0 %v11973_v53  ;;  %7792 = vmatpush1.bf16.msra.mxu1 %v11976_v54  ;;  %v12051_v53 = vld [vmem:[%s12598_s6 + $0x708] ss:$52 sps:$4 sm:$0xff]   ;;  %v12054_v54 = vld [vmem:[%s12598_s6 + $0x710] ss:$52 sps:$4 sm:$0xff]  }
 0x2aa   : > { %7588 = vmatprep.subr.bf16.mxu0 %v11981_v56  ;;  %7793 = vmatprep.subr.bf16.mxu1 %v11984_v57  ;;  %v12059_v56 = vld [vmem:[%s12598_s6 + $0x774] ss:$52 sps:$4 sm:$0xff]   ;;  %v12062_v57 = vld [vmem:[%s12598_s6 + $0x77c] ss:$52 sps:$4 sm:$0xff]  }
 0x2ad   : > { %7589 = vmatpush1.bf16.msra.mxu0 %v11979_v58  ;;  %7794 = vmatpush1.bf16.msra.mxu1 %v11982_v60  ;;  %v12057_v58 = vld [vmem:[%s12598_s6 + $0x770] ss:$52 sps:$4 sm:$0xff]   ;;  %v12060_v60 = vld [vmem:[%s12598_s6 + $0x778] ss:$52 sps:$4 sm:$0xff]  }
 0x2ae   : > { %7590 = vmatprep.subr.bf16.mxu0 %v11987_v33  ;;  %7795 = vmatprep.subr.bf16.mxu1 %v11990_v62  ;;  %v12065_v33 = vld [vmem:[%s12598_s6 + $0x7dc] ss:$52 sps:$4 sm:$0xff]   ;;  %v12068_v62 = vld [vmem:[%s12598_s6 + $0x7e4] ss:$52 sps:$4 sm:$0xff]  }
 0x2b1   : > { %7591 = vmatpush1.bf16.msra.mxu0 %v11985_v63  ;;  %7796 = vmatpush1.bf16.msra.mxu1 %v11988_v0  ;;  %v12063_v63 = vld [vmem:[%s12598_s6 + $0x7d8] ss:$52 sps:$4 sm:$0xff]   ;;  %v12066_v0 = vld [vmem:[%s12598_s6 + $0x7e0] ss:$52 sps:$4 sm:$0xff]  }
 0x2b2   : > { %7592 = vmatprep.subr.bf16.mxu0 %v11993_v1  ;;  %7797 = vmatprep.subr.bf16.mxu1 %v11996_v2  ;;  %v12071_v1 = vld [vmem:[%s12598_s6 + $0x844] ss:$52 sps:$4 sm:$0xff]   ;;  %v12074_v2 = vld [vmem:[%s12598_s6 + $0x84c] ss:$52 sps:$4 sm:$0xff]  }
 0x2b5   : > { %7593 = vmatpush1.bf16.msra.mxu0 %v11991_v3  ;;  %7798 = vmatpush1.bf16.msra.mxu1 %v11994_v5  ;;  %v12069_v3 = vld [vmem:[%s12598_s6 + $0x840] ss:$52 sps:$4 sm:$0xff]   ;;  %v12072_v5 = vld [vmem:[%s12598_s6 + $0x848] ss:$52 sps:$4 sm:$0xff]  }
 0x2b6   : > { %7594 = vmatprep.subr.bf16.mxu0 %v11999_v6  ;;  %7799 = vmatprep.subr.bf16.mxu1 %v12002_v7  ;;  %v12077_v6 = vld [vmem:[%s12598_s6 + $0x8ac] ss:$52 sps:$4 sm:$0xff]   ;;  %v12080_v7 = vld [vmem:[%s12598_s6 + $0x8b4] ss:$52 sps:$4 sm:$0xff]  }
 0x2b9   : > { %7595 = vmatpush1.bf16.msra.mxu0 %v11997_v8  ;;  %7800 = vmatpush1.bf16.msra.mxu1 %v12000_v48  ;;  %v12075_v8 = vld [vmem:[%s12598_s6 + $0x8a8] ss:$52 sps:$4 sm:$0xff]   ;;  %v12078_v48 = vld [vmem:[%s12598_s6 + $0x8b0] ss:$52 sps:$4 sm:$0xff]  }
 0x2ba   : > { %7596 = vmatprep.subr.bf16.mxu0 %v12005_v9  ;;  %7801 = vmatprep.subr.bf16.mxu1 %v12008_v11  ;;  %v12083_v9 = vld [vmem:[%s12598_s6 + $0x914] ss:$52 sps:$4 sm:$0xff]   ;;  %v12086_v11 = vld [vmem:[%s12598_s6 + $0x91c] ss:$52 sps:$4 sm:$0xff]  }
 0x2bd   : > { %7597 = vmatpush1.bf16.msra.mxu0 %v12003_v12  ;;  %7802 = vmatpush1.bf16.msra.mxu1 %v12006_v13  ;;  %v12081_v12 = vld [vmem:[%s12598_s6 + $0x910] ss:$52 sps:$4 sm:$0xff]   ;;  %v12084_v13 = vld [vmem:[%s12598_s6 + $0x918] ss:$52 sps:$4 sm:$0xff]  }
 0x2be   : > { %7598 = vmatprep.subr.bf16.mxu0 %v12011_v14  ;;  %7803 = vmatprep.subr.bf16.mxu1 %v12014_v15  ;;  %v12089_v14 = vld [vmem:[%s12598_s6 + $0x97c] ss:$52 sps:$4 sm:$0xff]   ;;  %v12092_v15 = vld [vmem:[%s12598_s6 + $0x984] ss:$52 sps:$4 sm:$0xff]  }
 0x2c1   : > { %7599 = vmatpush1.bf16.msra.mxu0 %v12009_v16  ;;  %7804 = vmatpush1.bf16.msra.mxu1 %v12012_v18  ;;  %v12087_v16 = vld [vmem:[%s12598_s6 + $0x978] ss:$52 sps:$4 sm:$0xff]   ;;  %v12090_v18 = vld [vmem:[%s12598_s6 + $0x980] ss:$52 sps:$4 sm:$0xff]  }
 0x2c2   : > { %7600 = vmatprep.subr.bf16.mxu0 %v12017_v19  ;;  %7805 = vmatprep.subr.bf16.mxu1 %v12020_v20  ;;  %v12095_v19 = vld [vmem:[%s12598_s6 + $0x9e4] ss:$52 sps:$4 sm:$0xff]   ;;  %v12098_v20 = vld [vmem:[%s12598_s6 + $0x9ec] ss:$52 sps:$4 sm:$0xff]  }
 0x2c5   : > { %7601 = vmatpush1.bf16.msra.mxu0 %v12015_v22  ;;  %7806 = vmatpush1.bf16.msra.mxu1 %v12018_v23  ;;  %v12093_v22 = vld [vmem:[%s12598_s6 + $0x9e0] ss:$52 sps:$4 sm:$0xff]   ;;  %v12096_v23 = vld [vmem:[%s12598_s6 + $0x9e8] ss:$52 sps:$4 sm:$0xff]  }
 0x2c6   : > { %7602 = vmatprep.subr.bf16.mxu0 %v12023_v24  ;;  %7807 = vmatprep.subr.bf16.mxu1 %v12026_v26  ;;  %v12101_v24 = vld [vmem:[%s12598_s6 + $0xa4c] ss:$52 sps:$4 sm:$0xff]   ;;  %v12104_v26 = vld [vmem:[%s12598_s6 + $0xa54] ss:$52 sps:$4 sm:$0xff]  }
 0x2c9   : > { %7603 = vmatpush1.bf16.msra.mxu0 %v12021_v28  ;;  %7808 = vmatpush1.bf16.msra.mxu1 %v12024_v29  ;;  %v12099_v28 = vld [vmem:[%s12598_s6 + $0xa48] ss:$52 sps:$4 sm:$0xff]   ;;  %v12102_v29 = vld [vmem:[%s12598_s6 + $0xa50] ss:$52 sps:$4 sm:$0xff]  }
 0x2ca   : > { %7604 = vmatprep.subr.bf16.mxu0 %v12029_v10  ;;  %7809 = vmatprep.subr.bf16.mxu1 %v12032_v31  ;;  %v12107_v10 = vld [vmem:[%s12598_s6 + $0xab4] ss:$52 sps:$4 sm:$0xff]   ;;  %v12110_v31 = vld [vmem:[%s12598_s6 + $0xabc] ss:$52 sps:$4 sm:$0xff]  }
 0x2cd   : > { %7605 = vmatpush1.bf16.msra.mxu0 %v12027_v32  ;;  %7810 = vmatpush1.bf16.msra.mxu1 %v12030_v27  ;;  %v12105_v32 = vld [vmem:[%s12598_s6 + $0xab0] ss:$52 sps:$4 sm:$0xff]   ;;  %v12108_v27 = vld [vmem:[%s12598_s6 + $0xab8] ss:$52 sps:$4 sm:$0xff]  }
 0x2ce   : > { %7606 = vmatprep.subr.bf16.mxu0 %v12035_v34  ;;  %7811 = vmatprep.subr.bf16.mxu1 %v12038_v36  ;;  %v12113_v34 = vld [vmem:[%s12598_s6 + $0xb1c] ss:$52 sps:$4 sm:$0xff]   ;;  %v12116_v36 = vld [vmem:[%s12598_s6 + $0xb24] ss:$52 sps:$4 sm:$0xff]  }
 0x2d1   : > { %7607 = vmatpush1.bf16.msra.mxu0 %v12033_v37  ;;  %7812 = vmatpush1.bf16.msra.mxu1 %v12036_v38  ;;  %v12111_v37 = vld [vmem:[%s12598_s6 + $0xb18] ss:$52 sps:$4 sm:$0xff]   ;;  %v12114_v38 = vld [vmem:[%s12598_s6 + $0xb20] ss:$52 sps:$4 sm:$0xff]  }
 0x2d2   : > { %7608 = vmatprep.subr.bf16.mxu0 %v12041_v40  ;;  %7813 = vmatprep.subr.bf16.mxu1 %v12044_v41  ;;  %v12119_v40 = vld [vmem:[%s12598_s6 + $0xb84] ss:$52 sps:$4 sm:$0xff]   ;;  %v12122_v41 = vld [vmem:[%s12598_s6 + $0xb8c] ss:$52 sps:$4 sm:$0xff]  }
 0x2d5   : > { %7609 = vmatpush1.bf16.msra.mxu0 %v12039_v42  ;;  %7814 = vmatpush1.bf16.msra.mxu1 %v12042_v43  ;;  %v12117_v42 = vld [vmem:[%s12598_s6 + $0xb80] ss:$52 sps:$4 sm:$0xff]   ;;  %v12120_v43 = vld [vmem:[%s12598_s6 + $0xb88] ss:$52 sps:$4 sm:$0xff]  }
 0x2d6   : > { %7619 = vmatprep.subr.bf16.mxu0 %v12047_v30  ;;  %7824 = vmatprep.subr.bf16.mxu1 %v12050_v46  ;;  %v12125_v30 = vld [vmem:[%s12598_s6 + $0xbec] ss:$52 sps:$4 sm:$0xff]   ;;  %v12128_v46 = vld [vmem:[%s12598_s6 + $0xbf4] ss:$52 sps:$4 sm:$0xff]  }
 0x2d8   : > { %7611 = vmatmul.mubr.bf16.vlgmr.msra.gmra.mrb[8].mxu0 %v12684_v17  ;;  %7816 = vmatmul.mubr.bf16.vlgmr.msra.gmra.mrb[8].mxu1 %v12684_v17 }
 0x2d9   : > { %7620 = vmatpush1.bf16.msra.mxu0 %v12045_v47  ;;  %7825 = vmatpush1.bf16.msra.mxu1 %v12048_v49  ;;  %v12123_v47 = vld [vmem:[%s12598_s6 + $0xbe8] ss:$52 sps:$4 sm:$0xff]   ;;  %v12126_v49 = vld [vmem:[%s12598_s6 + $0xbf0] ss:$52 sps:$4 sm:$0xff]  }
 0x2da   : > { %7621 = vmatprep.subr.bf16.mxu0 %v12053_v51  ;;  %7826 = vmatprep.subr.bf16.mxu1 %v12056_v52  ;;  %v12131_v51 = vld [vmem:[%s12598_s6 + $0xc54] ss:$52 sps:$4 sm:$0xff]   ;;  %v12134_v52 = vld [vmem:[%s12598_s6 + $0xc5c] ss:$52 sps:$4 sm:$0xff]  }
 0x2db   : > { %7651 = vmatprep.mubr.bf16.mxu0 %v12689_v21  ;;  %7856 = vmatprep.mubr.bf16.mxu1 %v12689_v21 }
 0x2dd   : > { %7622 = vmatpush1.bf16.msra.mxu0 %v12051_v53  ;;  %7827 = vmatpush1.bf16.msra.mxu1 %v12054_v54  ;;  %v12129_v53 = vld [vmem:[%s12598_s6 + $0xc50] ss:$52 sps:$4 sm:$0xff]   ;;  %v12132_v54 = vld [vmem:[%s12598_s6 + $0xc58] ss:$52 sps:$4 sm:$0xff]  }
 0x2de   : > { %7623 = vmatprep.subr.bf16.mxu0 %v12059_v56  ;;  %7828 = vmatprep.subr.bf16.mxu1 %v12062_v57  ;;  %v12137_v56 = vld [vmem:[%s12598_s6 + $0xcbc] ss:$52 sps:$4 sm:$0xff]   ;;  %v12140_v57 = vld [vmem:[%s12598_s6 + $0xcc4] ss:$52 sps:$4 sm:$0xff]  }
 0x2e1   : > { %7624 = vmatpush1.bf16.msra.mxu0 %v12057_v58  ;;  %7829 = vmatpush1.bf16.msra.mxu1 %v12060_v60  ;;  %v12135_v58 = vld [vmem:[%s12598_s6 + $0xcb8] ss:$52 sps:$4 sm:$0xff]   ;;  %v12138_v60 = vld [vmem:[%s12598_s6 + $0xcc0] ss:$52 sps:$4 sm:$0xff]  }
 0x2e2   : > { %7625 = vmatprep.subr.bf16.mxu0 %v12065_v33  ;;  %7830 = vmatprep.subr.bf16.mxu1 %v12068_v62  ;;  %v12143_v33 = vld [vmem:[%s12598_s6 + $0xd24] ss:$52 sps:$4 sm:$0xff]   ;;  %v12146_v62 = vld [vmem:[%s12598_s6 + $0xd2c] ss:$52 sps:$4 sm:$0xff]  }
 0x2e5   : > { %7626 = vmatpush1.bf16.msra.mxu0 %v12063_v63  ;;  %7831 = vmatpush1.bf16.msra.mxu1 %v12066_v0  ;;  %v12141_v63 = vld [vmem:[%s12598_s6 + $0xd20] ss:$52 sps:$4 sm:$0xff]   ;;  %v12144_v0 = vld [vmem:[%s12598_s6 + $0xd28] ss:$52 sps:$4 sm:$0xff]  }
 0x2e6   : > { %7627 = vmatprep.subr.bf16.mxu0 %v12071_v1  ;;  %7832 = vmatprep.subr.bf16.mxu1 %v12074_v2  ;;  %v12149_v1 = vld [vmem:[%s12598_s6 + $0xd8c] ss:$52 sps:$4 sm:$0xff]   ;;  %v12152_v2 = vld [vmem:[%s12598_s6 + $0xd94] ss:$52 sps:$4 sm:$0xff]  }
 0x2e9   : > { %7628 = vmatpush1.bf16.msra.mxu0 %v12069_v3  ;;  %7833 = vmatpush1.bf16.msra.mxu1 %v12072_v5  ;;  %v12147_v3 = vld [vmem:[%s12598_s6 + $0xd88] ss:$52 sps:$4 sm:$0xff]   ;;  %v12150_v5 = vld [vmem:[%s12598_s6 + $0xd90] ss:$52 sps:$4 sm:$0xff]  }
 0x2ea   : > { %7629 = vmatprep.subr.bf16.mxu0 %v12077_v6  ;;  %7834 = vmatprep.subr.bf16.mxu1 %v12080_v7  ;;  %v12155_v6 = vld [vmem:[%s12598_s6 + $0xdf4] ss:$52 sps:$4 sm:$0xff]   ;;  %v12158_v7 = vld [vmem:[%s12598_s6 + $0xdfc] ss:$52 sps:$4 sm:$0xff]  }
 0x2ed   : > { %7630 = vmatpush1.bf16.msra.mxu0 %v12075_v8  ;;  %7835 = vmatpush1.bf16.msra.mxu1 %v12078_v48  ;;  %v12153_v8 = vld [vmem:[%s12598_s6 + $0xdf0] ss:$52 sps:$4 sm:$0xff]   ;;  %v12156_v48 = vld [vmem:[%s12598_s6 + $0xdf8] ss:$52 sps:$4 sm:$0xff]  }
 0x2ee   : > { %7631 = vmatprep.subr.bf16.mxu0 %v12083_v9  ;;  %7836 = vmatprep.subr.bf16.mxu1 %v12086_v11  ;;  %v12161_v9 = vld [vmem:[%s12598_s6 + $0xe5c] ss:$52 sps:$4 sm:$0xff]   ;;  %v12164_v11 = vld [vmem:[%s12598_s6 + $0xe64] ss:$52 sps:$4 sm:$0xff]  }
 0x2f1   : > { %7632 = vmatpush1.bf16.msra.mxu0 %v12081_v12  ;;  %7837 = vmatpush1.bf16.msra.mxu1 %v12084_v13  ;;  %v12159_v12 = vld [vmem:[%s12598_s6 + $0xe58] ss:$52 sps:$4 sm:$0xff]   ;;  %v12162_v13 = vld [vmem:[%s12598_s6 + $0xe60] ss:$52 sps:$4 sm:$0xff]  }
 0x2f2   : > { %7633 = vmatprep.subr.bf16.mxu0 %v12089_v14  ;;  %7838 = vmatprep.subr.bf16.mxu1 %v12092_v15  ;;  %v12167_v14 = vld [vmem:[%s12598_s6 + $0xec4] ss:$52 sps:$4 sm:$0xff]   ;;  %v12170_v15 = vld [vmem:[%s12598_s6 + $0xecc] ss:$52 sps:$4 sm:$0xff]  }
 0x2f5   : > { %7634 = vmatpush1.bf16.msra.mxu0 %v12087_v16  ;;  %7839 = vmatpush1.bf16.msra.mxu1 %v12090_v18  ;;  %v12165_v16 = vld [vmem:[%s12598_s6 + $0xec0] ss:$52 sps:$4 sm:$0xff]   ;;  %v12168_v18 = vld [vmem:[%s12598_s6 + $0xec8] ss:$52 sps:$4 sm:$0xff]  }
 0x2f6   : > { %7635 = vmatprep.subr.bf16.mxu0 %v12095_v19  ;;  %7840 = vmatprep.subr.bf16.mxu1 %v12098_v20  ;;  %v12173_v19 = vld [vmem:[%s12598_s6 + $0xf2c] ss:$52 sps:$4 sm:$0xff]   ;;  %v12176_v20 = vld [vmem:[%s12598_s6 + $0xf34] ss:$52 sps:$4 sm:$0xff]  }
 0x2f9   : > { %7636 = vmatpush1.bf16.msra.mxu0 %v12093_v22  ;;  %7841 = vmatpush1.bf16.msra.mxu1 %v12096_v23  ;;  %v12171_v22 = vld [vmem:[%s12598_s6 + $0xf28] ss:$52 sps:$4 sm:$0xff]   ;;  %v12174_v23 = vld [vmem:[%s12598_s6 + $0xf30] ss:$52 sps:$4 sm:$0xff]  }
 0x2fa   : > { %7637 = vmatprep.subr.bf16.mxu0 %v12101_v24  ;;  %7842 = vmatprep.subr.bf16.mxu1 %v12104_v26  ;;  %v12179_v24 = vld [vmem:[%s12598_s6 + $0xf94] ss:$52 sps:$4 sm:$0xff]   ;;  %v12182_v26 = vld [vmem:[%s12598_s6 + $0xf9c] ss:$52 sps:$4 sm:$0xff]  }
 0x2fd   : > { %7638 = vmatpush1.bf16.msra.mxu0 %v12099_v28  ;;  %7843 = vmatpush1.bf16.msra.mxu1 %v12102_v29  ;;  %v12177_v28 = vld [vmem:[%s12598_s6 + $0xf90] ss:$52 sps:$4 sm:$0xff]   ;;  %v12180_v29 = vld [vmem:[%s12598_s6 + $0xf98] ss:$52 sps:$4 sm:$0xff]  }
 0x2fe   : > { %7639 = vmatprep.subr.bf16.mxu0 %v12107_v10  ;;  %7844 = vmatprep.subr.bf16.mxu1 %v12110_v31  ;;  %v12185_v10 = vld [vmem:[%s12598_s6 + $0xffc] ss:$52 sps:$4 sm:$0xff]   ;;  %v12188_v31 = vld [vmem:[%s12598_s6 + $0x1004] ss:$52 sps:$4 sm:$0xff]  }
 0x301   : > { %7640 = vmatpush1.bf16.msra.mxu0 %v12105_v32  ;;  %7845 = vmatpush1.bf16.msra.mxu1 %v12108_v27  ;;  %v12183_v32 = vld [vmem:[%s12598_s6 + $0xff8] ss:$52 sps:$4 sm:$0xff]   ;;  %v12186_v27 = vld [vmem:[%s12598_s6 + $0x1000] ss:$52 sps:$4 sm:$0xff]  }
 0x302   : > { %7641 = vmatprep.subr.bf16.mxu0 %v12113_v34  ;;  %7846 = vmatprep.subr.bf16.mxu1 %v12116_v36  ;;  %v12191_v34 = vld [vmem:[%s12598_s6 + $0x1064] ss:$52 sps:$4 sm:$0xff]   ;;  %v12194_v36 = vld [vmem:[%s12598_s6 + $0x106c] ss:$52 sps:$4 sm:$0xff]  }
 0x305   : > { %7642 = vmatpush1.bf16.msra.mxu0 %v12111_v37  ;;  %7847 = vmatpush1.bf16.msra.mxu1 %v12114_v38  ;;  %v12189_v37 = vld [vmem:[%s12598_s6 + $0x1060] ss:$52 sps:$4 sm:$0xff]   ;;  %v12192_v38 = vld [vmem:[%s12598_s6 + $0x1068] ss:$52 sps:$4 sm:$0xff]  }
 0x306   : > { %7643 = vmatprep.subr.bf16.mxu0 %v12119_v40  ;;  %7848 = vmatprep.subr.bf16.mxu1 %v12122_v41  ;;  %v12197_v40 = vld [vmem:[%s12598_s6 + $0x10cc] ss:$52 sps:$4 sm:$0xff]   ;;  %v12200_v41 = vld [vmem:[%s12598_s6 + $0x10d4] ss:$52 sps:$4 sm:$0xff]  }
 0x309   : > { %7644 = vmatpush1.bf16.msra.mxu0 %v12117_v42  ;;  %7849 = vmatpush1.bf16.msra.mxu1 %v12120_v43  ;;  %v12195_v42 = vld [vmem:[%s12598_s6 + $0x10c8] ss:$52 sps:$4 sm:$0xff]   ;;  %v12198_v43 = vld [vmem:[%s12598_s6 + $0x10d0] ss:$52 sps:$4 sm:$0xff]  }
 0x30a   : > { %7645 = vmatprep.subr.bf16.mxu0 %v12125_v30  ;;  %7850 = vmatprep.subr.bf16.mxu1 %v12128_v46  ;;  %v12203_v30 = vld [vmem:[%s12598_s6 + $0x1134] ss:$52 sps:$4 sm:$0xff]   ;;  %v12206_v46 = vld [vmem:[%s12598_s6 + $0x113c] ss:$52 sps:$4 sm:$0xff]  }
 0x30d   : > { %7646 = vmatpush1.bf16.msra.mxu0 %v12123_v47  ;;  %7851 = vmatpush1.bf16.msra.mxu1 %v12126_v49  ;;  %v12201_v47 = vld [vmem:[%s12598_s6 + $0x1130] ss:$52 sps:$4 sm:$0xff]   ;;  %v12204_v49 = vld [vmem:[%s12598_s6 + $0x1138] ss:$52 sps:$4 sm:$0xff]  }
 0x30e   : > { %7647 = vmatprep.subr.bf16.mxu0 %v12131_v51  ;;  %7852 = vmatprep.subr.bf16.mxu1 %v12134_v52  ;;  %v12209_v51 = vld [vmem:[%s12598_s6 + $0x119c] ss:$52 sps:$4 sm:$0xff]   ;;  %v12212_v52 = vld [vmem:[%s12598_s6 + $0x11a4] ss:$52 sps:$4 sm:$0xff]  }
 0x311   : > { %7648 = vmatpush1.bf16.msra.mxu0 %v12129_v53  ;;  %7853 = vmatpush1.bf16.msra.mxu1 %v12132_v54  ;;  %v12207_v53 = vld [vmem:[%s12598_s6 + $0x1198] ss:$52 sps:$4 sm:$0xff]   ;;  %v12210_v54 = vld [vmem:[%s12598_s6 + $0x11a0] ss:$52 sps:$4 sm:$0xff]  }
 0x312   : > { %7649 = vmatprep.subr.bf16.mxu0 %v12137_v56  ;;  %7854 = vmatprep.subr.bf16.mxu1 %v12140_v57  ;;  %v12215_v56 = vld [vmem:[%s12598_s6 + $0x1204] ss:$52 sps:$4 sm:$0xff]   ;;  %v12218_v57 = vld [vmem:[%s12598_s6 + $0x120c] ss:$52 sps:$4 sm:$0xff]  }
 0x315   : > { %7650 = vmatpush1.bf16.msra.mxu0 %v12135_v58  ;;  %7855 = vmatpush1.bf16.msra.mxu1 %v12138_v60  ;;  %v12213_v58 = vld [vmem:[%s12598_s6 + $0x1200] ss:$52 sps:$4 sm:$0xff]   ;;  %v12216_v60 = vld [vmem:[%s12598_s6 + $0x1208] ss:$52 sps:$4 sm:$0xff]  }
 0x316   : > { %7660 = vmatprep.subr.bf16.mxu0 %v12143_v33  ;;  %7865 = vmatprep.subr.bf16.mxu1 %v12146_v62  ;;  %v12221_v33 = vld [vmem:[%s12598_s6 + $0x126c] ss:$52 sps:$4 sm:$0xff]   ;;  %v12224_v62 = vld [vmem:[%s12598_s6 + $0x1274] ss:$52 sps:$4 sm:$0xff]  }
 0x318   : > { %7652 = vmatmul.mubr.bf16.vlgmr.msra.gmra.mrb[8].mxu0 %v12758_v25  ;;  %7857 = vmatmul.mubr.bf16.vlgmr.msra.gmra.mrb[8].mxu1 %v12758_v25 }
 0x319   : > { %7661 = vmatpush1.bf16.msra.mxu0 %v12141_v63  ;;  %7866 = vmatpush1.bf16.msra.mxu1 %v12144_v0  ;;  %v12219_v63 = vld [vmem:[%s12598_s6 + $0x1268] ss:$52 sps:$4 sm:$0xff]   ;;  %v12222_v0 = vld [vmem:[%s12598_s6 + $0x1270] ss:$52 sps:$4 sm:$0xff]  }
 0x31a   : > { %7662 = vmatprep.subr.bf16.mxu0 %v12149_v1  ;;  %7867 = vmatprep.subr.bf16.mxu1 %v12152_v2  ;;  %v12227_v1 = vld [vmem:[%s12598_s6 + $0x12d4] ss:$52 sps:$4 sm:$0xff]   ;;  %v12230_v2 = vld [vmem:[%s12598_s6 + $0x12dc] ss:$52 sps:$4 sm:$0xff]  }
 0x31b   : > { %7692 = vmatprep.mubr.bf16.mxu0 %v12778_v35  ;;  %7897 = vmatprep.mubr.bf16.mxu1 %v12778_v35 }
 0x31d   : > { %7663 = vmatpush1.bf16.msra.mxu0 %v12147_v3  ;;  %7868 = vmatpush1.bf16.msra.mxu1 %v12150_v5  ;;  %v12225_v3 = vld [vmem:[%s12598_s6 + $0x12d0] ss:$52 sps:$4 sm:$0xff]   ;;  %v12228_v5 = vld [vmem:[%s12598_s6 + $0x12d8] ss:$52 sps:$4 sm:$0xff]  }
 0x31e   : > { %7664 = vmatprep.subr.bf16.mxu0 %v12155_v6  ;;  %7869 = vmatprep.subr.bf16.mxu1 %v12158_v7  ;;  %v12233_v6 = vld [vmem:[%s12598_s6 + $0x133c] ss:$52 sps:$4 sm:$0xff]   ;;  %v12236_v7 = vld [vmem:[%s12598_s6 + $0x1344] ss:$52 sps:$4 sm:$0xff]  }
 0x321   : > { %7665 = vmatpush1.bf16.msra.mxu0 %v12153_v8  ;;  %7870 = vmatpush1.bf16.msra.mxu1 %v12156_v48  ;;  %v12231_v8 = vld [vmem:[%s12598_s6 + $0x1338] ss:$52 sps:$4 sm:$0xff]   ;;  %v12234_v48 = vld [vmem:[%s12598_s6 + $0x1340] ss:$52 sps:$4 sm:$0xff]  }
 0x322   : > { %7666 = vmatprep.subr.bf16.mxu0 %v12161_v9  ;;  %7871 = vmatprep.subr.bf16.mxu1 %v12164_v11  ;;  %v12239_v9 = vld [vmem:[%s12598_s6 + $0x13a4] ss:$52 sps:$4 sm:$0xff]   ;;  %v12242_v11 = vld [vmem:[%s12598_s6 + $0x13ac] ss:$52 sps:$4 sm:$0xff]  }
 0x325   : > { %7667 = vmatpush1.bf16.msra.mxu0 %v12159_v12  ;;  %7872 = vmatpush1.bf16.msra.mxu1 %v12162_v13  ;;  %v12237_v12 = vld [vmem:[%s12598_s6 + $0x13a0] ss:$52 sps:$4 sm:$0xff]   ;;  %v12240_v13 = vld [vmem:[%s12598_s6 + $0x13a8] ss:$52 sps:$4 sm:$0xff]  }
 0x326   : > { %7668 = vmatprep.subr.bf16.mxu0 %v12167_v14  ;;  %7873 = vmatprep.subr.bf16.mxu1 %v12170_v15  ;;  %v12245_v14 = vld [vmem:[%s12598_s6 + $0x140c] ss:$52 sps:$4 sm:$0xff]   ;;  %v12248_v15 = vld [vmem:[%s12598_s6 + $0x1414] ss:$52 sps:$4 sm:$0xff]  }
 0x329   : > { %7669 = vmatpush1.bf16.msra.mxu0 %v12165_v16  ;;  %7874 = vmatpush1.bf16.msra.mxu1 %v12168_v18  ;;  %v12243_v16 = vld [vmem:[%s12598_s6 + $0x1408] ss:$52 sps:$4 sm:$0xff]   ;;  %v12246_v18 = vld [vmem:[%s12598_s6 + $0x1410] ss:$52 sps:$4 sm:$0xff]  }
 0x32a   : > { %7670 = vmatprep.subr.bf16.mxu0 %v12173_v19  ;;  %7875 = vmatprep.subr.bf16.mxu1 %v12176_v20  ;;  %v12251_v19 = vld [vmem:[%s12598_s6 + $0x1474] ss:$52 sps:$4 sm:$0xff]   ;;  %v12254_v20 = vld [vmem:[%s12598_s6 + $0x147c] ss:$52 sps:$4 sm:$0xff]  }
 0x32d   : > { %7671 = vmatpush1.bf16.msra.mxu0 %v12171_v22  ;;  %7876 = vmatpush1.bf16.msra.mxu1 %v12174_v23  ;;  %v12249_v22 = vld [vmem:[%s12598_s6 + $0x1470] ss:$52 sps:$4 sm:$0xff]   ;;  %v12252_v23 = vld [vmem:[%s12598_s6 + $0x1478] ss:$52 sps:$4 sm:$0xff]  }
 0x32e   : > { %7672 = vmatprep.subr.bf16.mxu0 %v12179_v24  ;;  %7877 = vmatprep.subr.bf16.mxu1 %v12182_v26  ;;  %v12257_v24 = vld [vmem:[%s12598_s6 + $0x14dc] ss:$52 sps:$4 sm:$0xff]   ;;  %v12260_v26 = vld [vmem:[%s12598_s6 + $0x14e4] ss:$52 sps:$4 sm:$0xff]  }
 0x331   : > { %7673 = vmatpush1.bf16.msra.mxu0 %v12177_v28  ;;  %7878 = vmatpush1.bf16.msra.mxu1 %v12180_v29  ;;  %v12255_v28 = vld [vmem:[%s12598_s6 + $0x14d8] ss:$52 sps:$4 sm:$0xff]   ;;  %v12258_v29 = vld [vmem:[%s12598_s6 + $0x14e0] ss:$52 sps:$4 sm:$0xff]  }
 0x332   : > { %7674 = vmatprep.subr.bf16.mxu0 %v12185_v10  ;;  %7879 = vmatprep.subr.bf16.mxu1 %v12188_v31  ;;  %v12263_v10 = vld [vmem:[%s12598_s6 + $0x1544] ss:$52 sps:$4 sm:$0xff]   ;;  %v12266_v31 = vld [vmem:[%s12598_s6 + $0x154c] ss:$52 sps:$4 sm:$0xff]  }
 0x335   : > { %7675 = vmatpush1.bf16.msra.mxu0 %v12183_v32  ;;  %7880 = vmatpush1.bf16.msra.mxu1 %v12186_v27  ;;  %v12261_v32 = vld [vmem:[%s12598_s6 + $0x1540] ss:$52 sps:$4 sm:$0xff]   ;;  %v12264_v27 = vld [vmem:[%s12598_s6 + $0x1548] ss:$52 sps:$4 sm:$0xff]  }
 0x336   : > { %7676 = vmatprep.subr.bf16.mxu0 %v12191_v34  ;;  %7881 = vmatprep.subr.bf16.mxu1 %v12194_v36  ;;  %v12269_v34 = vld [vmem:[%s12598_s6 + $0x15ac] ss:$52 sps:$4 sm:$0xff]   ;;  %v12272_v36 = vld [vmem:[%s12598_s6 + $0x15b4] ss:$52 sps:$4 sm:$0xff]  }
 0x339   : > { %7677 = vmatpush1.bf16.msra.mxu0 %v12189_v37  ;;  %7882 = vmatpush1.bf16.msra.mxu1 %v12192_v38  ;;  %v12267_v37 = vld [vmem:[%s12598_s6 + $0x15a8] ss:$52 sps:$4 sm:$0xff]   ;;  %v12270_v38 = vld [vmem:[%s12598_s6 + $0x15b0] ss:$52 sps:$4 sm:$0xff]  }
 0x33a   : > { %7678 = vmatprep.subr.bf16.mxu0 %v12197_v40  ;;  %7883 = vmatprep.subr.bf16.mxu1 %v12200_v41  ;;  %v12275_v40 = vld [vmem:[%s12598_s6 + $0x1614] ss:$52 sps:$4 sm:$0xff]   ;;  %v12278_v41 = vld [vmem:[%s12598_s6 + $0x161c] ss:$52 sps:$4 sm:$0xff]  }
 0x33d   : > { %7679 = vmatpush1.bf16.msra.mxu0 %v12195_v42  ;;  %7884 = vmatpush1.bf16.msra.mxu1 %v12198_v43 }
 0x33e   : > { %7680 = vmatprep.subr.bf16.mxu0 %v12203_v30  ;;  %7885 = vmatprep.subr.bf16.mxu1 %v12206_v46 }
 0x341   : > { %7681 = vmatpush1.bf16.msra.mxu0 %v12201_v47  ;;  %7886 = vmatpush1.bf16.msra.mxu1 %v12204_v49 }
 0x342   : > { %7682 = vmatprep.subr.bf16.mxu0 %v12209_v51  ;;  %7887 = vmatprep.subr.bf16.mxu1 %v12212_v52 }
 0x345   : > { %7683 = vmatpush1.bf16.msra.mxu0 %v12207_v53  ;;  %7888 = vmatpush1.bf16.msra.mxu1 %v12210_v54  ;;  %v12273_v53 = vld [vmem:[%s12598_s6 + $0x1610] ss:$52 sps:$4 sm:$0xff]   ;;  %v12276_v54 = vld [vmem:[%s12598_s6 + $0x1618] ss:$52 sps:$4 sm:$0xff]  }
 0x346   : > { %7684 = vmatprep.subr.bf16.mxu0 %v12215_v56  ;;  %7889 = vmatprep.subr.bf16.mxu1 %v12218_v57 }
 0x349   : > { %7685 = vmatpush1.bf16.msra.mxu0 %v12213_v58  ;;  %7890 = vmatpush1.bf16.msra.mxu1 %v12216_v60  ;;  %v12281_v58 = vld [vmem:[%s12598_s6 + $0x167c] ss:$52 sps:$4 sm:$0xff]   ;;  %v12284_v60 = vld [vmem:[%s12598_s6 + $0x1684] ss:$52 sps:$4 sm:$0xff]  }
 0x34a   : > { %7686 = vmatprep.subr.bf16.mxu0 %v12221_v33  ;;  %7891 = vmatprep.subr.bf16.mxu1 %v12224_v62 }
 0x34d   : > { %7687 = vmatpush1.bf16.msra.mxu0 %v12219_v63  ;;  %7892 = vmatpush1.bf16.msra.mxu1 %v12222_v0  ;;  %v287_v63 = vld [vmem:[#allocation2 + $0x8] sm:$0xff] }
 0x34e   : > { %7688 = vmatprep.subr.bf16.mxu0 %v12227_v1  ;;  %7893 = vmatprep.subr.bf16.mxu1 %v12230_v2  ;;  %v12279_v1 = vld [vmem:[%s12598_s6 + $0x1678] ss:$52 sps:$4 sm:$0xff]   ;;  %v12282_v2 = vld [vmem:[%s12598_s6 + $0x1680] ss:$52 sps:$4 sm:$0xff]  }
 0x351   : > { %7689 = vmatpush1.bf16.msra.mxu0 %v12225_v3  ;;  %7894 = vmatpush1.bf16.msra.mxu1 %v12228_v5  ;;  %v12287_v3 = vld [vmem:[%s12598_s6 + $0x16e4] ss:$52 sps:$4 sm:$0xff]   ;;  %v12290_v5 = vld [vmem:[%s12598_s6 + $0x16ec] ss:$52 sps:$4 sm:$0xff]  }
 0x352   : > { %7690 = vmatprep.subr.bf16.mxu0 %v12233_v6  ;;  %7895 = vmatprep.subr.bf16.mxu1 %v12236_v7  ;;  %v12285_v7 = vld [vmem:[%s12598_s6 + $0x16e0] ss:$52 sps:$4 sm:$0xff]  }
 0x355   : > { %7691 = vmatpush1.bf16.msra.mxu0 %v12231_v8  ;;  %7896 = vmatpush1.bf16.msra.mxu1 %v12234_v48  ;;  %v12288_v8 = vld [vmem:[%s12598_s6 + $0x16e8] ss:$52 sps:$4 sm:$0xff]   ;;  %v12293_v48 = vld [vmem:[%s12598_s6 + $0x174c] ss:$52 sps:$4 sm:$0xff]  }
 0x356   : > { %7701 = vmatprep.subr.bf16.mxu0 %v12239_v9  ;;  %7906 = vmatprep.subr.bf16.mxu1 %v12242_v11  ;;  %v12296_v9 = vld [vmem:[%s12598_s6 + $0x1754] ss:$52 sps:$4 sm:$0xff]  }
 0x357   : > { %v12291_v11 = vld [vmem:[%s12598_s6 + $0x1748] ss:$52 sps:$4 sm:$0xff]  }
 0x358   : > { %7693 = vmatmul.mubr.bf16.vlgmr.msra.gmra.mrb[8].mxu0 %v12847_v39  ;;  %7898 = vmatmul.mubr.bf16.vlgmr.msra.gmra.mrb[8].mxu1 %v12847_v39 }
 0x359   : > { %7702 = vmatpush1.bf16.msra.mxu0 %v12237_v12  ;;  %7907 = vmatpush1.bf16.msra.mxu1 %v12240_v13  ;;  %v12294_v12 = vld [vmem:[%s12598_s6 + $0x1750] ss:$52 sps:$4 sm:$0xff]   ;;  %v12299_v13 = vld [vmem:[%s12598_s6 + $0x17b4] ss:$52 sps:$4 sm:$0xff]  }
 0x35a   : > { %7703 = vmatprep.subr.bf16.mxu0 %v12245_v14  ;;  %7908 = vmatprep.subr.bf16.mxu1 %v12248_v15  ;;  %v12302_v14 = vld [vmem:[%s12598_s6 + $0x17bc] ss:$52 sps:$4 sm:$0xff]  }
 0x35b   : > { %7733 = vmatprep.mubr.bf16.mxu0 %v12853_v45  ;;  %7938 = vmatprep.mubr.bf16.mxu1 %v12853_v45  ;;  %v12297_v15 = vld [vmem:[%s12598_s6 + $0x17b0] ss:$52 sps:$4 sm:$0xff]  }
 0x35d   : > { %7704 = vmatpush1.bf16.msra.mxu0 %v12243_v16  ;;  %7909 = vmatpush1.bf16.msra.mxu1 %v12246_v18  ;;  %v12300_v16 = vld [vmem:[%s12598_s6 + $0x17b8] ss:$52 sps:$4 sm:$0xff]   ;;  %v12305_v18 = vld [vmem:[%s12598_s6 + $0x181c] ss:$52 sps:$4 sm:$0xff]  }
 0x35e   : > { %7705 = vmatprep.subr.bf16.mxu0 %v12251_v19  ;;  %7910 = vmatprep.subr.bf16.mxu1 %v12254_v20  ;;  %v12308_v19 = vld [vmem:[%s12598_s6 + $0x1824] ss:$52 sps:$4 sm:$0xff]  }
 0x35f   : > { %v12303_v20 = vld [vmem:[%s12598_s6 + $0x1818] ss:$52 sps:$4 sm:$0xff]  }
 0x361   : > { %7706 = vmatpush1.bf16.msra.mxu0 %v12249_v22  ;;  %7911 = vmatpush1.bf16.msra.mxu1 %v12252_v23  ;;  %v12306_v22 = vld [vmem:[%s12598_s6 + $0x1820] ss:$52 sps:$4 sm:$0xff]   ;;  %v12311_v23 = vld [vmem:[%s12598_s6 + $0x1884] ss:$52 sps:$4 sm:$0xff]  }
 0x362   : > { %7707 = vmatprep.subr.bf16.mxu0 %v12257_v24  ;;  %7912 = vmatprep.subr.bf16.mxu1 %v12260_v26  ;;  %v12314_v24 = vld [vmem:[%s12598_s6 + $0x188c] ss:$52 sps:$4 sm:$0xff]  }
 0x363   : > { %v12309_v26 = vld [vmem:[%s12598_s6 + $0x1880] ss:$52 sps:$4 sm:$0xff]  }
 0x365   : > { %7708 = vmatpush1.bf16.msra.mxu0 %v12255_v28  ;;  %7913 = vmatpush1.bf16.msra.mxu1 %v12258_v29  ;;  %v12312_v28 = vld [vmem:[%s12598_s6 + $0x1888] ss:$52 sps:$4 sm:$0xff]   ;;  %v12317_v29 = vld [vmem:[%s12598_s6 + $0x18ec] ss:$52 sps:$4 sm:$0xff]  }
 0x366   : > { %7709 = vmatprep.subr.bf16.mxu0 %v12263_v10  ;;  %7914 = vmatprep.subr.bf16.mxu1 %v12266_v31  ;;  %v12320_v10 = vld [vmem:[%s12598_s6 + $0x18f4] ss:$52 sps:$4 sm:$0xff]  }
 0x367   : > { %v12315_v31 = vld [vmem:[%s12598_s6 + $0x18e8] ss:$52 sps:$4 sm:$0xff]  }
 0x369   : > { %7710 = vmatpush1.bf16.msra.mxu0 %v12261_v32  ;;  %7915 = vmatpush1.bf16.msra.mxu1 %v12264_v27  ;;  %v12318_v32 = vld [vmem:[%s12598_s6 + $0x18f0] ss:$52 sps:$4 sm:$0xff]   ;;  %v12323_v27 = vld [vmem:[%s12598_s6 + $0x1954] ss:$52 sps:$4 sm:$0xff]  }
 0x36a   : > { %7711 = vmatprep.subr.bf16.mxu0 %v12269_v34  ;;  %7916 = vmatprep.subr.bf16.mxu1 %v12272_v36  ;;  %v12326_v34 = vld [vmem:[%s12598_s6 + $0x195c] ss:$52 sps:$4 sm:$0xff]  }
 0x36b   : > { %v7366_v42 = vpop.f32.mrb[4].mxu0  ;;  %v7571_v43 = vpop.f32.mrb[4].mxu1  ;;  %v12321_v36 = vld [vmem:[%s12598_s6 + $0x1950] ss:$52 sps:$4 sm:$0xff]  }
 0x36c   : > { %v7368_v30 = vpop.f32.mrb[5].mxu0  ;;  %v7573_v46 = vpop.f32.mrb[5].mxu1 }
 0x36d   : > { %v8218_v47 = vcombine.low %v7366_v42, %v7368_v30  ;;  %v8219_v49 = vcombine.low %v7571_v43, %v7573_v46  ;;  %v7370_v51 = vpop.f32.mrb[6].mxu0  ;;  %v7575_v52 = vpop.f32.mrb[6].mxu1  ;;  %7712 = vmatpush1.bf16.msra.mxu0 %v12267_v37  ;;  %7917 = vmatpush1.bf16.msra.mxu1 %v12270_v38  ;;  %v12324_v37 = vld [vmem:[%s12598_s6 + $0x1958] ss:$52 sps:$4 sm:$0xff]   ;;  %v12329_v38 = vld [vmem:[%s12598_s6 + $0x19bc] ss:$52 sps:$4 sm:$0xff]  }
 0x36e   : > { %v7371_v56 = vpop.f32.mrb[7].mxu0  ;;  %v7576_v57 = vpop.f32.mrb[7].mxu1  ;;  %7713 = vmatprep.subr.bf16.mxu0 %v12275_v40  ;;  %7918 = vmatprep.subr.bf16.mxu1 %v12278_v41  ;;  %v12332_v40 = vld [vmem:[%s12598_s6 + $0x19c4] ss:$52 sps:$4 sm:$0xff]   ;;  %v12330_v42 = vld [vmem:[%s12598_s6 + $0x19c0] ss:$52 sps:$4 sm:$0xff]  }
 0x36f   : > { %v8226_v33 = vrot.slane %v8218_v47, %v12648_v50  ;;  %v8233_v62 = vrot.slane %v8219_v49, %v12648_v50  ;;  %v12327_v41 = vld [vmem:[%s12598_s6 + $0x19b8] ss:$52 sps:$4 sm:$0xff]   ;;  %v12333_v46 = vld [vmem:[%s12598_s6 + $0x1a20] ss:$52 sps:$4 sm:$0xff]   ;;  %v12336_v47 = vld [vmem:[%s12598_s6 + $0x1a28] ss:$52 sps:$4 sm:$0xff]  }
 0x370   : > { %v12335_v43 = vld [vmem:[%s12598_s6 + $0x1a24] ss:$52 sps:$4 sm:$0xff]   ;;  %v12338_v30 = vld [vmem:[%s12598_s6 + $0x1a2c] ss:$52 sps:$4 sm:$0xff]   ;;  %v12344_v51 = vld [vmem:[%s12598_s6 + $0x1a94] ss:$52 sps:$4 sm:$0xff]  }
 0x371   : > { %v8234_v0 = vcombine.low %v8226_v33, %v8233_v62  ;;  %7714 = vmatpush1.bf16.msra.mxu0 %v12273_v53  ;;  %7919 = vmatpush1.bf16.msra.mxu1 %v12276_v54  ;;  %v12341_v49 = vld [vmem:[%s12598_s6 + $0x1a8c] ss:$52 sps:$4 sm:$0xff]   ;;  %v12339_v52 = vld [vmem:[%s12598_s6 + $0x1a88] ss:$52 sps:$4 sm:$0xff]   ;;  %v12342_v53 = vld [vmem:[%s12598_s6 + $0x1a90] ss:$52 sps:$4 sm:$0xff]  }
 0x372   : > { %7715 = vmatprep.subr.bf16.mxu0 %v12281_v58  ;;  %7920 = vmatprep.subr.bf16.mxu1 %v12284_v60  ;;  %v12347_v54 = vld [vmem:[%s12598_s6 + $0x1af4] ss:$52 sps:$4 sm:$0xff]   ;;  %v12350_v56 = vld [vmem:[%s12598_s6 + $0x1afc] ss:$52 sps:$4 sm:$0xff]   ;;  %v12348_v58 = vld [vmem:[%s12598_s6 + $0x1af8] ss:$52 sps:$4 sm:$0xff]  }
 0x373   : > { %v8264_v6 = vadd.f32 %v8234_v0, %v287_v63  ;;  %v12345_v57 = vld [vmem:[%s12598_s6 + $0x1af0] ss:$52 sps:$4 sm:$0xff]   ;;  %v12351_v62 = vld [vmem:[%s12598_s6 + $0x1b58] ss:$52 sps:$4 sm:$0xff]   ;;  %v12354_v63 = vld [vmem:[%s12598_s6 + $0x1b60] ss:$52 sps:$4 sm:$0xff]  }
 0x374   : > { %v12353_v60 = vld [vmem:[%s12598_s6 + $0x1b5c] ss:$52 sps:$4 sm:$0xff]   ;;  %v12356_v33 = vld [vmem:[%s12598_s6 + $0x1b64] ss:$52 sps:$4 sm:$0xff]  }
 0x375   : > { %8268 = vst [vmem:[#allocation2 + $0x8] sm:$0xff] %v8264_v6  ;;  %7716 = vmatpush1.bf16.msra.mxu0 %v12279_v1  ;;  %7921 = vmatpush1.bf16.msra.mxu1 %v12282_v2  ;;  %v12359_v0 = vld [vmem:[%s12598_s6 + $0x1bc4] ss:$52 sps:$4 sm:$0xff]   ;;  %v12362_v1 = vld [vmem:[%s12598_s6 + $0x1bcc] ss:$52 sps:$4 sm:$0xff]  }
 0x376   : > { %7717 = vmatprep.subr.bf16.mxu0 %v12287_v3  ;;  %7922 = vmatprep.subr.bf16.mxu1 %v12290_v5  ;;  %v12357_v2 = vld [vmem:[%s12598_s6 + $0x1bc0] ss:$52 sps:$4 sm:$0xff]   ;;  %v12360_v3 = vld [vmem:[%s12598_s6 + $0x1bc8] ss:$52 sps:$4 sm:$0xff]  }
 0x377   : > { %v12365_v5 = vld [vmem:[%s12598_s6 + $0x1c2c] ss:$52 sps:$4 sm:$0xff]   ;;  %v12368_v6 = vld [vmem:[%s12598_s6 + $0x1c34] ss:$52 sps:$4 sm:$0xff]  }
 0x379   : > { %7718 = vmatpush1.bf16.msra.mxu0 %v12285_v7  ;;  %7923 = vmatpush1.bf16.msra.mxu1 %v12288_v8  ;;  %v12363_v7 = vld [vmem:[%s12598_s6 + $0x1c28] ss:$52 sps:$4 sm:$0xff]   ;;  %v12366_v8 = vld [vmem:[%s12598_s6 + $0x1c30] ss:$52 sps:$4 sm:$0xff]  }
 0x37a   : > { %7719 = vmatprep.subr.bf16.mxu0 %v12293_v48  ;;  %7924 = vmatprep.subr.bf16.mxu1 %v12296_v9  ;;  %v12371_v48 = vld [vmem:[%s12598_s6 + $0x1c94] ss:$52 sps:$4 sm:$0xff]   ;;  %v12374_v9 = vld [vmem:[%s12598_s6 + $0x1c9c] ss:$52 sps:$4 sm:$0xff]  }
 0x37d   : > { %7720 = vmatpush1.bf16.msra.mxu0 %v12291_v11  ;;  %7925 = vmatpush1.bf16.msra.mxu1 %v12294_v12  ;;  %v12369_v11 = vld [vmem:[%s12598_s6 + $0x1c90] ss:$52 sps:$4 sm:$0xff]   ;;  %v12372_v12 = vld [vmem:[%s12598_s6 + $0x1c98] ss:$52 sps:$4 sm:$0xff]  }
 0x37e   : > { %7721 = vmatprep.subr.bf16.mxu0 %v12299_v13  ;;  %7926 = vmatprep.subr.bf16.mxu1 %v12302_v14  ;;  %v12377_v13 = vld [vmem:[%s12598_s6 + $0x1cfc] ss:$52 sps:$4 sm:$0xff]   ;;  %v12380_v14 = vld [vmem:[%s12598_s6 + $0x1d04] ss:$52 sps:$4 sm:$0xff]  }
 0x381   : > { %7722 = vmatpush1.bf16.msra.mxu0 %v12297_v15  ;;  %7927 = vmatpush1.bf16.msra.mxu1 %v12300_v16  ;;  %v12375_v15 = vld [vmem:[%s12598_s6 + $0x1cf8] ss:$52 sps:$4 sm:$0xff]   ;;  %v12378_v16 = vld [vmem:[%s12598_s6 + $0x1d00] ss:$52 sps:$4 sm:$0xff]  }
 0x382   : > { %7723 = vmatprep.subr.bf16.mxu0 %v12305_v18  ;;  %7928 = vmatprep.subr.bf16.mxu1 %v12308_v19  ;;  %v12383_v18 = vld [vmem:[%s12598_s6 + $0x1d64] ss:$52 sps:$4 sm:$0xff]   ;;  %v12386_v19 = vld [vmem:[%s12598_s6 + $0x1d6c] ss:$52 sps:$4 sm:$0xff]  }
 0x385   : > { %7724 = vmatpush1.bf16.msra.mxu0 %v12303_v20  ;;  %7929 = vmatpush1.bf16.msra.mxu1 %v12306_v22  ;;  %v12381_v20 = vld [vmem:[%s12598_s6 + $0x1d60] ss:$52 sps:$4 sm:$0xff]   ;;  %v12384_v22 = vld [vmem:[%s12598_s6 + $0x1d68] ss:$52 sps:$4 sm:$0xff]  }
 0x386   : > { %7725 = vmatprep.subr.bf16.mxu0 %v12311_v23  ;;  %7930 = vmatprep.subr.bf16.mxu1 %v12314_v24  ;;  %v12389_v23 = vld [vmem:[%s12598_s6 + $0x1dcc] ss:$52 sps:$4 sm:$0xff]   ;;  %v12392_v24 = vld [vmem:[%s12598_s6 + $0x1dd4] ss:$52 sps:$4 sm:$0xff]  }
 0x389   : > { %7726 = vmatpush1.bf16.msra.mxu0 %v12309_v26  ;;  %7931 = vmatpush1.bf16.msra.mxu1 %v12312_v28  ;;  %v12387_v26 = vld [vmem:[%s12598_s6 + $0x1dc8] ss:$52 sps:$4 sm:$0xff]   ;;  %v12390_v28 = vld [vmem:[%s12598_s6 + $0x1dd0] ss:$52 sps:$4 sm:$0xff]  }
 0x38a   : > { %7727 = vmatprep.subr.bf16.mxu0 %v12317_v29  ;;  %7932 = vmatprep.subr.bf16.mxu1 %v12320_v10  ;;  %v12395_v29 = vld [vmem:[%s12598_s6 + $0x1e34] ss:$52 sps:$4 sm:$0xff]   ;;  %v12398_v10 = vld [vmem:[%s12598_s6 + $0x1e3c] ss:$52 sps:$4 sm:$0xff]  }
 0x38d   : > { %7728 = vmatpush1.bf16.msra.mxu0 %v12315_v31  ;;  %7933 = vmatpush1.bf16.msra.mxu1 %v12318_v32  ;;  %v12393_v31 = vld [vmem:[%s12598_s6 + $0x1e30] ss:$52 sps:$4 sm:$0xff]   ;;  %v12396_v32 = vld [vmem:[%s12598_s6 + $0x1e38] ss:$52 sps:$4 sm:$0xff]  }
 0x38e   : > { %7729 = vmatprep.subr.bf16.mxu0 %v12323_v27  ;;  %7934 = vmatprep.subr.bf16.mxu1 %v12326_v34  ;;  %v12401_v27 = vld [vmem:[%s12598_s6 + $0x1e9c] ss:$52 sps:$4 sm:$0xff]   ;;  %v12404_v34 = vld [vmem:[%s12598_s6 + $0x1ea4] ss:$52 sps:$4 sm:$0xff]  }
 0x391   : > { %7730 = vmatpush1.bf16.msra.mxu0 %v12321_v36  ;;  %7935 = vmatpush1.bf16.msra.mxu1 %v12324_v37  ;;  %v12399_v36 = vld [vmem:[%s12598_s6 + $0x1e98] ss:$52 sps:$4 sm:$0xff]   ;;  %v12402_v37 = vld [vmem:[%s12598_s6 + $0x1ea0] ss:$52 sps:$4 sm:$0xff]  }
 0x392   : > { %7731 = vmatprep.subr.bf16.mxu0 %v12329_v38  ;;  %7936 = vmatprep.subr.bf16.mxu1 %v12332_v40  ;;  %v12407_v38 = vld [vmem:[%s12598_s6 + $0x1f04] ss:$52 sps:$4 sm:$0xff]   ;;  %v12410_v40 = vld [vmem:[%s12598_s6 + $0x1f0c] ss:$52 sps:$4 sm:$0xff]  }
 0x395   : > { %7732 = vmatpush1.bf16.msra.mxu0 %v12327_v41  ;;  %7937 = vmatpush1.bf16.msra.mxu1 %v12330_v42  ;;  %v12405_v41 = vld [vmem:[%s12598_s6 + $0x1f00] ss:$52 sps:$4 sm:$0xff]   ;;  %v12408_v42 = vld [vmem:[%s12598_s6 + $0x1f08] ss:$52 sps:$4 sm:$0xff]  }
 0x396   : > { %7742 = vmatprep.subr.bf16.mxu0 %v12335_v43  ;;  %7947 = vmatprep.subr.bf16.mxu1 %v12338_v30  ;;  %v12413_v43 = vld [vmem:[%s12598_s6 + $0x1f6c] ss:$52 sps:$4 sm:$0xff]   ;;  %v12416_v30 = vld [vmem:[%s12598_s6 + $0x1f74] ss:$52 sps:$4 sm:$0xff]  }
 0x398   : > { %7734 = vmatmul.mubr.bf16.vlgmr.msra.gmra.mrb[8].mxu0 %v12927_v55  ;;  %7939 = vmatmul.mubr.bf16.vlgmr.msra.gmra.mrb[8].mxu1 %v12927_v55 }
 0x399   : > { %7743 = vmatpush1.bf16.msra.mxu0 %v12333_v46  ;;  %7948 = vmatpush1.bf16.msra.mxu1 %v12336_v47  ;;  %v12411_v46 = vld [vmem:[%s12598_s6 + $0x1f68] ss:$52 sps:$4 sm:$0xff]   ;;  %v12414_v47 = vld [vmem:[%s12598_s6 + $0x1f70] ss:$52 sps:$4 sm:$0xff]  }
 0x39a   : > { %7744 = vmatprep.subr.bf16.mxu0 %v12341_v49  ;;  %7949 = vmatprep.subr.bf16.mxu1 %v12344_v51  ;;  %v12419_v49 = vld [vmem:[%s12598_s6 + $0x1fd4] ss:$52 sps:$4 sm:$0xff]   ;;  %v12422_v51 = vld [vmem:[%s12598_s6 + $0x1fdc] ss:$52 sps:$4 sm:$0xff]  }
 0x39b   : > { %7774 = vmatprep.mubr.bf16.mxu0 %v12932_v59  ;;  %7979 = vmatprep.mubr.bf16.mxu1 %v12932_v59 }
 0x39d   : > { %7745 = vmatpush1.bf16.msra.mxu0 %v12339_v52  ;;  %7950 = vmatpush1.bf16.msra.mxu1 %v12342_v53  ;;  %v12417_v52 = vld [vmem:[%s12598_s6 + $0x1fd0] ss:$52 sps:$4 sm:$0xff]   ;;  %v12420_v53 = vld [vmem:[%s12598_s6 + $0x1fd8] ss:$52 sps:$4 sm:$0xff]  }
 0x39e   : > { %7746 = vmatprep.subr.bf16.mxu0 %v12347_v54  ;;  %7951 = vmatprep.subr.bf16.mxu1 %v12350_v56  ;;  %v12425_v54 = vld [vmem:[%s12598_s6 + $0x203c] ss:$52 sps:$4 sm:$0xff]   ;;  %v12428_v56 = vld [vmem:[%s12598_s6 + $0x2044] ss:$52 sps:$4 sm:$0xff]  }
 0x3a1   : > { %7747 = vmatpush1.bf16.msra.mxu0 %v12345_v57  ;;  %7952 = vmatpush1.bf16.msra.mxu1 %v12348_v58  ;;  %v12423_v57 = vld [vmem:[%s12598_s6 + $0x2038] ss:$52 sps:$4 sm:$0xff]   ;;  %v12426_v58 = vld [vmem:[%s12598_s6 + $0x2040] ss:$52 sps:$4 sm:$0xff]  }
 0x3a2   : > { %7748 = vmatprep.subr.bf16.mxu0 %v12353_v60  ;;  %7953 = vmatprep.subr.bf16.mxu1 %v12356_v33  ;;  %v12429_v60 = vld [vmem:[%s12598_s6 + $0x370] ss:$52 sps:$4 sm:$0xff]  }
 0x3a3   : > { %v12430_v33 = vld [vmem:[%s12598_s6 + $0x9f0] ss:$52 sps:$4 sm:$0xff]  }
 0x3a5   : > { %7749 = vmatpush1.bf16.msra.mxu0 %v12351_v62  ;;  %7954 = vmatpush1.bf16.msra.mxu1 %v12354_v63  ;;  %v12431_v62 = vld [vmem:[%s12598_s6 + $0x30] ss:$52 sps:$4 sm:$0xff]  }
 0x3a6   : > { %7750 = vmatprep.subr.bf16.mxu0 %v12359_v0  ;;  %7955 = vmatprep.subr.bf16.mxu1 %v12362_v1  ;;  %v12432_v63 = vld [vmem:[%s12598_s6 + $0x6b0] ss:$52 sps:$4 sm:$0xff]   ;;  %v12433_v0 = vld [vmem:[%s12598_s6 + $0x3d8] ss:$52 sps:$4 sm:$0xff]  }
 0x3a7   : > { %v12434_v1 = vld [vmem:[%s12598_s6 + $0xa58] ss:$52 sps:$4 sm:$0xff]  }
 0x3a9   : > { %7751 = vmatpush1.bf16.msra.mxu0 %v12357_v2  ;;  %7956 = vmatpush1.bf16.msra.mxu1 %v12360_v3  ;;  %v12435_v2 = vld [vmem:[%s12598_s6 + $0x98] ss:$52 sps:$4 sm:$0xff]  }
 0x3aa   : > { %7752 = vmatprep.subr.bf16.mxu0 %v12365_v5  ;;  %7957 = vmatprep.subr.bf16.mxu1 %v12368_v6  ;;  %v12436_v3 = vld [vmem:[%s12598_s6 + $0x718] ss:$52 sps:$4 sm:$0xff]   ;;  %v12437_v5 = vld [vmem:[%s12598_s6 + $0x440] ss:$52 sps:$4 sm:$0xff]  }
 0x3ab   : > { %v12438_v6 = vld [vmem:[%s12598_s6 + $0xac0] ss:$52 sps:$4 sm:$0xff]  }
 0x3ad   : > { %7753 = vmatpush1.bf16.msra.mxu0 %v12363_v7  ;;  %7958 = vmatpush1.bf16.msra.mxu1 %v12366_v8  ;;  %v12439_v7 = vld [vmem:[%s12598_s6 + $0x100] ss:$52 sps:$4 sm:$0xff]  }
 0x3ae   : > { %7754 = vmatprep.subr.bf16.mxu0 %v12371_v48  ;;  %7959 = vmatprep.subr.bf16.mxu1 %v12374_v9  ;;  %v12440_v8 = vld [vmem:[%s12598_s6 + $0x780] ss:$52 sps:$4 sm:$0xff]   ;;  %v12441_v48 = vld [vmem:[%s12598_s6 + $0x4a8] ss:$52 sps:$4 sm:$0xff]  }
 0x3af   : > { %v12442_v9 = vld [vmem:[%s12598_s6 + $0xb28] ss:$52 sps:$4 sm:$0xff]  }
 0x3b1   : > { %7755 = vmatpush1.bf16.msra.mxu0 %v12369_v11  ;;  %7960 = vmatpush1.bf16.msra.mxu1 %v12372_v12  ;;  %v12443_v11 = vld [vmem:[%s12598_s6 + $0x168] ss:$52 sps:$4 sm:$0xff]   ;;  %v12446_v12 = vld [vmem:[%s12598_s6 + $0xb90] ss:$52 sps:$4 sm:$0xff]  }
 0x3b2   : > { %7756 = vmatprep.subr.bf16.mxu0 %v12377_v13  ;;  %7961 = vmatprep.subr.bf16.mxu1 %v12380_v14  ;;  %v12447_v13 = vld [vmem:[%s12598_s6 + $0x1d0] ss:$52 sps:$4 sm:$0xff]  }
 0x3b3   : > { %v12448_v14 = vld [vmem:[%s12598_s6 + $0x850] ss:$52 sps:$4 sm:$0xff]  }
 0x3b5   : > { %7757 = vmatpush1.bf16.msra.mxu0 %v12375_v15  ;;  %7962 = vmatpush1.bf16.msra.mxu1 %v12378_v16  ;;  %v12449_v15 = vld [vmem:[%s12598_s6 + $0x578] ss:$52 sps:$4 sm:$0xff]  }
 0x3b6   : > { %7758 = vmatprep.subr.bf16.mxu0 %v12383_v18  ;;  %7963 = vmatprep.subr.bf16.mxu1 %v12386_v19  ;;  %v12450_v16 = vld [vmem:[%s12598_s6 + $0xbf8] ss:$52 sps:$4 sm:$0xff]  }
 0x3b7   : > { %v12451_v18 = vld [vmem:[%s12598_s6 + $0x238] ss:$52 sps:$4 sm:$0xff]  }
 0x3b8   : > { %v12452_v19 = vld [vmem:[%s12598_s6 + $0x8b8] ss:$52 sps:$4 sm:$0xff]  }
 0x3b9   : > { %7759 = vmatpush1.bf16.msra.mxu0 %v12381_v20  ;;  %7964 = vmatpush1.bf16.msra.mxu1 %v12384_v22  ;;  %v12453_v20 = vld [vmem:[%s12598_s6 + $0x5e0] ss:$52 sps:$4 sm:$0xff]  }
 0x3ba   : > { %7760 = vmatprep.subr.bf16.mxu0 %v12389_v23  ;;  %7965 = vmatprep.subr.bf16.mxu1 %v12392_v24  ;;  %v12454_v22 = vld [vmem:[%s12598_s6 + $0xc60] ss:$52 sps:$4 sm:$0xff]  }
 0x3bb   : > { %v12455_v23 = vld [vmem:[%s12598_s6 + $0x2a0] ss:$52 sps:$4 sm:$0xff]  }
 0x3bc   : > { %v12456_v24 = vld [vmem:[%s12598_s6 + $0x920] ss:$52 sps:$4 sm:$0xff]  }
 0x3bd   : > { %7761 = vmatpush1.bf16.msra.mxu0 %v12387_v26  ;;  %7966 = vmatpush1.bf16.msra.mxu1 %v12390_v28  ;;  %v12457_v26 = vld [vmem:[%s12598_s6 + $0x648] ss:$52 sps:$4 sm:$0xff]  }
 0x3be   : > { %7762 = vmatprep.subr.bf16.mxu0 %v12395_v29  ;;  %7967 = vmatprep.subr.bf16.mxu1 %v12398_v10  ;;  %v12458_v28 = vld [vmem:[%s12598_s6 + $0xcc8] ss:$52 sps:$4 sm:$0xff]  }
 0x3bf   : > { %v12459_v29 = vld [vmem:[%s12598_s6 + $0x308] ss:$52 sps:$4 sm:$0xff]  }
 0x3c0   : > { %v12460_v10 = vld [vmem:[%s12598_s6 + $0x988] ss:$52 sps:$4 sm:$0xff]  }
 0x3c1   : > { %7763 = vmatpush1.bf16.msra.mxu0 %v12393_v31  ;;  %7968 = vmatpush1.bf16.msra.mxu1 %v12396_v32  ;;  %v12461_v31 = vld [vmem:[%s12598_s6 + $0x1070] ss:$52 sps:$4 sm:$0xff]  }
 0x3c2   : > { %7764 = vmatprep.subr.bf16.mxu0 %v12401_v27  ;;  %7969 = vmatprep.subr.bf16.mxu1 %v12404_v34  ;;  %v12463_v32 = vld [vmem:[%s12598_s6 + $0x16f0] ss:$52 sps:$4 sm:$0xff]  }
 0x3c3   : > { %v12462_v27 = vld [vmem:[%s12598_s6 + $0xd30] ss:$52 sps:$4 sm:$0xff]  }
 0x3c4   : > { %v12464_v34 = vld [vmem:[%s12598_s6 + $0x13b0] ss:$52 sps:$4 sm:$0xff]  }
 0x3c5   : > { %7765 = vmatpush1.bf16.msra.mxu0 %v12399_v36  ;;  %7970 = vmatpush1.bf16.msra.mxu1 %v12402_v37  ;;  %v12465_v36 = vld [vmem:[%s12598_s6 + $0x10d8] ss:$52 sps:$4 sm:$0xff]  }
 0x3c6   : > { %7766 = vmatprep.subr.bf16.mxu0 %v12407_v38  ;;  %7971 = vmatprep.subr.bf16.mxu1 %v12410_v40  ;;  %v12467_v37 = vld [vmem:[%s12598_s6 + $0x1758] ss:$52 sps:$4 sm:$0xff]  }
 0x3c7   : > { %v12466_v38 = vld [vmem:[%s12598_s6 + $0xd98] ss:$52 sps:$4 sm:$0xff]  }
 0x3c8   : > { %v12468_v40 = vld [vmem:[%s12598_s6 + $0x1418] ss:$52 sps:$4 sm:$0xff]  }
 0x3c9   : > { %7767 = vmatpush1.bf16.msra.mxu0 %v12405_v41  ;;  %7972 = vmatpush1.bf16.msra.mxu1 %v12408_v42  ;;  %v12469_v41 = vld [vmem:[%s12598_s6 + $0x1140] ss:$52 sps:$4 sm:$0xff]  }
 0x3ca   : > { %7768 = vmatprep.subr.bf16.mxu0 %v12413_v43  ;;  %7973 = vmatprep.subr.bf16.mxu1 %v12416_v30  ;;  %v12471_v42 = vld [vmem:[%s12598_s6 + $0x17c0] ss:$52 sps:$4 sm:$0xff]   ;;  %v12473_v43 = vld [vmem:[%s12598_s6 + $0x11a8] ss:$52 sps:$4 sm:$0xff]  }
 0x3cb   : > { %v12475_v30 = vld [vmem:[%s12598_s6 + $0x1828] ss:$52 sps:$4 sm:$0xff]  }
 0x3cd   : > { %7769 = vmatpush1.bf16.msra.mxu0 %v12411_v46  ;;  %7974 = vmatpush1.bf16.msra.mxu1 %v12414_v47  ;;  %v12474_v46 = vld [vmem:[%s12598_s6 + $0xe68] ss:$52 sps:$4 sm:$0xff]   ;;  %v12479_v47 = vld [vmem:[%s12598_s6 + $0x1890] ss:$52 sps:$4 sm:$0xff]  }
 0x3ce   : > { %7770 = vmatprep.subr.bf16.mxu0 %v12419_v49  ;;  %7975 = vmatprep.subr.bf16.mxu1 %v12422_v51  ;;  %v12478_v49 = vld [vmem:[%s12598_s6 + $0xed0] ss:$52 sps:$4 sm:$0xff]  }
 0x3cf   : > { %v12480_v51 = vld [vmem:[%s12598_s6 + $0x1550] ss:$52 sps:$4 sm:$0xff]  }
 0x3d1   : > { %7771 = vmatpush1.bf16.msra.mxu0 %v12417_v52  ;;  %7976 = vmatpush1.bf16.msra.mxu1 %v12420_v53  ;;  %v12481_v52 = vld [vmem:[%s12598_s6 + $0x1278] ss:$52 sps:$4 sm:$0xff]  }
 0x3d2   : > { %7772 = vmatprep.subr.bf16.mxu0 %v12425_v54  ;;  %7977 = vmatprep.subr.bf16.mxu1 %v12428_v56  ;;  %v12483_v53 = vld [vmem:[%s12598_s6 + $0x18f8] ss:$52 sps:$4 sm:$0xff]  }
 0x3d3   : > { %v12482_v54 = vld [vmem:[%s12598_s6 + $0xf38] ss:$52 sps:$4 sm:$0xff]  }
 0x3d4   : > { %v12484_v56 = vld [vmem:[%s12598_s6 + $0x15b8] ss:$52 sps:$4 sm:$0xff]  }
 0x3d5   : > { %7773 = vmatpush1.bf16.msra.mxu0 %v12423_v57  ;;  %7978 = vmatpush1.bf16.msra.mxu1 %v12426_v58  ;;  %v12485_v57 = vld [vmem:[%s12598_s6 + $0x12e0] ss:$52 sps:$4 sm:$0xff]  }
 0x3d6   : > { %10309 = vmatprep.subr.bf16.mxu0 %v12429_v60  ;;  %10331 = vmatprep.subr.bf16.mxu1 %v12430_v33  ;;  %v12487_v58 = vld [vmem:[%s12598_s6 + $0x1960] ss:$52 sps:$4 sm:$0xff]  }
 0x3d7   : > { %v12486_v60 = vld [vmem:[%s12598_s6 + $0xfa0] ss:$52 sps:$4 sm:$0xff]  }
 0x3d8   : > { %7775 = vmatmul.mubr.bf16.vlgmr.msra.gmra.mrb[8].mxu0 %v13000_v4  ;;  %7980 = vmatmul.mubr.bf16.vlgmr.msra.gmra.mrb[8].mxu1 %v13000_v4  ;;  %v12488_v33 = vld [vmem:[%s12598_s6 + $0x1620] ss:$52 sps:$4 sm:$0xff]  }
 0x3d9   : > { %10310 = vmatpush3.bf16.msra.mxu0 %v12431_v62  ;;  %10332 = vmatpush3.bf16.msra.mxu1 %v12432_v63  ;;  %v12489_v62 = vld [vmem:[%s12598_s6 + $0x1348] ss:$52 sps:$4 sm:$0xff]  }
 0x3da   : > { %10311 = vmatprep.subr.bf16.mxu0 %v12433_v0  ;;  %10333 = vmatprep.subr.bf16.mxu1 %v12434_v1  ;;  %v12491_v63 = vld [vmem:[%s12598_s6 + $0x19c8] ss:$52 sps:$4 sm:$0xff]  }
 0x3db   : > { %8020 = vmatprep.mubr.bf16.mxu0 %v12659_v61  ;;  %8060 = vmatprep.mubr.bf16.mxu1 %v12689_v21  ;;  %v12444_v61 = vld [vmem:[%s12598_s6 + $0x7e8] ss:$52 sps:$4 sm:$0xff]   ;;  %v12445_v21 = vld [vmem:[%s12598_s6 + $0x510] ss:$52 sps:$4 sm:$0xff]  }
 0x3dc   : > { %v12490_v0 = vld [vmem:[%s12598_s6 + $0x1008] ss:$52 sps:$4 sm:$0xff]  }
 0x3dd   : > { %10312 = vmatpush3.bf16.msra.mxu0 %v12435_v2  ;;  %10334 = vmatpush3.bf16.msra.mxu1 %v12436_v3  ;;  %v12492_v1 = vld [vmem:[%s12598_s6 + $0x1688] ss:$52 sps:$4 sm:$0xff]   ;;  %v12493_v2 = vld [vmem:[%s12598_s6 + $0x1d70] ss:$52 sps:$4 sm:$0xff]  }
 0x3de   : > { %10313 = vmatprep.subr.bf16.mxu0 %v12437_v5  ;;  %10335 = vmatprep.subr.bf16.mxu1 %v12438_v6  ;;  %v12494_v3 = vld [vmem:[%s12598_s6 + $0x1a30] ss:$52 sps:$4 sm:$0xff]   ;;  %v12495_v5 = vld [vmem:[%s12598_s6 + $0x1dd8] ss:$52 sps:$4 sm:$0xff]  }
 0x3df   : > { %v12496_v6 = vld [vmem:[%s12598_s6 + $0x1a98] ss:$52 sps:$4 sm:$0xff]  }
 0x3e1   : > { %10314 = vmatpush3.bf16.msra.mxu0 %v12439_v7  ;;  %10336 = vmatpush3.bf16.msra.mxu1 %v12440_v8  ;;  %v12497_v7 = vld [vmem:[%s12598_s6 + $0x1e40] ss:$52 sps:$4 sm:$0xff]  }
 0x3e2   : > { %10315 = vmatprep.subr.bf16.mxu0 %v12441_v48  ;;  %10337 = vmatprep.subr.bf16.mxu1 %v12442_v9  ;;  %v12498_v8 = vld [vmem:[%s12598_s6 + $0x1b00] ss:$52 sps:$4 sm:$0xff]   ;;  %v12499_v48 = vld [vmem:[%s12598_s6 + $0x1ea8] ss:$52 sps:$4 sm:$0xff]   ;;  %v12502_v9 = vld [vmem:[%s12598_s6 + $0x1bd0] ss:$52 sps:$4 sm:$0xff]  }
 0x3e5   : > { %10316 = vmatpush3.bf16.msra.mxu0 %v12443_v11  ;;  %10338 = vmatpush3.bf16.msra.mxu1 %v12444_v61  ;;  %v12503_v11 = vld [vmem:[%s12598_s6 + $0x1f78] ss:$52 sps:$4 sm:$0xff]   ;;  %v12505_v61 = vld [vmem:[%s12598_s6 + $0x1fe0] ss:$52 sps:$4 sm:$0xff]  }
 0x3e6   : > { %10317 = vmatprep.subr.bf16.mxu0 %v12445_v21  ;;  %10339 = vmatprep.subr.bf16.mxu1 %v12446_v12  ;;  %v12506_v21 = vld [vmem:[%s12598_s6 + $0x1ca0] ss:$52 sps:$4 sm:$0xff]   ;;  %v12507_v12 = vld [vmem:[%s12598_s6 + $0x2048] ss:$52 sps:$4 sm:$0xff]  }
 0x3e9   : > { %10318 = vmatpush3.bf16.msra.mxu0 %v12447_v13  ;;  %10340 = vmatpush3.bf16.msra.mxu1 %v12448_v14  ;;  %v12508_v13 = vld [vmem:[%s12598_s6 + $0x1d08] ss:$52 sps:$4 sm:$0xff]  }
 0x3ea   : > { %10319 = vmatprep.subr.bf16.mxu0 %v12449_v15  ;;  %10341 = vmatprep.subr.bf16.mxu1 %v12450_v16 }
 0x3ed   : > { %10320 = vmatpush3.bf16.msra.mxu0 %v12451_v18  ;;  %10342 = vmatpush3.bf16.msra.mxu1 %v12452_v19 }
 0x3ee   : > { %10321 = vmatprep.subr.bf16.mxu0 %v12453_v20  ;;  %10343 = vmatprep.subr.bf16.mxu1 %v12454_v22 }
 0x3f1   : > { %10322 = vmatpush3.bf16.msra.mxu0 %v12455_v23  ;;  %10344 = vmatpush3.bf16.msra.mxu1 %v12456_v24 }
 0x3f2   : > { %10323 = vmatprep.subr.bf16.mxu0 %v12457_v26  ;;  %10345 = vmatprep.subr.bf16.mxu1 %v12458_v28 }
 0x3f5   : > { %10324 = vmatpush3.bf16.msra.mxu0 %v12459_v29  ;;  %10346 = vmatpush3.bf16.msra.mxu1 %v12460_v10  ;;  %v288_v10 = vld [vmem:[#allocation2 + $0x10] sm:$0xff] }
 0x3f6   : > { %10353 = vmatprep.subr.bf16.mxu0 %v12461_v31  ;;  %10375 = vmatprep.subr.bf16.mxu1 %v12463_v32 }
 0x3f8   : > { %8021 = vmatmul.mubr.bf16.vlgmr.msra.gmra.mrb[12].mxu0 %v12684_v17  ;;  %8061 = vmatmul.mubr.bf16.vlgmr.msra.gmra.mrb[12].mxu1 %v12758_v25  ;;  %v12470_v17 = vld [vmem:[%s12598_s6 + $0xe00] ss:$52 sps:$4 sm:$0xff]  }
 0x3f9   : > { %10354 = vmatpush3.bf16.msra.mxu0 %v12462_v27  ;;  %10376 = vmatpush3.bf16.msra.mxu1 %v12464_v34  ;;  %v12472_v25 = vld [vmem:[%s12598_s6 + $0x1480] ss:$52 sps:$4 sm:$0xff]  }
 0x3fa   : > { %10355 = vmatprep.subr.bf16.mxu0 %v12465_v36  ;;  %10377 = vmatprep.subr.bf16.mxu1 %v12467_v37 }
 0x3fb   : > { %8100 = vmatprep.mubr.bf16.mxu0 %v12778_v35  ;;  %8140 = vmatprep.mubr.bf16.mxu1 %v12853_v45  ;;  %v12476_v35 = vld [vmem:[%s12598_s6 + $0x14e8] ss:$52 sps:$4 sm:$0xff]   ;;  %v12477_v45 = vld [vmem:[%s12598_s6 + $0x1210] ss:$52 sps:$4 sm:$0xff]  }
 0x3fd   : > { %10356 = vmatpush3.bf16.msra.mxu0 %v12466_v38  ;;  %10378 = vmatpush3.bf16.msra.mxu1 %v12468_v40 }
 0x3fe   : > { %10357 = vmatprep.subr.bf16.mxu0 %v12469_v41  ;;  %10379 = vmatprep.subr.bf16.mxu1 %v12471_v42 }
 0x401   : > { %10358 = vmatpush3.bf16.msra.mxu0 %v12470_v17  ;;  %10380 = vmatpush3.bf16.msra.mxu1 %v12472_v25 }
 0x402   : > { %10359 = vmatprep.subr.bf16.mxu0 %v12473_v43  ;;  %10381 = vmatprep.subr.bf16.mxu1 %v12475_v30 }
 0x405   : > { %10360 = vmatpush3.bf16.msra.mxu0 %v12474_v46  ;;  %10382 = vmatpush3.bf16.msra.mxu1 %v12476_v35 }
 0x406   : > { %10361 = vmatprep.subr.bf16.mxu0 %v12477_v45  ;;  %10383 = vmatprep.subr.bf16.mxu1 %v12479_v47 }
 0x409   : > { %10362 = vmatpush3.bf16.msra.mxu0 %v12478_v49  ;;  %10384 = vmatpush3.bf16.msra.mxu1 %v12480_v51 }
 0x40a   : > { %10363 = vmatprep.subr.bf16.mxu0 %v12481_v52  ;;  %10385 = vmatprep.subr.bf16.mxu1 %v12483_v53 }
 0x40d   : > { %10364 = vmatpush3.bf16.msra.mxu0 %v12482_v54  ;;  %10386 = vmatpush3.bf16.msra.mxu1 %v12484_v56 }
 0x40e   : > { %10365 = vmatprep.subr.bf16.mxu0 %v12485_v57  ;;  %10387 = vmatprep.subr.bf16.mxu1 %v12487_v58 }
 0x411   : > { %10366 = vmatpush3.bf16.msra.mxu0 %v12486_v60  ;;  %10388 = vmatpush3.bf16.msra.mxu1 %v12488_v33 }
 0x412   : > { %10367 = vmatprep.subr.bf16.mxu0 %v12489_v62  ;;  %10389 = vmatprep.subr.bf16.mxu1 %v12491_v63 }
 0x415   : > { %10368 = vmatpush3.bf16.msra.mxu0 %v12490_v0  ;;  %10390 = vmatpush3.bf16.msra.mxu1 %v12492_v1  ;;  %v289_v0 = vld [vmem:[#allocation2 + $0x18] sm:$0x3] }
 0x416   : > { %10397 = vmatprep.subr.bf16.mxu0 %v12493_v2 }
 0x418   : > { %8101 = vmatmul.mubr.bf16.vlgmr.msra.gmra.mrb[16].mxu0 %v12847_v39  ;;  %8141 = vmatmul.mubr.bf16.vlgmr.msra.gmra.mrb[16].mxu1 %v12927_v55  ;;  %v12500_v39 = vld [vmem:[%s12598_s6 + $0x1b68] ss:$52 sps:$4 sm:$0xff]   ;;  %v12501_v55 = vld [vmem:[%s12598_s6 + $0x1f10] ss:$52 sps:$4 sm:$0xff]  }
 0x419   : > { %10398 = vmatpush3.bf16.msra.mxu0 %v12494_v3  ;;  %8180 = vmatprep.mubr.bf16.mxu0 %v12932_v59  ;;  %v12504_v59 = vld [vmem:[%s12598_s6 + $0x1c38] ss:$52 sps:$4 sm:$0xff]   ;;  %v8418_v3 = vld [vmem:[%s14473_s3 + $0x80] sm:$0xff] (!%p10303_p7) }
 0x41a   : > { %10399 = vmatprep.subr.bf16.mxu0 %v12495_v5  ;;  %v8419_v5 = vld [vmem:[%s14473_s3 + $0x88] sm:$0xff] (!%p10303_p7) }
 0x41d   : > { %10400 = vmatpush3.bf16.msra.mxu0 %v12496_v6  ;;  %v8402_v6 = vld [vmem:[%s14473_s3] sm:$0xff] (!%p10303_p7) }
 0x41e   : > { %10401 = vmatprep.subr.bf16.mxu0 %v12497_v7  ;;  %v10657_v7 = vpack.c.bf16 (!%p10303_p7), %v8419_v5, %v8418_v3  ;;  %v8412_v5 = vld [vmem:[%s14473_s3 + $0x50] sm:$0xff] (!%p10303_p7) }
 0x421   : > { %10402 = vmatpush3.bf16.msra.mxu0 %v12498_v8  ;;  %v8403_v8 = vld [vmem:[%s14473_s3 + $0x8] sm:$0xff] (!%p10303_p7) }
 0x422   : > { %10403 = vmatprep.subr.bf16.mxu0 %v12499_v48  ;;  %v8450_v48 = vld [vmem:[%s14473_s3 + $0x180] sm:$0xff] (!%p10303_p7) }
 0x425   : > { %10404 = vmatpush3.bf16.msra.mxu0 %v12500_v39  ;;  %v8451_v39 = vld [vmem:[%s14473_s3 + $0x188] sm:$0xff] (!%p10303_p7) }
 0x426   : > { %10405 = vmatprep.subr.bf16.mxu0 %v12501_v55  ;;  %v10659_v55 = vpack.c.bf16 (!%p10303_p7), %v8403_v8, %v8402_v6  ;;  %v8413_v6 = vld [vmem:[%s14473_s3 + $0x58] sm:$0xff] (!%p10303_p7) }
 0x429   : > { %10406 = vmatpush3.bf16.msra.mxu0 %v12502_v9  ;;  %v10689_v9 = vpack.c.bf16 (!%p10303_p7), %v8451_v39, %v8450_v48  ;;  %v8444_v48 = vld [vmem:[%s14473_s3 + $0x150] sm:$0xff] (!%p10303_p7)  ;;  %v8445_v39 = vld [vmem:[%s14473_s3 + $0x158] sm:$0xff] (!%p10303_p7) }
 0x42a   : > { %10407 = vmatprep.subr.bf16.mxu0 %v12503_v11  ;;  %v8434_v11 = vld [vmem:[%s14473_s3 + $0x100] sm:$0xff] (!%p10303_p7) }
 0x42b   : > { %10690 = vmatprep.subr.bf16.mxu1 (!%p10303_p7), %v10689_v9  ;;  %v8286_v9 = vsub.s32 (!%p10303_p7), 0, %v12640_v44 }
 0x42d   : > { %10408 = vmatpush3.bf16.msra.mxu0 %v12504_v59  ;;  %v8435_v59 = vld [vmem:[%s14473_s3 + $0x108] sm:$0xff] (!%p10303_p7) }
 0x42e   : > { %10409 = vmatprep.subr.bf16.mxu0 %v12505_v61  ;;  %v8420_v61 = vld [vmem:[%s14473_s3 + $0x90] sm:$0xff] (!%p10303_p7) }
 0x431   : > { %10410 = vmatpush3.bf16.msra.mxu0 %v12506_v21  ;;  %v10691_v21 = vpack.c.bf16 (!%p10303_p7), %v8435_v59, %v8434_v11  ;;  %v8431_v59 = vld [vmem:[%s14473_s3 + $0xe8] sm:$0xff] (!%p10303_p7) }
 0x432   : > { %10411 = vmatprep.subr.bf16.mxu0 %v12507_v12  ;;  %v8421_v12 = vld [vmem:[%s14473_s3 + $0x98] sm:$0xff] (!%p10303_p7) }
 0x433   : > { %10692 = vmatpush3.bf16.msra.mxu1 (!%p10303_p7), %v10691_v21  ;;  %v8463_v21 = vld [vmem:[%s14473_s3 + $0x1e8] sm:$0xff] (!%p10303_p7) }
 0x435   : > { %10412 = vmatpush3.bf16.msra.mxu0 %v12508_v13  ;;  %v8404_v13 = vld [vmem:[%s14473_s3 + $0x10] sm:$0xff] (!%p10303_p7) }
 0x436   : > { %10658 = vmatprep.subr.bf16.mxu0 (!%p10303_p7), %v10657_v7 }
 0x438   : > { %8181 = vmatmul.mubr.bf16.vlgmr.msra.gmra.mrb[20].mxu0 %v13000_v4 }
 0x439   : > { %10660 = vmatpush3.bf16.msra.mxu0 (!%p10303_p7), %v10659_v55  ;;  %v8430_v55 = vld [vmem:[%s14473_s3 + $0xe0] sm:$0xff] (!%p10303_p7) }
 0x4ab   : > { %v7776_v14 = vpop.f32.mrb[8].mxu0  ;;  %v7981_v15 = vpop.f32.mrb[8].mxu1 }
 0x4ac   : > { %v7778_v16 = vpop.f32.mrb[9].mxu0  ;;  %v7983_v18 = vpop.f32.mrb[9].mxu1 }
 0x4ad   : > { %v8235_v19 = vcombine.low %v7776_v14, %v7778_v16  ;;  %v8236_v20 = vcombine.low %v7981_v15, %v7983_v18  ;;  %v7780_v22 = vpop.f32.mrb[10].mxu0  ;;  %v7985_v23 = vpop.f32.mrb[10].mxu1  ;;  %v8405_v14 = vld [vmem:[%s14473_s3 + $0x18] sm:$0xff] (!%p10303_p7)  ;;  %v10661_v15 = vpack.c.bf16 (!%p10303_p7), %v8421_v12, %v8420_v61  ;;  %v8452_v18 = vld [vmem:[%s14473_s3 + $0x190] sm:$0xff] (!%p10303_p7)  ;;  %v8462_v61 = vld [vmem:[%s14473_s3 + $0x1e0] sm:$0xff] (!%p10303_p7)  ;;  %v8290_v12 = vsub.s32 (!%p10303_p7), 1, %v12640_v44 }
 0x4ae   : > { %v7781_v24 = vpop.f32.mrb[11].mxu0  ;;  %v7986_v26 = vpop.f32.mrb[11].mxu1  ;;  %v10663_v16 = vpack.c.bf16 (!%p10303_p7), %v8405_v14, %v8404_v13  ;;  %v8437_v23 = vld [vmem:[%s14473_s3 + $0x118] sm:$0xff] (!%p10303_p7)  ;;  %v8294_v13 = vsub.s32 (!%p10303_p7), 2, %v12640_v44  ;;  %v8298_v14 = vsub.s32 (!%p10303_p7), 3, %v12640_v44 }
 0x4af   : > { %v8243_v28 = vrot.slane %v8235_v19, %v12648_v50  ;;  %v8250_v29 = vrot.slane %v8236_v20, %v12648_v50  ;;  %v8453_v19 = vld [vmem:[%s14473_s3 + $0x198] sm:$0xff] (!%p10303_p7)  ;;  %v8436_v20 = vld [vmem:[%s14473_s3 + $0x110] sm:$0xff] (!%p10303_p7)  ;;  %v8422_v24 = vld [vmem:[%s14473_s3 + $0xa0] sm:$0xff] (!%p10303_p7)  ;;  %10662 = vmatprep.subr.bf16.mxu0 (!%p10303_p7), %v10661_v15  ;;  %v10679_v15 = vpack.c.bf16 (!%p10303_p7), %v8413_v6, %v8412_v5 }
 0x4b0   : > { %v10693_v22 = vpack.c.bf16 (!%p10303_p7), %v8453_v19, %v8452_v18  ;;  %v8423_v26 = vld [vmem:[%s14473_s3 + $0xa8] sm:$0xff] (!%p10303_p7)  ;;  %10664 = vmatpush3.bf16.msra.mxu0 (!%p10303_p7), %v10663_v16  ;;  %v8414_v16 = vld [vmem:[%s14473_s3 + $0x60] sm:$0xff] (!%p10303_p7)  ;;  %v10711_v18 = vpack.c.bf16 (!%p10303_p7), %v8445_v39, %v8444_v48  ;;  %v10681_v19 = vpack.c.bf16 (!%p10303_p7), %v8431_v59, %v8430_v55  ;;  %v8485_v59 = vld [vmem:[%s14473_s3 + $0x298] sm:$0xff] (!%p10303_p7) }
 0x4b1   : > { %v8251_v31 = vcombine.low %v8243_v28, %v8250_v29  ;;  %v10695_v28 = vpack.c.bf16 (!%p10303_p7), %v8437_v23, %v8436_v20  ;;  %v10665_v29 = vpack.c.bf16 (!%p10303_p7), %v8423_v26, %v8422_v24  ;;  %v8415_v20 = vld [vmem:[%s14473_s3 + $0x68] sm:$0xff] (!%p10303_p7)  ;;  %v8446_v23 = vld [vmem:[%s14473_s3 + $0x160] sm:$0xff] (!%p10303_p7) }
 0x4b2   : > { %10694 = vmatprep.subr.bf16.mxu1 (!%p10303_p7), %v10693_v22  ;;  %v10713_v22 = vpack.c.bf16 (!%p10303_p7), %v8463_v21, %v8462_v61  ;;  %v8280_v24 = vld [vmem:[%s14472_s2] sm:$0xff] (!%p10303_p7)  ;;  %v8447_v26 = vld [vmem:[%s14473_s3 + $0x168] sm:$0xff] (!%p10303_p7) }
 0x4b3   : > { %v8265_v32 = vadd.f32 %v8251_v31, %v288_v10  ;;  %v8406_v10 = vld [vmem:[%s14473_s3 + $0x20] sm:$0xff] (!%p10303_p7)  ;;  %v8407_v31 = vld [vmem:[%s14473_s3 + $0x28] sm:$0xff] (!%p10303_p7)  ;;  %10696 = vmatpush3.bf16.msra.mxu1 (!%p10303_p7), %v10695_v28  ;;  %10666 = vmatprep.subr.bf16.mxu0 (!%p10303_p7), %v10665_v29  ;;  %v8432_v28 = vld [vmem:[%s14473_s3 + $0xf0] sm:$0xff] (!%p10303_p7) }
 0x4b4   : > { %v8433_v29 = vld [vmem:[%s14473_s3 + $0xf8] sm:$0xff] (!%p10303_p7)  ;;  %v8466_v6 = vld [vmem:[%s14473_s3 + $0x200] sm:$0xff] (!%p10303_p7)  ;;  %v8499_v21 = vld [vmem:[%s14473_s3 + $0x308] sm:$0xff] (!%p10303_p7) }
 0x4b5   : > { %8269 = vst [vmem:[#allocation2 + $0x10] sm:$0xff] %v8265_v32  ;;  %v8454_v32 = vld [vmem:[%s14473_s3 + $0x1a0] sm:$0xff] (!%p10303_p7) }
 0x4b6   : > { %v8498_v61 = vld [vmem:[%s14473_s3 + $0x300] sm:$0xff] (!%p10303_p7) }
 0x4cb   : > { %v10325_v27 = vpop.f32.mrb[12].mxu0  ;;  %v10347_v4 = vpop.f32.mrb[12].mxu1 }
 0x4cc   : > { %v10326_v34 = vpop.f32.mrb[13].mxu0  ;;  %v10348_v36 = vpop.f32.mrb[13].mxu1 }
 0x4cd   : > { %v10327_v37 = vadd.f32 %v10326_v34, %v10325_v27  ;;  %v10349_v38 = vadd.f32 %v10348_v36, %v10347_v4  ;;  %v10328_v40 = vpop.f32.mrb[14].mxu0  ;;  %v10350_v41 = vpop.f32.mrb[14].mxu1  ;;  %v8455_v27 = vld [vmem:[%s14473_s3 + $0x1a8] sm:$0xff] (!%p10303_p7)  ;;  %v8438_v4 = vld [vmem:[%s14473_s3 + $0x120] sm:$0xff] (!%p10303_p7)  ;;  %v10667_v36 = vpack.c.bf16 (!%p10303_p7), %v8407_v31, %v8406_v10  ;;  %v8287_v10 = vrot.slane (!%p10303_p7), %v8280_v24, %v8286_v9 }
 0x4ce   : > { %v10329_v42 = vpop.f32.mrb[15].mxu0  ;;  %v10351_v17 = vpop.f32.mrb[15].mxu1  ;;  %v8439_v34 = vld [vmem:[%s14473_s3 + $0x128] sm:$0xff] (!%p10303_p7)  ;;  %v8425_v40 = vld [vmem:[%s14473_s3 + $0xb8] sm:$0xff] (!%p10303_p7)  ;;  %v8408_v41 = vld [vmem:[%s14473_s3 + $0x30] sm:$0xff] (!%p10303_p7)  ;;  %v8291_v31 = vrot.slane (!%p10303_p7), %v8280_v24, %v8290_v12 }
 0x4cf   : > { %v8063_v25 = vadd.f32 %v10349_v38, %v10327_v37  ;;  %v10697_v37 = vpack.c.bf16 (!%p10303_p7), %v8455_v27, %v8454_v32  ;;  %v8424_v38 = vld [vmem:[%s14473_s3 + $0xb0] sm:$0xff] (!%p10303_p7)  ;;  %v10699_v42 = vpack.c.bf16 (!%p10303_p7), %v8439_v34, %v8438_v4  ;;  %10668 = vmatpush3.bf16.msra.mxu0 (!%p10303_p7), %v10667_v36  ;;  %v8295_v32 = vrot.slane (!%p10303_p7), %v8280_v24, %v8294_v13  ;;  %v8465_v34 = vld [vmem:[%s14473_s3 + $0x1f8] sm:$0xff] (!%p10303_p7) }
 0x4d0   : > { %v10669_v17 = vpack.c.bf16 (!%p10303_p7), %v8425_v40, %v8424_v38  ;;  %v8299_v27 = vrot.slane (!%p10303_p7), %v8280_v24, %v8298_v14  ;;  %v8464_v4 = vld [vmem:[%s14473_s3 + $0x1f0] sm:$0xff] (!%p10303_p7)  ;;  %v8302_v36 = vsub.s32 (!%p10303_p7), 4, %v12640_v44  ;;  %v8310_v38 = vsub.s32 (!%p10303_p7), 6, %v12640_v44 }
 0x4d1   : > { %10698 = vmatprep.subr.bf16.mxu1 (!%p10303_p7), %v10697_v37  ;;  %v8306_v37 = vsub.s32 (!%p10303_p7), 5, %v12640_v44  ;;  %v8314_v40 = vsub.s32 (!%p10303_p7), 7, %v12640_v44 }
 0x4d2   : > { %10700 = vmatpush3.bf16.msra.mxu1 (!%p10303_p7), %v10699_v42  ;;  %10670 = vmatprep.subr.bf16.mxu0 (!%p10303_p7), %v10669_v17  ;;  %v8336_v42 = vcombine.low (!%p10303_p7), %v8287_v10, %v8291_v31  ;;  %v8337_v17 = vcombine.low (!%p10303_p7), %v8295_v32, %v8299_v27  ;;  %v10755_v10 = vpack.c.bf16 (!%p10303_p7), %v8499_v21, %v8498_v61  ;;  %v8486_v31 = vld [vmem:[%s14473_s3 + $0x2a0] sm:$0xff] (!%p10303_p7)  ;;  %v8487_v32 = vld [vmem:[%s14473_s3 + $0x2a8] sm:$0xff] (!%p10303_p7)  ;;  %v8492_v61 = vld [vmem:[%s14473_s3 + $0x2d0] sm:$0xff] (!%p10303_p7) }
 0x4d3   : > { %v8493_v21 = vld [vmem:[%s14473_s3 + $0x2d8] sm:$0xff] (!%p10303_p7) }
 0x4eb   : > { %v10369_v43 = vpop.f32.mrb[16].mxu0  ;;  %v10391_v30 = vpop.f32.mrb[16].mxu1 }
 0x4ec   : > { %v10370_v46 = vpop.f32.mrb[17].mxu0  ;;  %v10392_v35 = vpop.f32.mrb[17].mxu1 }
 0x4ed   : > { %v10371_v45 = vadd.f32 %v10370_v46, %v10369_v43  ;;  %v10372_v47 = vpop.f32.mrb[18].mxu0  ;;  %v10393_v49 = vadd.f32 %v10392_v35, %v10391_v30  ;;  %v10394_v51 = vpop.f32.mrb[18].mxu1  ;;  %v8456_v43 = vld [vmem:[%s14473_s3 + $0x1b0] sm:$0xff] (!%p10303_p7)  ;;  %v8457_v30 = vld [vmem:[%s14473_s3 + $0x1b8] sm:$0xff] (!%p10303_p7) }
 0x4ee   : > { %v10373_v52 = vpop.f32.mrb[19].mxu0  ;;  %v10395_v53 = vpop.f32.mrb[19].mxu1  ;;  %v10701_v46 = vpack.c.bf16 (!%p10303_p7), %v8457_v30, %v8456_v43  ;;  %v8440_v35 = vld [vmem:[%s14473_s3 + $0x130] sm:$0xff] (!%p10303_p7)  ;;  %v8426_v47 = vld [vmem:[%s14473_s3 + $0xc0] sm:$0xff] (!%p10303_p7)  ;;  %v10685_v43 = vpack.c.bf16 (!%p10303_p7), %v8433_v29, %v8432_v28 }
 0x4ef   : > { %v8103_v54 = vadd.f32 %v10371_v45, %v8063_v25  ;;  %v8409_v25 = vld [vmem:[%s14473_s3 + $0x38] sm:$0xff] (!%p10303_p7)  ;;  %v8458_v52 = vld [vmem:[%s14473_s3 + $0x1c0] sm:$0xff] (!%p10303_p7)  ;;  %v8459_v53 = vld [vmem:[%s14473_s3 + $0x1c8] sm:$0xff] (!%p10303_p7) }
 0x4f0   : > { %v8441_v45 = vld [vmem:[%s14473_s3 + $0x138] sm:$0xff] (!%p10303_p7)  ;;  %v10671_v51 = vpack.c.bf16 (!%p10303_p7), %v8409_v25, %v8408_v41  ;;  %10702 = vmatprep.subr.bf16.mxu1 (!%p10303_p7), %v10701_v46  ;;  %v10683_v41 = vpack.c.bf16 (!%p10303_p7), %v8415_v20, %v8414_v16  ;;  %v10715_v25 = vpack.c.bf16 (!%p10303_p7), %v8447_v26, %v8446_v23  ;;  %v8416_v30 = vld [vmem:[%s14473_s3 + $0x70] sm:$0xff] (!%p10303_p7) }
 0x4f1   : > { %v8143_v56 = vadd.f32 %v10393_v49, %v8103_v54  ;;  %v8427_v49 = vld [vmem:[%s14473_s3 + $0xc8] sm:$0xff] (!%p10303_p7)  ;;  %v10703_v54 = vpack.c.bf16 (!%p10303_p7), %v8441_v45, %v8440_v35  ;;  %v8417_v46 = vld [vmem:[%s14473_s3 + $0x78] sm:$0xff] (!%p10303_p7)  ;;  %v8448_v35 = vld [vmem:[%s14473_s3 + $0x170] sm:$0xff] (!%p10303_p7)  ;;  %v10717_v45 = vpack.c.bf16 (!%p10303_p7), %v8465_v34, %v8464_v4 }
 0x4f2   : > { %10672 = vmatpush3.bf16.msra.mxu0 (!%p10303_p7), %v10671_v51  ;;  %v8449_v51 = vld [vmem:[%s14473_s3 + $0x178] sm:$0xff] (!%p10303_p7)  ;;  %v8468_v23 = vld [vmem:[%s14473_s3 + $0x210] sm:$0xff] (!%p10303_p7) }
 0x4f3   : > { %10704 = vmatpush3.bf16.msra.mxu1 (!%p10303_p7), %v10703_v54  ;;  %v8276_v54 = vld [vmem:[#allocation2] sm:$0xff] (!%p10303_p7)  ;;  %v8517_v20 = vld [vmem:[%s14473_s3 + $0x398] sm:$0xff] (!%p10303_p7)  ;;  %v8500_v4 = vld [vmem:[%s14473_s3 + $0x310] sm:$0xff] (!%p10303_p7) }
 0x4f4   : > { %v8501_v34 = vld [vmem:[%s14473_s3 + $0x318] sm:$0xff] (!%p10303_p7) }
 0x50b   : > { %v10413_v57 = vpop.f32.mrb[20].mxu0 }
 0x50c   : > { %v10414_v58 = vpop.f32.mrb[21].mxu0 }
 0x50d   : > { %v10415_v60 = vadd.f32 %v10414_v58, %v10413_v57  ;;  %v10416_v33 = vpop.f32.mrb[22].mxu0  ;;  %v8410_v57 = vld [vmem:[%s14473_s3 + $0x40] sm:$0xff] (!%p10303_p7)  ;;  %v8411_v58 = vld [vmem:[%s14473_s3 + $0x48] sm:$0xff] (!%p10303_p7) }
 0x50e   : > { %v10417_v62 = vpop.f32.mrb[23].mxu0  ;;  %v10705_v33 = vpack.c.bf16 (!%p10303_p7), %v8459_v53, %v8458_v52  ;;  %v10675_v3 = vpack.c.bf16 (!%p10303_p7), %v8411_v58, %v8410_v57  ;;  %v8482_v52 = vld [vmem:[%s14473_s3 + $0x280] sm:$0xff] (!%p10303_p7)  ;;  %v8483_v53 = vld [vmem:[%s14473_s3 + $0x288] sm:$0xff] (!%p10303_p7)  ;;  %v8303_v58 = vrot.slane (!%p10303_p7), %v8280_v24, %v8302_v36 }
 0x50f   : > { %v8183_v63 = vadd.f32 %v10415_v60, %v8143_v56  ;;  %8275 = sbr.rel (%p10303_p7) target bundleno = 1609 (0x649), region = 48  ;;  %v10673_v56 = vpack.c.bf16 (!%p10303_p7), %v8427_v49, %v8426_v47  ;;  %v8442_v60 = vld [vmem:[%s14473_s3 + $0x140] sm:$0xff] (!%p10303_p7)  ;;  %v8443_v62 = vld [vmem:[%s14473_s3 + $0x148] sm:$0xff] (!%p10303_p7)  ;;  %v8344_v47 = vrot.slane (!%p10303_p7), %v8336_v42, %v12648_v50  ;;  %v8351_v49 = vrot.slane (!%p10303_p7), %v8337_v17, %v12648_v50 }
 0x510   : > { %v10707_v7 = vpack.c.bf16 (!%p10303_p7), %v8443_v62, %v8442_v60  ;;  %10706 = vmatprep.subr.bf16.mxu1 (!%p10303_p7), %v10705_v33  ;;  %v8515_v57 = vld [vmem:[%s14473_s3 + $0x388] sm:$0xff] (!%p10303_p7)  ;;  %v8307_v60 = vrot.slane (!%p10303_p7), %v8280_v24, %v8306_v37  ;;  %v8311_v33 = vrot.slane (!%p10303_p7), %v8280_v24, %v8310_v38  ;;  %v8315_v62 = vrot.slane (!%p10303_p7), %v8280_v24, %v8314_v40  ;;  %v8469_v24 = vld [vmem:[%s14473_s3 + $0x218] sm:$0xff] (!%p10303_p7)  ;;  %v8518_v38 = vld [vmem:[%s14473_s3 + $0x3a0] sm:$0xff] (!%p10303_p7) }
 0x511   : > { %v8258_v1 = vrot.slane %v8183_v63, %v12648_v50  ;;  %v8428_v63 = vld [vmem:[%s14473_s3 + $0xd0] sm:$0xff] (!%p10303_p7)  ;;  %10674 = vmatprep.subr.bf16.mxu0 (!%p10303_p7), %v10673_v56  ;;  %v8514_v56 = vld [vmem:[%s14473_s3 + $0x380] sm:$0xff] (!%p10303_p7)  ;;  %v10727_v37 = vpack.c.bf16 (!%p10303_p7), %v8469_v24, %v8468_v23  ;;  %v8519_v40 = vld [vmem:[%s14473_s3 + $0x3a8] sm:$0xff] (!%p10303_p7)  ;;  %v10741_v24 = vpack.c.bf16 (!%p10303_p7), %v8493_v21, %v8492_v61 }
 0x512   : > { %10676 = vmatpush3.bf16.msra.mxu0 (!%p10303_p7), %v10675_v3  ;;  %10708 = vmatpush3.bf16.msra.mxu1 (!%p10303_p7), %v10707_v7  ;;  %v10753_v5 = vpack.c.bf16 (!%p10303_p7), %v8515_v57, %v8514_v56  ;;  %v8467_v7 = vld [vmem:[%s14473_s3 + $0x208] sm:$0xff] (!%p10303_p7)  ;;  %v8354_v48 = vcombine.low (!%p10303_p7), %v8311_v33, %v8315_v62  ;;  %v8470_v42 = vld [vmem:[%s14473_s3 + $0x220] sm:$0xff] (!%p10303_p7)  ;;  %v8472_v56 = vld [vmem:[%s14473_s3 + $0x230] sm:$0xff] (!%p10303_p7) }
 0x513   : > { %v8266_v2 = vadd.f32 %v8258_v1, %v289_v0  ;;  %v8429_v0 = vld [vmem:[%s14473_s3 + $0xd8] sm:$0xff] (!%p10303_p7)  ;;  %v8460_v1 = vld [vmem:[%s14473_s3 + $0x1d0] sm:$0xff] (!%p10303_p7)  ;;  %v8471_v17 = vld [vmem:[%s14473_s3 + $0x228] sm:$0xff] (!%p10303_p7) }
 0x514   : > { %v10677_v8 = vpack.c.bf16 (!%p10303_p7), %v8429_v0, %v8428_v63  ;;  %v10687_v63 = vpack.c.bf16 (!%p10303_p7), %v8417_v46, %v8416_v30  ;;  %v8352_v0 = vcombine.low (!%p10303_p7), %v8344_v47, %v8351_v49  ;;  %v8368_v28 = vrot.slane (!%p10303_p7), %v8354_v48, %v12648_v50  ;;  %v8488_v30 = vld [vmem:[%s14473_s3 + $0x2b0] sm:$0xff] (!%p10303_p7)  ;;  %v8489_v46 = vld [vmem:[%s14473_s3 + $0x2b8] sm:$0xff] (!%p10303_p7)  ;;  %v8503_v47 = vld [vmem:[%s14473_s3 + $0x328] sm:$0xff] (!%p10303_p7) }
 0x515   : > { %8271 = vst.msk [vmem:[#allocation2 + $0x18] sm:$0x3] %vm8270_vm1, %v8266_v2  ;;  %v8461_v2 = vld [vmem:[%s14473_s3 + $0x1d8] sm:$0xff] (!%p10303_p7)  ;;  %v10731_v49 = vpack.c.bf16 (!%p10303_p7), %v8471_v17, %v8470_v42  ;;  %v8490_v33 = vld [vmem:[%s14473_s3 + $0x2c0] sm:$0xff] (!%p10303_p7)  ;;  %v8491_v62 = vld [vmem:[%s14473_s3 + $0x2c8] sm:$0xff] (!%p10303_p7) }
 0x516   : > { %v10709_v11 = vpack.c.bf16 %v8461_v2, %v8460_v1  ;;  %10678 = vmatprep.subr.bf16.mxu0 %v10677_v8  ;;  %v10719_v1 = vpack.c.bf16 %v8449_v51, %v8448_v35  ;;  %v10721_v2 = vpack.c.bf16 %v8483_v53, %v8482_v52  ;;  %v8398_v3 = vadd.f32 %v8352_v0, %v8276_v54  ;;  %v8520_v51 = vld [vmem:[%s14473_s3 + $0x3b0] sm:$0xff]  ;;  %v8521_v52 = vld [vmem:[%s14473_s3 + $0x3b8] sm:$0xff]  ;;  %v8277_v53 = vld [vmem:[#allocation2 + $0x8] sm:$0xff] }
 0x517   : > { %10680 = vmatpush3.bf16.msra.mxu0 %v10679_v15  ;;  %v8353_v8 = vcombine.low %v8303_v58, %v8307_v60  ;;  %v10761_v35 = vpack.c.bf16 %v8519_v40, %v8518_v38  ;;  %v10733_v54 = vpack.c.bf16 %v8489_v46, %v8488_v30  ;;  %v8473_v57 = vld [vmem:[%s14473_s3 + $0x238] sm:$0xff]  ;;  %v8504_v0 = vld [vmem:[%s14473_s3 + $0x330] sm:$0xff]  ;;  %v8474_v48 = vld [vmem:[%s14473_s3 + $0x240] sm:$0xff] }
 0x518   : > { %10710 = vmatprep.subr.bf16.mxu1 %v10709_v11  ;;  %10682 = vmatprep.subr.bf16.mxu0 %v10681_v19  ;;  %v8620_v39 = vrot.slane %v8398_v3, %v12648_v50  ;;  %v8613_v55 = vcombine.high %v8398_v3, %v8398_v3  ;;  %v8484_v11 = vld [vmem:[%s14473_s3 + $0x290] sm:$0xff]  ;;  %v8525_v23 = vld [vmem:[%s14473_s3 + $0x3d8] sm:$0xff]  ;;  %v8527_v38 = vld [vmem:[%s14473_s3 + $0x3e8] sm:$0xff] }
 0x519   : > { %10712 = vmatpush3.bf16.msra.mxu1 %v10711_v18  ;;  %v10723_v18 = vpack.c.bf16 %v8467_v7, %v8466_v6  ;;  %v8516_v19 = vld [vmem:[%s14473_s3 + $0x390] sm:$0xff]  ;;  %v8361_v26 = vrot.slane %v8353_v8, %v12648_v50  ;;  %v8522_v6 = vld [vmem:[%s14473_s3 + $0x3c0] sm:$0xff]  ;;  %v8523_v7 = vld [vmem:[%s14473_s3 + $0x3c8] sm:$0xff]  ;;  %v10737_v8 = vpack.c.bf16 %v8491_v62, %v8490_v33 }
 0x51a   : > { %10714 = vmatprep.subr.bf16.mxu1 %v10713_v22  ;;  %v8628_v15 = vcombine.high %v8620_v39, %v8620_v39  ;;  %v8627_v16 = vrot.slane %v8613_v55, %v12648_v50  ;;  %v10725_v22 = vpack.c.bf16 %v8485_v59, %v8484_v11  ;;  %v10757_v27 = vpack.c.bf16 %v8517_v20, %v8516_v19  ;;  %v8479_v42 = vld [vmem:[%s14473_s3 + $0x268] sm:$0xff]  ;;  %v8510_v46 = vld [vmem:[%s14473_s3 + $0x360] sm:$0xff]  ;;  %v8513_v33 = vld [vmem:[%s14473_s3 + $0x378] sm:$0xff] }
 0x51b   : > { %10684 = vmatpush3.bf16.msra.mxu0 %v10683_v41  ;;  %v10729_v41 = vpack.c.bf16 %v8487_v32, %v8486_v31  ;;  %v8495_v31 = vld [vmem:[%s14473_s3 + $0x2e8] sm:$0xff] }
 0x51c   : > { %10686 = vmatprep.subr.bf16.mxu0 %v10685_v43  ;;  %8750 = vmatprep.mubr.f32.mxu0 %v8628_v15  ;;  %v8629_v29 = vcombine.high %v8627_v16, %v8627_v16  ;;  %v10759_v43 = vpack.c.bf16 %v8501_v34, %v8500_v4  ;;  %v10769_v15 = vpack.c.bf16 %v8523_v7, %v8522_v6  ;;  %v8509_v4 = vld [vmem:[%s14473_s3 + $0x358] sm:$0xff]  ;;  %v8548_v7 = vld [vmem:[%s14473_s3 + $0x490] sm:$0xff] }
 0x51d   : > { %10716 = vmatpush3.bf16.msra.mxu1 %v10715_v25  ;;  %v8369_v25 = vcombine.low %v8361_v26, %v8368_v28  ;;  %v8476_v26 = vld [vmem:[%s14473_s3 + $0x250] sm:$0xff]  ;;  %v8477_v28 = vld [vmem:[%s14473_s3 + $0x258] sm:$0xff] }
 0x51e   : > { %10718 = vmatprep.subr.bf16.mxu1 %v10717_v45  ;;  %8820 = vmatprep.mubr.f32.mxu1 %v8629_v29  ;;  %v8502_v45 = vld [vmem:[%s14473_s3 + $0x320] sm:$0xff]  ;;  %v10743_v34 = vpack.c.bf16 %v8477_v28, %v8476_v26 }
 0x51f   : > { %10688 = vmatpush3.bf16.msra.mxu0 %v10687_v63  ;;  %v8399_v58 = vadd.f32 %v8369_v25, %v8277_v53  ;;  %v10763_v60 = vpack.c.bf16 %v8503_v47, %v8502_v45  ;;  %v10765_v63 = vpack.c.bf16 %v8521_v52, %v8520_v51  ;;  %v8496_v25 = vld [vmem:[%s14473_s3 + $0x2f0] sm:$0xff]  ;;  %v8481_v53 = vld [vmem:[%s14473_s3 + $0x278] sm:$0xff] }
 0x520   : > { %10722 = vmatprep.subr.bf16.mxu0 %v10721_v2  ;;  %v8528_v47 = vld [vmem:[%s14473_s3 + $0x3f0] sm:$0xff] }
 0x521   : > { %10720 = vmatpush3.bf16.msra.mxu1 %v10719_v1  ;;  %v8505_v1 = vld [vmem:[%s14473_s3 + $0x338] sm:$0xff]  ;;  %v14102_v2 = vrot.slane %v8399_v58, %v12648_v50  ;;  %v8630_v3 = vcombine.high %v8399_v58, %v8399_v58  ;;  %v8480_v52 = vld [vmem:[%s14473_s3 + $0x270] sm:$0xff] }
 0x522   : > { %10754 = vmatprep.subr.bf16.mxu1 %v10753_v5  ;;  %8751 = vmatmul.mubr.f32.vlgmr.msra.gmra.mrb[0].mxu0 %v8620_v39  ;;  %v10735_v5 = vpack.c.bf16 %v8473_v57, %v8472_v56  ;;  %v8475_v39 = vld [vmem:[%s14473_s3 + $0x248] sm:$0xff]  ;;  %v10767_v59 = vpack.c.bf16 %v8505_v1, %v8504_v0  ;;  %v8546_v56 = vld [vmem:[%s14473_s3 + $0x480] sm:$0xff]  ;;  %v10751_v62 = vpack.c.bf16 %v8481_v53, %v8480_v52  ;;  %v8537_v52 = vld [vmem:[%s14473_s3 + $0x438] sm:$0xff] }
 0x523   : > { %10724 = vmatpush3.bf16.msra.mxu0 %v10723_v18  ;;  %v8645_v55 = vcombine.high %v14102_v2, %v14102_v2  ;;  %v14119_v11 = vrot.slane %v8630_v3, %v12648_v50  ;;  %v8507_v18 = vld [vmem:[%s14473_s3 + $0x348] sm:$0xff]  ;;  %v10739_v20 = vpack.c.bf16 %v8475_v39, %v8474_v48  ;;  %v8530_v3 = vld [vmem:[%s14473_s3 + $0x400] sm:$0xff] }
 0x524   : > { %8821 = vmatmul.mubr.f32.vlgmr.msra.gmra.mrb[0].mxu1 %v8627_v16  ;;  %10726 = vmatprep.subr.bf16.mxu0 %v10725_v22  ;;  %v8506_v16 = vld [vmem:[%s14473_s3 + $0x340] sm:$0xff]  ;;  %v8524_v22 = vld [vmem:[%s14473_s3 + $0x3d0] sm:$0xff]  ;;  %v8547_v57 = vld [vmem:[%s14473_s3 + $0x488] sm:$0xff] }
 0x525   : > { %10756 = vmatpush3.bf16.msra.mxu1 %v10755_v10  ;;  %8890 = vmatprep.mubr.f32.mxu0 %v8645_v55  ;;  %v8646_v19 = vcombine.high %v14119_v11, %v14119_v11  ;;  %v10771_v29 = vpack.c.bf16 %v8507_v18, %v8506_v16  ;;  %v8494_v10 = vld [vmem:[%s14473_s3 + $0x2e0] sm:$0xff]  ;;  %v10773_v32 = vpack.c.bf16 %v8525_v23, %v8524_v22  ;;  %v8579_v0 = vld [vmem:[%s14473_s3 + $0x588] sm:$0xff]  ;;  %v8580_v18 = vld [vmem:[%s14473_s3 + $0x590] sm:$0xff] }
 0x526   : > { %10758 = vmatprep.subr.bf16.mxu1 %v10757_v27  ;;  %v8508_v27 = vld [vmem:[%s14473_s3 + $0x350] sm:$0xff]  ;;  %v10745_v40 = vpack.c.bf16 %v8495_v31, %v8494_v10  ;;  %v10785_v1 = vpack.c.bf16 %v8547_v57, %v8546_v56  ;;  %v14228_v48 = vld [vmem:[%s14472_s2 + $0x8] sm:$0x1f]  ;;  %v8562_v55 = vld [vmem:[%s14473_s3 + $0x500] sm:$0xff] }
 0x527   : > { %10728 = vmatpush3.bf16.msra.mxu0 %v10727_v37  ;;  %8960 = vmatprep.mubr.f32.mxu1 %v8646_v19  ;;  %v8526_v37 = vld [vmem:[%s14473_s3 + $0x3e0] sm:$0xff]  ;;  %v10775_v17 = vpack.c.bf16 %v8509_v4, %v8508_v27  ;;  %v8319_v61 = vrot.slane %v14228_v48, %v8286_v9  ;;  %v8323_v21 = vrot.slane %v14228_v48, %v8290_v12  ;;  %v8581_v19 = vld [vmem:[%s14473_s3 + $0x598] sm:$0xff]  ;;  %v8555_v56 = vld [vmem:[%s14473_s3 + $0x4c8] sm:$0xff] }
 0x528   : > { %10730 = vmatprep.subr.bf16.mxu0 %v10729_v41  ;;  %v8478_v41 = vld [vmem:[%s14473_s3 + $0x260] sm:$0xff]  ;;  %v10777_v30 = vpack.c.bf16 %v8527_v38, %v8526_v37  ;;  %v8331_v9 = vrot.slane %v14228_v48, %v8298_v14  ;;  %v8551_v14 = vld [vmem:[%s14473_s3 + $0x4a8] sm:$0xff]  ;;  %v10821_v28 = vpack.c.bf16 %v8581_v19, %v8580_v18  ;;  %v8565_v10 = vld [vmem:[%s14473_s3 + $0x518] sm:$0xff] }
 0x529   : > { %10760 = vmatpush3.bf16.msra.mxu1 %v10759_v43  ;;  %v8497_v43 = vld [vmem:[%s14473_s3 + $0x2f8] sm:$0xff]  ;;  %v10747_v45 = vpack.c.bf16 %v8479_v42, %v8478_v41  ;;  %v8370_v22 = vcombine.low %v8319_v61, %v8323_v21  ;;  %v8582_v27 = vld [vmem:[%s14473_s3 + $0x5a0] sm:$0xff]  ;;  %v8535_v38 = vld [vmem:[%s14473_s3 + $0x428] sm:$0xff] }
 0x52a   : > { %10762 = vmatprep.subr.bf16.mxu1 %v10761_v35  ;;  %v8511_v35 = vld [vmem:[%s14473_s3 + $0x368] sm:$0xff]  ;;  %v10749_v51 = vpack.c.bf16 %v8497_v43, %v8496_v25  ;;  %v8534_v37 = vld [vmem:[%s14473_s3 + $0x420] sm:$0xff]  ;;  %v8552_v42 = vld [vmem:[%s14473_s3 + $0x4b0] sm:$0xff] }
 0x52b   : > { %10732 = vmatpush3.bf16.msra.mxu0 %v10731_v49  ;;  %v8529_v49 = vld [vmem:[%s14473_s3 + $0x3f8] sm:$0xff]  ;;  %v8378_v31 = vrot.slane %v8370_v22, %v12648_v50  ;;  %v8566_v43 = vld [vmem:[%s14473_s3 + $0x520] sm:$0xff]  ;;  %v8588_v19 = vld [vmem:[%s14473_s3 + $0x5d0] sm:$0xff] }
 0x52c   : > { %10734 = vmatprep.subr.bf16.mxu0 %v10733_v54  ;;  %v10779_v54 = vpack.c.bf16 %v8511_v35, %v8510_v46  ;;  %v10781_v58 = vpack.c.bf16 %v8529_v49, %v8528_v47  ;;  %v10795_v46 = vpack.c.bf16 %v8535_v38, %v8534_v37  ;;  %v8584_v35 = vld [vmem:[%s14473_s3 + $0x5b0] sm:$0xff]  ;;  %v8561_v37 = vld [vmem:[%s14473_s3 + $0x4f8] sm:$0xff] }
 0x52d   : > { %10764 = vmatpush3.bf16.msra.mxu1 %v10763_v60  ;;  %v8512_v60 = vld [vmem:[%s14473_s3 + $0x370] sm:$0xff] }
 0x52e   : > { %10766 = vmatprep.subr.bf16.mxu1 %v10765_v63  ;;  %v8578_v63 = vld [vmem:[%s14473_s3 + $0x580] sm:$0xff]  ;;  %v10783_v6 = vpack.c.bf16 %v8513_v33, %v8512_v60  ;;  %v8568_v33 = vld [vmem:[%s14473_s3 + $0x530] sm:$0xff] }
 0x52f   : > { %10736 = vmatpush3.bf16.msra.mxu0 %v10735_v5  ;;  %v8531_v5 = vld [vmem:[%s14473_s3 + $0x408] sm:$0xff]  ;;  %v10817_v39 = vpack.c.bf16 %v8579_v0, %v8578_v63  ;;  %v8586_v0 = vld [vmem:[%s14473_s3 + $0x5c0] sm:$0xff] }
 0x530   : > { %10738 = vmatprep.subr.bf16.mxu0 %v10737_v8  ;;  %v8549_v8 = vld [vmem:[%s14473_s3 + $0x498] sm:$0xff]  ;;  %v10787_v16 = vpack.c.bf16 %v8531_v5, %v8530_v3 }
 0x531   : > { %10768 = vmatpush3.bf16.msra.mxu1 %v10767_v59  ;;  %v8563_v59 = vld [vmem:[%s14473_s3 + $0x508] sm:$0xff]  ;;  %v10789_v12 = vpack.c.bf16 %v8549_v8, %v8548_v7  ;;  %v8538_v7 = vld [vmem:[%s14473_s3 + $0x440] sm:$0xff] }
 0x532   : > { %10770 = vmatprep.subr.bf16.mxu1 %v10769_v15  ;;  %v8327_v15 = vrot.slane %v14228_v48, %v8294_v13  ;;  %v8532_v13 = vld [vmem:[%s14473_s3 + $0x410] sm:$0xff]  ;;  %v10819_v23 = vpack.c.bf16 %v8563_v59, %v8562_v55  ;;  %v8539_v8 = vld [vmem:[%s14473_s3 + $0x448] sm:$0xff]  ;;  %v8557_v59 = vld [vmem:[%s14473_s3 + $0x4d8] sm:$0xff] }
 0x533   : > { %10740 = vmatpush3.bf16.msra.mxu0 %v10739_v20  ;;  %v8533_v20 = vld [vmem:[%s14473_s3 + $0x418] sm:$0xff]  ;;  %v8556_v55 = vld [vmem:[%s14473_s3 + $0x4d0] sm:$0xff]  ;;  %v10803_v18 = vpack.c.bf16 %v8539_v8, %v8538_v7 }
 0x534   : > { %10742 = vmatprep.subr.bf16.mxu0 %v10741_v24  ;;  %v8550_v24 = vld [vmem:[%s14473_s3 + $0x4a0] sm:$0xff]  ;;  %v8371_v26 = vcombine.low %v8327_v15, %v8331_v9  ;;  %v8589_v9 = vld [vmem:[%s14473_s3 + $0x5d8] sm:$0xff] }
 0x535   : > { %10772 = vmatpush3.bf16.msra.mxu1 %v10771_v29  ;;  %v8564_v29 = vld [vmem:[%s14473_s3 + $0x510] sm:$0xff]  ;;  %v8570_v15 = vld [vmem:[%s14473_s3 + $0x540] sm:$0xff] }
 0x536   : > { %10774 = vmatprep.subr.bf16.mxu1 %v10773_v32  ;;  %v10791_v32 = vpack.c.bf16 %v8533_v20, %v8532_v13  ;;  %v8385_v4 = vrot.slane %v8371_v26, %v12648_v50  ;;  %v10823_v41 = vpack.c.bf16 %v8565_v10, %v8564_v29  ;;  %v8540_v13 = vld [vmem:[%s14473_s3 + $0x450] sm:$0xff]  ;;  %v8541_v20 = vld [vmem:[%s14473_s3 + $0x458] sm:$0xff]  ;;  %v8590_v10 = vld [vmem:[%s14473_s3 + $0x5e0] sm:$0xff] }
 0x537   : > { %10744 = vmatpush3.bf16.msra.mxu0 %v10743_v34  ;;  %v10793_v34 = vpack.c.bf16 %v8551_v14, %v8550_v24  ;;  %v8559_v24 = vld [vmem:[%s14473_s3 + $0x4e8] sm:$0xff]  ;;  %v10837_v14 = vpack.c.bf16 %v8589_v9, %v8588_v19  ;;  %v8572_v26 = vld [vmem:[%s14473_s3 + $0x550] sm:$0xff]  ;;  %v10807_v29 = vpack.c.bf16 %v8541_v20, %v8540_v13 }
 0x538   : > { %10746 = vmatprep.subr.bf16.mxu0 %v10745_v40  ;;  %v8278_v40 = vld [vmem:[#allocation2 + $0x10] sm:$0xff] }
 0x539   : > { %10776 = vmatpush3.bf16.msra.mxu1 %v10775_v17  ;;  %v8386_v17 = vcombine.low %v8378_v31, %v8385_v4  ;;  %v8591_v31 = vld [vmem:[%s14473_s3 + $0x5e8] sm:$0xff] }
 0x53a   : > { %10778 = vmatprep.subr.bf16.mxu1 %v10777_v30  ;;  %v8567_v30 = vld [vmem:[%s14473_s3 + $0x528] sm:$0xff]  ;;  %v10841_v38 = vpack.c.bf16 %v8591_v31, %v8590_v10 }
 0x53b   : > { %10748 = vmatpush3.bf16.msra.mxu0 %v10747_v45  ;;  %v8585_v45 = vld [vmem:[%s14473_s3 + $0x5b8] sm:$0xff]  ;;  %v8400_v47 = vadd.f32 %v8386_v17, %v8278_v40  ;;  %v10827_v53 = vpack.c.bf16 %v8567_v30, %v8566_v43  ;;  %v8574_v40 = vld [vmem:[%s14473_s3 + $0x560] sm:$0xff]  ;;  %v8544_v43 = vld [vmem:[%s14473_s3 + $0x470] sm:$0xff] }
 0x53c   : > { %10750 = vmatprep.subr.bf16.mxu0 %v10749_v51  ;;  %v8536_v51 = vld [vmem:[%s14473_s3 + $0x430] sm:$0xff]  ;;  %v10829_v60 = vpack.c.bf16 %v8585_v45, %v8584_v35  ;;  %v8593_v17 = vld [vmem:[%s14473_s3 + $0x5f8] sm:$0xff] }
 0x53d   : > { %10780 = vmatpush3.bf16.msra.mxu1 %v10779_v54  ;;  %v8554_v54 = vld [vmem:[%s14473_s3 + $0x4c0] sm:$0xff]  ;;  %v14319_v57 = vrot.slane %v8400_v47, %v12648_v50  ;;  %v10799_v63 = vpack.c.bf16 %v8537_v52, %v8536_v51  ;;  %v8545_v30 = vld [vmem:[%s14473_s3 + $0x478] sm:$0xff]  ;;  %v8576_v45 = vld [vmem:[%s14473_s3 + $0x570] sm:$0xff] }
 0x53e   : > { %10782 = vmatprep.subr.bf16.mxu1 %v10781_v58  ;;  %v8647_v58 = vcombine.high %v8400_v47, %v8400_v47  ;;  %v8577_v47 = vld [vmem:[%s14473_s3 + $0x578] sm:$0xff]  ;;  %v8594_v51 = vld [vmem:[%s14473_s3 + $0x600] sm:$0xff]  ;;  %v8595_v52 = vld [vmem:[%s14473_s3 + $0x608] sm:$0xff] }
 0x53f   : > { %10752 = vmatpush3.bf16.msra.mxu0 %v10751_v62  ;;  %v8569_v62 = vld [vmem:[%s14473_s3 + $0x538] sm:$0xff]  ;;  %v8662_v3 = vcombine.high %v14319_v57, %v14319_v57 }
 0x540   : > { %10786 = vmatprep.subr.bf16.mxu0 %v10785_v1  ;;  %v8587_v1 = vld [vmem:[%s14473_s3 + $0x5c8] sm:$0xff]  ;;  %v14336_v5 = vrot.slane %v8647_v58, %v12648_v50  ;;  %v8596_v58 = vld [vmem:[%s14473_s3 + $0x610] sm:$0xff] }
 0x541   : > { %10784 = vmatpush3.bf16.msra.mxu1 %v10783_v6  ;;  %v10801_v6 = vpack.c.bf16 %v8555_v56, %v8554_v54  ;;  %v10833_v21 = vpack.c.bf16 %v8587_v1, %v8586_v0  ;;  %v10850_v54 = vpack.c.bf16 %v8595_v52, %v8594_v51  ;;  %v12535_v56 = vmov 0.0|0.0   ;;  %v8598_v0 = vld [vmem:[%s14473_s3 + $0x620] sm:$0xff]  ;;  %v8600_v1 = vld [vmem:[%s14473_s3 + $0x630] sm:$0xff] }
 0x542   : > { %8891 = vmatmul.mubr.f32.vlgmr.msra.gmra.mrb[2].mxu0 %v14102_v2  ;;  %10818 = vmatprep.subr.bf16.mxu1 %v10817_v39  ;;  %v8583_v2 = vld [vmem:[%s14473_s3 + $0x5a8] sm:$0xff]  ;;  %v10831_v39 = vpack.c.bf16 %v8569_v62, %v8568_v33  ;;  %v8663_v61 = vcombine.high %v14336_v5, %v14336_v5  ;;  %v8335_v33 = vrot.slane %v14228_v48, %v8302_v36  ;;  %v8279_v48 = vld [vmem:[#allocation2 + $0x18] sm:$0x3] }
 0x543   : > { %10788 = vmatpush3.bf16.msra.mxu0 %v10787_v16  ;;  %v10825_v25 = vpack.c.bf16 %v8583_v2, %v8582_v27  ;;  %9030 = vmatprep.mubr.f32.mxu0 %v8662_v3  ;;  %v8571_v16 = vld [vmem:[%s14473_s3 + $0x548] sm:$0xff]  ;;  %v8542_v27 = vld [vmem:[%s14473_s3 + $0x460] sm:$0xff]  ;;  %v8601_v3 = vld [vmem:[%s14473_s3 + $0x638] sm:$0xff] }
 0x544   : > { %8961 = vmatmul.mubr.f32.vlgmr.msra.gmra.mrb[2].mxu1 %v14119_v11  ;;  %10790 = vmatprep.subr.bf16.mxu0 %v10789_v12  ;;  %v8553_v11 = vld [vmem:[%s14473_s3 + $0x4b8] sm:$0xff]  ;;  %v10805_v12 = vpack.c.bf16 %v8557_v59, %v8556_v55  ;;  %v10835_v22 = vpack.c.bf16 %v8571_v16, %v8570_v15  ;;  %v8543_v2 = vld [vmem:[%s14473_s3 + $0x468] sm:$0xff]  ;;  %v8393_v44 = vrot.slane %v8335_v33, %v12648_v50 }
 0x545   : > { %10820 = vmatpush3.bf16.msra.mxu1 %v10819_v23  ;;  %v10797_v49 = vpack.c.bf16 %v8553_v11, %v8552_v42  ;;  %9100 = vmatprep.mubr.f32.mxu1 %v8663_v61  ;;  %v8558_v23 = vld [vmem:[%s14473_s3 + $0x4e0] sm:$0xff]  ;;  %v10811_v42 = vpack.c.bf16 %v8543_v2, %v8542_v27  ;;  %v8592_v11 = vld [vmem:[%s14473_s3 + $0x5f0] sm:$0xff] }
 0x546   : > { %10822 = vmatprep.subr.bf16.mxu1 %v10821_v28  ;;  %v8573_v28 = vld [vmem:[%s14473_s3 + $0x558] sm:$0xff]  ;;  %v10845_v35 = vpack.c.bf16 %v8593_v17, %v8592_v11 }
 0x547   : > { %10792 = vmatpush3.bf16.msra.mxu0 %v10791_v32  ;;  %v10809_v32 = vpack.c.bf16 %v8559_v24, %v8558_v23  ;;  %v10839_v4 = vpack.c.bf16 %v8573_v28, %v8572_v26 }
 0x548   : > { %10794 = vmatprep.subr.bf16.mxu0 %v10793_v34  ;;  %v8560_v34 = vld [vmem:[%s14473_s3 + $0x4f0] sm:$0xff] }
 0x549   : > { %10824 = vmatpush3.bf16.msra.mxu1 %v10823_v41  ;;  %v8575_v41 = vld [vmem:[%s14473_s3 + $0x568] sm:$0xff] }
 0x54a   : > { %10826 = vmatprep.subr.bf16.mxu1 %v10825_v25  ;;  %v10813_v25 = vpack.c.bf16 %v8561_v37, %v8560_v34 }
 0x54b   : > { %10796 = vmatpush3.bf16.msra.mxu0 %v10795_v46  ;;  %v10843_v46 = vpack.c.bf16 %v8575_v41, %v8574_v40 }
 0x54c   : > { %10798 = vmatprep.subr.bf16.mxu0 %v10797_v49  ;;  %v10815_v49 = vpack.c.bf16 %v8545_v30, %v8544_v43 }
 0x54d   : > { %10828 = vmatpush3.bf16.msra.mxu1 %v10827_v53  ;;  %v10847_v53 = vpack.c.bf16 %v8577_v47, %v8576_v45 }
 0x54e   : > { %10830 = vmatprep.subr.bf16.mxu1 %v10829_v60  ;;  %v8597_v60 = vld [vmem:[%s14473_s3 + $0x618] sm:$0xff] }
 0x54f   : > { %10800 = vmatpush3.bf16.msra.mxu0 %v10799_v63  ;;  %v10853_v62 = vpack.c.bf16 %v8597_v60, %v8596_v58  ;;  %v12537_v63 = vmov 0.0  }
 0x550   : > { %10802 = vmatprep.subr.bf16.mxu0 %v10801_v6  ;;  %v10859_v6 = vpack.c.bf16 %v8601_v3, %v8600_v1 }
 0x551   : > { %10832 = vmatpush3.bf16.msra.mxu1 %v10831_v39  ;;  %v10304_v39 = vld [vmem:[%s14474_s4] ss:$0 sm:$0xff] }
 0x552   : > { %10834 = vmatprep.subr.bf16.mxu1 %v10833_v21 }
 0x553   : > { %10804 = vmatpush3.bf16.msra.mxu0 %v10803_v18 }
 0x554   : > { %10806 = vmatprep.subr.bf16.mxu0 %v10805_v12 }
 0x555   : > { %10836 = vmatpush3.bf16.msra.mxu1 %v10835_v22 }
 0x556   : > { %10838 = vmatprep.subr.bf16.mxu1 %v10837_v14 }
 0x557   : > { %10808 = vmatpush3.bf16.msra.mxu0 %v10807_v29 }
 0x558   : > { %10810 = vmatprep.subr.bf16.mxu0 %v10809_v32 }
 0x559   : > { %10840 = vmatpush3.bf16.msra.mxu1 %v10839_v4 }
 0x55a   : > { %10842 = vmatprep.subr.bf16.mxu1 %v10841_v38 }
 0x55b   : > { %10812 = vmatpush3.bf16.msra.mxu0 %v10811_v42 }
 0x55c   : > { %10814 = vmatprep.subr.bf16.mxu0 %v10813_v25 }
 0x55d   : > { %10844 = vmatpush3.bf16.msra.mxu1 %v10843_v46 }
 0x55e   : > { %10846 = vmatprep.subr.bf16.mxu1 %v10845_v35 }
 0x55f   : > { %10816 = vmatpush3.bf16.msra.mxu0 %v10815_v49 }
 0x560   : > { %10849 = vmatprep.subr.bf16.mxu0 %v12535_v56 }
 0x561   : > { %10848 = vmatpush3.bf16.msra.mxu1 %v10847_v53 }
 0x562   : > { %9031 = vmatmul.mubr.f32.vlgmr.msra.gmra.mrb[4].mxu0 %v14319_v57  ;;  %v8599_v57 = vld [vmem:[%s14473_s3 + $0x628] sm:$0xff] }
 0x563   : > { %10851 = vmatpush3.bf16.msra.mxu0 %v10850_v54  ;;  %10654 = vmatprep.mubr.msk.f32.mxu0 %vm12536_vm2, %v12537_v63  ;;  %v10856_v36 = vpack.c.bf16 %v8599_v57, %v8598_v0 }
 0x564   : > { %9101 = vmatmul.mubr.f32.vlgmr.msra.gmra.mrb[4].mxu1 %v14336_v5  ;;  %10852 = vmatprep.subr.bf16.mxu0 %v12535_v56  ;;  %v8401_v5 = vadd.f32 %v8393_v44, %v8279_v48 }
 0x566   : > { %v8670_v7 = vrot.slane %v8401_v5, %v12648_v50 }
 0x567   : > { %10854 = vmatpush3.bf16.msra.mxu0 %v10853_v62 }
 0x568   : > { %10855 = vmatprep.subr.bf16.mxu0 %v12535_v56 }
 0x56b   : > { %10857 = vmatpush3.bf16.msra.mxu0 %v10856_v36 }
 0x56c   : > { %10858 = vmatprep.subr.bf16.mxu0 %v12535_v56 }
 0x56f   : > { %10860 = vmatpush3.bf16.msra.mxu0 %v10859_v6 }
 0x572   : > { %10655 = vmatmul.mubr.msk.f32.vlgmr.msra.gmra.mrb[6].mxu0 %vm8683_vm3, %v8670_v7 }
 0x5f5   : > { %v10451_v8 = vpop.f32.mrb[0].mxu0 }
 0x5f6   : > { %v10452_v55 = vpop.f32.mrb[1].mxu0 }
 0x5f7   : > { %v10453_v59 = vadd.f32 %v10452_v55, %v10451_v8  ;;  %v10486_v61 = vpop.f32.mrb[0].mxu1 }
 0x5f8   : > { %v10487_v21 = vpop.f32.mrb[1].mxu1 }
 0x5f9   : > { %v8753_v15 = vadd.f32 %v10453_v59, %v10304_v39  ;;  %v10488_v16 = vadd.f32 %v10487_v21, %v10486_v61 }
 0x5fb   : > { %v8823_v18 = vadd.f32 %v10488_v16, %v8753_v15 }
 0x615   : > { %v10521_v19 = vpop.f32.mrb[2].mxu0 }
 0x616   : > { %v10522_v9 = vpop.f32.mrb[3].mxu0 }
 0x617   : > { %v10523_v12 = vadd.f32 %v10522_v9, %v10521_v19  ;;  %v10556_v13 = vpop.f32.mrb[2].mxu1 }
 0x618   : > { %v10557_v50 = vpop.f32.mrb[3].mxu1 }
 0x619   : > { %v8893_v20 = vadd.f32 %v10523_v12, %v8823_v18  ;;  %v10558_v22 = vadd.f32 %v10557_v50, %v10556_v13 }
 0x61b   : > { %v8963_v23 = vadd.f32 %v10558_v22, %v8893_v20 }
 0x635   : > { %v10591_v24 = vpop.f32.mrb[4].mxu0 }
 0x636   : > { %v10592_v14 = vpop.f32.mrb[5].mxu0 }
 0x637   : > { %v10593_v26 = vadd.f32 %v10592_v14, %v10591_v24  ;;  %v10626_v28 = vpop.f32.mrb[4].mxu1 }
 0x638   : > { %v10627_v29 = vpop.f32.mrb[5].mxu1 }
 0x639   : > { %v9033_v10 = vadd.f32 %v10593_v26, %v8963_v23  ;;  %v10628_v31 = vadd.f32 %v10627_v29, %v10626_v28 }
 0x63b   : > { %v9103_v32 = vadd.f32 %v10628_v31, %v9033_v10 }
 0x645   : > { %v9172_v27 = vpop.f32.mrb[6].mxu0 }
 0x646   : > { %v9173_v2 = vadd.f32 %v9172_v27, %v9103_v32  ;;  %v10656_v4 = vpop.f32.mrb[7].mxu0 }
 0x648   : > { %9177 = vst.msk [vmem:[%s14475_s5] sm:$0x3] %vm9176_vm4, %v9173_v2 }
 0x649 PF: > { %s15_s20 = sadd.s32 1, %s12531_s20   ;;  %s14476_s18 = smov %s12527_s19 }
 0x64a   : > { %p12_p8 = scmp.ge.s32.totalorder %s15_s20, 7   ;;  %s14477_s19 = smov %s14479_s21 }
 0x64c   :  { %14 = sbr.rel (!%p12_p8) target bundleno = 2 (0x2), region = 81 }

</bundles_post_ra>
